<compile_context>
chip_gen: v6e
topology: v6e:2x2x1
jax: 0.10.0
libtpu: 0.0.40
codegen_flags: <defaults>
</compile_context>

<pallas_src>
import functools

import jax
import jax.numpy as jnp
import numpy as np
from jax.experimental import pallas as pl
from jax.experimental.pallas import tpu as pltpu

_PAD = 3  # canvas border = max(pad_3x3, pad_7x7)


def _conv37_kernel(x_ref, ws1_ref, w3b_ref, w7b_ref, w1_ref,
                   scales_ref, shifts_ref, b1_ref,
                   out_ref,
                   h3_can, h7_can, patch_ref, acc_ref,
                   *, H, W, Wp, B, Cin, Cout):
    """B samples per grid step: conv_block_3 || conv_block_7 -> 1x1 conv."""
    HpA = H + 2 * _PAD + 1          # +1 over-reach row (read only by masked lanes)
    S = HpA * Wp                    # per-sample canvas length (flat)
    L = H * Wp                      # per-sample output slab length (flat)
    BL = B * L
    interior = _PAD * Wp + _PAD     # flat offset of canvas (row=PAD, col=PAD)
    f32 = jnp.float32
    cd = patch_ref.dtype            # matmul operand dtype (f32 or bf16)

    # Valid-output-column mask over the whole batch tile; per-sample segments
    # are Wp-aligned (L = H*Wp), so a single modulo works across B*L lanes.
    col = jax.lax.broadcasted_iota(jnp.int32, (1, BL), 1) % Wp
    valid = col < W

    def build_patch(load_tap, K, c_src):
        # im2col: tap (dy, dx) of a KxK stride-1 pad-(K//2) conv is the flat
        # canvas window shifted by dy*Wp + dx from base (_PAD - K//2)*(Wp+1).
        base = (_PAD - K // 2) * (Wp + 1)
        for dy in range(K):
            for dx in range(K):
                r = (dy * K + dx) * c_src
                off = base + dy * Wp + dx
                for s in range(B):
                    patch_ref[r:r + c_src, s * L:(s + 1) * L] = load_tap(s, off)

    def epilogue(acc, stage):       # folded BN affine + ReLU, in f32
        acc = acc * scales_ref[:, stage:stage + 1] + shifts_ref[:, stage:stage + 1]
        return jnp.maximum(acc, 0.0)

    def to_canvas(dst_can, slab):
        # Masked interior slab + two zero padding bands => every canvas element
        # is (re)written each grid step: no cross-step scratch state, so this is
        # safe when the grid is sharded across TensorCores.
        slab = jnp.where(valid, slab, 0.0).astype(dst_can.dtype)
        zpre = jnp.zeros((Cout, interior), dst_can.dtype)
        zsuf = jnp.zeros((Cout, S - interior - L), dst_can.dtype)
        for s in range(B):
            o = s * S
            dst_can[:, o:o + interior] = zpre
            dst_can[:, o + interior:o + interior + L] = slab[:, s * L:(s + 1) * L]
            dst_can[:, o + interior + L:o + S] = zsuf

    # ---- fused first stage: 3x3a and 7x7a share one 49-tap input patch ------
    build_patch(lambda s, off: x_ref[s, :, off:off + L], 7, Cin)
    acc1 = jnp.dot(ws1_ref[...], patch_ref[0:49 * Cin, :],
                   preferred_element_type=f32)                  # (2*Cout, B*L)
    to_canvas(h3_can, epilogue(acc1[0:Cout, :], 0))             # 3x3a -> canvas
    to_canvas(h7_can, epilogue(acc1[Cout:2 * Cout, :], 2))      # 7x7a -> canvas

    # ---- branch 3, second 3x3 conv; fold its 1x1 partial immediately --------
    build_patch(lambda s, off: h3_can[:, s * S + off:s * S + off + L], 3, Cout)
    x3 = epilogue(jnp.dot(w3b_ref[...], patch_ref[0:9 * Cout, :],
                          preferred_element_type=f32), 1)
    acc_ref[...] = jnp.dot(w1_ref[:, 0:Cout], x3.astype(cd),
                           preferred_element_type=f32)          # shrink x3 live range

    # ---- branch 7, second 7x7 conv -------------------------------------------
    build_patch(lambda s, off: h7_can[:, s * S + off:s * S + off + L], 7, Cout)
    x7 = epilogue(jnp.dot(w7b_ref[...], patch_ref[0:49 * Cout, :],
                          preferred_element_type=f32), 3)

    # final 1x1 on concat(x3, x7) == sum of the two partial matmuls (no concat)
    out = acc_ref[...] + jnp.dot(w1_ref[:, Cout:2 * Cout], x7.astype(cd),
                                 preferred_element_type=f32) + b1_ref[...]
    for s in range(B):                                          # lane-dense stores
        out_ref[s] = out[:, s * L:(s + 1) * L].astype(out_ref.dtype)


def conv_3_7_forward(x, p, *, compute_dtype=jnp.float32, b_tile=None):
    """x: (N, Cin, H, W) NCHW (PyTorch layout). Returns (N, Cout, H, W).

    compute_dtype=jnp.bfloat16 is recommended on v6e/v7x at real channel
    counts (MXU-native operands, half the canvas/patch VMEM & ld/st traffic);
    the BN/ReLU epilogue stays f32.
    """
    N, Cin, H, W = x.shape
    Cout = p["w3a"].shape[-1]

    # Canvas row stride: >= W + 2*PAD, rounded up (when cheap) so L = H*Wp is
    # a multiple of 128 -> lane-dense, unmasked vector stores on the output.
    Wp = W + 2 * _PAD
    for cand in range(Wp, Wp + 64):
        if (H * cand) % 128 == 0:
            Wp = cand
            break
    HpA = H + 2 * _PAD + 1
    S, L = HpA * Wp, H * Wp

    # Batch tile: biggest divisor of N (<= 8) that still leaves >= 2 grid
    # steps, so both v7x TensorCores get parallel work.
    if b_tile is None:
        divs = [b for b in range(1, min(N, 8) + 1) if N % b == 0]
        par = [b for b in divs if N // b >= 2]
        b_tile = max(par) if par else max(divs)
    assert N % b_tile == 0, (N, b_tile)
    grid_n = N // b_tile

    def wflat(w):                      # (K,K,Ci,Co) HWIO -> (Co, K*K*Ci)
        K, _, Ci, Co = w.shape
        return w.transpose(3, 0, 1, 2).reshape(Co, K * K * Ci).astype(compute_dtype)

    def fold(bn, bias, eps=1e-5):      # eval-mode BN; conv bias folded in
        gamma, beta, mean, var = bn
        scale = gamma / jnp.sqrt(var + eps)
        return scale, beta + (bias - mean) * scale

    s3a, t3a = fold(p["bn3a"], p["b3a"])
    s3b, t3b = fold(p["bn3b"], p["b3b"])
    s7a, t7a = fold(p["bn7a"], p["b7a"])
    s7b, t7b = fold(p["bn7b"], p["b7b"])
    scales = jnp.stack([s3a, s3b, s7a, s7b], axis=1).astype(jnp.float32)  # (Cout,4)
    shifts = jnp.stack([t3a, t3b, t7a, t7b], axis=1).astype(jnp.float32)  # (Cout,4)
    b1 = p["b1"].reshape(Cout, 1).astype(jnp.float32)

    # Fused first-stage weight: w3a scattered into the central 3x3 taps of a
    # 7x7 grid (pad-1 3x3 tap (dy,dx) == pad-3 7x7 tap (dy+2,dx+2)), stacked on
    # top of w7a -> one patch build + one matmul for both first-stage convs.
    w3a_as7 = jnp.zeros((7, 7, Cin, Cout), p["w3a"].dtype).at[2:5, 2:5].set(p["w3a"])
    ws1 = jnp.concatenate([wflat(w3a_as7), wflat(p["w7a"])], axis=0)  # (2*Cout, 49*Cin)

    # Wrapper-side padded input canvas (one XLA pad; fuses): replaces the
    # per-row in-kernel input placement and the input scratch canvas.
    x_can = jnp.pad(x, ((0, 0), (0, 0), (_PAD, HpA - H - _PAD),
                        (_PAD, Wp - W - _PAD)))
    x_can = x_can.reshape(N, Cin, S).astype(compute_dtype)

    kernel = functools.partial(_conv37_kernel, H=H, W=W, Wp=Wp, B=b_tile,
                               Cin=Cin, Cout=Cout)
    # TODO(synk): for real CRNet sizes (large H/W/C), add a row-tile grid axis
    # with (K-1)-row halos so canvases + patch fit v7x's 64 MiB VMEM (32 MiB
    # default scoped) and set vmem_limit_bytes explicitly.
    out_flat = pl.pallas_call(
        kernel,
        out_shape=jax.ShapeDtypeStruct((N, Cout, L), x.dtype),
        grid=(grid_n,),
        in_specs=[
            pl.BlockSpec((b_tile, Cin, S), lambda n: (n, 0, 0)),
            pl.BlockSpec((2 * Cout, 49 * Cin), lambda n: (0, 0)),
            pl.BlockSpec((Cout, 9 * Cout), lambda n: (0, 0)),
            pl.BlockSpec((Cout, 49 * Cout), lambda n: (0, 0)),
            pl.BlockSpec((Cout, 2 * Cout), lambda n: (0, 0)),
            pl.BlockSpec((Cout, 4), lambda n: (0, 0)),
            pl.BlockSpec((Cout, 4), lambda n: (0, 0)),
            pl.BlockSpec((Cout, 1), lambda n: (0, 0)),
        ],
        out_specs=pl.BlockSpec((b_tile, Cout, L), lambda n: (n, 0, 0)),
        scratch_shapes=[
            pltpu.VMEM((Cout, b_tile * S), compute_dtype),              # branch-3 canvas
            pltpu.VMEM((Cout, b_tile * S), compute_dtype),              # branch-7 canvas
            pltpu.VMEM((49 * max(Cin, Cout), b_tile * L), compute_dtype),  # im2col patch
            pltpu.VMEM((Cout, b_tile * L), jnp.float32),                # 1x1 partial acc
        ],
        compiler_params=pltpu.CompilerParams(
            dimension_semantics=("parallel",)),
    )(x_can, ws1, wflat(p["w3b"]), wflat(p["w7b"]), wflat(p["w1"]),
      scales, shifts, b1)

    # Layout plumbing: drop the Wp-W padding columns.
    # TODO(synk): at real sizes fold this slice into the consumer so XLA fuses
    # it instead of materializing a second full activation in HBM.
    return out_flat.reshape(N, Cout, H, Wp)[:, :, :, :W]


# ---------------- deterministic synthetic parameters ----------------
def init_params(key, ch_in, ch_out):
    ks = jax.random.split(key, 20)
    p = {}

    def conv_w(k, kh, ci, co):
        return jax.random.normal(k, (kh, kh, ci, co), jnp.float32) * 0.1

    def bn(k):
        k1, k2, k3, k4 = jax.random.split(k, 4)
        gamma = jax.random.uniform(k1, (ch_out,), jnp.float32, 0.5, 1.5)
        beta = jax.random.normal(k2, (ch_out,), jnp.float32) * 0.1
        mean = jax.random.normal(k3, (ch_out,), jnp.float32) * 0.1
        var = jax.random.uniform(k4, (ch_out,), jnp.float32, 0.5, 1.5)
        return gamma, beta, mean, var

    p["w3a"] = conv_w(ks[0], 3, ch_in, ch_out)
    p["b3a"] = jax.random.normal(ks[1], (ch_out,), jnp.float32) * 0.1
    p["bn3a"] = bn(ks[2])
    p["w3b"] = conv_w(ks[3], 3, ch_out, ch_out)
    p["b3b"] = jax.random.normal(ks[4], (ch_out,), jnp.float32) * 0.1
    p["bn3b"] = bn(ks[5])
    p["w7a"] = conv_w(ks[6], 7, ch_in, ch_out)
    p["b7a"] = jax.random.normal(ks[7], (ch_out,), jnp.float32) * 0.1
    p["bn7a"] = bn(ks[8])
    p["w7b"] = conv_w(ks[9], 7, ch_out, ch_out)
    p["b7b"] = jax.random.normal(ks[10], (ch_out,), jnp.float32) * 0.1
    p["bn7b"] = bn(ks[11])
    p["w1"] = conv_w(ks[12], 1, ch_out * 2, ch_out)
    p["b1"] = jax.random.normal(ks[13], (ch_out,), jnp.float32) * 0.1
    return p


# ---------------- pure-JAX reference (for verification) ----------------
def _ref_conv(x, w, b, pad):
    y = jax.lax.conv_general_dilated(
        x, w, window_strides=(1, 1), padding=[(pad, pad), (pad, pad)],
        dimension_numbers=("NCHW", "HWIO", "NCHW"),
        precision=jax.lax.Precision.HIGHEST)
    return y + b.reshape(1, -1, 1, 1)


def conv_3_7_reference(x, p):
    def stage(x, w, b, bn, pad, relu):
        y = _ref_conv(x, w, b, pad)
        if bn is not None:
            gamma, beta, mean, var = bn
            scale = gamma / jnp.sqrt(var + 1e-5)
            shift = beta - mean * scale
            y = y * scale.reshape(1, -1, 1, 1) + shift.reshape(1, -1, 1, 1)
        if relu:
            y = jnp.maximum(y, 0.0)
        return y

    h = stage(x, p["w3a"], p["b3a"], p["bn3a"], 1, True)
    x3 = stage(h, p["w3b"], p["b3b"], p["bn3b"], 1, True)
    h = stage(x, p["w7a"], p["b7a"], p["bn7a"], 3, True)
    x7 = stage(h, p["w7b"], p["b7b"], p["bn7b"], 3, True)
    cat = jnp.concatenate([x3, x7], axis=1)
    return stage(cat, p["w1"], p["b1"], None, 0, False)


if __name__ == "__main__":
    key = jax.random.PRNGKey(0)
    kx, kp = jax.random.split(key)

    # Small shapes; N=4 exercises both batch tiling (B_TILE=2) and a multi-step
    # parallel grid (grid=2, one unit per v7x TensorCore).
    N, H, W = 4, 16, 16
    ch_in, ch_out = 4, 8

    x = jax.random.normal(kx, (N, ch_in, H, W), jnp.float32)   # NCHW
    params = init_params(kp, ch_in, ch_out)

    out = jax.block_until_ready(conv_3_7_forward(x, params))
    ref = jax.block_until_ready(conv_3_7_reference(x, params))

    assert out.shape == (N, ch_out, H, W), out.shape
    # Tolerance allows for the MXU's default f32-matmul precision (bf16 passes)
    # vs. the HIGHEST-precision XLA conv reference; structural bugs (tap
    # offsets, BN fold, masking) would produce O(1) errors and still fail.
    np.testing.assert_allclose(np.asarray(out), np.asarray(ref),
                               rtol=3e-2, atol=3e-2)
    print("KERNEL_OK")
</pallas_src>

<mosaic_0001>
module attributes {stable_mosaic.version = 11 : i64} {
  func.func @_conv37_kernel(%arg0: i32, %arg1: memref<2x4x552xf32, #tpu.memory_space<vmem>>, %arg2: memref<16x196xf32, #tpu.memory_space<vmem>>, %arg3: memref<8x72xf32, #tpu.memory_space<vmem>>, %arg4: memref<8x392xf32, #tpu.memory_space<vmem>>, %arg5: memref<8x16xf32, #tpu.memory_space<vmem>>, %arg6: memref<8x4xf32, #tpu.memory_space<vmem>>, %arg7: memref<8x4xf32, #tpu.memory_space<vmem>>, %arg8: memref<8x1xf32, #tpu.memory_space<vmem>>, %arg9: memref<2x8x384xf32, #tpu.memory_space<vmem>>, %arg10: memref<8x1104xf32, #tpu.memory_space<vmem>>, %arg11: memref<8x1104xf32, #tpu.memory_space<vmem>>, %arg12: memref<392x768xf32, #tpu.memory_space<vmem>>, %arg13: memref<8x768xf32, #tpu.memory_space<vmem>>) attributes {dimension_semantics = [#tpu.dimension_semantics<parallel>], iteration_bounds = array<i64: 2>, scalar_prefetch = 0 : i64, scratch_operands = 4 : i64, tpu.core_type = #tpu.core_type<tc>, window_params = [{transform_indices = @transform_0, window_bounds = array<i64: 2, 4, 552>}, {pipeline_mode = #tpu.pipeline_mode<synchronous>, transform_indices = @transform_1, window_bounds = array<i64: 16, 196>}, {pipeline_mode = #tpu.pipeline_mode<synchronous>, transform_indices = @transform_2, window_bounds = array<i64: 8, 72>}, {pipeline_mode = #tpu.pipeline_mode<synchronous>, transform_indices = @transform_3, window_bounds = array<i64: 8, 392>}, {pipeline_mode = #tpu.pipeline_mode<synchronous>, transform_indices = @transform_4, window_bounds = array<i64: 8, 16>}, {pipeline_mode = #tpu.pipeline_mode<synchronous>, transform_indices = @transform_5, window_bounds = array<i64: 8, 4>}, {pipeline_mode = #tpu.pipeline_mode<synchronous>, transform_indices = @transform_6, window_bounds = array<i64: 8, 4>}, {pipeline_mode = #tpu.pipeline_mode<synchronous>, transform_indices = @transform_7, window_bounds = array<i64: 8, 1>}, {transform_indices = @transform_8, window_bounds = array<i64: 2, 8, 384>}]} {
    %0 = tpu.iota {dimensions = array<i32: 1>} : vector<1x768xi32>
    %c24_i32 = arith.constant 24 : i32
    %c0_i32 = arith.constant 0 : i32
    %1 = arith.cmpi eq, %c24_i32, %c0_i32 : i32
    %c1_i32 = arith.constant 1 : i32
    %2 = arith.select %1, %c1_i32, %c24_i32 : i32
    %3 = vector.broadcast %2 : i32 to vector<1x768xi32>
    %4 = arith.remsi %0, %3 : vector<1x768xi32>
    %c0_i32_0 = arith.constant 0 : i32
    %5 = vector.broadcast %c0_i32_0 : i32 to vector<1x768xi32>
    %6 = arith.cmpi ne, %4, %5 : vector<1x768xi32>
    %c0_i32_1 = arith.constant 0 : i32
    %7 = vector.broadcast %c0_i32_1 : i32 to vector<1x768xi32>
    %8 = arith.cmpi slt, %4, %7 : vector<1x768xi32>
    %c0_i32_2 = arith.constant 0 : i32
    %9 = arith.cmpi slt, %2, %c0_i32_2 : i32
    %10 = vector.broadcast %9 : i1 to vector<1x768xi1>
    %11 = vector.broadcast %10 : vector<1x768xi1> to vector<1x768xi1>
    %12 = arith.xori %8, %11 : vector<1x768xi1>
    %13 = arith.andi %12, %6 : vector<1x768xi1>
    %14 = vector.broadcast %2 : i32 to vector<1x768xi32>
    %15 = arith.addi %4, %14 : vector<1x768xi32>
    %16 = arith.select %13, %15, %4 : vector<1x768xi1>, vector<1x768xi32>
    %c16_i32 = arith.constant 16 : i32
    %17 = vector.broadcast %c16_i32 : i32 to vector<1x768xi32>
    %18 = arith.cmpi slt, %16, %17 : vector<1x768xi32>
    %c0 = arith.constant 0 : index
    %c0_3 = arith.constant 0 : index
    %c0_4 = arith.constant 0 : index
    %19 = vector.load %arg1[%c0, %c0_3, %c0_4] : memref<2x4x552xf32, #tpu.memory_space<vmem>>, vector<1x4x384xf32>
    %20 = vector.shape_cast %19 : vector<1x4x384xf32> to vector<4x384xf32>
    %c0_5 = arith.constant 0 : index
    %c0_6 = arith.constant 0 : index
    %21 = vector.load %arg12[%c0_5, %c0_6] : memref<392x768xf32, #tpu.memory_space<vmem>>, vector<4x384xf32>
    tpu.vector_store %arg12[%c0_5, %c0_6], %20 {strides = array<i32>} : memref<392x768xf32, #tpu.memory_space<vmem>>, vector<4x384xf32>,
    %c1 = arith.constant 1 : index
    %c0_7 = arith.constant 0 : index
    %c0_8 = arith.constant 0 : index
    %22 = vector.load %arg1[%c1, %c0_7, %c0_8] : memref<2x4x552xf32, #tpu.memory_space<vmem>>, vector<1x4x384xf32>
    %23 = vector.shape_cast %22 : vector<1x4x384xf32> to vector<4x384xf32>
    %c0_9 = arith.constant 0 : index
    %c384 = arith.constant 384 : index
    %24 = vector.load %arg12[%c0_9, %c384] : memref<392x768xf32, #tpu.memory_space<vmem>>, vector<4x384xf32>
    tpu.vector_store %arg12[%c0_9, %c384], %23 {strides = array<i32>} : memref<392x768xf32, #tpu.memory_space<vmem>>, vector<4x384xf32>,
    %c0_10 = arith.constant 0 : index
    %c0_11 = arith.constant 0 : index
    %c1_12 = arith.constant 1 : index
    %25 = vector.load %arg1[%c0_10, %c0_11, %c1_12] : memref<2x4x552xf32, #tpu.memory_space<vmem>>, vector<1x4x384xf32>
    %26 = vector.shape_cast %25 : vector<1x4x384xf32> to vector<4x384xf32>
    %c4 = arith.constant 4 : index
    %c0_13 = arith.constant 0 : index
    %27 = vector.load %arg12[%c4, %c0_13] : memref<392x768xf32, #tpu.memory_space<vmem>>, vector<4x384xf32>
    tpu.vector_store %arg12[%c4, %c0_13], %26 {strides = array<i32>} : memref<392x768xf32, #tpu.memory_space<vmem>>, vector<4x384xf32>,
    %c1_14 = arith.constant 1 : index
    %c0_15 = arith.constant 0 : index
    %c1_16 = arith.constant 1 : index
    %28 = vector.load %arg1[%c1_14, %c0_15, %c1_16] : memref<2x4x552xf32, #tpu.memory_space<vmem>>, vector<1x4x384xf32>
    %29 = vector.shape_cast %28 : vector<1x4x384xf32> to vector<4x384xf32>
    %c4_17 = arith.constant 4 : index
    %c384_18 = arith.constant 384 : index
    %30 = vector.load %arg12[%c4_17, %c384_18] : memref<392x768xf32, #tpu.memory_space<vmem>>, vector<4x384xf32>
    tpu.vector_store %arg12[%c4_17, %c384_18], %29 {strides = array<i32>} : memref<392x768xf32, #tpu.memory_space<vmem>>, vector<4x384xf32>,
    %c0_19 = arith.constant 0 : index
    %c0_20 = arith.constant 0 : index
    %c2 = arith.constant 2 : index
    %31 = vector.load %arg1[%c0_19, %c0_20, %c2] : memref<2x4x552xf32, #tpu.memory_space<vmem>>, vector<1x4x384xf32>
    %32 = vector.shape_cast %31 : vector<1x4x384xf32> to vector<4x384xf32>
    %c8 = arith.constant 8 : index
    %c0_21 = arith.constant 0 : index
    %33 = vector.load %arg12[%c8, %c0_21] : memref<392x768xf32, #tpu.memory_space<vmem>>, vector<4x384xf32>
    tpu.vector_store %arg12[%c8, %c0_21], %32 {strides = array<i32>} : memref<392x768xf32, #tpu.memory_space<vmem>>, vector<4x384xf32>,
    %c1_22 = arith.constant 1 : index
    %c0_23 = arith.constant 0 : index
    %c2_24 = arith.constant 2 : index
    %34 = vector.load %arg1[%c1_22, %c0_23, %c2_24] : memref<2x4x552xf32, #tpu.memory_space<vmem>>, vector<1x4x384xf32>
    %35 = vector.shape_cast %34 : vector<1x4x384xf32> to vector<4x384xf32>
    %c8_25 = arith.constant 8 : index
    %c384_26 = arith.constant 384 : index
    %36 = vector.load %arg12[%c8_25, %c384_26] : memref<392x768xf32, #tpu.memory_space<vmem>>, vector<4x384xf32>
    tpu.vector_store %arg12[%c8_25, %c384_26], %35 {strides = array<i32>} : memref<392x768xf32, #tpu.memory_space<vmem>>, vector<4x384xf32>,
    %c0_27 = arith.constant 0 : index
    %c0_28 = arith.constant 0 : index
    %c3 = arith.constant 3 : index
    %37 = vector.load %arg1[%c0_27, %c0_28, %c3] : memref<2x4x552xf32, #tpu.memory_space<vmem>>, vector<1x4x384xf32>
    %38 = vector.shape_cast %37 : vector<1x4x384xf32> to vector<4x384xf32>
    %c12 = arith.constant 12 : index
    %c0_29 = arith.constant 0 : index
    %39 = vector.load %arg12[%c12, %c0_29] : memref<392x768xf32, #tpu.memory_space<vmem>>, vector<4x384xf32>
    tpu.vector_store %arg12[%c12, %c0_29], %38 {strides = array<i32>} : memref<392x768xf32, #tpu.memory_space<vmem>>, vector<4x384xf32>,
    %c1_30 = arith.constant 1 : index
    %c0_31 = arith.constant 0 : index
    %c3_32 = arith.constant 3 : index
    %40 = vector.load %arg1[%c1_30, %c0_31, %c3_32] : memref<2x4x552xf32, #tpu.memory_space<vmem>>, vector<1x4x384xf32>
    %41 = vector.shape_cast %40 : vector<1x4x384xf32> to vector<4x384xf32>
    %c12_33 = arith.constant 12 : index
    %c384_34 = arith.constant 384 : index
    %42 = vector.load %arg12[%c12_33, %c384_34] : memref<392x768xf32, #tpu.memory_space<vmem>>, vector<4x384xf32>
    tpu.vector_store %arg12[%c12_33, %c384_34], %41 {strides = array<i32>} : memref<392x768xf32, #tpu.memory_space<vmem>>, vector<4x384xf32>,
    %c0_35 = arith.constant 0 : index
    %c0_36 = arith.constant 0 : index
    %c4_37 = arith.constant 4 : index
    %43 = vector.load %arg1[%c0_35, %c0_36, %c4_37] : memref<2x4x552xf32, #tpu.memory_space<vmem>>, vector<1x4x384xf32>
    %44 = vector.shape_cast %43 : vector<1x4x384xf32> to vector<4x384xf32>
    %c16 = arith.constant 16 : index
    %c0_38 = arith.constant 0 : index
    %45 = vector.load %arg12[%c16, %c0_38] : memref<392x768xf32, #tpu.memory_space<vmem>>, vector<4x384xf32>
    tpu.vector_store %arg12[%c16, %c0_38], %44 {strides = array<i32>} : memref<392x768xf32, #tpu.memory_space<vmem>>, vector<4x384xf32>,
    %c1_39 = arith.constant 1 : index
    %c0_40 = arith.constant 0 : index
    %c4_41 = arith.constant 4 : index
    %46 = vector.load %arg1[%c1_39, %c0_40, %c4_41] : memref<2x4x552xf32, #tpu.memory_space<vmem>>, vector<1x4x384xf32>
    %47 = vector.shape_cast %46 : vector<1x4x384xf32> to vector<4x384xf32>
    %c16_42 = arith.constant 16 : index
    %c384_43 = arith.constant 384 : index
    %48 = vector.load %arg12[%c16_42, %c384_43] : memref<392x768xf32, #tpu.memory_space<vmem>>, vector<4x384xf32>
    tpu.vector_store %arg12[%c16_42, %c384_43], %47 {strides = array<i32>} : memref<392x768xf32, #tpu.memory_space<vmem>>, vector<4x384xf32>,
    %c0_44 = arith.constant 0 : index
    %c0_45 = arith.constant 0 : index
    %c5 = arith.constant 5 : index
    %49 = vector.load %arg1[%c0_44, %c0_45, %c5] : memref<2x4x552xf32, #tpu.memory_space<vmem>>, vector<1x4x384xf32>
    %50 = vector.shape_cast %49 : vector<1x4x384xf32> to vector<4x384xf32>
    %c20 = arith.constant 20 : index
    %c0_46 = arith.constant 0 : index
    %51 = vector.load %arg12[%c20, %c0_46] : memref<392x768xf32, #tpu.memory_space<vmem>>, vector<4x384xf32>
    tpu.vector_store %arg12[%c20, %c0_46], %50 {strides = array<i32>} : memref<392x768xf32, #tpu.memory_space<vmem>>, vector<4x384xf32>,
    %c1_47 = arith.constant 1 : index
    %c0_48 = arith.constant 0 : index
    %c5_49 = arith.constant 5 : index
    %52 = vector.load %arg1[%c1_47, %c0_48, %c5_49] : memref<2x4x552xf32, #tpu.memory_space<vmem>>, vector<1x4x384xf32>
    %53 = vector.shape_cast %52 : vector<1x4x384xf32> to vector<4x384xf32>
    %c20_50 = arith.constant 20 : index
    %c384_51 = arith.constant 384 : index
    %54 = vector.load %arg12[%c20_50, %c384_51] : memref<392x768xf32, #tpu.memory_space<vmem>>, vector<4x384xf32>
    tpu.vector_store %arg12[%c20_50, %c384_51], %53 {strides = array<i32>} : memref<392x768xf32, #tpu.memory_space<vmem>>, vector<4x384xf32>,
    %c0_52 = arith.constant 0 : index
    %c0_53 = arith.constant 0 : index
    %c6 = arith.constant 6 : index
    %55 = vector.load %arg1[%c0_52, %c0_53, %c6] : memref<2x4x552xf32, #tpu.memory_space<vmem>>, vector<1x4x384xf32>
    %56 = vector.shape_cast %55 : vector<1x4x384xf32> to vector<4x384xf32>
    %c24 = arith.constant 24 : index
    %c0_54 = arith.constant 0 : index
    %57 = vector.load %arg12[%c24, %c0_54] : memref<392x768xf32, #tpu.memory_space<vmem>>, vector<4x384xf32>
    tpu.vector_store %arg12[%c24, %c0_54], %56 {strides = array<i32>} : memref<392x768xf32, #tpu.memory_space<vmem>>, vector<4x384xf32>,
    %c1_55 = arith.constant 1 : index
    %c0_56 = arith.constant 0 : index
    %c6_57 = arith.constant 6 : index
    %58 = vector.load %arg1[%c1_55, %c0_56, %c6_57] : memref<2x4x552xf32, #tpu.memory_space<vmem>>, vector<1x4x384xf32>
    %59 = vector.shape_cast %58 : vector<1x4x384xf32> to vector<4x384xf32>
    %c24_58 = arith.constant 24 : index
    %c384_59 = arith.constant 384 : index
    %60 = vector.load %arg12[%c24_58, %c384_59] : memref<392x768xf32, #tpu.memory_space<vmem>>, vector<4x384xf32>
    tpu.vector_store %arg12[%c24_58, %c384_59], %59 {strides = array<i32>} : memref<392x768xf32, #tpu.memory_space<vmem>>, vector<4x384xf32>,
    %c0_60 = arith.constant 0 : index
    %c0_61 = arith.constant 0 : index
    %c24_62 = arith.constant 24 : index
    %61 = vector.load %arg1[%c0_60, %c0_61, %c24_62] : memref<2x4x552xf32, #tpu.memory_space<vmem>>, vector<1x4x384xf32>
    %62 = vector.shape_cast %61 : vector<1x4x384xf32> to vector<4x384xf32>
    %c28 = arith.constant 28 : index
    %c0_63 = arith.constant 0 : index
    %63 = vector.load %arg12[%c28, %c0_63] : memref<392x768xf32, #tpu.memory_space<vmem>>, vector<4x384xf32>
    tpu.vector_store %arg12[%c28, %c0_63], %62 {strides = array<i32>} : memref<392x768xf32, #tpu.memory_space<vmem>>, vector<4x384xf32>,
    %c1_64 = arith.constant 1 : index
    %c0_65 = arith.constant 0 : index
    %c24_66 = arith.constant 24 : index
    %64 = vector.load %arg1[%c1_64, %c0_65, %c24_66] : memref<2x4x552xf32, #tpu.memory_space<vmem>>, vector<1x4x384xf32>
    %65 = vector.shape_cast %64 : vector<1x4x384xf32> to vector<4x384xf32>
    %c28_67 = arith.constant 28 : index
    %c384_68 = arith.constant 384 : index
    %66 = vector.load %arg12[%c28_67, %c384_68] : memref<392x768xf32, #tpu.memory_space<vmem>>, vector<4x384xf32>
    tpu.vector_store %arg12[%c28_67, %c384_68], %65 {strides = array<i32>} : memref<392x768xf32, #tpu.memory_space<vmem>>, vector<4x384xf32>,
    %c0_69 = arith.constant 0 : index
    %c0_70 = arith.constant 0 : index
    %c25 = arith.constant 25 : index
    %67 = vector.load %arg1[%c0_69, %c0_70, %c25] : memref<2x4x552xf32, #tpu.memory_space<vmem>>, vector<1x4x384xf32>
    %68 = vector.shape_cast %67 : vector<1x4x384xf32> to vector<4x384xf32>
    %c32 = arith.constant 32 : index
    %c0_71 = arith.constant 0 : index
    %69 = vector.load %arg12[%c32, %c0_71] : memref<392x768xf32, #tpu.memory_space<vmem>>, vector<4x384xf32>
    tpu.vector_store %arg12[%c32, %c0_71], %68 {strides = array<i32>} : memref<392x768xf32, #tpu.memory_space<vmem>>, vector<4x384xf32>,
    %c1_72 = arith.constant 1 : index
    %c0_73 = arith.constant 0 : index
    %c25_74 = arith.constant 25 : index
    %70 = vector.load %arg1[%c1_72, %c0_73, %c25_74] : memref<2x4x552xf32, #tpu.memory_space<vmem>>, vector<1x4x384xf32>
    %71 = vector.shape_cast %70 : vector<1x4x384xf32> to vector<4x384xf32>
    %c32_75 = arith.constant 32 : index
    %c384_76 = arith.constant 384 : index
    %72 = vector.load %arg12[%c32_75, %c384_76] : memref<392x768xf32, #tpu.memory_space<vmem>>, vector<4x384xf32>
    tpu.vector_store %arg12[%c32_75, %c384_76], %71 {strides = array<i32>} : memref<392x768xf32, #tpu.memory_space<vmem>>, vector<4x384xf32>,
    %c0_77 = arith.constant 0 : index
    %c0_78 = arith.constant 0 : index
    %c26 = arith.constant 26 : index
    %73 = vector.load %arg1[%c0_77, %c0_78, %c26] : memref<2x4x552xf32, #tpu.memory_space<vmem>>, vector<1x4x384xf32>
    %74 = vector.shape_cast %73 : vector<1x4x384xf32> to vector<4x384xf32>
    %c36 = arith.constant 36 : index
    %c0_79 = arith.constant 0 : index
    %75 = vector.load %arg12[%c36, %c0_79] : memref<392x768xf32, #tpu.memory_space<vmem>>, vector<4x384xf32>
    tpu.vector_store %arg12[%c36, %c0_79], %74 {strides = array<i32>} : memref<392x768xf32, #tpu.memory_space<vmem>>, vector<4x384xf32>,
    %c1_80 = arith.constant 1 : index
    %c0_81 = arith.constant 0 : index
    %c26_82 = arith.constant 26 : index
    %76 = vector.load %arg1[%c1_80, %c0_81, %c26_82] : memref<2x4x552xf32, #tpu.memory_space<vmem>>, vector<1x4x384xf32>
    %77 = vector.shape_cast %76 : vector<1x4x384xf32> to vector<4x384xf32>
    %c36_83 = arith.constant 36 : index
    %c384_84 = arith.constant 384 : index
    %78 = vector.load %arg12[%c36_83, %c384_84] : memref<392x768xf32, #tpu.memory_space<vmem>>, vector<4x384xf32>
    tpu.vector_store %arg12[%c36_83, %c384_84], %77 {strides = array<i32>} : memref<392x768xf32, #tpu.memory_space<vmem>>, vector<4x384xf32>,
    %c0_85 = arith.constant 0 : index
    %c0_86 = arith.constant 0 : index
    %c27 = arith.constant 27 : index
    %79 = vector.load %arg1[%c0_85, %c0_86, %c27] : memref<2x4x552xf32, #tpu.memory_space<vmem>>, vector<1x4x384xf32>
    %80 = vector.shape_cast %79 : vector<1x4x384xf32> to vector<4x384xf32>
    %c40 = arith.constant 40 : index
    %c0_87 = arith.constant 0 : index
    %81 = vector.load %arg12[%c40, %c0_87] : memref<392x768xf32, #tpu.memory_space<vmem>>, vector<4x384xf32>
    tpu.vector_store %arg12[%c40, %c0_87], %80 {strides = array<i32>} : memref<392x768xf32, #tpu.memory_space<vmem>>, vector<4x384xf32>,
    %c1_88 = arith.constant 1 : index
    %c0_89 = arith.constant 0 : index
    %c27_90 = arith.constant 27 : index
    %82 = vector.load %arg1[%c1_88, %c0_89, %c27_90] : memref<2x4x552xf32, #tpu.memory_space<vmem>>, vector<1x4x384xf32>
    %83 = vector.shape_cast %82 : vector<1x4x384xf32> to vector<4x384xf32>
    %c40_91 = arith.constant 40 : index
    %c384_92 = arith.constant 384 : index
    %84 = vector.load %arg12[%c40_91, %c384_92] : memref<392x768xf32, #tpu.memory_space<vmem>>, vector<4x384xf32>
    tpu.vector_store %arg12[%c40_91, %c384_92], %83 {strides = array<i32>} : memref<392x768xf32, #tpu.memory_space<vmem>>, vector<4x384xf32>,
    %c0_93 = arith.constant 0 : index
    %c0_94 = arith.constant 0 : index
    %c28_95 = arith.constant 28 : index
    %85 = vector.load %arg1[%c0_93, %c0_94, %c28_95] : memref<2x4x552xf32, #tpu.memory_space<vmem>>, vector<1x4x384xf32>
    %86 = vector.shape_cast %85 : vector<1x4x384xf32> to vector<4x384xf32>
    %c44 = arith.constant 44 : index
    %c0_96 = arith.constant 0 : index
    %87 = vector.load %arg12[%c44, %c0_96] : memref<392x768xf32, #tpu.memory_space<vmem>>, vector<4x384xf32>
    tpu.vector_store %arg12[%c44, %c0_96], %86 {strides = array<i32>} : memref<392x768xf32, #tpu.memory_space<vmem>>, vector<4x384xf32>,
    %c1_97 = arith.constant 1 : index
    %c0_98 = arith.constant 0 : index
    %c28_99 = arith.constant 28 : index
    %88 = vector.load %arg1[%c1_97, %c0_98, %c28_99] : memref<2x4x552xf32, #tpu.memory_space<vmem>>, vector<1x4x384xf32>
    %89 = vector.shape_cast %88 : vector<1x4x384xf32> to vector<4x384xf32>
    %c44_100 = arith.constant 44 : index
    %c384_101 = arith.constant 384 : index
    %90 = vector.load %arg12[%c44_100, %c384_101] : memref<392x768xf32, #tpu.memory_space<vmem>>, vector<4x384xf32>
    tpu.vector_store %arg12[%c44_100, %c384_101], %89 {strides = array<i32>} : memref<392x768xf32, #tpu.memory_space<vmem>>, vector<4x384xf32>,
    %c0_102 = arith.constant 0 : index
    %c0_103 = arith.constant 0 : index
    %c29 = arith.constant 29 : index
    %91 = vector.load %arg1[%c0_102, %c0_103, %c29] : memref<2x4x552xf32, #tpu.memory_space<vmem>>, vector<1x4x384xf32>
    %92 = vector.shape_cast %91 : vector<1x4x384xf32> to vector<4x384xf32>
    %c48 = arith.constant 48 : index
    %c0_104 = arith.constant 0 : index
    %93 = vector.load %arg12[%c48, %c0_104] : memref<392x768xf32, #tpu.memory_space<vmem>>, vector<4x384xf32>
    tpu.vector_store %arg12[%c48, %c0_104], %92 {strides = array<i32>} : memref<392x768xf32, #tpu.memory_space<vmem>>, vector<4x384xf32>,
    %c1_105 = arith.constant 1 : index
    %c0_106 = arith.constant 0 : index
    %c29_107 = arith.constant 29 : index
    %94 = vector.load %arg1[%c1_105, %c0_106, %c29_107] : memref<2x4x552xf32, #tpu.memory_space<vmem>>, vector<1x4x384xf32>
    %95 = vector.shape_cast %94 : vector<1x4x384xf32> to vector<4x384xf32>
    %c48_108 = arith.constant 48 : index
    %c384_109 = arith.constant 384 : index
    %96 = vector.load %arg12[%c48_108, %c384_109] : memref<392x768xf32, #tpu.memory_space<vmem>>, vector<4x384xf32>
    tpu.vector_store %arg12[%c48_108, %c384_109], %95 {strides = array<i32>} : memref<392x768xf32, #tpu.memory_space<vmem>>, vector<4x384xf32>,
    %c0_110 = arith.constant 0 : index
    %c0_111 = arith.constant 0 : index
    %c30 = arith.constant 30 : index
    %97 = vector.load %arg1[%c0_110, %c0_111, %c30] : memref<2x4x552xf32, #tpu.memory_space<vmem>>, vector<1x4x384xf32>
    %98 = vector.shape_cast %97 : vector<1x4x384xf32> to vector<4x384xf32>
    %c52 = arith.constant 52 : index
    %c0_112 = arith.constant 0 : index
    %99 = vector.load %arg12[%c52, %c0_112] : memref<392x768xf32, #tpu.memory_space<vmem>>, vector<4x384xf32>
    tpu.vector_store %arg12[%c52, %c0_112], %98 {strides = array<i32>} : memref<392x768xf32, #tpu.memory_space<vmem>>, vector<4x384xf32>,
    %c1_113 = arith.constant 1 : index
    %c0_114 = arith.constant 0 : index
    %c30_115 = arith.constant 30 : index
    %100 = vector.load %arg1[%c1_113, %c0_114, %c30_115] : memref<2x4x552xf32, #tpu.memory_space<vmem>>, vector<1x4x384xf32>
    %101 = vector.shape_cast %100 : vector<1x4x384xf32> to vector<4x384xf32>
    %c52_116 = arith.constant 52 : index
    %c384_117 = arith.constant 384 : index
    %102 = vector.load %arg12[%c52_116, %c384_117] : memref<392x768xf32, #tpu.memory_space<vmem>>, vector<4x384xf32>
    tpu.vector_store %arg12[%c52_116, %c384_117], %101 {strides = array<i32>} : memref<392x768xf32, #tpu.memory_space<vmem>>, vector<4x384xf32>,
    %c0_118 = arith.constant 0 : index
    %c0_119 = arith.constant 0 : index
    %c48_120 = arith.constant 48 : index
    %103 = vector.load %arg1[%c0_118, %c0_119, %c48_120] : memref<2x4x552xf32, #tpu.memory_space<vmem>>, vector<1x4x384xf32>
    %104 = vector.shape_cast %103 : vector<1x4x384xf32> to vector<4x384xf32>
    %c56 = arith.constant 56 : index
    %c0_121 = arith.constant 0 : index
    %105 = vector.load %arg12[%c56, %c0_121] : memref<392x768xf32, #tpu.memory_space<vmem>>, vector<4x384xf32>
    tpu.vector_store %arg12[%c56, %c0_121], %104 {strides = array<i32>} : memref<392x768xf32, #tpu.memory_space<vmem>>, vector<4x384xf32>,
    %c1_122 = arith.constant 1 : index
    %c0_123 = arith.constant 0 : index
    %c48_124 = arith.constant 48 : index
    %106 = vector.load %arg1[%c1_122, %c0_123, %c48_124] : memref<2x4x552xf32, #tpu.memory_space<vmem>>, vector<1x4x384xf32>
    %107 = vector.shape_cast %106 : vector<1x4x384xf32> to vector<4x384xf32>
    %c56_125 = arith.constant 56 : index
    %c384_126 = arith.constant 384 : index
    %108 = vector.load %arg12[%c56_125, %c384_126] : memref<392x768xf32, #tpu.memory_space<vmem>>, vector<4x384xf32>
    tpu.vector_store %arg12[%c56_125, %c384_126], %107 {strides = array<i32>} : memref<392x768xf32, #tpu.memory_space<vmem>>, vector<4x384xf32>,
    %c0_127 = arith.constant 0 : index
    %c0_128 = arith.constant 0 : index
    %c49 = arith.constant 49 : index
    %109 = vector.load %arg1[%c0_127, %c0_128, %c49] : memref<2x4x552xf32, #tpu.memory_space<vmem>>, vector<1x4x384xf32>
    %110 = vector.shape_cast %109 : vector<1x4x384xf32> to vector<4x384xf32>
    %c60 = arith.constant 60 : index
    %c0_129 = arith.constant 0 : index
    %111 = vector.load %arg12[%c60, %c0_129] : memref<392x768xf32, #tpu.memory_space<vmem>>, vector<4x384xf32>
    tpu.vector_store %arg12[%c60, %c0_129], %110 {strides = array<i32>} : memref<392x768xf32, #tpu.memory_space<vmem>>, vector<4x384xf32>,
    %c1_130 = arith.constant 1 : index
    %c0_131 = arith.constant 0 : index
    %c49_132 = arith.constant 49 : index
    %112 = vector.load %arg1[%c1_130, %c0_131, %c49_132] : memref<2x4x552xf32, #tpu.memory_space<vmem>>, vector<1x4x384xf32>
    %113 = vector.shape_cast %112 : vector<1x4x384xf32> to vector<4x384xf32>
    %c60_133 = arith.constant 60 : index
    %c384_134 = arith.constant 384 : index
    %114 = vector.load %arg12[%c60_133, %c384_134] : memref<392x768xf32, #tpu.memory_space<vmem>>, vector<4x384xf32>
    tpu.vector_store %arg12[%c60_133, %c384_134], %113 {strides = array<i32>} : memref<392x768xf32, #tpu.memory_space<vmem>>, vector<4x384xf32>,
    %c0_135 = arith.constant 0 : index
    %c0_136 = arith.constant 0 : index
    %c50 = arith.constant 50 : index
    %115 = vector.load %arg1[%c0_135, %c0_136, %c50] : memref<2x4x552xf32, #tpu.memory_space<vmem>>, vector<1x4x384xf32>
    %116 = vector.shape_cast %115 : vector<1x4x384xf32> to vector<4x384xf32>
    %c64 = arith.constant 64 : index
    %c0_137 = arith.constant 0 : index
    %117 = vector.load %arg12[%c64, %c0_137] : memref<392x768xf32, #tpu.memory_space<vmem>>, vector<4x384xf32>
    tpu.vector_store %arg12[%c64, %c0_137], %116 {strides = array<i32>} : memref<392x768xf32, #tpu.memory_space<vmem>>, vector<4x384xf32>,
    %c1_138 = arith.constant 1 : index
    %c0_139 = arith.constant 0 : index
    %c50_140 = arith.constant 50 : index
    %118 = vector.load %arg1[%c1_138, %c0_139, %c50_140] : memref<2x4x552xf32, #tpu.memory_space<vmem>>, vector<1x4x384xf32>
    %119 = vector.shape_cast %118 : vector<1x4x384xf32> to vector<4x384xf32>
    %c64_141 = arith.constant 64 : index
    %c384_142 = arith.constant 384 : index
    %120 = vector.load %arg12[%c64_141, %c384_142] : memref<392x768xf32, #tpu.memory_space<vmem>>, vector<4x384xf32>
    tpu.vector_store %arg12[%c64_141, %c384_142], %119 {strides = array<i32>} : memref<392x768xf32, #tpu.memory_space<vmem>>, vector<4x384xf32>,
    %c0_143 = arith.constant 0 : index
    %c0_144 = arith.constant 0 : index
    %c51 = arith.constant 51 : index
    %121 = vector.load %arg1[%c0_143, %c0_144, %c51] : memref<2x4x552xf32, #tpu.memory_space<vmem>>, vector<1x4x384xf32>
    %122 = vector.shape_cast %121 : vector<1x4x384xf32> to vector<4x384xf32>
    %c68 = arith.constant 68 : index
    %c0_145 = arith.constant 0 : index
    %123 = vector.load %arg12[%c68, %c0_145] : memref<392x768xf32, #tpu.memory_space<vmem>>, vector<4x384xf32>
    tpu.vector_store %arg12[%c68, %c0_145], %122 {strides = array<i32>} : memref<392x768xf32, #tpu.memory_space<vmem>>, vector<4x384xf32>,
    %c1_146 = arith.constant 1 : index
    %c0_147 = arith.constant 0 : index
    %c51_148 = arith.constant 51 : index
    %124 = vector.load %arg1[%c1_146, %c0_147, %c51_148] : memref<2x4x552xf32, #tpu.memory_space<vmem>>, vector<1x4x384xf32>
    %125 = vector.shape_cast %124 : vector<1x4x384xf32> to vector<4x384xf32>
    %c68_149 = arith.constant 68 : index
    %c384_150 = arith.constant 384 : index
    %126 = vector.load %arg12[%c68_149, %c384_150] : memref<392x768xf32, #tpu.memory_space<vmem>>, vector<4x384xf32>
    tpu.vector_store %arg12[%c68_149, %c384_150], %125 {strides = array<i32>} : memref<392x768xf32, #tpu.memory_space<vmem>>, vector<4x384xf32>,
    %c0_151 = arith.constant 0 : index
    %c0_152 = arith.constant 0 : index
    %c52_153 = arith.constant 52 : index
    %127 = vector.load %arg1[%c0_151, %c0_152, %c52_153] : memref<2x4x552xf32, #tpu.memory_space<vmem>>, vector<1x4x384xf32>
    %128 = vector.shape_cast %127 : vector<1x4x384xf32> to vector<4x384xf32>
    %c72 = arith.constant 72 : index
    %c0_154 = arith.constant 0 : index
    %129 = vector.load %arg12[%c72, %c0_154] : memref<392x768xf32, #tpu.memory_space<vmem>>, vector<4x384xf32>
    tpu.vector_store %arg12[%c72, %c0_154], %128 {strides = array<i32>} : memref<392x768xf32, #tpu.memory_space<vmem>>, vector<4x384xf32>,
    %c1_155 = arith.constant 1 : index
    %c0_156 = arith.constant 0 : index
    %c52_157 = arith.constant 52 : index
    %130 = vector.load %arg1[%c1_155, %c0_156, %c52_157] : memref<2x4x552xf32, #tpu.memory_space<vmem>>, vector<1x4x384xf32>
    %131 = vector.shape_cast %130 : vector<1x4x384xf32> to vector<4x384xf32>
    %c72_158 = arith.constant 72 : index
    %c384_159 = arith.constant 384 : index
    %132 = vector.load %arg12[%c72_158, %c384_159] : memref<392x768xf32, #tpu.memory_space<vmem>>, vector<4x384xf32>
    tpu.vector_store %arg12[%c72_158, %c384_159], %131 {strides = array<i32>} : memref<392x768xf32, #tpu.memory_space<vmem>>, vector<4x384xf32>,
    %c0_160 = arith.constant 0 : index
    %c0_161 = arith.constant 0 : index
    %c53 = arith.constant 53 : index
    %133 = vector.load %arg1[%c0_160, %c0_161, %c53] : memref<2x4x552xf32, #tpu.memory_space<vmem>>, vector<1x4x384xf32>
    %134 = vector.shape_cast %133 : vector<1x4x384xf32> to vector<4x384xf32>
    %c76 = arith.constant 76 : index
    %c0_162 = arith.constant 0 : index
    %135 = vector.load %arg12[%c76, %c0_162] : memref<392x768xf32, #tpu.memory_space<vmem>>, vector<4x384xf32>
    tpu.vector_store %arg12[%c76, %c0_162], %134 {strides = array<i32>} : memref<392x768xf32, #tpu.memory_space<vmem>>, vector<4x384xf32>,
    %c1_163 = arith.constant 1 : index
    %c0_164 = arith.constant 0 : index
    %c53_165 = arith.constant 53 : index
    %136 = vector.load %arg1[%c1_163, %c0_164, %c53_165] : memref<2x4x552xf32, #tpu.memory_space<vmem>>, vector<1x4x384xf32>
    %137 = vector.shape_cast %136 : vector<1x4x384xf32> to vector<4x384xf32>
    %c76_166 = arith.constant 76 : index
    %c384_167 = arith.constant 384 : index
    %138 = vector.load %arg12[%c76_166, %c384_167] : memref<392x768xf32, #tpu.memory_space<vmem>>, vector<4x384xf32>
    tpu.vector_store %arg12[%c76_166, %c384_167], %137 {strides = array<i32>} : memref<392x768xf32, #tpu.memory_space<vmem>>, vector<4x384xf32>,
    %c0_168 = arith.constant 0 : index
    %c0_169 = arith.constant 0 : index
    %c54 = arith.constant 54 : index
    %139 = vector.load %arg1[%c0_168, %c0_169, %c54] : memref<2x4x552xf32, #tpu.memory_space<vmem>>, vector<1x4x384xf32>
    %140 = vector.shape_cast %139 : vector<1x4x384xf32> to vector<4x384xf32>
    %c80 = arith.constant 80 : index
    %c0_170 = arith.constant 0 : index
    %141 = vector.load %arg12[%c80, %c0_170] : memref<392x768xf32, #tpu.memory_space<vmem>>, vector<4x384xf32>
    tpu.vector_store %arg12[%c80, %c0_170], %140 {strides = array<i32>} : memref<392x768xf32, #tpu.memory_space<vmem>>, vector<4x384xf32>,
    %c1_171 = arith.constant 1 : index
    %c0_172 = arith.constant 0 : index
    %c54_173 = arith.constant 54 : index
    %142 = vector.load %arg1[%c1_171, %c0_172, %c54_173] : memref<2x4x552xf32, #tpu.memory_space<vmem>>, vector<1x4x384xf32>
    %143 = vector.shape_cast %142 : vector<1x4x384xf32> to vector<4x384xf32>
    %c80_174 = arith.constant 80 : index
    %c384_175 = arith.constant 384 : index
    %144 = vector.load %arg12[%c80_174, %c384_175] : memref<392x768xf32, #tpu.memory_space<vmem>>, vector<4x384xf32>
    tpu.vector_store %arg12[%c80_174, %c384_175], %143 {strides = array<i32>} : memref<392x768xf32, #tpu.memory_space<vmem>>, vector<4x384xf32>,
    %c0_176 = arith.constant 0 : index
    %c0_177 = arith.constant 0 : index
    %c72_178 = arith.constant 72 : index
    %145 = vector.load %arg1[%c0_176, %c0_177, %c72_178] : memref<2x4x552xf32, #tpu.memory_space<vmem>>, vector<1x4x384xf32>
    %146 = vector.shape_cast %145 : vector<1x4x384xf32> to vector<4x384xf32>
    %c84 = arith.constant 84 : index
    %c0_179 = arith.constant 0 : index
    %147 = vector.load %arg12[%c84, %c0_179] : memref<392x768xf32, #tpu.memory_space<vmem>>, vector<4x384xf32>
    tpu.vector_store %arg12[%c84, %c0_179], %146 {strides = array<i32>} : memref<392x768xf32, #tpu.memory_space<vmem>>, vector<4x384xf32>,
    %c1_180 = arith.constant 1 : index
    %c0_181 = arith.constant 0 : index
    %c72_182 = arith.constant 72 : index
    %148 = vector.load %arg1[%c1_180, %c0_181, %c72_182] : memref<2x4x552xf32, #tpu.memory_space<vmem>>, vector<1x4x384xf32>
    %149 = vector.shape_cast %148 : vector<1x4x384xf32> to vector<4x384xf32>
    %c84_183 = arith.constant 84 : index
    %c384_184 = arith.constant 384 : index
    %150 = vector.load %arg12[%c84_183, %c384_184] : memref<392x768xf32, #tpu.memory_space<vmem>>, vector<4x384xf32>
    tpu.vector_store %arg12[%c84_183, %c384_184], %149 {strides = array<i32>} : memref<392x768xf32, #tpu.memory_space<vmem>>, vector<4x384xf32>,
    %c0_185 = arith.constant 0 : index
    %c0_186 = arith.constant 0 : index
    %c73 = arith.constant 73 : index
    %151 = vector.load %arg1[%c0_185, %c0_186, %c73] : memref<2x4x552xf32, #tpu.memory_space<vmem>>, vector<1x4x384xf32>
    %152 = vector.shape_cast %151 : vector<1x4x384xf32> to vector<4x384xf32>
    %c88 = arith.constant 88 : index
    %c0_187 = arith.constant 0 : index
    %153 = vector.load %arg12[%c88, %c0_187] : memref<392x768xf32, #tpu.memory_space<vmem>>, vector<4x384xf32>
    tpu.vector_store %arg12[%c88, %c0_187], %152 {strides = array<i32>} : memref<392x768xf32, #tpu.memory_space<vmem>>, vector<4x384xf32>,
    %c1_188 = arith.constant 1 : index
    %c0_189 = arith.constant 0 : index
    %c73_190 = arith.constant 73 : index
    %154 = vector.load %arg1[%c1_188, %c0_189, %c73_190] : memref<2x4x552xf32, #tpu.memory_space<vmem>>, vector<1x4x384xf32>
    %155 = vector.shape_cast %154 : vector<1x4x384xf32> to vector<4x384xf32>
    %c88_191 = arith.constant 88 : index
    %c384_192 = arith.constant 384 : index
    %156 = vector.load %arg12[%c88_191, %c384_192] : memref<392x768xf32, #tpu.memory_space<vmem>>, vector<4x384xf32>
    tpu.vector_store %arg12[%c88_191, %c384_192], %155 {strides = array<i32>} : memref<392x768xf32, #tpu.memory_space<vmem>>, vector<4x384xf32>,
    %c0_193 = arith.constant 0 : index
    %c0_194 = arith.constant 0 : index
    %c74 = arith.constant 74 : index
    %157 = vector.load %arg1[%c0_193, %c0_194, %c74] : memref<2x4x552xf32, #tpu.memory_space<vmem>>, vector<1x4x384xf32>
    %158 = vector.shape_cast %157 : vector<1x4x384xf32> to vector<4x384xf32>
    %c92 = arith.constant 92 : index
    %c0_195 = arith.constant 0 : index
    %159 = vector.load %arg12[%c92, %c0_195] : memref<392x768xf32, #tpu.memory_space<vmem>>, vector<4x384xf32>
    tpu.vector_store %arg12[%c92, %c0_195], %158 {strides = array<i32>} : memref<392x768xf32, #tpu.memory_space<vmem>>, vector<4x384xf32>,
    %c1_196 = arith.constant 1 : index
    %c0_197 = arith.constant 0 : index
    %c74_198 = arith.constant 74 : index
    %160 = vector.load %arg1[%c1_196, %c0_197, %c74_198] : memref<2x4x552xf32, #tpu.memory_space<vmem>>, vector<1x4x384xf32>
    %161 = vector.shape_cast %160 : vector<1x4x384xf32> to vector<4x384xf32>
    %c92_199 = arith.constant 92 : index
    %c384_200 = arith.constant 384 : index
    %162 = vector.load %arg12[%c92_199, %c384_200] : memref<392x768xf32, #tpu.memory_space<vmem>>, vector<4x384xf32>
    tpu.vector_store %arg12[%c92_199, %c384_200], %161 {strides = array<i32>} : memref<392x768xf32, #tpu.memory_space<vmem>>, vector<4x384xf32>,
    %c0_201 = arith.constant 0 : index
    %c0_202 = arith.constant 0 : index
    %c75 = arith.constant 75 : index
    %163 = vector.load %arg1[%c0_201, %c0_202, %c75] : memref<2x4x552xf32, #tpu.memory_space<vmem>>, vector<1x4x384xf32>
    %164 = vector.shape_cast %163 : vector<1x4x384xf32> to vector<4x384xf32>
    %c96 = arith.constant 96 : index
    %c0_203 = arith.constant 0 : index
    %165 = vector.load %arg12[%c96, %c0_203] : memref<392x768xf32, #tpu.memory_space<vmem>>, vector<4x384xf32>
    tpu.vector_store %arg12[%c96, %c0_203], %164 {strides = array<i32>} : memref<392x768xf32, #tpu.memory_space<vmem>>, vector<4x384xf32>,
    %c1_204 = arith.constant 1 : index
    %c0_205 = arith.constant 0 : index
    %c75_206 = arith.constant 75 : index
    %166 = vector.load %arg1[%c1_204, %c0_205, %c75_206] : memref<2x4x552xf32, #tpu.memory_space<vmem>>, vector<1x4x384xf32>
    %167 = vector.shape_cast %166 : vector<1x4x384xf32> to vector<4x384xf32>
    %c96_207 = arith.constant 96 : index
    %c384_208 = arith.constant 384 : index
    %168 = vector.load %arg12[%c96_207, %c384_208] : memref<392x768xf32, #tpu.memory_space<vmem>>, vector<4x384xf32>
    tpu.vector_store %arg12[%c96_207, %c384_208], %167 {strides = array<i32>} : memref<392x768xf32, #tpu.memory_space<vmem>>, vector<4x384xf32>,
    %c0_209 = arith.constant 0 : index
    %c0_210 = arith.constant 0 : index
    %c76_211 = arith.constant 76 : index
    %169 = vector.load %arg1[%c0_209, %c0_210, %c76_211] : memref<2x4x552xf32, #tpu.memory_space<vmem>>, vector<1x4x384xf32>
    %170 = vector.shape_cast %169 : vector<1x4x384xf32> to vector<4x384xf32>
    %c100 = arith.constant 100 : index
    %c0_212 = arith.constant 0 : index
    %171 = vector.load %arg12[%c100, %c0_212] : memref<392x768xf32, #tpu.memory_space<vmem>>, vector<4x384xf32>
    tpu.vector_store %arg12[%c100, %c0_212], %170 {strides = array<i32>} : memref<392x768xf32, #tpu.memory_space<vmem>>, vector<4x384xf32>,
    %c1_213 = arith.constant 1 : index
    %c0_214 = arith.constant 0 : index
    %c76_215 = arith.constant 76 : index
    %172 = vector.load %arg1[%c1_213, %c0_214, %c76_215] : memref<2x4x552xf32, #tpu.memory_space<vmem>>, vector<1x4x384xf32>
    %173 = vector.shape_cast %172 : vector<1x4x384xf32> to vector<4x384xf32>
    %c100_216 = arith.constant 100 : index
    %c384_217 = arith.constant 384 : index
    %174 = vector.load %arg12[%c100_216, %c384_217] : memref<392x768xf32, #tpu.memory_space<vmem>>, vector<4x384xf32>
    tpu.vector_store %arg12[%c100_216, %c384_217], %173 {strides = array<i32>} : memref<392x768xf32, #tpu.memory_space<vmem>>, vector<4x384xf32>,
    %c0_218 = arith.constant 0 : index
    %c0_219 = arith.constant 0 : index
    %c77 = arith.constant 77 : index
    %175 = vector.load %arg1[%c0_218, %c0_219, %c77] : memref<2x4x552xf32, #tpu.memory_space<vmem>>, vector<1x4x384xf32>
    %176 = vector.shape_cast %175 : vector<1x4x384xf32> to vector<4x384xf32>
    %c104 = arith.constant 104 : index
    %c0_220 = arith.constant 0 : index
    %177 = vector.load %arg12[%c104, %c0_220] : memref<392x768xf32, #tpu.memory_space<vmem>>, vector<4x384xf32>
    tpu.vector_store %arg12[%c104, %c0_220], %176 {strides = array<i32>} : memref<392x768xf32, #tpu.memory_space<vmem>>, vector<4x384xf32>,
    %c1_221 = arith.constant 1 : index
    %c0_222 = arith.constant 0 : index
    %c77_223 = arith.constant 77 : index
    %178 = vector.load %arg1[%c1_221, %c0_222, %c77_223] : memref<2x4x552xf32, #tpu.memory_space<vmem>>, vector<1x4x384xf32>
    %179 = vector.shape_cast %178 : vector<1x4x384xf32> to vector<4x384xf32>
    %c104_224 = arith.constant 104 : index
    %c384_225 = arith.constant 384 : index
    %180 = vector.load %arg12[%c104_224, %c384_225] : memref<392x768xf32, #tpu.memory_space<vmem>>, vector<4x384xf32>
    tpu.vector_store %arg12[%c104_224, %c384_225], %179 {strides = array<i32>} : memref<392x768xf32, #tpu.memory_space<vmem>>, vector<4x384xf32>,
    %c0_226 = arith.constant 0 : index
    %c0_227 = arith.constant 0 : index
    %c78 = arith.constant 78 : index
    %181 = vector.load %arg1[%c0_226, %c0_227, %c78] : memref<2x4x552xf32, #tpu.memory_space<vmem>>, vector<1x4x384xf32>
    %182 = vector.shape_cast %181 : vector<1x4x384xf32> to vector<4x384xf32>
    %c108 = arith.constant 108 : index
    %c0_228 = arith.constant 0 : index
    %183 = vector.load %arg12[%c108, %c0_228] : memref<392x768xf32, #tpu.memory_space<vmem>>, vector<4x384xf32>
    tpu.vector_store %arg12[%c108, %c0_228], %182 {strides = array<i32>} : memref<392x768xf32, #tpu.memory_space<vmem>>, vector<4x384xf32>,
    %c1_229 = arith.constant 1 : index
    %c0_230 = arith.constant 0 : index
    %c78_231 = arith.constant 78 : index
    %184 = vector.load %arg1[%c1_229, %c0_230, %c78_231] : memref<2x4x552xf32, #tpu.memory_space<vmem>>, vector<1x4x384xf32>
    %185 = vector.shape_cast %184 : vector<1x4x384xf32> to vector<4x384xf32>
    %c108_232 = arith.constant 108 : index
    %c384_233 = arith.constant 384 : index
    %186 = vector.load %arg12[%c108_232, %c384_233] : memref<392x768xf32, #tpu.memory_space<vmem>>, vector<4x384xf32>
    tpu.vector_store %arg12[%c108_232, %c384_233], %185 {strides = array<i32>} : memref<392x768xf32, #tpu.memory_space<vmem>>, vector<4x384xf32>,
    %c0_234 = arith.constant 0 : index
    %c0_235 = arith.constant 0 : index
    %c96_236 = arith.constant 96 : index
    %187 = vector.load %arg1[%c0_234, %c0_235, %c96_236] : memref<2x4x552xf32, #tpu.memory_space<vmem>>, vector<1x4x384xf32>
    %188 = vector.shape_cast %187 : vector<1x4x384xf32> to vector<4x384xf32>
    %c112 = arith.constant 112 : index
    %c0_237 = arith.constant 0 : index
    %189 = vector.load %arg12[%c112, %c0_237] : memref<392x768xf32, #tpu.memory_space<vmem>>, vector<4x384xf32>
    tpu.vector_store %arg12[%c112, %c0_237], %188 {strides = array<i32>} : memref<392x768xf32, #tpu.memory_space<vmem>>, vector<4x384xf32>,
    %c1_238 = arith.constant 1 : index
    %c0_239 = arith.constant 0 : index
    %c96_240 = arith.constant 96 : index
    %190 = vector.load %arg1[%c1_238, %c0_239, %c96_240] : memref<2x4x552xf32, #tpu.memory_space<vmem>>, vector<1x4x384xf32>
    %191 = vector.shape_cast %190 : vector<1x4x384xf32> to vector<4x384xf32>
    %c112_241 = arith.constant 112 : index
    %c384_242 = arith.constant 384 : index
    %192 = vector.load %arg12[%c112_241, %c384_242] : memref<392x768xf32, #tpu.memory_space<vmem>>, vector<4x384xf32>
    tpu.vector_store %arg12[%c112_241, %c384_242], %191 {strides = array<i32>} : memref<392x768xf32, #tpu.memory_space<vmem>>, vector<4x384xf32>,
    %c0_243 = arith.constant 0 : index
    %c0_244 = arith.constant 0 : index
    %c97 = arith.constant 97 : index
    %193 = vector.load %arg1[%c0_243, %c0_244, %c97] : memref<2x4x552xf32, #tpu.memory_space<vmem>>, vector<1x4x384xf32>
    %194 = vector.shape_cast %193 : vector<1x4x384xf32> to vector<4x384xf32>
    %c116 = arith.constant 116 : index
    %c0_245 = arith.constant 0 : index
    %195 = vector.load %arg12[%c116, %c0_245] : memref<392x768xf32, #tpu.memory_space<vmem>>, vector<4x384xf32>
    tpu.vector_store %arg12[%c116, %c0_245], %194 {strides = array<i32>} : memref<392x768xf32, #tpu.memory_space<vmem>>, vector<4x384xf32>,
    %c1_246 = arith.constant 1 : index
    %c0_247 = arith.constant 0 : index
    %c97_248 = arith.constant 97 : index
    %196 = vector.load %arg1[%c1_246, %c0_247, %c97_248] : memref<2x4x552xf32, #tpu.memory_space<vmem>>, vector<1x4x384xf32>
    %197 = vector.shape_cast %196 : vector<1x4x384xf32> to vector<4x384xf32>
    %c116_249 = arith.constant 116 : index
    %c384_250 = arith.constant 384 : index
    %198 = vector.load %arg12[%c116_249, %c384_250] : memref<392x768xf32, #tpu.memory_space<vmem>>, vector<4x384xf32>
    tpu.vector_store %arg12[%c116_249, %c384_250], %197 {strides = array<i32>} : memref<392x768xf32, #tpu.memory_space<vmem>>, vector<4x384xf32>,
    %c0_251 = arith.constant 0 : index
    %c0_252 = arith.constant 0 : index
    %c98 = arith.constant 98 : index
    %199 = vector.load %arg1[%c0_251, %c0_252, %c98] : memref<2x4x552xf32, #tpu.memory_space<vmem>>, vector<1x4x384xf32>
    %200 = vector.shape_cast %199 : vector<1x4x384xf32> to vector<4x384xf32>
    %c120 = arith.constant 120 : index
    %c0_253 = arith.constant 0 : index
    %201 = vector.load %arg12[%c120, %c0_253] : memref<392x768xf32, #tpu.memory_space<vmem>>, vector<4x384xf32>
    tpu.vector_store %arg12[%c120, %c0_253], %200 {strides = array<i32>} : memref<392x768xf32, #tpu.memory_space<vmem>>, vector<4x384xf32>,
    %c1_254 = arith.constant 1 : index
    %c0_255 = arith.constant 0 : index
    %c98_256 = arith.constant 98 : index
    %202 = vector.load %arg1[%c1_254, %c0_255, %c98_256] : memref<2x4x552xf32, #tpu.memory_space<vmem>>, vector<1x4x384xf32>
    %203 = vector.shape_cast %202 : vector<1x4x384xf32> to vector<4x384xf32>
    %c120_257 = arith.constant 120 : index
    %c384_258 = arith.constant 384 : index
    %204 = vector.load %arg12[%c120_257, %c384_258] : memref<392x768xf32, #tpu.memory_space<vmem>>, vector<4x384xf32>
    tpu.vector_store %arg12[%c120_257, %c384_258], %203 {strides = array<i32>} : memref<392x768xf32, #tpu.memory_space<vmem>>, vector<4x384xf32>,
    %c0_259 = arith.constant 0 : index
    %c0_260 = arith.constant 0 : index
    %c99 = arith.constant 99 : index
    %205 = vector.load %arg1[%c0_259, %c0_260, %c99] : memref<2x4x552xf32, #tpu.memory_space<vmem>>, vector<1x4x384xf32>
    %206 = vector.shape_cast %205 : vector<1x4x384xf32> to vector<4x384xf32>
    %c124 = arith.constant 124 : index
    %c0_261 = arith.constant 0 : index
    %207 = vector.load %arg12[%c124, %c0_261] : memref<392x768xf32, #tpu.memory_space<vmem>>, vector<4x384xf32>
    tpu.vector_store %arg12[%c124, %c0_261], %206 {strides = array<i32>} : memref<392x768xf32, #tpu.memory_space<vmem>>, vector<4x384xf32>,
    %c1_262 = arith.constant 1 : index
    %c0_263 = arith.constant 0 : index
    %c99_264 = arith.constant 99 : index
    %208 = vector.load %arg1[%c1_262, %c0_263, %c99_264] : memref<2x4x552xf32, #tpu.memory_space<vmem>>, vector<1x4x384xf32>
    %209 = vector.shape_cast %208 : vector<1x4x384xf32> to vector<4x384xf32>
    %c124_265 = arith.constant 124 : index
    %c384_266 = arith.constant 384 : index
    %210 = vector.load %arg12[%c124_265, %c384_266] : memref<392x768xf32, #tpu.memory_space<vmem>>, vector<4x384xf32>
    tpu.vector_store %arg12[%c124_265, %c384_266], %209 {strides = array<i32>} : memref<392x768xf32, #tpu.memory_space<vmem>>, vector<4x384xf32>,
    %c0_267 = arith.constant 0 : index
    %c0_268 = arith.constant 0 : index
    %c100_269 = arith.constant 100 : index
    %211 = vector.load %arg1[%c0_267, %c0_268, %c100_269] : memref<2x4x552xf32, #tpu.memory_space<vmem>>, vector<1x4x384xf32>
    %212 = vector.shape_cast %211 : vector<1x4x384xf32> to vector<4x384xf32>
    %c128 = arith.constant 128 : index
    %c0_270 = arith.constant 0 : index
    %213 = vector.load %arg12[%c128, %c0_270] : memref<392x768xf32, #tpu.memory_space<vmem>>, vector<4x384xf32>
    tpu.vector_store %arg12[%c128, %c0_270], %212 {strides = array<i32>} : memref<392x768xf32, #tpu.memory_space<vmem>>, vector<4x384xf32>,
    %c1_271 = arith.constant 1 : index
    %c0_272 = arith.constant 0 : index
    %c100_273 = arith.constant 100 : index
    %214 = vector.load %arg1[%c1_271, %c0_272, %c100_273] : memref<2x4x552xf32, #tpu.memory_space<vmem>>, vector<1x4x384xf32>
    %215 = vector.shape_cast %214 : vector<1x4x384xf32> to vector<4x384xf32>
    %c128_274 = arith.constant 128 : index
    %c384_275 = arith.constant 384 : index
    %216 = vector.load %arg12[%c128_274, %c384_275] : memref<392x768xf32, #tpu.memory_space<vmem>>, vector<4x384xf32>
    tpu.vector_store %arg12[%c128_274, %c384_275], %215 {strides = array<i32>} : memref<392x768xf32, #tpu.memory_space<vmem>>, vector<4x384xf32>,
    %c0_276 = arith.constant 0 : index
    %c0_277 = arith.constant 0 : index
    %c101 = arith.constant 101 : index
    %217 = vector.load %arg1[%c0_276, %c0_277, %c101] : memref<2x4x552xf32, #tpu.memory_space<vmem>>, vector<1x4x384xf32>
    %218 = vector.shape_cast %217 : vector<1x4x384xf32> to vector<4x384xf32>
    %c132 = arith.constant 132 : index
    %c0_278 = arith.constant 0 : index
    %219 = vector.load %arg12[%c132, %c0_278] : memref<392x768xf32, #tpu.memory_space<vmem>>, vector<4x384xf32>
    tpu.vector_store %arg12[%c132, %c0_278], %218 {strides = array<i32>} : memref<392x768xf32, #tpu.memory_space<vmem>>, vector<4x384xf32>,
    %c1_279 = arith.constant 1 : index
    %c0_280 = arith.constant 0 : index
    %c101_281 = arith.constant 101 : index
    %220 = vector.load %arg1[%c1_279, %c0_280, %c101_281] : memref<2x4x552xf32, #tpu.memory_space<vmem>>, vector<1x4x384xf32>
    %221 = vector.shape_cast %220 : vector<1x4x384xf32> to vector<4x384xf32>
    %c132_282 = arith.constant 132 : index
    %c384_283 = arith.constant 384 : index
    %222 = vector.load %arg12[%c132_282, %c384_283] : memref<392x768xf32, #tpu.memory_space<vmem>>, vector<4x384xf32>
    tpu.vector_store %arg12[%c132_282, %c384_283], %221 {strides = array<i32>} : memref<392x768xf32, #tpu.memory_space<vmem>>, vector<4x384xf32>,
    %c0_284 = arith.constant 0 : index
    %c0_285 = arith.constant 0 : index
    %c102 = arith.constant 102 : index
    %223 = vector.load %arg1[%c0_284, %c0_285, %c102] : memref<2x4x552xf32, #tpu.memory_space<vmem>>, vector<1x4x384xf32>
    %224 = vector.shape_cast %223 : vector<1x4x384xf32> to vector<4x384xf32>
    %c136 = arith.constant 136 : index
    %c0_286 = arith.constant 0 : index
    %225 = vector.load %arg12[%c136, %c0_286] : memref<392x768xf32, #tpu.memory_space<vmem>>, vector<4x384xf32>
    tpu.vector_store %arg12[%c136, %c0_286], %224 {strides = array<i32>} : memref<392x768xf32, #tpu.memory_space<vmem>>, vector<4x384xf32>,
    %c1_287 = arith.constant 1 : index
    %c0_288 = arith.constant 0 : index
    %c102_289 = arith.constant 102 : index
    %226 = vector.load %arg1[%c1_287, %c0_288, %c102_289] : memref<2x4x552xf32, #tpu.memory_space<vmem>>, vector<1x4x384xf32>
    %227 = vector.shape_cast %226 : vector<1x4x384xf32> to vector<4x384xf32>
    %c136_290 = arith.constant 136 : index
    %c384_291 = arith.constant 384 : index
    %228 = vector.load %arg12[%c136_290, %c384_291] : memref<392x768xf32, #tpu.memory_space<vmem>>, vector<4x384xf32>
    tpu.vector_store %arg12[%c136_290, %c384_291], %227 {strides = array<i32>} : memref<392x768xf32, #tpu.memory_space<vmem>>, vector<4x384xf32>,
    %c0_292 = arith.constant 0 : index
    %c0_293 = arith.constant 0 : index
    %c120_294 = arith.constant 120 : index
    %229 = vector.load %arg1[%c0_292, %c0_293, %c120_294] : memref<2x4x552xf32, #tpu.memory_space<vmem>>, vector<1x4x384xf32>
    %230 = vector.shape_cast %229 : vector<1x4x384xf32> to vector<4x384xf32>
    %c140 = arith.constant 140 : index
    %c0_295 = arith.constant 0 : index
    %231 = vector.load %arg12[%c140, %c0_295] : memref<392x768xf32, #tpu.memory_space<vmem>>, vector<4x384xf32>
    tpu.vector_store %arg12[%c140, %c0_295], %230 {strides = array<i32>} : memref<392x768xf32, #tpu.memory_space<vmem>>, vector<4x384xf32>,
    %c1_296 = arith.constant 1 : index
    %c0_297 = arith.constant 0 : index
    %c120_298 = arith.constant 120 : index
    %232 = vector.load %arg1[%c1_296, %c0_297, %c120_298] : memref<2x4x552xf32, #tpu.memory_space<vmem>>, vector<1x4x384xf32>
    %233 = vector.shape_cast %232 : vector<1x4x384xf32> to vector<4x384xf32>
    %c140_299 = arith.constant 140 : index
    %c384_300 = arith.constant 384 : index
    %234 = vector.load %arg12[%c140_299, %c384_300] : memref<392x768xf32, #tpu.memory_space<vmem>>, vector<4x384xf32>
    tpu.vector_store %arg12[%c140_299, %c384_300], %233 {strides = array<i32>} : memref<392x768xf32, #tpu.memory_space<vmem>>, vector<4x384xf32>,
    %c0_301 = arith.constant 0 : index
    %c0_302 = arith.constant 0 : index
    %c121 = arith.constant 121 : index
    %235 = vector.load %arg1[%c0_301, %c0_302, %c121] : memref<2x4x552xf32, #tpu.memory_space<vmem>>, vector<1x4x384xf32>
    %236 = vector.shape_cast %235 : vector<1x4x384xf32> to vector<4x384xf32>
    %c144 = arith.constant 144 : index
    %c0_303 = arith.constant 0 : index
    %237 = vector.load %arg12[%c144, %c0_303] : memref<392x768xf32, #tpu.memory_space<vmem>>, vector<4x384xf32>
    tpu.vector_store %arg12[%c144, %c0_303], %236 {strides = array<i32>} : memref<392x768xf32, #tpu.memory_space<vmem>>, vector<4x384xf32>,
    %c1_304 = arith.constant 1 : index
    %c0_305 = arith.constant 0 : index
    %c121_306 = arith.constant 121 : index
    %238 = vector.load %arg1[%c1_304, %c0_305, %c121_306] : memref<2x4x552xf32, #tpu.memory_space<vmem>>, vector<1x4x384xf32>
    %239 = vector.shape_cast %238 : vector<1x4x384xf32> to vector<4x384xf32>
    %c144_307 = arith.constant 144 : index
    %c384_308 = arith.constant 384 : index
    %240 = vector.load %arg12[%c144_307, %c384_308] : memref<392x768xf32, #tpu.memory_space<vmem>>, vector<4x384xf32>
    tpu.vector_store %arg12[%c144_307, %c384_308], %239 {strides = array<i32>} : memref<392x768xf32, #tpu.memory_space<vmem>>, vector<4x384xf32>,
    %c0_309 = arith.constant 0 : index
    %c0_310 = arith.constant 0 : index
    %c122 = arith.constant 122 : index
    %241 = vector.load %arg1[%c0_309, %c0_310, %c122] : memref<2x4x552xf32, #tpu.memory_space<vmem>>, vector<1x4x384xf32>
    %242 = vector.shape_cast %241 : vector<1x4x384xf32> to vector<4x384xf32>
    %c148 = arith.constant 148 : index
    %c0_311 = arith.constant 0 : index
    %243 = vector.load %arg12[%c148, %c0_311] : memref<392x768xf32, #tpu.memory_space<vmem>>, vector<4x384xf32>
    tpu.vector_store %arg12[%c148, %c0_311], %242 {strides = array<i32>} : memref<392x768xf32, #tpu.memory_space<vmem>>, vector<4x384xf32>,
    %c1_312 = arith.constant 1 : index
    %c0_313 = arith.constant 0 : index
    %c122_314 = arith.constant 122 : index
    %244 = vector.load %arg1[%c1_312, %c0_313, %c122_314] : memref<2x4x552xf32, #tpu.memory_space<vmem>>, vector<1x4x384xf32>
    %245 = vector.shape_cast %244 : vector<1x4x384xf32> to vector<4x384xf32>
    %c148_315 = arith.constant 148 : index
    %c384_316 = arith.constant 384 : index
    %246 = vector.load %arg12[%c148_315, %c384_316] : memref<392x768xf32, #tpu.memory_space<vmem>>, vector<4x384xf32>
    tpu.vector_store %arg12[%c148_315, %c384_316], %245 {strides = array<i32>} : memref<392x768xf32, #tpu.memory_space<vmem>>, vector<4x384xf32>,
    %c0_317 = arith.constant 0 : index
    %c0_318 = arith.constant 0 : index
    %c123 = arith.constant 123 : index
    %247 = vector.load %arg1[%c0_317, %c0_318, %c123] : memref<2x4x552xf32, #tpu.memory_space<vmem>>, vector<1x4x384xf32>
    %248 = vector.shape_cast %247 : vector<1x4x384xf32> to vector<4x384xf32>
    %c152 = arith.constant 152 : index
    %c0_319 = arith.constant 0 : index
    %249 = vector.load %arg12[%c152, %c0_319] : memref<392x768xf32, #tpu.memory_space<vmem>>, vector<4x384xf32>
    tpu.vector_store %arg12[%c152, %c0_319], %248 {strides = array<i32>} : memref<392x768xf32, #tpu.memory_space<vmem>>, vector<4x384xf32>,
    %c1_320 = arith.constant 1 : index
    %c0_321 = arith.constant 0 : index
    %c123_322 = arith.constant 123 : index
    %250 = vector.load %arg1[%c1_320, %c0_321, %c123_322] : memref<2x4x552xf32, #tpu.memory_space<vmem>>, vector<1x4x384xf32>
    %251 = vector.shape_cast %250 : vector<1x4x384xf32> to vector<4x384xf32>
    %c152_323 = arith.constant 152 : index
    %c384_324 = arith.constant 384 : index
    %252 = vector.load %arg12[%c152_323, %c384_324] : memref<392x768xf32, #tpu.memory_space<vmem>>, vector<4x384xf32>
    tpu.vector_store %arg12[%c152_323, %c384_324], %251 {strides = array<i32>} : memref<392x768xf32, #tpu.memory_space<vmem>>, vector<4x384xf32>,
    %c0_325 = arith.constant 0 : index
    %c0_326 = arith.constant 0 : index
    %c124_327 = arith.constant 124 : index
    %253 = vector.load %arg1[%c0_325, %c0_326, %c124_327] : memref<2x4x552xf32, #tpu.memory_space<vmem>>, vector<1x4x384xf32>
    %254 = vector.shape_cast %253 : vector<1x4x384xf32> to vector<4x384xf32>
    %c156 = arith.constant 156 : index
    %c0_328 = arith.constant 0 : index
    %255 = vector.load %arg12[%c156, %c0_328] : memref<392x768xf32, #tpu.memory_space<vmem>>, vector<4x384xf32>
    tpu.vector_store %arg12[%c156, %c0_328], %254 {strides = array<i32>} : memref<392x768xf32, #tpu.memory_space<vmem>>, vector<4x384xf32>,
    %c1_329 = arith.constant 1 : index
    %c0_330 = arith.constant 0 : index
    %c124_331 = arith.constant 124 : index
    %256 = vector.load %arg1[%c1_329, %c0_330, %c124_331] : memref<2x4x552xf32, #tpu.memory_space<vmem>>, vector<1x4x384xf32>
    %257 = vector.shape_cast %256 : vector<1x4x384xf32> to vector<4x384xf32>
    %c156_332 = arith.constant 156 : index
    %c384_333 = arith.constant 384 : index
    %258 = vector.load %arg12[%c156_332, %c384_333] : memref<392x768xf32, #tpu.memory_space<vmem>>, vector<4x384xf32>
    tpu.vector_store %arg12[%c156_332, %c384_333], %257 {strides = array<i32>} : memref<392x768xf32, #tpu.memory_space<vmem>>, vector<4x384xf32>,
    %c0_334 = arith.constant 0 : index
    %c0_335 = arith.constant 0 : index
    %c125 = arith.constant 125 : index
    %259 = vector.load %arg1[%c0_334, %c0_335, %c125] : memref<2x4x552xf32, #tpu.memory_space<vmem>>, vector<1x4x384xf32>
    %260 = vector.shape_cast %259 : vector<1x4x384xf32> to vector<4x384xf32>
    %c160 = arith.constant 160 : index
    %c0_336 = arith.constant 0 : index
    %261 = vector.load %arg12[%c160, %c0_336] : memref<392x768xf32, #tpu.memory_space<vmem>>, vector<4x384xf32>
    tpu.vector_store %arg12[%c160, %c0_336], %260 {strides = array<i32>} : memref<392x768xf32, #tpu.memory_space<vmem>>, vector<4x384xf32>,
    %c1_337 = arith.constant 1 : index
    %c0_338 = arith.constant 0 : index
    %c125_339 = arith.constant 125 : index
    %262 = vector.load %arg1[%c1_337, %c0_338, %c125_339] : memref<2x4x552xf32, #tpu.memory_space<vmem>>, vector<1x4x384xf32>
    %263 = vector.shape_cast %262 : vector<1x4x384xf32> to vector<4x384xf32>
    %c160_340 = arith.constant 160 : index
    %c384_341 = arith.constant 384 : index
    %264 = vector.load %arg12[%c160_340, %c384_341] : memref<392x768xf32, #tpu.memory_space<vmem>>, vector<4x384xf32>
    tpu.vector_store %arg12[%c160_340, %c384_341], %263 {strides = array<i32>} : memref<392x768xf32, #tpu.memory_space<vmem>>, vector<4x384xf32>,
    %c0_342 = arith.constant 0 : index
    %c0_343 = arith.constant 0 : index
    %c126 = arith.constant 126 : index
    %265 = vector.load %arg1[%c0_342, %c0_343, %c126] : memref<2x4x552xf32, #tpu.memory_space<vmem>>, vector<1x4x384xf32>
    %266 = vector.shape_cast %265 : vector<1x4x384xf32> to vector<4x384xf32>
    %c164 = arith.constant 164 : index
    %c0_344 = arith.constant 0 : index
    %267 = vector.load %arg12[%c164, %c0_344] : memref<392x768xf32, #tpu.memory_space<vmem>>, vector<4x384xf32>
    tpu.vector_store %arg12[%c164, %c0_344], %266 {strides = array<i32>} : memref<392x768xf32, #tpu.memory_space<vmem>>, vector<4x384xf32>,
    %c1_345 = arith.constant 1 : index
    %c0_346 = arith.constant 0 : index
    %c126_347 = arith.constant 126 : index
    %268 = vector.load %arg1[%c1_345, %c0_346, %c126_347] : memref<2x4x552xf32, #tpu.memory_space<vmem>>, vector<1x4x384xf32>
    %269 = vector.shape_cast %268 : vector<1x4x384xf32> to vector<4x384xf32>
    %c164_348 = arith.constant 164 : index
    %c384_349 = arith.constant 384 : index
    %270 = vector.load %arg12[%c164_348, %c384_349] : memref<392x768xf32, #tpu.memory_space<vmem>>, vector<4x384xf32>
    tpu.vector_store %arg12[%c164_348, %c384_349], %269 {strides = array<i32>} : memref<392x768xf32, #tpu.memory_space<vmem>>, vector<4x384xf32>,
    %c0_350 = arith.constant 0 : index
    %c0_351 = arith.constant 0 : index
    %c144_352 = arith.constant 144 : index
    %271 = vector.load %arg1[%c0_350, %c0_351, %c144_352] : memref<2x4x552xf32, #tpu.memory_space<vmem>>, vector<1x4x384xf32>
    %272 = vector.shape_cast %271 : vector<1x4x384xf32> to vector<4x384xf32>
    %c168 = arith.constant 168 : index
    %c0_353 = arith.constant 0 : index
    %273 = vector.load %arg12[%c168, %c0_353] : memref<392x768xf32, #tpu.memory_space<vmem>>, vector<4x384xf32>
    tpu.vector_store %arg12[%c168, %c0_353], %272 {strides = array<i32>} : memref<392x768xf32, #tpu.memory_space<vmem>>, vector<4x384xf32>,
    %c1_354 = arith.constant 1 : index
    %c0_355 = arith.constant 0 : index
    %c144_356 = arith.constant 144 : index
    %274 = vector.load %arg1[%c1_354, %c0_355, %c144_356] : memref<2x4x552xf32, #tpu.memory_space<vmem>>, vector<1x4x384xf32>
    %275 = vector.shape_cast %274 : vector<1x4x384xf32> to vector<4x384xf32>
    %c168_357 = arith.constant 168 : index
    %c384_358 = arith.constant 384 : index
    %276 = vector.load %arg12[%c168_357, %c384_358] : memref<392x768xf32, #tpu.memory_space<vmem>>, vector<4x384xf32>
    tpu.vector_store %arg12[%c168_357, %c384_358], %275 {strides = array<i32>} : memref<392x768xf32, #tpu.memory_space<vmem>>, vector<4x384xf32>,
    %c0_359 = arith.constant 0 : index
    %c0_360 = arith.constant 0 : index
    %c145 = arith.constant 145 : index
    %277 = vector.load %arg1[%c0_359, %c0_360, %c145] : memref<2x4x552xf32, #tpu.memory_space<vmem>>, vector<1x4x384xf32>
    %278 = vector.shape_cast %277 : vector<1x4x384xf32> to vector<4x384xf32>
    %c172 = arith.constant 172 : index
    %c0_361 = arith.constant 0 : index
    %279 = vector.load %arg12[%c172, %c0_361] : memref<392x768xf32, #tpu.memory_space<vmem>>, vector<4x384xf32>
    tpu.vector_store %arg12[%c172, %c0_361], %278 {strides = array<i32>} : memref<392x768xf32, #tpu.memory_space<vmem>>, vector<4x384xf32>,
    %c1_362 = arith.constant 1 : index
    %c0_363 = arith.constant 0 : index
    %c145_364 = arith.constant 145 : index
    %280 = vector.load %arg1[%c1_362, %c0_363, %c145_364] : memref<2x4x552xf32, #tpu.memory_space<vmem>>, vector<1x4x384xf32>
    %281 = vector.shape_cast %280 : vector<1x4x384xf32> to vector<4x384xf32>
    %c172_365 = arith.constant 172 : index
    %c384_366 = arith.constant 384 : index
    %282 = vector.load %arg12[%c172_365, %c384_366] : memref<392x768xf32, #tpu.memory_space<vmem>>, vector<4x384xf32>
    tpu.vector_store %arg12[%c172_365, %c384_366], %281 {strides = array<i32>} : memref<392x768xf32, #tpu.memory_space<vmem>>, vector<4x384xf32>,
    %c0_367 = arith.constant 0 : index
    %c0_368 = arith.constant 0 : index
    %c146 = arith.constant 146 : index
    %283 = vector.load %arg1[%c0_367, %c0_368, %c146] : memref<2x4x552xf32, #tpu.memory_space<vmem>>, vector<1x4x384xf32>
    %284 = vector.shape_cast %283 : vector<1x4x384xf32> to vector<4x384xf32>
    %c176 = arith.constant 176 : index
    %c0_369 = arith.constant 0 : index
    %285 = vector.load %arg12[%c176, %c0_369] : memref<392x768xf32, #tpu.memory_space<vmem>>, vector<4x384xf32>
    tpu.vector_store %arg12[%c176, %c0_369], %284 {strides = array<i32>} : memref<392x768xf32, #tpu.memory_space<vmem>>, vector<4x384xf32>,
    %c1_370 = arith.constant 1 : index
    %c0_371 = arith.constant 0 : index
    %c146_372 = arith.constant 146 : index
    %286 = vector.load %arg1[%c1_370, %c0_371, %c146_372] : memref<2x4x552xf32, #tpu.memory_space<vmem>>, vector<1x4x384xf32>
    %287 = vector.shape_cast %286 : vector<1x4x384xf32> to vector<4x384xf32>
    %c176_373 = arith.constant 176 : index
    %c384_374 = arith.constant 384 : index
    %288 = vector.load %arg12[%c176_373, %c384_374] : memref<392x768xf32, #tpu.memory_space<vmem>>, vector<4x384xf32>
    tpu.vector_store %arg12[%c176_373, %c384_374], %287 {strides = array<i32>} : memref<392x768xf32, #tpu.memory_space<vmem>>, vector<4x384xf32>,
    %c0_375 = arith.constant 0 : index
    %c0_376 = arith.constant 0 : index
    %c147 = arith.constant 147 : index
    %289 = vector.load %arg1[%c0_375, %c0_376, %c147] : memref<2x4x552xf32, #tpu.memory_space<vmem>>, vector<1x4x384xf32>
    %290 = vector.shape_cast %289 : vector<1x4x384xf32> to vector<4x384xf32>
    %c180 = arith.constant 180 : index
    %c0_377 = arith.constant 0 : index
    %291 = vector.load %arg12[%c180, %c0_377] : memref<392x768xf32, #tpu.memory_space<vmem>>, vector<4x384xf32>
    tpu.vector_store %arg12[%c180, %c0_377], %290 {strides = array<i32>} : memref<392x768xf32, #tpu.memory_space<vmem>>, vector<4x384xf32>,
    %c1_378 = arith.constant 1 : index
    %c0_379 = arith.constant 0 : index
    %c147_380 = arith.constant 147 : index
    %292 = vector.load %arg1[%c1_378, %c0_379, %c147_380] : memref<2x4x552xf32, #tpu.memory_space<vmem>>, vector<1x4x384xf32>
    %293 = vector.shape_cast %292 : vector<1x4x384xf32> to vector<4x384xf32>
    %c180_381 = arith.constant 180 : index
    %c384_382 = arith.constant 384 : index
    %294 = vector.load %arg12[%c180_381, %c384_382] : memref<392x768xf32, #tpu.memory_space<vmem>>, vector<4x384xf32>
    tpu.vector_store %arg12[%c180_381, %c384_382], %293 {strides = array<i32>} : memref<392x768xf32, #tpu.memory_space<vmem>>, vector<4x384xf32>,
    %c0_383 = arith.constant 0 : index
    %c0_384 = arith.constant 0 : index
    %c148_385 = arith.constant 148 : index
    %295 = vector.load %arg1[%c0_383, %c0_384, %c148_385] : memref<2x4x552xf32, #tpu.memory_space<vmem>>, vector<1x4x384xf32>
    %296 = vector.shape_cast %295 : vector<1x4x384xf32> to vector<4x384xf32>
    %c184 = arith.constant 184 : index
    %c0_386 = arith.constant 0 : index
    %297 = vector.load %arg12[%c184, %c0_386] : memref<392x768xf32, #tpu.memory_space<vmem>>, vector<4x384xf32>
    tpu.vector_store %arg12[%c184, %c0_386], %296 {strides = array<i32>} : memref<392x768xf32, #tpu.memory_space<vmem>>, vector<4x384xf32>,
    %c1_387 = arith.constant 1 : index
    %c0_388 = arith.constant 0 : index
    %c148_389 = arith.constant 148 : index
    %298 = vector.load %arg1[%c1_387, %c0_388, %c148_389] : memref<2x4x552xf32, #tpu.memory_space<vmem>>, vector<1x4x384xf32>
    %299 = vector.shape_cast %298 : vector<1x4x384xf32> to vector<4x384xf32>
    %c184_390 = arith.constant 184 : index
    %c384_391 = arith.constant 384 : index
    %300 = vector.load %arg12[%c184_390, %c384_391] : memref<392x768xf32, #tpu.memory_space<vmem>>, vector<4x384xf32>
    tpu.vector_store %arg12[%c184_390, %c384_391], %299 {strides = array<i32>} : memref<392x768xf32, #tpu.memory_space<vmem>>, vector<4x384xf32>,
    %c0_392 = arith.constant 0 : index
    %c0_393 = arith.constant 0 : index
    %c149 = arith.constant 149 : index
    %301 = vector.load %arg1[%c0_392, %c0_393, %c149] : memref<2x4x552xf32, #tpu.memory_space<vmem>>, vector<1x4x384xf32>
    %302 = vector.shape_cast %301 : vector<1x4x384xf32> to vector<4x384xf32>
    %c188 = arith.constant 188 : index
    %c0_394 = arith.constant 0 : index
    %303 = vector.load %arg12[%c188, %c0_394] : memref<392x768xf32, #tpu.memory_space<vmem>>, vector<4x384xf32>
    tpu.vector_store %arg12[%c188, %c0_394], %302 {strides = array<i32>} : memref<392x768xf32, #tpu.memory_space<vmem>>, vector<4x384xf32>,
    %c1_395 = arith.constant 1 : index
    %c0_396 = arith.constant 0 : index
    %c149_397 = arith.constant 149 : index
    %304 = vector.load %arg1[%c1_395, %c0_396, %c149_397] : memref<2x4x552xf32, #tpu.memory_space<vmem>>, vector<1x4x384xf32>
    %305 = vector.shape_cast %304 : vector<1x4x384xf32> to vector<4x384xf32>
    %c188_398 = arith.constant 188 : index
    %c384_399 = arith.constant 384 : index
    %306 = vector.load %arg12[%c188_398, %c384_399] : memref<392x768xf32, #tpu.memory_space<vmem>>, vector<4x384xf32>
    tpu.vector_store %arg12[%c188_398, %c384_399], %305 {strides = array<i32>} : memref<392x768xf32, #tpu.memory_space<vmem>>, vector<4x384xf32>,
    %c0_400 = arith.constant 0 : index
    %c0_401 = arith.constant 0 : index
    %c150 = arith.constant 150 : index
    %307 = vector.load %arg1[%c0_400, %c0_401, %c150] : memref<2x4x552xf32, #tpu.memory_space<vmem>>, vector<1x4x384xf32>
    %308 = vector.shape_cast %307 : vector<1x4x384xf32> to vector<4x384xf32>
    %c192 = arith.constant 192 : index
    %c0_402 = arith.constant 0 : index
    %309 = vector.load %arg12[%c192, %c0_402] : memref<392x768xf32, #tpu.memory_space<vmem>>, vector<4x384xf32>
    tpu.vector_store %arg12[%c192, %c0_402], %308 {strides = array<i32>} : memref<392x768xf32, #tpu.memory_space<vmem>>, vector<4x384xf32>,
    %c1_403 = arith.constant 1 : index
    %c0_404 = arith.constant 0 : index
    %c150_405 = arith.constant 150 : index
    %310 = vector.load %arg1[%c1_403, %c0_404, %c150_405] : memref<2x4x552xf32, #tpu.memory_space<vmem>>, vector<1x4x384xf32>
    %311 = vector.shape_cast %310 : vector<1x4x384xf32> to vector<4x384xf32>
    %c192_406 = arith.constant 192 : index
    %c384_407 = arith.constant 384 : index
    %312 = vector.load %arg12[%c192_406, %c384_407] : memref<392x768xf32, #tpu.memory_space<vmem>>, vector<4x384xf32>
    tpu.vector_store %arg12[%c192_406, %c384_407], %311 {strides = array<i32>} : memref<392x768xf32, #tpu.memory_space<vmem>>, vector<4x384xf32>,
    %c0_408 = arith.constant 0 : index
    %c0_409 = arith.constant 0 : index
    %313 = vector.load %arg2[%c0_408, %c0_409] : memref<16x196xf32, #tpu.memory_space<vmem>>, vector<16x196xf32>
    %c0_410 = arith.constant 0 : index
    %c0_411 = arith.constant 0 : index
    %314 = vector.load %arg12[%c0_410, %c0_411] : memref<392x768xf32, #tpu.memory_space<vmem>>, vector<196x768xf32>
    %cst = arith.constant dense<0.000000e+00> : vector<16x768xf32>
    %315 = tpu.matmul %313, %314, %cst {dimension_numbers = #tpu.dot_dimension_numbers<[1], [0], [0], [1], [0, 0, 1, 1], [], []>} : vector<16x196xf32>, vector<196x768xf32>, vector<16x768xf32> -> vector<16x768xf32>
    %316 = vector.extract_strided_slice %315 {offsets = [0, 0], sizes = [8, 768], strides = [1, 1]} : vector<16x768xf32> to vector<8x768xf32>
    %c0_412 = arith.constant 0 : index
    %c0_413 = arith.constant 0 : index
    %317 = vector.load %arg6[%c0_412, %c0_413] : memref<8x4xf32, #tpu.memory_space<vmem>>, vector<8x1xf32>
    %318 = vector.broadcast %317 : vector<8x1xf32> to vector<8x768xf32>
    %319 = arith.mulf %316, %318 : vector<8x768xf32>
    %c0_414 = arith.constant 0 : index
    %c0_415 = arith.constant 0 : index
    %320 = vector.load %arg7[%c0_414, %c0_415] : memref<8x4xf32, #tpu.memory_space<vmem>>, vector<8x1xf32>
    %321 = vector.broadcast %320 : vector<8x1xf32> to vector<8x768xf32>
    %322 = arith.addf %319, %321 : vector<8x768xf32>
    %cst_416 = arith.constant 0.000000e+00 : f32
    %323 = vector.broadcast %cst_416 : f32 to vector<8x768xf32>
    %324 = arith.maximumf %322, %323 : vector<8x768xf32>
    %cst_417 = arith.constant 0.000000e+00 : f32
    %325 = vector.shape_cast %18 : vector<1x768xi1> to vector<1x768xi1>
    %326 = vector.broadcast %325 : vector<1x768xi1> to vector<8x768xi1>
    %327 = vector.broadcast %cst_417 : f32 to vector<8x768xf32>
    %328 = arith.select %326, %324, %327 : vector<8x768xi1>, vector<8x768xf32>
    %cst_418 = arith.constant 0.000000e+00 : f32
    %329 = vector.broadcast %cst_418 : f32 to vector<8x75xf32>
    %cst_419 = arith.constant 0.000000e+00 : f32
    %330 = vector.broadcast %cst_419 : f32 to vector<8x93xf32>
    %c0_420 = arith.constant 0 : index
    %c0_421 = arith.constant 0 : index
    %331 = vector.load %arg10[%c0_420, %c0_421] : memref<8x1104xf32, #tpu.memory_space<vmem>>, vector<8x75xf32>
    tpu.vector_store %arg10[%c0_420, %c0_421], %329 {strides = array<i32>} : memref<8x1104xf32, #tpu.memory_space<vmem>>, vector<8x75xf32>,
    %332 = vector.extract_strided_slice %328 {offsets = [0, 0], sizes = [8, 384], strides = [1, 1]} : vector<8x768xf32> to vector<8x384xf32>
    %c0_422 = arith.constant 0 : index
    %c75_423 = arith.constant 75 : index
    %333 = vector.load %arg10[%c0_422, %c75_423] : memref<8x1104xf32, #tpu.memory_space<vmem>>, vector<8x384xf32>
    tpu.vector_store %arg10[%c0_422, %c75_423], %332 {strides = array<i32>} : memref<8x1104xf32, #tpu.memory_space<vmem>>, vector<8x384xf32>,
    %c0_424 = arith.constant 0 : index
    %c459 = arith.constant 459 : index
    %334 = vector.load %arg10[%c0_424, %c459] : memref<8x1104xf32, #tpu.memory_space<vmem>>, vector<8x93xf32>
    tpu.vector_store %arg10[%c0_424, %c459], %330 {strides = array<i32>} : memref<8x1104xf32, #tpu.memory_space<vmem>>, vector<8x93xf32>,
    %c0_425 = arith.constant 0 : index
    %c552 = arith.constant 552 : index
    %335 = vector.load %arg10[%c0_425, %c552] : memref<8x1104xf32, #tpu.memory_space<vmem>>, vector<8x75xf32>
    tpu.vector_store %arg10[%c0_425, %c552], %329 {strides = array<i32>} : memref<8x1104xf32, #tpu.memory_space<vmem>>, vector<8x75xf32>,
    %336 = vector.extract_strided_slice %328 {offsets = [0, 384], sizes = [8, 384], strides = [1, 1]} : vector<8x768xf32> to vector<8x384xf32>
    %c0_426 = arith.constant 0 : index
    %c627 = arith.constant 627 : index
    %337 = vector.load %arg10[%c0_426, %c627] : memref<8x1104xf32, #tpu.memory_space<vmem>>, vector<8x384xf32>
    tpu.vector_store %arg10[%c0_426, %c627], %336 {strides = array<i32>} : memref<8x1104xf32, #tpu.memory_space<vmem>>, vector<8x384xf32>,
    %c0_427 = arith.constant 0 : index
    %c1011 = arith.constant 1011 : index
    %338 = vector.load %arg10[%c0_427, %c1011] : memref<8x1104xf32, #tpu.memory_space<vmem>>, vector<8x93xf32>
    tpu.vector_store %arg10[%c0_427, %c1011], %330 {strides = array<i32>} : memref<8x1104xf32, #tpu.memory_space<vmem>>, vector<8x93xf32>,
    %339 = vector.extract_strided_slice %315 {offsets = [8, 0], sizes = [8, 768], strides = [1, 1]} : vector<16x768xf32> to vector<8x768xf32>
    %c0_428 = arith.constant 0 : index
    %c2_429 = arith.constant 2 : index
    %340 = vector.load %arg6[%c0_428, %c2_429] : memref<8x4xf32, #tpu.memory_space<vmem>>, vector<8x1xf32>
    %341 = vector.broadcast %340 : vector<8x1xf32> to vector<8x768xf32>
    %342 = arith.mulf %339, %341 : vector<8x768xf32>
    %c0_430 = arith.constant 0 : index
    %c2_431 = arith.constant 2 : index
    %343 = vector.load %arg7[%c0_430, %c2_431] : memref<8x4xf32, #tpu.memory_space<vmem>>, vector<8x1xf32>
    %344 = vector.broadcast %343 : vector<8x1xf32> to vector<8x768xf32>
    %345 = arith.addf %342, %344 : vector<8x768xf32>
    %cst_432 = arith.constant 0.000000e+00 : f32
    %346 = vector.broadcast %cst_432 : f32 to vector<8x768xf32>
    %347 = arith.maximumf %345, %346 : vector<8x768xf32>
    %cst_433 = arith.constant 0.000000e+00 : f32
    %348 = vector.shape_cast %18 : vector<1x768xi1> to vector<1x768xi1>
    %349 = vector.broadcast %348 : vector<1x768xi1> to vector<8x768xi1>
    %350 = vector.broadcast %cst_433 : f32 to vector<8x768xf32>
    %351 = arith.select %349, %347, %350 : vector<8x768xi1>, vector<8x768xf32>
    %cst_434 = arith.constant 0.000000e+00 : f32
    %352 = vector.broadcast %cst_434 : f32 to vector<8x75xf32>
    %cst_435 = arith.constant 0.000000e+00 : f32
    %353 = vector.broadcast %cst_435 : f32 to vector<8x93xf32>
    %c0_436 = arith.constant 0 : index
    %c0_437 = arith.constant 0 : index
    %354 = vector.load %arg11[%c0_436, %c0_437] : memref<8x1104xf32, #tpu.memory_space<vmem>>, vector<8x75xf32>
    tpu.vector_store %arg11[%c0_436, %c0_437], %352 {strides = array<i32>} : memref<8x1104xf32, #tpu.memory_space<vmem>>, vector<8x75xf32>,
    %355 = vector.extract_strided_slice %351 {offsets = [0, 0], sizes = [8, 384], strides = [1, 1]} : vector<8x768xf32> to vector<8x384xf32>
    %c0_438 = arith.constant 0 : index
    %c75_439 = arith.constant 75 : index
    %356 = vector.load %arg11[%c0_438, %c75_439] : memref<8x1104xf32, #tpu.memory_space<vmem>>, vector<8x384xf32>
    tpu.vector_store %arg11[%c0_438, %c75_439], %355 {strides = array<i32>} : memref<8x1104xf32, #tpu.memory_space<vmem>>, vector<8x384xf32>,
    %c0_440 = arith.constant 0 : index
    %c459_441 = arith.constant 459 : index
    %357 = vector.load %arg11[%c0_440, %c459_441] : memref<8x1104xf32, #tpu.memory_space<vmem>>, vector<8x93xf32>
    tpu.vector_store %arg11[%c0_440, %c459_441], %353 {strides = array<i32>} : memref<8x1104xf32, #tpu.memory_space<vmem>>, vector<8x93xf32>,
    %c0_442 = arith.constant 0 : index
    %c552_443 = arith.constant 552 : index
    %358 = vector.load %arg11[%c0_442, %c552_443] : memref<8x1104xf32, #tpu.memory_space<vmem>>, vector<8x75xf32>
    tpu.vector_store %arg11[%c0_442, %c552_443], %352 {strides = array<i32>} : memref<8x1104xf32, #tpu.memory_space<vmem>>, vector<8x75xf32>,
    %359 = vector.extract_strided_slice %351 {offsets = [0, 384], sizes = [8, 384], strides = [1, 1]} : vector<8x768xf32> to vector<8x384xf32>
    %c0_444 = arith.constant 0 : index
    %c627_445 = arith.constant 627 : index
    %360 = vector.load %arg11[%c0_444, %c627_445] : memref<8x1104xf32, #tpu.memory_space<vmem>>, vector<8x384xf32>
    tpu.vector_store %arg11[%c0_444, %c627_445], %359 {strides = array<i32>} : memref<8x1104xf32, #tpu.memory_space<vmem>>, vector<8x384xf32>,
    %c0_446 = arith.constant 0 : index
    %c1011_447 = arith.constant 1011 : index
    %361 = vector.load %arg11[%c0_446, %c1011_447] : memref<8x1104xf32, #tpu.memory_space<vmem>>, vector<8x93xf32>
    tpu.vector_store %arg11[%c0_446, %c1011_447], %353 {strides = array<i32>} : memref<8x1104xf32, #tpu.memory_space<vmem>>, vector<8x93xf32>,
    %c0_448 = arith.constant 0 : index
    %c50_449 = arith.constant 50 : index
    %362 = vector.load %arg10[%c0_448, %c50_449] : memref<8x1104xf32, #tpu.memory_space<vmem>>, vector<8x384xf32>
    %c0_450 = arith.constant 0 : index
    %c0_451 = arith.constant 0 : index
    %363 = vector.load %arg12[%c0_450, %c0_451] : memref<392x768xf32, #tpu.memory_space<vmem>>, vector<8x384xf32>
    tpu.vector_store %arg12[%c0_450, %c0_451], %362 {strides = array<i32>} : memref<392x768xf32, #tpu.memory_space<vmem>>, vector<8x384xf32>,
    %c0_452 = arith.constant 0 : index
    %c602 = arith.constant 602 : index
    %364 = vector.load %arg10[%c0_452, %c602] : memref<8x1104xf32, #tpu.memory_space<vmem>>, vector<8x384xf32>
    %c0_453 = arith.constant 0 : index
    %c384_454 = arith.constant 384 : index
    %365 = vector.load %arg12[%c0_453, %c384_454] : memref<392x768xf32, #tpu.memory_space<vmem>>, vector<8x384xf32>
    tpu.vector_store %arg12[%c0_453, %c384_454], %364 {strides = array<i32>} : memref<392x768xf32, #tpu.memory_space<vmem>>, vector<8x384xf32>,
    %c0_455 = arith.constant 0 : index
    %c51_456 = arith.constant 51 : index
    %366 = vector.load %arg10[%c0_455, %c51_456] : memref<8x1104xf32, #tpu.memory_space<vmem>>, vector<8x384xf32>
    %c8_457 = arith.constant 8 : index
    %c0_458 = arith.constant 0 : index
    %367 = vector.load %arg12[%c8_457, %c0_458] : memref<392x768xf32, #tpu.memory_space<vmem>>, vector<8x384xf32>
    tpu.vector_store %arg12[%c8_457, %c0_458], %366 {strides = array<i32>} : memref<392x768xf32, #tpu.memory_space<vmem>>, vector<8x384xf32>,
    %c0_459 = arith.constant 0 : index
    %c603 = arith.constant 603 : index
    %368 = vector.load %arg10[%c0_459, %c603] : memref<8x1104xf32, #tpu.memory_space<vmem>>, vector<8x384xf32>
    %c8_460 = arith.constant 8 : index
    %c384_461 = arith.constant 384 : index
    %369 = vector.load %arg12[%c8_460, %c384_461] : memref<392x768xf32, #tpu.memory_space<vmem>>, vector<8x384xf32>
    tpu.vector_store %arg12[%c8_460, %c384_461], %368 {strides = array<i32>} : memref<392x768xf32, #tpu.memory_space<vmem>>, vector<8x384xf32>,
    %c0_462 = arith.constant 0 : index
    %c52_463 = arith.constant 52 : index
    %370 = vector.load %arg10[%c0_462, %c52_463] : memref<8x1104xf32, #tpu.memory_space<vmem>>, vector<8x384xf32>
    %c16_464 = arith.constant 16 : index
    %c0_465 = arith.constant 0 : index
    %371 = vector.load %arg12[%c16_464, %c0_465] : memref<392x768xf32, #tpu.memory_space<vmem>>, vector<8x384xf32>
    tpu.vector_store %arg12[%c16_464, %c0_465], %370 {strides = array<i32>} : memref<392x768xf32, #tpu.memory_space<vmem>>, vector<8x384xf32>,
    %c0_466 = arith.constant 0 : index
    %c604 = arith.constant 604 : index
    %372 = vector.load %arg10[%c0_466, %c604] : memref<8x1104xf32, #tpu.memory_space<vmem>>, vector<8x384xf32>
    %c16_467 = arith.constant 16 : index
    %c384_468 = arith.constant 384 : index
    %373 = vector.load %arg12[%c16_467, %c384_468] : memref<392x768xf32, #tpu.memory_space<vmem>>, vector<8x384xf32>
    tpu.vector_store %arg12[%c16_467, %c384_468], %372 {strides = array<i32>} : memref<392x768xf32, #tpu.memory_space<vmem>>, vector<8x384xf32>,
    %c0_469 = arith.constant 0 : index
    %c74_470 = arith.constant 74 : index
    %374 = vector.load %arg10[%c0_469, %c74_470] : memref<8x1104xf32, #tpu.memory_space<vmem>>, vector<8x384xf32>
    %c24_471 = arith.constant 24 : index
    %c0_472 = arith.constant 0 : index
    %375 = vector.load %arg12[%c24_471, %c0_472] : memref<392x768xf32, #tpu.memory_space<vmem>>, vector<8x384xf32>
    tpu.vector_store %arg12[%c24_471, %c0_472], %374 {strides = array<i32>} : memref<392x768xf32, #tpu.memory_space<vmem>>, vector<8x384xf32>,
    %c0_473 = arith.constant 0 : index
    %c626 = arith.constant 626 : index
    %376 = vector.load %arg10[%c0_473, %c626] : memref<8x1104xf32, #tpu.memory_space<vmem>>, vector<8x384xf32>
    %c24_474 = arith.constant 24 : index
    %c384_475 = arith.constant 384 : index
    %377 = vector.load %arg12[%c24_474, %c384_475] : memref<392x768xf32, #tpu.memory_space<vmem>>, vector<8x384xf32>
    tpu.vector_store %arg12[%c24_474, %c384_475], %376 {strides = array<i32>} : memref<392x768xf32, #tpu.memory_space<vmem>>, vector<8x384xf32>,
    %c0_476 = arith.constant 0 : index
    %c75_477 = arith.constant 75 : index
    %378 = vector.load %arg10[%c0_476, %c75_477] : memref<8x1104xf32, #tpu.memory_space<vmem>>, vector<8x384xf32>
    %c32_478 = arith.constant 32 : index
    %c0_479 = arith.constant 0 : index
    %379 = vector.load %arg12[%c32_478, %c0_479] : memref<392x768xf32, #tpu.memory_space<vmem>>, vector<8x384xf32>
    tpu.vector_store %arg12[%c32_478, %c0_479], %378 {strides = array<i32>} : memref<392x768xf32, #tpu.memory_space<vmem>>, vector<8x384xf32>,
    %c0_480 = arith.constant 0 : index
    %c627_481 = arith.constant 627 : index
    %380 = vector.load %arg10[%c0_480, %c627_481] : memref<8x1104xf32, #tpu.memory_space<vmem>>, vector<8x384xf32>
    %c32_482 = arith.constant 32 : index
    %c384_483 = arith.constant 384 : index
    %381 = vector.load %arg12[%c32_482, %c384_483] : memref<392x768xf32, #tpu.memory_space<vmem>>, vector<8x384xf32>
    tpu.vector_store %arg12[%c32_482, %c384_483], %380 {strides = array<i32>} : memref<392x768xf32, #tpu.memory_space<vmem>>, vector<8x384xf32>,
    %c0_484 = arith.constant 0 : index
    %c76_485 = arith.constant 76 : index
    %382 = vector.load %arg10[%c0_484, %c76_485] : memref<8x1104xf32, #tpu.memory_space<vmem>>, vector<8x384xf32>
    %c40_486 = arith.constant 40 : index
    %c0_487 = arith.constant 0 : index
    %383 = vector.load %arg12[%c40_486, %c0_487] : memref<392x768xf32, #tpu.memory_space<vmem>>, vector<8x384xf32>
    tpu.vector_store %arg12[%c40_486, %c0_487], %382 {strides = array<i32>} : memref<392x768xf32, #tpu.memory_space<vmem>>, vector<8x384xf32>,
    %c0_488 = arith.constant 0 : index
    %c628 = arith.constant 628 : index
    %384 = vector.load %arg10[%c0_488, %c628] : memref<8x1104xf32, #tpu.memory_space<vmem>>, vector<8x384xf32>
    %c40_489 = arith.constant 40 : index
    %c384_490 = arith.constant 384 : index
    %385 = vector.load %arg12[%c40_489, %c384_490] : memref<392x768xf32, #tpu.memory_space<vmem>>, vector<8x384xf32>
    tpu.vector_store %arg12[%c40_489, %c384_490], %384 {strides = array<i32>} : memref<392x768xf32, #tpu.memory_space<vmem>>, vector<8x384xf32>,
    %c0_491 = arith.constant 0 : index
    %c98_492 = arith.constant 98 : index
    %386 = vector.load %arg10[%c0_491, %c98_492] : memref<8x1104xf32, #tpu.memory_space<vmem>>, vector<8x384xf32>
    %c48_493 = arith.constant 48 : index
    %c0_494 = arith.constant 0 : index
    %387 = vector.load %arg12[%c48_493, %c0_494] : memref<392x768xf32, #tpu.memory_space<vmem>>, vector<8x384xf32>
    tpu.vector_store %arg12[%c48_493, %c0_494], %386 {strides = array<i32>} : memref<392x768xf32, #tpu.memory_space<vmem>>, vector<8x384xf32>,
    %c0_495 = arith.constant 0 : index
    %c650 = arith.constant 650 : index
    %388 = vector.load %arg10[%c0_495, %c650] : memref<8x1104xf32, #tpu.memory_space<vmem>>, vector<8x384xf32>
    %c48_496 = arith.constant 48 : index
    %c384_497 = arith.constant 384 : index
    %389 = vector.load %arg12[%c48_496, %c384_497] : memref<392x768xf32, #tpu.memory_space<vmem>>, vector<8x384xf32>
    tpu.vector_store %arg12[%c48_496, %c384_497], %388 {strides = array<i32>} : memref<392x768xf32, #tpu.memory_space<vmem>>, vector<8x384xf32>,
    %c0_498 = arith.constant 0 : index
    %c99_499 = arith.constant 99 : index
    %390 = vector.load %arg10[%c0_498, %c99_499] : memref<8x1104xf32, #tpu.memory_space<vmem>>, vector<8x384xf32>
    %c56_500 = arith.constant 56 : index
    %c0_501 = arith.constant 0 : index
    %391 = vector.load %arg12[%c56_500, %c0_501] : memref<392x768xf32, #tpu.memory_space<vmem>>, vector<8x384xf32>
    tpu.vector_store %arg12[%c56_500, %c0_501], %390 {strides = array<i32>} : memref<392x768xf32, #tpu.memory_space<vmem>>, vector<8x384xf32>,
    %c0_502 = arith.constant 0 : index
    %c651 = arith.constant 651 : index
    %392 = vector.load %arg10[%c0_502, %c651] : memref<8x1104xf32, #tpu.memory_space<vmem>>, vector<8x384xf32>
    %c56_503 = arith.constant 56 : index
    %c384_504 = arith.constant 384 : index
    %393 = vector.load %arg12[%c56_503, %c384_504] : memref<392x768xf32, #tpu.memory_space<vmem>>, vector<8x384xf32>
    tpu.vector_store %arg12[%c56_503, %c384_504], %392 {strides = array<i32>} : memref<392x768xf32, #tpu.memory_space<vmem>>, vector<8x384xf32>,
    %c0_505 = arith.constant 0 : index
    %c100_506 = arith.constant 100 : index
    %394 = vector.load %arg10[%c0_505, %c100_506] : memref<8x1104xf32, #tpu.memory_space<vmem>>, vector<8x384xf32>
    %c64_507 = arith.constant 64 : index
    %c0_508 = arith.constant 0 : index
    %395 = vector.load %arg12[%c64_507, %c0_508] : memref<392x768xf32, #tpu.memory_space<vmem>>, vector<8x384xf32>
    tpu.vector_store %arg12[%c64_507, %c0_508], %394 {strides = array<i32>} : memref<392x768xf32, #tpu.memory_space<vmem>>, vector<8x384xf32>,
    %c0_509 = arith.constant 0 : index
    %c652 = arith.constant 652 : index
    %396 = vector.load %arg10[%c0_509, %c652] : memref<8x1104xf32, #tpu.memory_space<vmem>>, vector<8x384xf32>
    %c64_510 = arith.constant 64 : index
    %c384_511 = arith.constant 384 : index
    %397 = vector.load %arg12[%c64_510, %c384_511] : memref<392x768xf32, #tpu.memory_space<vmem>>, vector<8x384xf32>
    tpu.vector_store %arg12[%c64_510, %c384_511], %396 {strides = array<i32>} : memref<392x768xf32, #tpu.memory_space<vmem>>, vector<8x384xf32>,
    %c0_512 = arith.constant 0 : index
    %c0_513 = arith.constant 0 : index
    %398 = vector.load %arg3[%c0_512, %c0_513] : memref<8x72xf32, #tpu.memory_space<vmem>>, vector<8x72xf32>
    %c0_514 = arith.constant 0 : index
    %c0_515 = arith.constant 0 : index
    %399 = vector.load %arg12[%c0_514, %c0_515] : memref<392x768xf32, #tpu.memory_space<vmem>>, vector<72x768xf32>
    %cst_516 = arith.constant dense<0.000000e+00> : vector<8x768xf32>
    %400 = tpu.matmul %398, %399, %cst_516 {dimension_numbers = #tpu.dot_dimension_numbers<[1], [0], [0], [1], [0, 0, 1, 1], [], []>} : vector<8x72xf32>, vector<72x768xf32>, vector<8x768xf32> -> vector<8x768xf32>
    %c0_517 = arith.constant 0 : index
    %c1_518 = arith.constant 1 : index
    %401 = vector.load %arg6[%c0_517, %c1_518] : memref<8x4xf32, #tpu.memory_space<vmem>>, vector<8x1xf32>
    %402 = vector.broadcast %401 : vector<8x1xf32> to vector<8x768xf32>
    %403 = arith.mulf %400, %402 : vector<8x768xf32>
    %c0_519 = arith.constant 0 : index
    %c1_520 = arith.constant 1 : index
    %404 = vector.load %arg7[%c0_519, %c1_520] : memref<8x4xf32, #tpu.memory_space<vmem>>, vector<8x1xf32>
    %405 = vector.broadcast %404 : vector<8x1xf32> to vector<8x768xf32>
    %406 = arith.addf %403, %405 : vector<8x768xf32>
    %cst_521 = arith.constant 0.000000e+00 : f32
    %407 = vector.broadcast %cst_521 : f32 to vector<8x768xf32>
    %408 = arith.maximumf %406, %407 : vector<8x768xf32>
    %c0_522 = arith.constant 0 : index
    %c0_523 = arith.constant 0 : index
    %409 = vector.load %arg5[%c0_522, %c0_523] : memref<8x16xf32, #tpu.memory_space<vmem>>, vector<8x8xf32>
    %cst_524 = arith.constant dense<0.000000e+00> : vector<8x768xf32>
    %410 = tpu.matmul %409, %408, %cst_524 {dimension_numbers = #tpu.dot_dimension_numbers<[1], [0], [0], [1], [0, 0, 1, 1], [], []>} : vector<8x8xf32>, vector<8x768xf32>, vector<8x768xf32> -> vector<8x768xf32>
    %c0_525 = arith.constant 0 : index
    %c0_526 = arith.constant 0 : index
    %411 = vector.load %arg13[%c0_525, %c0_526] : memref<8x768xf32, #tpu.memory_space<vmem>>, vector<8x768xf32>
    tpu.vector_store %arg13[%c0_525, %c0_526], %410 {strides = array<i32>} : memref<8x768xf32, #tpu.memory_space<vmem>>, vector<8x768xf32>,
    %c0_527 = arith.constant 0 : index
    %c0_528 = arith.constant 0 : index
    %412 = vector.load %arg11[%c0_527, %c0_528] : memref<8x1104xf32, #tpu.memory_space<vmem>>, vector<8x384xf32>
    %c0_529 = arith.constant 0 : index
    %c0_530 = arith.constant 0 : index
    %413 = vector.load %arg12[%c0_529, %c0_530] : memref<392x768xf32, #tpu.memory_space<vmem>>, vector<8x384xf32>
    tpu.vector_store %arg12[%c0_529, %c0_530], %412 {strides = array<i32>} : memref<392x768xf32, #tpu.memory_space<vmem>>, vector<8x384xf32>,
    %c0_531 = arith.constant 0 : index
    %c552_532 = arith.constant 552 : index
    %414 = vector.load %arg11[%c0_531, %c552_532] : memref<8x1104xf32, #tpu.memory_space<vmem>>, vector<8x384xf32>
    %c0_533 = arith.constant 0 : index
    %c384_534 = arith.constant 384 : index
    %415 = vector.load %arg12[%c0_533, %c384_534] : memref<392x768xf32, #tpu.memory_space<vmem>>, vector<8x384xf32>
    tpu.vector_store %arg12[%c0_533, %c384_534], %414 {strides = array<i32>} : memref<392x768xf32, #tpu.memory_space<vmem>>, vector<8x384xf32>,
    %c0_535 = arith.constant 0 : index
    %c1_536 = arith.constant 1 : index
    %416 = vector.load %arg11[%c0_535, %c1_536] : memref<8x1104xf32, #tpu.memory_space<vmem>>, vector<8x384xf32>
    %c8_537 = arith.constant 8 : index
    %c0_538 = arith.constant 0 : index
    %417 = vector.load %arg12[%c8_537, %c0_538] : memref<392x768xf32, #tpu.memory_space<vmem>>, vector<8x384xf32>
    tpu.vector_store %arg12[%c8_537, %c0_538], %416 {strides = array<i32>} : memref<392x768xf32, #tpu.memory_space<vmem>>, vector<8x384xf32>,
    %c0_539 = arith.constant 0 : index
    %c553 = arith.constant 553 : index
    %418 = vector.load %arg11[%c0_539, %c553] : memref<8x1104xf32, #tpu.memory_space<vmem>>, vector<8x384xf32>
    %c8_540 = arith.constant 8 : index
    %c384_541 = arith.constant 384 : index
    %419 = vector.load %arg12[%c8_540, %c384_541] : memref<392x768xf32, #tpu.memory_space<vmem>>, vector<8x384xf32>
    tpu.vector_store %arg12[%c8_540, %c384_541], %418 {strides = array<i32>} : memref<392x768xf32, #tpu.memory_space<vmem>>, vector<8x384xf32>,
    %c0_542 = arith.constant 0 : index
    %c2_543 = arith.constant 2 : index
    %420 = vector.load %arg11[%c0_542, %c2_543] : memref<8x1104xf32, #tpu.memory_space<vmem>>, vector<8x384xf32>
    %c16_544 = arith.constant 16 : index
    %c0_545 = arith.constant 0 : index
    %421 = vector.load %arg12[%c16_544, %c0_545] : memref<392x768xf32, #tpu.memory_space<vmem>>, vector<8x384xf32>
    tpu.vector_store %arg12[%c16_544, %c0_545], %420 {strides = array<i32>} : memref<392x768xf32, #tpu.memory_space<vmem>>, vector<8x384xf32>,
    %c0_546 = arith.constant 0 : index
    %c554 = arith.constant 554 : index
    %422 = vector.load %arg11[%c0_546, %c554] : memref<8x1104xf32, #tpu.memory_space<vmem>>, vector<8x384xf32>
    %c16_547 = arith.constant 16 : index
    %c384_548 = arith.constant 384 : index
    %423 = vector.load %arg12[%c16_547, %c384_548] : memref<392x768xf32, #tpu.memory_space<vmem>>, vector<8x384xf32>
    tpu.vector_store %arg12[%c16_547, %c384_548], %422 {strides = array<i32>} : memref<392x768xf32, #tpu.memory_space<vmem>>, vector<8x384xf32>,
    %c0_549 = arith.constant 0 : index
    %c3_550 = arith.constant 3 : index
    %424 = vector.load %arg11[%c0_549, %c3_550] : memref<8x1104xf32, #tpu.memory_space<vmem>>, vector<8x384xf32>
    %c24_551 = arith.constant 24 : index
    %c0_552 = arith.constant 0 : index
    %425 = vector.load %arg12[%c24_551, %c0_552] : memref<392x768xf32, #tpu.memory_space<vmem>>, vector<8x384xf32>
    tpu.vector_store %arg12[%c24_551, %c0_552], %424 {strides = array<i32>} : memref<392x768xf32, #tpu.memory_space<vmem>>, vector<8x384xf32>,
    %c0_553 = arith.constant 0 : index
    %c555 = arith.constant 555 : index
    %426 = vector.load %arg11[%c0_553, %c555] : memref<8x1104xf32, #tpu.memory_space<vmem>>, vector<8x384xf32>
    %c24_554 = arith.constant 24 : index
    %c384_555 = arith.constant 384 : index
    %427 = vector.load %arg12[%c24_554, %c384_555] : memref<392x768xf32, #tpu.memory_space<vmem>>, vector<8x384xf32>
    tpu.vector_store %arg12[%c24_554, %c384_555], %426 {strides = array<i32>} : memref<392x768xf32, #tpu.memory_space<vmem>>, vector<8x384xf32>,
    %c0_556 = arith.constant 0 : index
    %c4_557 = arith.constant 4 : index
    %428 = vector.load %arg11[%c0_556, %c4_557] : memref<8x1104xf32, #tpu.memory_space<vmem>>, vector<8x384xf32>
    %c32_558 = arith.constant 32 : index
    %c0_559 = arith.constant 0 : index
    %429 = vector.load %arg12[%c32_558, %c0_559] : memref<392x768xf32, #tpu.memory_space<vmem>>, vector<8x384xf32>
    tpu.vector_store %arg12[%c32_558, %c0_559], %428 {strides = array<i32>} : memref<392x768xf32, #tpu.memory_space<vmem>>, vector<8x384xf32>,
    %c0_560 = arith.constant 0 : index
    %c556 = arith.constant 556 : index
    %430 = vector.load %arg11[%c0_560, %c556] : memref<8x1104xf32, #tpu.memory_space<vmem>>, vector<8x384xf32>
    %c32_561 = arith.constant 32 : index
    %c384_562 = arith.constant 384 : index
    %431 = vector.load %arg12[%c32_561, %c384_562] : memref<392x768xf32, #tpu.memory_space<vmem>>, vector<8x384xf32>
    tpu.vector_store %arg12[%c32_561, %c384_562], %430 {strides = array<i32>} : memref<392x768xf32, #tpu.memory_space<vmem>>, vector<8x384xf32>,
    %c0_563 = arith.constant 0 : index
    %c5_564 = arith.constant 5 : index
    %432 = vector.load %arg11[%c0_563, %c5_564] : memref<8x1104xf32, #tpu.memory_space<vmem>>, vector<8x384xf32>
    %c40_565 = arith.constant 40 : index
    %c0_566 = arith.constant 0 : index
    %433 = vector.load %arg12[%c40_565, %c0_566] : memref<392x768xf32, #tpu.memory_space<vmem>>, vector<8x384xf32>
    tpu.vector_store %arg12[%c40_565, %c0_566], %432 {strides = array<i32>} : memref<392x768xf32, #tpu.memory_space<vmem>>, vector<8x384xf32>,
    %c0_567 = arith.constant 0 : index
    %c557 = arith.constant 557 : index
    %434 = vector.load %arg11[%c0_567, %c557] : memref<8x1104xf32, #tpu.memory_space<vmem>>, vector<8x384xf32>
    %c40_568 = arith.constant 40 : index
    %c384_569 = arith.constant 384 : index
    %435 = vector.load %arg12[%c40_568, %c384_569] : memref<392x768xf32, #tpu.memory_space<vmem>>, vector<8x384xf32>
    tpu.vector_store %arg12[%c40_568, %c384_569], %434 {strides = array<i32>} : memref<392x768xf32, #tpu.memory_space<vmem>>, vector<8x384xf32>,
    %c0_570 = arith.constant 0 : index
    %c6_571 = arith.constant 6 : index
    %436 = vector.load %arg11[%c0_570, %c6_571] : memref<8x1104xf32, #tpu.memory_space<vmem>>, vector<8x384xf32>
    %c48_572 = arith.constant 48 : index
    %c0_573 = arith.constant 0 : index
    %437 = vector.load %arg12[%c48_572, %c0_573] : memref<392x768xf32, #tpu.memory_space<vmem>>, vector<8x384xf32>
    tpu.vector_store %arg12[%c48_572, %c0_573], %436 {strides = array<i32>} : memref<392x768xf32, #tpu.memory_space<vmem>>, vector<8x384xf32>,
    %c0_574 = arith.constant 0 : index
    %c558 = arith.constant 558 : index
    %438 = vector.load %arg11[%c0_574, %c558] : memref<8x1104xf32, #tpu.memory_space<vmem>>, vector<8x384xf32>
    %c48_575 = arith.constant 48 : index
    %c384_576 = arith.constant 384 : index
    %439 = vector.load %arg12[%c48_575, %c384_576] : memref<392x768xf32, #tpu.memory_space<vmem>>, vector<8x384xf32>
    tpu.vector_store %arg12[%c48_575, %c384_576], %438 {strides = array<i32>} : memref<392x768xf32, #tpu.memory_space<vmem>>, vector<8x384xf32>,
    %c0_577 = arith.constant 0 : index
    %c24_578 = arith.constant 24 : index
    %440 = vector.load %arg11[%c0_577, %c24_578] : memref<8x1104xf32, #tpu.memory_space<vmem>>, vector<8x384xf32>
    %c56_579 = arith.constant 56 : index
    %c0_580 = arith.constant 0 : index
    %441 = vector.load %arg12[%c56_579, %c0_580] : memref<392x768xf32, #tpu.memory_space<vmem>>, vector<8x384xf32>
    tpu.vector_store %arg12[%c56_579, %c0_580], %440 {strides = array<i32>} : memref<392x768xf32, #tpu.memory_space<vmem>>, vector<8x384xf32>,
    %c0_581 = arith.constant 0 : index
    %c576 = arith.constant 576 : index
    %442 = vector.load %arg11[%c0_581, %c576] : memref<8x1104xf32, #tpu.memory_space<vmem>>, vector<8x384xf32>
    %c56_582 = arith.constant 56 : index
    %c384_583 = arith.constant 384 : index
    %443 = vector.load %arg12[%c56_582, %c384_583] : memref<392x768xf32, #tpu.memory_space<vmem>>, vector<8x384xf32>
    tpu.vector_store %arg12[%c56_582, %c384_583], %442 {strides = array<i32>} : memref<392x768xf32, #tpu.memory_space<vmem>>, vector<8x384xf32>,
    %c0_584 = arith.constant 0 : index
    %c25_585 = arith.constant 25 : index
    %444 = vector.load %arg11[%c0_584, %c25_585] : memref<8x1104xf32, #tpu.memory_space<vmem>>, vector<8x384xf32>
    %c64_586 = arith.constant 64 : index
    %c0_587 = arith.constant 0 : index
    %445 = vector.load %arg12[%c64_586, %c0_587] : memref<392x768xf32, #tpu.memory_space<vmem>>, vector<8x384xf32>
    tpu.vector_store %arg12[%c64_586, %c0_587], %444 {strides = array<i32>} : memref<392x768xf32, #tpu.memory_space<vmem>>, vector<8x384xf32>,
    %c0_588 = arith.constant 0 : index
    %c577 = arith.constant 577 : index
    %446 = vector.load %arg11[%c0_588, %c577] : memref<8x1104xf32, #tpu.memory_space<vmem>>, vector<8x384xf32>
    %c64_589 = arith.constant 64 : index
    %c384_590 = arith.constant 384 : index
    %447 = vector.load %arg12[%c64_589, %c384_590] : memref<392x768xf32, #tpu.memory_space<vmem>>, vector<8x384xf32>
    tpu.vector_store %arg12[%c64_589, %c384_590], %446 {strides = array<i32>} : memref<392x768xf32, #tpu.memory_space<vmem>>, vector<8x384xf32>,
    %c0_591 = arith.constant 0 : index
    %c26_592 = arith.constant 26 : index
    %448 = vector.load %arg11[%c0_591, %c26_592] : memref<8x1104xf32, #tpu.memory_space<vmem>>, vector<8x384xf32>
    %c72_593 = arith.constant 72 : index
    %c0_594 = arith.constant 0 : index
    %449 = vector.load %arg12[%c72_593, %c0_594] : memref<392x768xf32, #tpu.memory_space<vmem>>, vector<8x384xf32>
    tpu.vector_store %arg12[%c72_593, %c0_594], %448 {strides = array<i32>} : memref<392x768xf32, #tpu.memory_space<vmem>>, vector<8x384xf32>,
    %c0_595 = arith.constant 0 : index
    %c578 = arith.constant 578 : index
    %450 = vector.load %arg11[%c0_595, %c578] : memref<8x1104xf32, #tpu.memory_space<vmem>>, vector<8x384xf32>
    %c72_596 = arith.constant 72 : index
    %c384_597 = arith.constant 384 : index
    %451 = vector.load %arg12[%c72_596, %c384_597] : memref<392x768xf32, #tpu.memory_space<vmem>>, vector<8x384xf32>
    tpu.vector_store %arg12[%c72_596, %c384_597], %450 {strides = array<i32>} : memref<392x768xf32, #tpu.memory_space<vmem>>, vector<8x384xf32>,
    %c0_598 = arith.constant 0 : index
    %c27_599 = arith.constant 27 : index
    %452 = vector.load %arg11[%c0_598, %c27_599] : memref<8x1104xf32, #tpu.memory_space<vmem>>, vector<8x384xf32>
    %c80_600 = arith.constant 80 : index
    %c0_601 = arith.constant 0 : index
    %453 = vector.load %arg12[%c80_600, %c0_601] : memref<392x768xf32, #tpu.memory_space<vmem>>, vector<8x384xf32>
    tpu.vector_store %arg12[%c80_600, %c0_601], %452 {strides = array<i32>} : memref<392x768xf32, #tpu.memory_space<vmem>>, vector<8x384xf32>,
    %c0_602 = arith.constant 0 : index
    %c579 = arith.constant 579 : index
    %454 = vector.load %arg11[%c0_602, %c579] : memref<8x1104xf32, #tpu.memory_space<vmem>>, vector<8x384xf32>
    %c80_603 = arith.constant 80 : index
    %c384_604 = arith.constant 384 : index
    %455 = vector.load %arg12[%c80_603, %c384_604] : memref<392x768xf32, #tpu.memory_space<vmem>>, vector<8x384xf32>
    tpu.vector_store %arg12[%c80_603, %c384_604], %454 {strides = array<i32>} : memref<392x768xf32, #tpu.memory_space<vmem>>, vector<8x384xf32>,
    %c0_605 = arith.constant 0 : index
    %c28_606 = arith.constant 28 : index
    %456 = vector.load %arg11[%c0_605, %c28_606] : memref<8x1104xf32, #tpu.memory_space<vmem>>, vector<8x384xf32>
    %c88_607 = arith.constant 88 : index
    %c0_608 = arith.constant 0 : index
    %457 = vector.load %arg12[%c88_607, %c0_608] : memref<392x768xf32, #tpu.memory_space<vmem>>, vector<8x384xf32>
    tpu.vector_store %arg12[%c88_607, %c0_608], %456 {strides = array<i32>} : memref<392x768xf32, #tpu.memory_space<vmem>>, vector<8x384xf32>,
    %c0_609 = arith.constant 0 : index
    %c580 = arith.constant 580 : index
    %458 = vector.load %arg11[%c0_609, %c580] : memref<8x1104xf32, #tpu.memory_space<vmem>>, vector<8x384xf32>
    %c88_610 = arith.constant 88 : index
    %c384_611 = arith.constant 384 : index
    %459 = vector.load %arg12[%c88_610, %c384_611] : memref<392x768xf32, #tpu.memory_space<vmem>>, vector<8x384xf32>
    tpu.vector_store %arg12[%c88_610, %c384_611], %458 {strides = array<i32>} : memref<392x768xf32, #tpu.memory_space<vmem>>, vector<8x384xf32>,
    %c0_612 = arith.constant 0 : index
    %c29_613 = arith.constant 29 : index
    %460 = vector.load %arg11[%c0_612, %c29_613] : memref<8x1104xf32, #tpu.memory_space<vmem>>, vector<8x384xf32>
    %c96_614 = arith.constant 96 : index
    %c0_615 = arith.constant 0 : index
    %461 = vector.load %arg12[%c96_614, %c0_615] : memref<392x768xf32, #tpu.memory_space<vmem>>, vector<8x384xf32>
    tpu.vector_store %arg12[%c96_614, %c0_615], %460 {strides = array<i32>} : memref<392x768xf32, #tpu.memory_space<vmem>>, vector<8x384xf32>,
    %c0_616 = arith.constant 0 : index
    %c581 = arith.constant 581 : index
    %462 = vector.load %arg11[%c0_616, %c581] : memref<8x1104xf32, #tpu.memory_space<vmem>>, vector<8x384xf32>
    %c96_617 = arith.constant 96 : index
    %c384_618 = arith.constant 384 : index
    %463 = vector.load %arg12[%c96_617, %c384_618] : memref<392x768xf32, #tpu.memory_space<vmem>>, vector<8x384xf32>
    tpu.vector_store %arg12[%c96_617, %c384_618], %462 {strides = array<i32>} : memref<392x768xf32, #tpu.memory_space<vmem>>, vector<8x384xf32>,
    %c0_619 = arith.constant 0 : index
    %c30_620 = arith.constant 30 : index
    %464 = vector.load %arg11[%c0_619, %c30_620] : memref<8x1104xf32, #tpu.memory_space<vmem>>, vector<8x384xf32>
    %c104_621 = arith.constant 104 : index
    %c0_622 = arith.constant 0 : index
    %465 = vector.load %arg12[%c104_621, %c0_622] : memref<392x768xf32, #tpu.memory_space<vmem>>, vector<8x384xf32>
    tpu.vector_store %arg12[%c104_621, %c0_622], %464 {strides = array<i32>} : memref<392x768xf32, #tpu.memory_space<vmem>>, vector<8x384xf32>,
    %c0_623 = arith.constant 0 : index
    %c582 = arith.constant 582 : index
    %466 = vector.load %arg11[%c0_623, %c582] : memref<8x1104xf32, #tpu.memory_space<vmem>>, vector<8x384xf32>
    %c104_624 = arith.constant 104 : index
    %c384_625 = arith.constant 384 : index
    %467 = vector.load %arg12[%c104_624, %c384_625] : memref<392x768xf32, #tpu.memory_space<vmem>>, vector<8x384xf32>
    tpu.vector_store %arg12[%c104_624, %c384_625], %466 {strides = array<i32>} : memref<392x768xf32, #tpu.memory_space<vmem>>, vector<8x384xf32>,
    %c0_626 = arith.constant 0 : index
    %c48_627 = arith.constant 48 : index
    %468 = vector.load %arg11[%c0_626, %c48_627] : memref<8x1104xf32, #tpu.memory_space<vmem>>, vector<8x384xf32>
    %c112_628 = arith.constant 112 : index
    %c0_629 = arith.constant 0 : index
    %469 = vector.load %arg12[%c112_628, %c0_629] : memref<392x768xf32, #tpu.memory_space<vmem>>, vector<8x384xf32>
    tpu.vector_store %arg12[%c112_628, %c0_629], %468 {strides = array<i32>} : memref<392x768xf32, #tpu.memory_space<vmem>>, vector<8x384xf32>,
    %c0_630 = arith.constant 0 : index
    %c600 = arith.constant 600 : index
    %470 = vector.load %arg11[%c0_630, %c600] : memref<8x1104xf32, #tpu.memory_space<vmem>>, vector<8x384xf32>
    %c112_631 = arith.constant 112 : index
    %c384_632 = arith.constant 384 : index
    %471 = vector.load %arg12[%c112_631, %c384_632] : memref<392x768xf32, #tpu.memory_space<vmem>>, vector<8x384xf32>
    tpu.vector_store %arg12[%c112_631, %c384_632], %470 {strides = array<i32>} : memref<392x768xf32, #tpu.memory_space<vmem>>, vector<8x384xf32>,
    %c0_633 = arith.constant 0 : index
    %c49_634 = arith.constant 49 : index
    %472 = vector.load %arg11[%c0_633, %c49_634] : memref<8x1104xf32, #tpu.memory_space<vmem>>, vector<8x384xf32>
    %c120_635 = arith.constant 120 : index
    %c0_636 = arith.constant 0 : index
    %473 = vector.load %arg12[%c120_635, %c0_636] : memref<392x768xf32, #tpu.memory_space<vmem>>, vector<8x384xf32>
    tpu.vector_store %arg12[%c120_635, %c0_636], %472 {strides = array<i32>} : memref<392x768xf32, #tpu.memory_space<vmem>>, vector<8x384xf32>,
    %c0_637 = arith.constant 0 : index
    %c601 = arith.constant 601 : index
    %474 = vector.load %arg11[%c0_637, %c601] : memref<8x1104xf32, #tpu.memory_space<vmem>>, vector<8x384xf32>
    %c120_638 = arith.constant 120 : index
    %c384_639 = arith.constant 384 : index
    %475 = vector.load %arg12[%c120_638, %c384_639] : memref<392x768xf32, #tpu.memory_space<vmem>>, vector<8x384xf32>
    tpu.vector_store %arg12[%c120_638, %c384_639], %474 {strides = array<i32>} : memref<392x768xf32, #tpu.memory_space<vmem>>, vector<8x384xf32>,
    %c0_640 = arith.constant 0 : index
    %c50_641 = arith.constant 50 : index
    %476 = vector.load %arg11[%c0_640, %c50_641] : memref<8x1104xf32, #tpu.memory_space<vmem>>, vector<8x384xf32>
    %c128_642 = arith.constant 128 : index
    %c0_643 = arith.constant 0 : index
    %477 = vector.load %arg12[%c128_642, %c0_643] : memref<392x768xf32, #tpu.memory_space<vmem>>, vector<8x384xf32>
    tpu.vector_store %arg12[%c128_642, %c0_643], %476 {strides = array<i32>} : memref<392x768xf32, #tpu.memory_space<vmem>>, vector<8x384xf32>,
    %c0_644 = arith.constant 0 : index
    %c602_645 = arith.constant 602 : index
    %478 = vector.load %arg11[%c0_644, %c602_645] : memref<8x1104xf32, #tpu.memory_space<vmem>>, vector<8x384xf32>
    %c128_646 = arith.constant 128 : index
    %c384_647 = arith.constant 384 : index
    %479 = vector.load %arg12[%c128_646, %c384_647] : memref<392x768xf32, #tpu.memory_space<vmem>>, vector<8x384xf32>
    tpu.vector_store %arg12[%c128_646, %c384_647], %478 {strides = array<i32>} : memref<392x768xf32, #tpu.memory_space<vmem>>, vector<8x384xf32>,
    %c0_648 = arith.constant 0 : index
    %c51_649 = arith.constant 51 : index
    %480 = vector.load %arg11[%c0_648, %c51_649] : memref<8x1104xf32, #tpu.memory_space<vmem>>, vector<8x384xf32>
    %c136_650 = arith.constant 136 : index
    %c0_651 = arith.constant 0 : index
    %481 = vector.load %arg12[%c136_650, %c0_651] : memref<392x768xf32, #tpu.memory_space<vmem>>, vector<8x384xf32>
    tpu.vector_store %arg12[%c136_650, %c0_651], %480 {strides = array<i32>} : memref<392x768xf32, #tpu.memory_space<vmem>>, vector<8x384xf32>,
    %c0_652 = arith.constant 0 : index
    %c603_653 = arith.constant 603 : index
    %482 = vector.load %arg11[%c0_652, %c603_653] : memref<8x1104xf32, #tpu.memory_space<vmem>>, vector<8x384xf32>
    %c136_654 = arith.constant 136 : index
    %c384_655 = arith.constant 384 : index
    %483 = vector.load %arg12[%c136_654, %c384_655] : memref<392x768xf32, #tpu.memory_space<vmem>>, vector<8x384xf32>
    tpu.vector_store %arg12[%c136_654, %c384_655], %482 {strides = array<i32>} : memref<392x768xf32, #tpu.memory_space<vmem>>, vector<8x384xf32>,
    %c0_656 = arith.constant 0 : index
    %c52_657 = arith.constant 52 : index
    %484 = vector.load %arg11[%c0_656, %c52_657] : memref<8x1104xf32, #tpu.memory_space<vmem>>, vector<8x384xf32>
    %c144_658 = arith.constant 144 : index
    %c0_659 = arith.constant 0 : index
    %485 = vector.load %arg12[%c144_658, %c0_659] : memref<392x768xf32, #tpu.memory_space<vmem>>, vector<8x384xf32>
    tpu.vector_store %arg12[%c144_658, %c0_659], %484 {strides = array<i32>} : memref<392x768xf32, #tpu.memory_space<vmem>>, vector<8x384xf32>,
    %c0_660 = arith.constant 0 : index
    %c604_661 = arith.constant 604 : index
    %486 = vector.load %arg11[%c0_660, %c604_661] : memref<8x1104xf32, #tpu.memory_space<vmem>>, vector<8x384xf32>
    %c144_662 = arith.constant 144 : index
    %c384_663 = arith.constant 384 : index
    %487 = vector.load %arg12[%c144_662, %c384_663] : memref<392x768xf32, #tpu.memory_space<vmem>>, vector<8x384xf32>
    tpu.vector_store %arg12[%c144_662, %c384_663], %486 {strides = array<i32>} : memref<392x768xf32, #tpu.memory_space<vmem>>, vector<8x384xf32>,
    %c0_664 = arith.constant 0 : index
    %c53_665 = arith.constant 53 : index
    %488 = vector.load %arg11[%c0_664, %c53_665] : memref<8x1104xf32, #tpu.memory_space<vmem>>, vector<8x384xf32>
    %c152_666 = arith.constant 152 : index
    %c0_667 = arith.constant 0 : index
    %489 = vector.load %arg12[%c152_666, %c0_667] : memref<392x768xf32, #tpu.memory_space<vmem>>, vector<8x384xf32>
    tpu.vector_store %arg12[%c152_666, %c0_667], %488 {strides = array<i32>} : memref<392x768xf32, #tpu.memory_space<vmem>>, vector<8x384xf32>,
    %c0_668 = arith.constant 0 : index
    %c605 = arith.constant 605 : index
    %490 = vector.load %arg11[%c0_668, %c605] : memref<8x1104xf32, #tpu.memory_space<vmem>>, vector<8x384xf32>
    %c152_669 = arith.constant 152 : index
    %c384_670 = arith.constant 384 : index
    %491 = vector.load %arg12[%c152_669, %c384_670] : memref<392x768xf32, #tpu.memory_space<vmem>>, vector<8x384xf32>
    tpu.vector_store %arg12[%c152_669, %c384_670], %490 {strides = array<i32>} : memref<392x768xf32, #tpu.memory_space<vmem>>, vector<8x384xf32>,
    %c0_671 = arith.constant 0 : index
    %c54_672 = arith.constant 54 : index
    %492 = vector.load %arg11[%c0_671, %c54_672] : memref<8x1104xf32, #tpu.memory_space<vmem>>, vector<8x384xf32>
    %c160_673 = arith.constant 160 : index
    %c0_674 = arith.constant 0 : index
    %493 = vector.load %arg12[%c160_673, %c0_674] : memref<392x768xf32, #tpu.memory_space<vmem>>, vector<8x384xf32>
    tpu.vector_store %arg12[%c160_673, %c0_674], %492 {strides = array<i32>} : memref<392x768xf32, #tpu.memory_space<vmem>>, vector<8x384xf32>,
    %c0_675 = arith.constant 0 : index
    %c606 = arith.constant 606 : index
    %494 = vector.load %arg11[%c0_675, %c606] : memref<8x1104xf32, #tpu.memory_space<vmem>>, vector<8x384xf32>
    %c160_676 = arith.constant 160 : index
    %c384_677 = arith.constant 384 : index
    %495 = vector.load %arg12[%c160_676, %c384_677] : memref<392x768xf32, #tpu.memory_space<vmem>>, vector<8x384xf32>
    tpu.vector_store %arg12[%c160_676, %c384_677], %494 {strides = array<i32>} : memref<392x768xf32, #tpu.memory_space<vmem>>, vector<8x384xf32>,
    %c0_678 = arith.constant 0 : index
    %c72_679 = arith.constant 72 : index
    %496 = vector.load %arg11[%c0_678, %c72_679] : memref<8x1104xf32, #tpu.memory_space<vmem>>, vector<8x384xf32>
    %c168_680 = arith.constant 168 : index
    %c0_681 = arith.constant 0 : index
    %497 = vector.load %arg12[%c168_680, %c0_681] : memref<392x768xf32, #tpu.memory_space<vmem>>, vector<8x384xf32>
    tpu.vector_store %arg12[%c168_680, %c0_681], %496 {strides = array<i32>} : memref<392x768xf32, #tpu.memory_space<vmem>>, vector<8x384xf32>,
    %c0_682 = arith.constant 0 : index
    %c624 = arith.constant 624 : index
    %498 = vector.load %arg11[%c0_682, %c624] : memref<8x1104xf32, #tpu.memory_space<vmem>>, vector<8x384xf32>
    %c168_683 = arith.constant 168 : index
    %c384_684 = arith.constant 384 : index
    %499 = vector.load %arg12[%c168_683, %c384_684] : memref<392x768xf32, #tpu.memory_space<vmem>>, vector<8x384xf32>
    tpu.vector_store %arg12[%c168_683, %c384_684], %498 {strides = array<i32>} : memref<392x768xf32, #tpu.memory_space<vmem>>, vector<8x384xf32>,
    %c0_685 = arith.constant 0 : index
    %c73_686 = arith.constant 73 : index
    %500 = vector.load %arg11[%c0_685, %c73_686] : memref<8x1104xf32, #tpu.memory_space<vmem>>, vector<8x384xf32>
    %c176_687 = arith.constant 176 : index
    %c0_688 = arith.constant 0 : index
    %501 = vector.load %arg12[%c176_687, %c0_688] : memref<392x768xf32, #tpu.memory_space<vmem>>, vector<8x384xf32>
    tpu.vector_store %arg12[%c176_687, %c0_688], %500 {strides = array<i32>} : memref<392x768xf32, #tpu.memory_space<vmem>>, vector<8x384xf32>,
    %c0_689 = arith.constant 0 : index
    %c625 = arith.constant 625 : index
    %502 = vector.load %arg11[%c0_689, %c625] : memref<8x1104xf32, #tpu.memory_space<vmem>>, vector<8x384xf32>
    %c176_690 = arith.constant 176 : index
    %c384_691 = arith.constant 384 : index
    %503 = vector.load %arg12[%c176_690, %c384_691] : memref<392x768xf32, #tpu.memory_space<vmem>>, vector<8x384xf32>
    tpu.vector_store %arg12[%c176_690, %c384_691], %502 {strides = array<i32>} : memref<392x768xf32, #tpu.memory_space<vmem>>, vector<8x384xf32>,
    %c0_692 = arith.constant 0 : index
    %c74_693 = arith.constant 74 : index
    %504 = vector.load %arg11[%c0_692, %c74_693] : memref<8x1104xf32, #tpu.memory_space<vmem>>, vector<8x384xf32>
    %c184_694 = arith.constant 184 : index
    %c0_695 = arith.constant 0 : index
    %505 = vector.load %arg12[%c184_694, %c0_695] : memref<392x768xf32, #tpu.memory_space<vmem>>, vector<8x384xf32>
    tpu.vector_store %arg12[%c184_694, %c0_695], %504 {strides = array<i32>} : memref<392x768xf32, #tpu.memory_space<vmem>>, vector<8x384xf32>,
    %c0_696 = arith.constant 0 : index
    %c626_697 = arith.constant 626 : index
    %506 = vector.load %arg11[%c0_696, %c626_697] : memref<8x1104xf32, #tpu.memory_space<vmem>>, vector<8x384xf32>
    %c184_698 = arith.constant 184 : index
    %c384_699 = arith.constant 384 : index
    %507 = vector.load %arg12[%c184_698, %c384_699] : memref<392x768xf32, #tpu.memory_space<vmem>>, vector<8x384xf32>
    tpu.vector_store %arg12[%c184_698, %c384_699], %506 {strides = array<i32>} : memref<392x768xf32, #tpu.memory_space<vmem>>, vector<8x384xf32>,
    %c0_700 = arith.constant 0 : index
    %c75_701 = arith.constant 75 : index
    %508 = vector.load %arg11[%c0_700, %c75_701] : memref<8x1104xf32, #tpu.memory_space<vmem>>, vector<8x384xf32>
    %c192_702 = arith.constant 192 : index
    %c0_703 = arith.constant 0 : index
    %509 = vector.load %arg12[%c192_702, %c0_703] : memref<392x768xf32, #tpu.memory_space<vmem>>, vector<8x384xf32>
    tpu.vector_store %arg12[%c192_702, %c0_703], %508 {strides = array<i32>} : memref<392x768xf32, #tpu.memory_space<vmem>>, vector<8x384xf32>,
    %c0_704 = arith.constant 0 : index
    %c627_705 = arith.constant 627 : index
    %510 = vector.load %arg11[%c0_704, %c627_705] : memref<8x1104xf32, #tpu.memory_space<vmem>>, vector<8x384xf32>
    %c192_706 = arith.constant 192 : index
    %c384_707 = arith.constant 384 : index
    %511 = vector.load %arg12[%c192_706, %c384_707] : memref<392x768xf32, #tpu.memory_space<vmem>>, vector<8x384xf32>
    tpu.vector_store %arg12[%c192_706, %c384_707], %510 {strides = array<i32>} : memref<392x768xf32, #tpu.memory_space<vmem>>, vector<8x384xf32>,
    %c0_708 = arith.constant 0 : index
    %c76_709 = arith.constant 76 : index
    %512 = vector.load %arg11[%c0_708, %c76_709] : memref<8x1104xf32, #tpu.memory_space<vmem>>, vector<8x384xf32>
    %c200 = arith.constant 200 : index
    %c0_710 = arith.constant 0 : index
    %513 = vector.load %arg12[%c200, %c0_710] : memref<392x768xf32, #tpu.memory_space<vmem>>, vector<8x384xf32>
    tpu.vector_store %arg12[%c200, %c0_710], %512 {strides = array<i32>} : memref<392x768xf32, #tpu.memory_space<vmem>>, vector<8x384xf32>,
    %c0_711 = arith.constant 0 : index
    %c628_712 = arith.constant 628 : index
    %514 = vector.load %arg11[%c0_711, %c628_712] : memref<8x1104xf32, #tpu.memory_space<vmem>>, vector<8x384xf32>
    %c200_713 = arith.constant 200 : index
    %c384_714 = arith.constant 384 : index
    %515 = vector.load %arg12[%c200_713, %c384_714] : memref<392x768xf32, #tpu.memory_space<vmem>>, vector<8x384xf32>
    tpu.vector_store %arg12[%c200_713, %c384_714], %514 {strides = array<i32>} : memref<392x768xf32, #tpu.memory_space<vmem>>, vector<8x384xf32>,
    %c0_715 = arith.constant 0 : index
    %c77_716 = arith.constant 77 : index
    %516 = vector.load %arg11[%c0_715, %c77_716] : memref<8x1104xf32, #tpu.memory_space<vmem>>, vector<8x384xf32>
    %c208 = arith.constant 208 : index
    %c0_717 = arith.constant 0 : index
    %517 = vector.load %arg12[%c208, %c0_717] : memref<392x768xf32, #tpu.memory_space<vmem>>, vector<8x384xf32>
    tpu.vector_store %arg12[%c208, %c0_717], %516 {strides = array<i32>} : memref<392x768xf32, #tpu.memory_space<vmem>>, vector<8x384xf32>,
    %c0_718 = arith.constant 0 : index
    %c629 = arith.constant 629 : index
    %518 = vector.load %arg11[%c0_718, %c629] : memref<8x1104xf32, #tpu.memory_space<vmem>>, vector<8x384xf32>
    %c208_719 = arith.constant 208 : index
    %c384_720 = arith.constant 384 : index
    %519 = vector.load %arg12[%c208_719, %c384_720] : memref<392x768xf32, #tpu.memory_space<vmem>>, vector<8x384xf32>
    tpu.vector_store %arg12[%c208_719, %c384_720], %518 {strides = array<i32>} : memref<392x768xf32, #tpu.memory_space<vmem>>, vector<8x384xf32>,
    %c0_721 = arith.constant 0 : index
    %c78_722 = arith.constant 78 : index
    %520 = vector.load %arg11[%c0_721, %c78_722] : memref<8x1104xf32, #tpu.memory_space<vmem>>, vector<8x384xf32>
    %c216 = arith.constant 216 : index
    %c0_723 = arith.constant 0 : index
    %521 = vector.load %arg12[%c216, %c0_723] : memref<392x768xf32, #tpu.memory_space<vmem>>, vector<8x384xf32>
    tpu.vector_store %arg12[%c216, %c0_723], %520 {strides = array<i32>} : memref<392x768xf32, #tpu.memory_space<vmem>>, vector<8x384xf32>,
    %c0_724 = arith.constant 0 : index
    %c630 = arith.constant 630 : index
    %522 = vector.load %arg11[%c0_724, %c630] : memref<8x1104xf32, #tpu.memory_space<vmem>>, vector<8x384xf32>
    %c216_725 = arith.constant 216 : index
    %c384_726 = arith.constant 384 : index
    %523 = vector.load %arg12[%c216_725, %c384_726] : memref<392x768xf32, #tpu.memory_space<vmem>>, vector<8x384xf32>
    tpu.vector_store %arg12[%c216_725, %c384_726], %522 {strides = array<i32>} : memref<392x768xf32, #tpu.memory_space<vmem>>, vector<8x384xf32>,
    %c0_727 = arith.constant 0 : index
    %c96_728 = arith.constant 96 : index
    %524 = vector.load %arg11[%c0_727, %c96_728] : memref<8x1104xf32, #tpu.memory_space<vmem>>, vector<8x384xf32>
    %c224 = arith.constant 224 : index
    %c0_729 = arith.constant 0 : index
    %525 = vector.load %arg12[%c224, %c0_729] : memref<392x768xf32, #tpu.memory_space<vmem>>, vector<8x384xf32>
    tpu.vector_store %arg12[%c224, %c0_729], %524 {strides = array<i32>} : memref<392x768xf32, #tpu.memory_space<vmem>>, vector<8x384xf32>,
    %c0_730 = arith.constant 0 : index
    %c648 = arith.constant 648 : index
    %526 = vector.load %arg11[%c0_730, %c648] : memref<8x1104xf32, #tpu.memory_space<vmem>>, vector<8x384xf32>
    %c224_731 = arith.constant 224 : index
    %c384_732 = arith.constant 384 : index
    %527 = vector.load %arg12[%c224_731, %c384_732] : memref<392x768xf32, #tpu.memory_space<vmem>>, vector<8x384xf32>
    tpu.vector_store %arg12[%c224_731, %c384_732], %526 {strides = array<i32>} : memref<392x768xf32, #tpu.memory_space<vmem>>, vector<8x384xf32>,
    %c0_733 = arith.constant 0 : index
    %c97_734 = arith.constant 97 : index
    %528 = vector.load %arg11[%c0_733, %c97_734] : memref<8x1104xf32, #tpu.memory_space<vmem>>, vector<8x384xf32>
    %c232 = arith.constant 232 : index
    %c0_735 = arith.constant 0 : index
    %529 = vector.load %arg12[%c232, %c0_735] : memref<392x768xf32, #tpu.memory_space<vmem>>, vector<8x384xf32>
    tpu.vector_store %arg12[%c232, %c0_735], %528 {strides = array<i32>} : memref<392x768xf32, #tpu.memory_space<vmem>>, vector<8x384xf32>,
    %c0_736 = arith.constant 0 : index
    %c649 = arith.constant 649 : index
    %530 = vector.load %arg11[%c0_736, %c649] : memref<8x1104xf32, #tpu.memory_space<vmem>>, vector<8x384xf32>
    %c232_737 = arith.constant 232 : index
    %c384_738 = arith.constant 384 : index
    %531 = vector.load %arg12[%c232_737, %c384_738] : memref<392x768xf32, #tpu.memory_space<vmem>>, vector<8x384xf32>
    tpu.vector_store %arg12[%c232_737, %c384_738], %530 {strides = array<i32>} : memref<392x768xf32, #tpu.memory_space<vmem>>, vector<8x384xf32>,
    %c0_739 = arith.constant 0 : index
    %c98_740 = arith.constant 98 : index
    %532 = vector.load %arg11[%c0_739, %c98_740] : memref<8x1104xf32, #tpu.memory_space<vmem>>, vector<8x384xf32>
    %c240 = arith.constant 240 : index
    %c0_741 = arith.constant 0 : index
    %533 = vector.load %arg12[%c240, %c0_741] : memref<392x768xf32, #tpu.memory_space<vmem>>, vector<8x384xf32>
    tpu.vector_store %arg12[%c240, %c0_741], %532 {strides = array<i32>} : memref<392x768xf32, #tpu.memory_space<vmem>>, vector<8x384xf32>,
    %c0_742 = arith.constant 0 : index
    %c650_743 = arith.constant 650 : index
    %534 = vector.load %arg11[%c0_742, %c650_743] : memref<8x1104xf32, #tpu.memory_space<vmem>>, vector<8x384xf32>
    %c240_744 = arith.constant 240 : index
    %c384_745 = arith.constant 384 : index
    %535 = vector.load %arg12[%c240_744, %c384_745] : memref<392x768xf32, #tpu.memory_space<vmem>>, vector<8x384xf32>
    tpu.vector_store %arg12[%c240_744, %c384_745], %534 {strides = array<i32>} : memref<392x768xf32, #tpu.memory_space<vmem>>, vector<8x384xf32>,
    %c0_746 = arith.constant 0 : index
    %c99_747 = arith.constant 99 : index
    %536 = vector.load %arg11[%c0_746, %c99_747] : memref<8x1104xf32, #tpu.memory_space<vmem>>, vector<8x384xf32>
    %c248 = arith.constant 248 : index
    %c0_748 = arith.constant 0 : index
    %537 = vector.load %arg12[%c248, %c0_748] : memref<392x768xf32, #tpu.memory_space<vmem>>, vector<8x384xf32>
    tpu.vector_store %arg12[%c248, %c0_748], %536 {strides = array<i32>} : memref<392x768xf32, #tpu.memory_space<vmem>>, vector<8x384xf32>,
    %c0_749 = arith.constant 0 : index
    %c651_750 = arith.constant 651 : index
    %538 = vector.load %arg11[%c0_749, %c651_750] : memref<8x1104xf32, #tpu.memory_space<vmem>>, vector<8x384xf32>
    %c248_751 = arith.constant 248 : index
    %c384_752 = arith.constant 384 : index
    %539 = vector.load %arg12[%c248_751, %c384_752] : memref<392x768xf32, #tpu.memory_space<vmem>>, vector<8x384xf32>
    tpu.vector_store %arg12[%c248_751, %c384_752], %538 {strides = array<i32>} : memref<392x768xf32, #tpu.memory_space<vmem>>, vector<8x384xf32>,
    %c0_753 = arith.constant 0 : index
    %c100_754 = arith.constant 100 : index
    %540 = vector.load %arg11[%c0_753, %c100_754] : memref<8x1104xf32, #tpu.memory_space<vmem>>, vector<8x384xf32>
    %c256 = arith.constant 256 : index
    %c0_755 = arith.constant 0 : index
    %541 = vector.load %arg12[%c256, %c0_755] : memref<392x768xf32, #tpu.memory_space<vmem>>, vector<8x384xf32>
    tpu.vector_store %arg12[%c256, %c0_755], %540 {strides = array<i32>} : memref<392x768xf32, #tpu.memory_space<vmem>>, vector<8x384xf32>,
    %c0_756 = arith.constant 0 : index
    %c652_757 = arith.constant 652 : index
    %542 = vector.load %arg11[%c0_756, %c652_757] : memref<8x1104xf32, #tpu.memory_space<vmem>>, vector<8x384xf32>
    %c256_758 = arith.constant 256 : index
    %c384_759 = arith.constant 384 : index
    %543 = vector.load %arg12[%c256_758, %c384_759] : memref<392x768xf32, #tpu.memory_space<vmem>>, vector<8x384xf32>
    tpu.vector_store %arg12[%c256_758, %c384_759], %542 {strides = array<i32>} : memref<392x768xf32, #tpu.memory_space<vmem>>, vector<8x384xf32>,
    %c0_760 = arith.constant 0 : index
    %c101_761 = arith.constant 101 : index
    %544 = vector.load %arg11[%c0_760, %c101_761] : memref<8x1104xf32, #tpu.memory_space<vmem>>, vector<8x384xf32>
    %c264 = arith.constant 264 : index
    %c0_762 = arith.constant 0 : index
    %545 = vector.load %arg12[%c264, %c0_762] : memref<392x768xf32, #tpu.memory_space<vmem>>, vector<8x384xf32>
    tpu.vector_store %arg12[%c264, %c0_762], %544 {strides = array<i32>} : memref<392x768xf32, #tpu.memory_space<vmem>>, vector<8x384xf32>,
    %c0_763 = arith.constant 0 : index
    %c653 = arith.constant 653 : index
    %546 = vector.load %arg11[%c0_763, %c653] : memref<8x1104xf32, #tpu.memory_space<vmem>>, vector<8x384xf32>
    %c264_764 = arith.constant 264 : index
    %c384_765 = arith.constant 384 : index
    %547 = vector.load %arg12[%c264_764, %c384_765] : memref<392x768xf32, #tpu.memory_space<vmem>>, vector<8x384xf32>
    tpu.vector_store %arg12[%c264_764, %c384_765], %546 {strides = array<i32>} : memref<392x768xf32, #tpu.memory_space<vmem>>, vector<8x384xf32>,
    %c0_766 = arith.constant 0 : index
    %c102_767 = arith.constant 102 : index
    %548 = vector.load %arg11[%c0_766, %c102_767] : memref<8x1104xf32, #tpu.memory_space<vmem>>, vector<8x384xf32>
    %c272 = arith.constant 272 : index
    %c0_768 = arith.constant 0 : index
    %549 = vector.load %arg12[%c272, %c0_768] : memref<392x768xf32, #tpu.memory_space<vmem>>, vector<8x384xf32>
    tpu.vector_store %arg12[%c272, %c0_768], %548 {strides = array<i32>} : memref<392x768xf32, #tpu.memory_space<vmem>>, vector<8x384xf32>,
    %c0_769 = arith.constant 0 : index
    %c654 = arith.constant 654 : index
    %550 = vector.load %arg11[%c0_769, %c654] : memref<8x1104xf32, #tpu.memory_space<vmem>>, vector<8x384xf32>
    %c272_770 = arith.constant 272 : index
    %c384_771 = arith.constant 384 : index
    %551 = vector.load %arg12[%c272_770, %c384_771] : memref<392x768xf32, #tpu.memory_space<vmem>>, vector<8x384xf32>
    tpu.vector_store %arg12[%c272_770, %c384_771], %550 {strides = array<i32>} : memref<392x768xf32, #tpu.memory_space<vmem>>, vector<8x384xf32>,
    %c0_772 = arith.constant 0 : index
    %c120_773 = arith.constant 120 : index
    %552 = vector.load %arg11[%c0_772, %c120_773] : memref<8x1104xf32, #tpu.memory_space<vmem>>, vector<8x384xf32>
    %c280 = arith.constant 280 : index
    %c0_774 = arith.constant 0 : index
    %553 = vector.load %arg12[%c280, %c0_774] : memref<392x768xf32, #tpu.memory_space<vmem>>, vector<8x384xf32>
    tpu.vector_store %arg12[%c280, %c0_774], %552 {strides = array<i32>} : memref<392x768xf32, #tpu.memory_space<vmem>>, vector<8x384xf32>,
    %c0_775 = arith.constant 0 : index
    %c672 = arith.constant 672 : index
    %554 = vector.load %arg11[%c0_775, %c672] : memref<8x1104xf32, #tpu.memory_space<vmem>>, vector<8x384xf32>
    %c280_776 = arith.constant 280 : index
    %c384_777 = arith.constant 384 : index
    %555 = vector.load %arg12[%c280_776, %c384_777] : memref<392x768xf32, #tpu.memory_space<vmem>>, vector<8x384xf32>
    tpu.vector_store %arg12[%c280_776, %c384_777], %554 {strides = array<i32>} : memref<392x768xf32, #tpu.memory_space<vmem>>, vector<8x384xf32>,
    %c0_778 = arith.constant 0 : index
    %c121_779 = arith.constant 121 : index
    %556 = vector.load %arg11[%c0_778, %c121_779] : memref<8x1104xf32, #tpu.memory_space<vmem>>, vector<8x384xf32>
    %c288 = arith.constant 288 : index
    %c0_780 = arith.constant 0 : index
    %557 = vector.load %arg12[%c288, %c0_780] : memref<392x768xf32, #tpu.memory_space<vmem>>, vector<8x384xf32>
    tpu.vector_store %arg12[%c288, %c0_780], %556 {strides = array<i32>} : memref<392x768xf32, #tpu.memory_space<vmem>>, vector<8x384xf32>,
    %c0_781 = arith.constant 0 : index
    %c673 = arith.constant 673 : index
    %558 = vector.load %arg11[%c0_781, %c673] : memref<8x1104xf32, #tpu.memory_space<vmem>>, vector<8x384xf32>
    %c288_782 = arith.constant 288 : index
    %c384_783 = arith.constant 384 : index
    %559 = vector.load %arg12[%c288_782, %c384_783] : memref<392x768xf32, #tpu.memory_space<vmem>>, vector<8x384xf32>
    tpu.vector_store %arg12[%c288_782, %c384_783], %558 {strides = array<i32>} : memref<392x768xf32, #tpu.memory_space<vmem>>, vector<8x384xf32>,
    %c0_784 = arith.constant 0 : index
    %c122_785 = arith.constant 122 : index
    %560 = vector.load %arg11[%c0_784, %c122_785] : memref<8x1104xf32, #tpu.memory_space<vmem>>, vector<8x384xf32>
    %c296 = arith.constant 296 : index
    %c0_786 = arith.constant 0 : index
    %561 = vector.load %arg12[%c296, %c0_786] : memref<392x768xf32, #tpu.memory_space<vmem>>, vector<8x384xf32>
    tpu.vector_store %arg12[%c296, %c0_786], %560 {strides = array<i32>} : memref<392x768xf32, #tpu.memory_space<vmem>>, vector<8x384xf32>,
    %c0_787 = arith.constant 0 : index
    %c674 = arith.constant 674 : index
    %562 = vector.load %arg11[%c0_787, %c674] : memref<8x1104xf32, #tpu.memory_space<vmem>>, vector<8x384xf32>
    %c296_788 = arith.constant 296 : index
    %c384_789 = arith.constant 384 : index
    %563 = vector.load %arg12[%c296_788, %c384_789] : memref<392x768xf32, #tpu.memory_space<vmem>>, vector<8x384xf32>
    tpu.vector_store %arg12[%c296_788, %c384_789], %562 {strides = array<i32>} : memref<392x768xf32, #tpu.memory_space<vmem>>, vector<8x384xf32>,
    %c0_790 = arith.constant 0 : index
    %c123_791 = arith.constant 123 : index
    %564 = vector.load %arg11[%c0_790, %c123_791] : memref<8x1104xf32, #tpu.memory_space<vmem>>, vector<8x384xf32>
    %c304 = arith.constant 304 : index
    %c0_792 = arith.constant 0 : index
    %565 = vector.load %arg12[%c304, %c0_792] : memref<392x768xf32, #tpu.memory_space<vmem>>, vector<8x384xf32>
    tpu.vector_store %arg12[%c304, %c0_792], %564 {strides = array<i32>} : memref<392x768xf32, #tpu.memory_space<vmem>>, vector<8x384xf32>,
    %c0_793 = arith.constant 0 : index
    %c675 = arith.constant 675 : index
    %566 = vector.load %arg11[%c0_793, %c675] : memref<8x1104xf32, #tpu.memory_space<vmem>>, vector<8x384xf32>
    %c304_794 = arith.constant 304 : index
    %c384_795 = arith.constant 384 : index
    %567 = vector.load %arg12[%c304_794, %c384_795] : memref<392x768xf32, #tpu.memory_space<vmem>>, vector<8x384xf32>
    tpu.vector_store %arg12[%c304_794, %c384_795], %566 {strides = array<i32>} : memref<392x768xf32, #tpu.memory_space<vmem>>, vector<8x384xf32>,
    %c0_796 = arith.constant 0 : index
    %c124_797 = arith.constant 124 : index
    %568 = vector.load %arg11[%c0_796, %c124_797] : memref<8x1104xf32, #tpu.memory_space<vmem>>, vector<8x384xf32>
    %c312 = arith.constant 312 : index
    %c0_798 = arith.constant 0 : index
    %569 = vector.load %arg12[%c312, %c0_798] : memref<392x768xf32, #tpu.memory_space<vmem>>, vector<8x384xf32>
    tpu.vector_store %arg12[%c312, %c0_798], %568 {strides = array<i32>} : memref<392x768xf32, #tpu.memory_space<vmem>>, vector<8x384xf32>,
    %c0_799 = arith.constant 0 : index
    %c676 = arith.constant 676 : index
    %570 = vector.load %arg11[%c0_799, %c676] : memref<8x1104xf32, #tpu.memory_space<vmem>>, vector<8x384xf32>
    %c312_800 = arith.constant 312 : index
    %c384_801 = arith.constant 384 : index
    %571 = vector.load %arg12[%c312_800, %c384_801] : memref<392x768xf32, #tpu.memory_space<vmem>>, vector<8x384xf32>
    tpu.vector_store %arg12[%c312_800, %c384_801], %570 {strides = array<i32>} : memref<392x768xf32, #tpu.memory_space<vmem>>, vector<8x384xf32>,
    %c0_802 = arith.constant 0 : index
    %c125_803 = arith.constant 125 : index
    %572 = vector.load %arg11[%c0_802, %c125_803] : memref<8x1104xf32, #tpu.memory_space<vmem>>, vector<8x384xf32>
    %c320 = arith.constant 320 : index
    %c0_804 = arith.constant 0 : index
    %573 = vector.load %arg12[%c320, %c0_804] : memref<392x768xf32, #tpu.memory_space<vmem>>, vector<8x384xf32>
    tpu.vector_store %arg12[%c320, %c0_804], %572 {strides = array<i32>} : memref<392x768xf32, #tpu.memory_space<vmem>>, vector<8x384xf32>,
    %c0_805 = arith.constant 0 : index
    %c677 = arith.constant 677 : index
    %574 = vector.load %arg11[%c0_805, %c677] : memref<8x1104xf32, #tpu.memory_space<vmem>>, vector<8x384xf32>
    %c320_806 = arith.constant 320 : index
    %c384_807 = arith.constant 384 : index
    %575 = vector.load %arg12[%c320_806, %c384_807] : memref<392x768xf32, #tpu.memory_space<vmem>>, vector<8x384xf32>
    tpu.vector_store %arg12[%c320_806, %c384_807], %574 {strides = array<i32>} : memref<392x768xf32, #tpu.memory_space<vmem>>, vector<8x384xf32>,
    %c0_808 = arith.constant 0 : index
    %c126_809 = arith.constant 126 : index
    %576 = vector.load %arg11[%c0_808, %c126_809] : memref<8x1104xf32, #tpu.memory_space<vmem>>, vector<8x384xf32>
    %c328 = arith.constant 328 : index
    %c0_810 = arith.constant 0 : index
    %577 = vector.load %arg12[%c328, %c0_810] : memref<392x768xf32, #tpu.memory_space<vmem>>, vector<8x384xf32>
    tpu.vector_store %arg12[%c328, %c0_810], %576 {strides = array<i32>} : memref<392x768xf32, #tpu.memory_space<vmem>>, vector<8x384xf32>,
    %c0_811 = arith.constant 0 : index
    %c678 = arith.constant 678 : index
    %578 = vector.load %arg11[%c0_811, %c678] : memref<8x1104xf32, #tpu.memory_space<vmem>>, vector<8x384xf32>
    %c328_812 = arith.constant 328 : index
    %c384_813 = arith.constant 384 : index
    %579 = vector.load %arg12[%c328_812, %c384_813] : memref<392x768xf32, #tpu.memory_space<vmem>>, vector<8x384xf32>
    tpu.vector_store %arg12[%c328_812, %c384_813], %578 {strides = array<i32>} : memref<392x768xf32, #tpu.memory_space<vmem>>, vector<8x384xf32>,
    %c0_814 = arith.constant 0 : index
    %c144_815 = arith.constant 144 : index
    %580 = vector.load %arg11[%c0_814, %c144_815] : memref<8x1104xf32, #tpu.memory_space<vmem>>, vector<8x384xf32>
    %c336 = arith.constant 336 : index
    %c0_816 = arith.constant 0 : index
    %581 = vector.load %arg12[%c336, %c0_816] : memref<392x768xf32, #tpu.memory_space<vmem>>, vector<8x384xf32>
    tpu.vector_store %arg12[%c336, %c0_816], %580 {strides = array<i32>} : memref<392x768xf32, #tpu.memory_space<vmem>>, vector<8x384xf32>,
    %c0_817 = arith.constant 0 : index
    %c696 = arith.constant 696 : index
    %582 = vector.load %arg11[%c0_817, %c696] : memref<8x1104xf32, #tpu.memory_space<vmem>>, vector<8x384xf32>
    %c336_818 = arith.constant 336 : index
    %c384_819 = arith.constant 384 : index
    %583 = vector.load %arg12[%c336_818, %c384_819] : memref<392x768xf32, #tpu.memory_space<vmem>>, vector<8x384xf32>
    tpu.vector_store %arg12[%c336_818, %c384_819], %582 {strides = array<i32>} : memref<392x768xf32, #tpu.memory_space<vmem>>, vector<8x384xf32>,
    %c0_820 = arith.constant 0 : index
    %c145_821 = arith.constant 145 : index
    %584 = vector.load %arg11[%c0_820, %c145_821] : memref<8x1104xf32, #tpu.memory_space<vmem>>, vector<8x384xf32>
    %c344 = arith.constant 344 : index
    %c0_822 = arith.constant 0 : index
    %585 = vector.load %arg12[%c344, %c0_822] : memref<392x768xf32, #tpu.memory_space<vmem>>, vector<8x384xf32>
    tpu.vector_store %arg12[%c344, %c0_822], %584 {strides = array<i32>} : memref<392x768xf32, #tpu.memory_space<vmem>>, vector<8x384xf32>,
    %c0_823 = arith.constant 0 : index
    %c697 = arith.constant 697 : index
    %586 = vector.load %arg11[%c0_823, %c697] : memref<8x1104xf32, #tpu.memory_space<vmem>>, vector<8x384xf32>
    %c344_824 = arith.constant 344 : index
    %c384_825 = arith.constant 384 : index
    %587 = vector.load %arg12[%c344_824, %c384_825] : memref<392x768xf32, #tpu.memory_space<vmem>>, vector<8x384xf32>
    tpu.vector_store %arg12[%c344_824, %c384_825], %586 {strides = array<i32>} : memref<392x768xf32, #tpu.memory_space<vmem>>, vector<8x384xf32>,
    %c0_826 = arith.constant 0 : index
    %c146_827 = arith.constant 146 : index
    %588 = vector.load %arg11[%c0_826, %c146_827] : memref<8x1104xf32, #tpu.memory_space<vmem>>, vector<8x384xf32>
    %c352 = arith.constant 352 : index
    %c0_828 = arith.constant 0 : index
    %589 = vector.load %arg12[%c352, %c0_828] : memref<392x768xf32, #tpu.memory_space<vmem>>, vector<8x384xf32>
    tpu.vector_store %arg12[%c352, %c0_828], %588 {strides = array<i32>} : memref<392x768xf32, #tpu.memory_space<vmem>>, vector<8x384xf32>,
    %c0_829 = arith.constant 0 : index
    %c698 = arith.constant 698 : index
    %590 = vector.load %arg11[%c0_829, %c698] : memref<8x1104xf32, #tpu.memory_space<vmem>>, vector<8x384xf32>
    %c352_830 = arith.constant 352 : index
    %c384_831 = arith.constant 384 : index
    %591 = vector.load %arg12[%c352_830, %c384_831] : memref<392x768xf32, #tpu.memory_space<vmem>>, vector<8x384xf32>
    tpu.vector_store %arg12[%c352_830, %c384_831], %590 {strides = array<i32>} : memref<392x768xf32, #tpu.memory_space<vmem>>, vector<8x384xf32>,
    %c0_832 = arith.constant 0 : index
    %c147_833 = arith.constant 147 : index
    %592 = vector.load %arg11[%c0_832, %c147_833] : memref<8x1104xf32, #tpu.memory_space<vmem>>, vector<8x384xf32>
    %c360 = arith.constant 360 : index
    %c0_834 = arith.constant 0 : index
    %593 = vector.load %arg12[%c360, %c0_834] : memref<392x768xf32, #tpu.memory_space<vmem>>, vector<8x384xf32>
    tpu.vector_store %arg12[%c360, %c0_834], %592 {strides = array<i32>} : memref<392x768xf32, #tpu.memory_space<vmem>>, vector<8x384xf32>,
    %c0_835 = arith.constant 0 : index
    %c699 = arith.constant 699 : index
    %594 = vector.load %arg11[%c0_835, %c699] : memref<8x1104xf32, #tpu.memory_space<vmem>>, vector<8x384xf32>
    %c360_836 = arith.constant 360 : index
    %c384_837 = arith.constant 384 : index
    %595 = vector.load %arg12[%c360_836, %c384_837] : memref<392x768xf32, #tpu.memory_space<vmem>>, vector<8x384xf32>
    tpu.vector_store %arg12[%c360_836, %c384_837], %594 {strides = array<i32>} : memref<392x768xf32, #tpu.memory_space<vmem>>, vector<8x384xf32>,
    %c0_838 = arith.constant 0 : index
    %c148_839 = arith.constant 148 : index
    %596 = vector.load %arg11[%c0_838, %c148_839] : memref<8x1104xf32, #tpu.memory_space<vmem>>, vector<8x384xf32>
    %c368 = arith.constant 368 : index
    %c0_840 = arith.constant 0 : index
    %597 = vector.load %arg12[%c368, %c0_840] : memref<392x768xf32, #tpu.memory_space<vmem>>, vector<8x384xf32>
    tpu.vector_store %arg12[%c368, %c0_840], %596 {strides = array<i32>} : memref<392x768xf32, #tpu.memory_space<vmem>>, vector<8x384xf32>,
    %c0_841 = arith.constant 0 : index
    %c700 = arith.constant 700 : index
    %598 = vector.load %arg11[%c0_841, %c700] : memref<8x1104xf32, #tpu.memory_space<vmem>>, vector<8x384xf32>
    %c368_842 = arith.constant 368 : index
    %c384_843 = arith.constant 384 : index
    %599 = vector.load %arg12[%c368_842, %c384_843] : memref<392x768xf32, #tpu.memory_space<vmem>>, vector<8x384xf32>
    tpu.vector_store %arg12[%c368_842, %c384_843], %598 {strides = array<i32>} : memref<392x768xf32, #tpu.memory_space<vmem>>, vector<8x384xf32>,
    %c0_844 = arith.constant 0 : index
    %c149_845 = arith.constant 149 : index
    %600 = vector.load %arg11[%c0_844, %c149_845] : memref<8x1104xf32, #tpu.memory_space<vmem>>, vector<8x384xf32>
    %c376 = arith.constant 376 : index
    %c0_846 = arith.constant 0 : index
    %601 = vector.load %arg12[%c376, %c0_846] : memref<392x768xf32, #tpu.memory_space<vmem>>, vector<8x384xf32>
    tpu.vector_store %arg12[%c376, %c0_846], %600 {strides = array<i32>} : memref<392x768xf32, #tpu.memory_space<vmem>>, vector<8x384xf32>,
    %c0_847 = arith.constant 0 : index
    %c701 = arith.constant 701 : index
    %602 = vector.load %arg11[%c0_847, %c701] : memref<8x1104xf32, #tpu.memory_space<vmem>>, vector<8x384xf32>
    %c376_848 = arith.constant 376 : index
    %c384_849 = arith.constant 384 : index
    %603 = vector.load %arg12[%c376_848, %c384_849] : memref<392x768xf32, #tpu.memory_space<vmem>>, vector<8x384xf32>
    tpu.vector_store %arg12[%c376_848, %c384_849], %602 {strides = array<i32>} : memref<392x768xf32, #tpu.memory_space<vmem>>, vector<8x384xf32>,
    %c0_850 = arith.constant 0 : index
    %c150_851 = arith.constant 150 : index
    %604 = vector.load %arg11[%c0_850, %c150_851] : memref<8x1104xf32, #tpu.memory_space<vmem>>, vector<8x384xf32>
    %c384_852 = arith.constant 384 : index
    %c0_853 = arith.constant 0 : index
    %605 = vector.load %arg12[%c384_852, %c0_853] : memref<392x768xf32, #tpu.memory_space<vmem>>, vector<8x384xf32>
    tpu.vector_store %arg12[%c384_852, %c0_853], %604 {strides = array<i32>} : memref<392x768xf32, #tpu.memory_space<vmem>>, vector<8x384xf32>,
    %c0_854 = arith.constant 0 : index
    %c702 = arith.constant 702 : index
    %606 = vector.load %arg11[%c0_854, %c702] : memref<8x1104xf32, #tpu.memory_space<vmem>>, vector<8x384xf32>
    %c384_855 = arith.constant 384 : index
    %c384_856 = arith.constant 384 : index
    %607 = vector.load %arg12[%c384_855, %c384_856] : memref<392x768xf32, #tpu.memory_space<vmem>>, vector<8x384xf32>
    tpu.vector_store %arg12[%c384_855, %c384_856], %606 {strides = array<i32>} : memref<392x768xf32, #tpu.memory_space<vmem>>, vector<8x384xf32>,
    %c0_857 = arith.constant 0 : index
    %c0_858 = arith.constant 0 : index
    %608 = vector.load %arg4[%c0_857, %c0_858] : memref<8x392xf32, #tpu.memory_space<vmem>>, vector<8x392xf32>
    %c0_859 = arith.constant 0 : index
    %c0_860 = arith.constant 0 : index
    %609 = vector.load %arg12[%c0_859, %c0_860] : memref<392x768xf32, #tpu.memory_space<vmem>>, vector<392x768xf32>
    %cst_861 = arith.constant dense<0.000000e+00> : vector<8x768xf32>
    %610 = tpu.matmul %608, %609, %cst_861 {dimension_numbers = #tpu.dot_dimension_numbers<[1], [0], [0], [1], [0, 0, 1, 1], [], []>} : vector<8x392xf32>, vector<392x768xf32>, vector<8x768xf32> -> vector<8x768xf32>
    %c0_862 = arith.constant 0 : index
    %c3_863 = arith.constant 3 : index
    %611 = vector.load %arg6[%c0_862, %c3_863] : memref<8x4xf32, #tpu.memory_space<vmem>>, vector<8x1xf32>
    %612 = vector.broadcast %611 : vector<8x1xf32> to vector<8x768xf32>
    %613 = arith.mulf %610, %612 : vector<8x768xf32>
    %c0_864 = arith.constant 0 : index
    %c3_865 = arith.constant 3 : index
    %614 = vector.load %arg7[%c0_864, %c3_865] : memref<8x4xf32, #tpu.memory_space<vmem>>, vector<8x1xf32>
    %615 = vector.broadcast %614 : vector<8x1xf32> to vector<8x768xf32>
    %616 = arith.addf %613, %615 : vector<8x768xf32>
    %cst_866 = arith.constant 0.000000e+00 : f32
    %617 = vector.broadcast %cst_866 : f32 to vector<8x768xf32>
    %618 = arith.maximumf %616, %617 : vector<8x768xf32>
    %c0_867 = arith.constant 0 : index
    %c0_868 = arith.constant 0 : index
    %619 = vector.load %arg13[%c0_867, %c0_868] : memref<8x768xf32, #tpu.memory_space<vmem>>, vector<8x768xf32>
    %c0_869 = arith.constant 0 : index
    %c8_870 = arith.constant 8 : index
    %620 = vector.load %arg5[%c0_869, %c8_870] : memref<8x16xf32, #tpu.memory_space<vmem>>, vector<8x8xf32>
    %cst_871 = arith.constant dense<0.000000e+00> : vector<8x768xf32>
    %621 = tpu.matmul %620, %618, %cst_871 {dimension_numbers = #tpu.dot_dimension_numbers<[1], [0], [0], [1], [0, 0, 1, 1], [], []>} : vector<8x8xf32>, vector<8x768xf32>, vector<8x768xf32> -> vector<8x768xf32>
    %622 = arith.addf %619, %621 : vector<8x768xf32>
    %c0_872 = arith.constant 0 : index
    %c0_873 = arith.constant 0 : index
    %623 = vector.load %arg8[%c0_872, %c0_873] : memref<8x1xf32, #tpu.memory_space<vmem>>, vector<8x1xf32>
    %624 = vector.broadcast %623 : vector<8x1xf32> to vector<8x768xf32>
    %625 = arith.addf %622, %624 : vector<8x768xf32>
    %626 = vector.extract_strided_slice %625 {offsets = [0, 0], sizes = [8, 384], strides = [1, 1]} : vector<8x768xf32> to vector<8x384xf32>
    %c0_874 = arith.constant 0 : index
    %c0_875 = arith.constant 0 : index
    %c0_876 = arith.constant 0 : index
    %627 = vector.load %arg9[%c0_874, %c0_875, %c0_876] : memref<2x8x384xf32, #tpu.memory_space<vmem>>, vector<1x8x384xf32>
    %628 = vector.shape_cast %627 : vector<1x8x384xf32> to vector<8x384xf32>
    %629 = vector.shape_cast %626 : vector<8x384xf32> to vector<1x8x384xf32>
    tpu.vector_store %arg9[%c0_874, %c0_875, %c0_876], %629 {strides = array<i32>} : memref<2x8x384xf32, #tpu.memory_space<vmem>>, vector<1x8x384xf32>,
    %630 = vector.extract_strided_slice %625 {offsets = [0, 384], sizes = [8, 384], strides = [1, 1]} : vector<8x768xf32> to vector<8x384xf32>
    %c1_877 = arith.constant 1 : index
    %c0_878 = arith.constant 0 : index
    %c0_879 = arith.constant 0 : index
    %631 = vector.load %arg9[%c1_877, %c0_878, %c0_879] : memref<2x8x384xf32, #tpu.memory_space<vmem>>, vector<1x8x384xf32>
    %632 = vector.shape_cast %631 : vector<1x8x384xf32> to vector<8x384xf32>
    %633 = vector.shape_cast %630 : vector<8x384xf32> to vector<1x8x384xf32>
    tpu.vector_store %arg9[%c1_877, %c0_878, %c0_879], %633 {strides = array<i32>} : memref<2x8x384xf32, #tpu.memory_space<vmem>>, vector<1x8x384xf32>,
    return
  }
  func.func @transform_0(%arg0: i32) -> (i32, i32, i32) {
    %c0_i32 = arith.constant 0 : i32
    %c0_i32_0 = arith.constant 0 : i32
    %c0_i32_1 = arith.constant 0 : i32
    return %arg0, %c0_i32, %c0_i32_0 : i32, i32, i32
  }
  func.func @transform_1(%arg0: i32) -> (i32, i32) {
    %c0_i32 = arith.constant 0 : i32
    %c0_i32_0 = arith.constant 0 : i32
    %c0_i32_1 = arith.constant 0 : i32
    return %c0_i32, %c0_i32_0 : i32, i32
  }
  func.func @transform_2(%arg0: i32) -> (i32, i32) {
    %c0_i32 = arith.constant 0 : i32
    %c0_i32_0 = arith.constant 0 : i32
    %c0_i32_1 = arith.constant 0 : i32
    return %c0_i32, %c0_i32_0 : i32, i32
  }
  func.func @transform_3(%arg0: i32) -> (i32, i32) {
    %c0_i32 = arith.constant 0 : i32
    %c0_i32_0 = arith.constant 0 : i32
    %c0_i32_1 = arith.constant 0 : i32
    return %c0_i32, %c0_i32_0 : i32, i32
  }
  func.func @transform_4(%arg0: i32) -> (i32, i32) {
    %c0_i32 = arith.constant 0 : i32
    %c0_i32_0 = arith.constant 0 : i32
    %c0_i32_1 = arith.constant 0 : i32
    return %c0_i32, %c0_i32_0 : i32, i32
  }
  func.func @transform_5(%arg0: i32) -> (i32, i32) {
    %c0_i32 = arith.constant 0 : i32
    %c0_i32_0 = arith.constant 0 : i32
    %c0_i32_1 = arith.constant 0 : i32
    return %c0_i32, %c0_i32_0 : i32, i32
  }
  func.func @transform_6(%arg0: i32) -> (i32, i32) {
    %c0_i32 = arith.constant 0 : i32
    %c0_i32_0 = arith.constant 0 : i32
    %c0_i32_1 = arith.constant 0 : i32
    return %c0_i32, %c0_i32_0 : i32, i32
  }
  func.func @transform_7(%arg0: i32) -> (i32, i32) {
    %c0_i32 = arith.constant 0 : i32
    %c0_i32_0 = arith.constant 0 : i32
    %c0_i32_1 = arith.constant 0 : i32
    return %c0_i32, %c0_i32_0 : i32, i32
  }
  func.func @transform_8(%arg0: i32) -> (i32, i32, i32) {
    %c0_i32 = arith.constant 0 : i32
    %c0_i32_0 = arith.constant 0 : i32
    %c0_i32_1 = arith.constant 0 : i32
    return %arg0, %c0_i32, %c0_i32_0 : i32, i32, i32
  }
}

</mosaic_0001>

<bundles_post_ra>
// kernel: tpu_custom_call.1
= control target key start
LH: loop header
LB: loop body
LE: loop exit
PB: predicated region body
PF: predicated region fallthrough
CT: control target
= control target key end

     0   :  { %s12259_s0 = inlined_call_operand.hbm [shape: f32[4,4,552], index: 0, kind: input, shape index: {}]   ;;  %s12260_s1 = inlined_call_operand.vmem [shape: f32[16,196], index: 1, kind: input, shape index: {}]   ;;  %s12261_s2 = inlined_call_operand.hbm [shape: f32[8,72], index: 2, kind: input, shape index: {}]   ;;  %s12262_s3 = inlined_call_operand.hbm [shape: f32[8,392], index: 3, kind: input, shape index: {}]   ;;  %s12263_s4 = inlined_call_operand.vmem [shape: f32[8,16], index: 4, kind: input, shape index: {}]   ;;  %s12264_s5 = inlined_call_operand.vmem [shape: f32[8,4], index: 5, kind: input, shape index: {}]   ;;  %s12265_s6 = inlined_call_operand.vmem [shape: f32[8,4], index: 6, kind: input, shape index: {}]   ;;  %s12266_s7 = inlined_call_operand.vmem [shape: f32[8,1], index: 7, kind: input, shape index: {}]   ;;  %s12267_s8 = inlined_call_operand.hbm [shape: f32[4,8,384], index: 8, kind: output, shape index: {}]  }
   0x1   :  { %12493 = sst [smem:[#allocation26_spill]] %s12259_s0 }
   0x2   :  { %12494 = sst [smem:[#allocation27_spill]] %s12260_s1 }
   0x3   :  { %12495 = sst [smem:[#allocation28_spill]] %s12261_s2 }
   0x4   :  { %12496 = sst [smem:[#allocation29_spill]] %s12262_s3 }
   0x5   :  { %12497 = sst [smem:[#allocation30_spill]] %s12263_s4 }
   0x6   :  { %12498 = sst [smem:[#allocation31_spill]] %s12264_s5 }
   0x7   :  { %12499 = sst [smem:[#allocation32_spill]] %s12265_s6 }
   0x8   :  { %12500 = sst [smem:[#allocation33_spill]] %s12266_s7 }
   0x9   :  { %12501 = sst [smem:[#allocation34_spill]] %s12267_s8 }
   0xa   :  { %13 = vsyncpa [#allocation7], 0 }
   0xb   :  { %15 = vsyncpa [#allocation7 + $0x1], 0 }
   0xc   :  { %16 = vsyncpa [#allocation10], 0 }
   0xd   :  { %17 = vsyncpa [#allocation8], 0 }
   0xe   :  { %19 = vsyncpa [#allocation8 + $0x1], 0  ;;  %s8572_s27 = smov 0   ;;  %s8574_s28 = smov 0  }
   0xf   :  { %s8576_s29 = smov 0   ;;  %s8578_s30 = smov 0  }
  0x10 LB: > { %12502 = sst [smem:[#allocation16_spill]] %s8403_s27  ;;  %s8593_s9 = sadd.s32 4294967295, %s8415_s30   ;;  %s8415_s30 = sphi %s8578_s30, %s12870_s30   ;;  %s8411_s29 = sphi %s8576_s29, %s12873_s29   ;;  %s8407_s28 = sphi %s8574_s28, %s12872_s28   ;;  %s8403_s27 = sphi %s8572_s27, %s12871_s27  }
  0x11   : > { %12503 = sst [smem:[#allocation17_spill]] %s8407_s28  ;;  %s7887_s10 = sadd.s32 4294967294, %s8415_s30  }
  0x12   : > { %12504 = sst [smem:[#allocation18_spill]] %s8411_s29  ;;  %s8597_s11 = sadd.s32 1, %s8415_s30  }
  0x13   : > { %12505 = sst [smem:[#allocation19_spill]] %s8415_s30  ;;  %s32_s12 = sadd.s32 1, %s8411_s29 }
  0x14   : > { %12506 = sst [smem:[#allocation20_spill]] %s8593_s9  ;;  %s29_s13 = ssub.s32 %s8415_s30, %s8597_s11 }
  0x15   : > { %12507 = sst [smem:[#allocation21_spill]] %s8597_s11  ;;  %p39_p0 = scmp.ne.s32.totalorder %s8411_s29, %s8407_s28 }
  0x16   : > { %p30_p1 = scmp.eq.s32.totalorder %s29_s13, 0  ;;  %p40_p2 = scmp.eq.s32.totalorder %s8415_s30, 0 }
  0x17   : > { %p45_p3 = scmp.ne.s32.totalorder %s8407_s28, %s8403_s27  ;;  %p12268_p4 = scmp.eq.s32.totalorder %s8593_s9, 0 }
  0x18   : > { %s8609_s14 = scalar_select %p30_p1, %s8411_s29, %s32_s12  }
  0x19   : > { %p8611_p5 = por %p40_p2, %p39_p0  ;;  %p8617_p6 = por %p12268_p4, %p45_p3 }
  0x1a   : > { %12508 = sst [smem:[#allocation22_spill]] %s8609_s14  ;;  %p216_p7 = scmp.eq.s32.totalorder %s8593_s9, 1 }
  0x1b   : > { %s12510_s16 = scalar_select %p8617_p6, 1, 0 }
  0x1c   : > { %p222_p8 = scmp.eq.s32.totalorder %s7887_s10, 1  ;;  %p7888_p9 = scmp.ge.s32.totalorder %s8415_s30, 1 }
  0x1d   : > { %p229_p10 = scmp.lt.s32.totalorder %s8415_s30, 3  ;;  %p8624_p11 = por %p216_p7, %p39_p0 }
  0x1e   : > { %p8628_p12 = por %p222_p8, %p45_p3  ;;  %s8417_s20 = smov [#allocation9]  }
  0x1f   : > { %s12511_s17 = scalar_select %p8624_p11, 1, 0 }
  0x20   : > { %s12513_s18 = scalar_select %p8628_p12, 1, 0 }
  0x21   : > { %12512 = sst [smem:[#allocation23_spill]] %s12511_s17  ;;  %p8632_p13 = pnand %p7888_p9, %p229_p10 }
  0x22   : > { %12514 = sst [smem:[#allocation24_spill]] %s12513_s18  ;;  %s245_s21 = sshll.u32 %s8417_s20, 4  ;;  %s246_s21 = int_to_ptr.vmem [resolvable:$true] %s245_s21 }
  0x23   : > { %s12515_s19 = scalar_select %p8632_p13, 1, 0 }
  0x24   : > { %p8057_p2 = pneg %p8632_p13  ;;  %p8074_p4 = scmp.lt.s32.totalorder %s8415_s30, 2 }
  0x25   : > { %p12516_p0 = scmp.eq.s32.totalorder %s8593_s9, 0  ;;  %s8418_s24 = smov [#allocation11]  }
  0x26   : > { %p8648_p3 = pnand %p8074_p4, %p8611_p5  ;;  %s256_s25 = sshll.u32 %s8418_s24, 4  ;;  %s257_s25 = int_to_ptr.vmem [resolvable:$true] %s256_s25 }
  0x27   : > { %p8642_p7 = pnand %p8057_p2, %p12516_p0  ;;  %s8278_s26 = scalar_lea.vmem %s246_s21, 128 }
  0x28   : > { %p8279_p9 = scmp.ne.s32.totalorder %s246_s21, %s8278_s26  ;;  %p8286_p0 = scmp.lt.s32.totalorder %s246_s21, %s246_s21 }
  0x29   : > { %p8269_p8 = pneg %p8642_p7  ;;  %p8287_p1 = scmp.lt.s32.totalorder %s8278_s26, %s8278_s26 }
  0x2b   : > { %p8281_p10 = pnand %p8279_p9, %p8269_p8  ;;  %p8288_p12 = por %p8287_p1, %p8286_p0 }
  0x2d   : > { %p8282_p2 = pneg %p8281_p10 }
  0x2f   : > { %p8289_p11 = pnand %p8288_p12, %p8282_p2 }
  0x31   : > { %8292 = shalt.err (!%p8289_p11)
}
  0x32   : > { %s12519_s2 = sld [smem:[#allocation28_spill]]  ;;  %s279_s13 = sand.u32 1, %s8411_s29  }
  0x33   : > { %s8304_s15 = scalar_lea.vmem %s257_s25, 512  ;;  %p8312_p10 = scmp.lt.s32.totalorder %s257_s25, %s257_s25 }
  0x34   : > { %p8305_p4 = scmp.ne.s32.totalorder %s257_s25, %s8304_s15  ;;  %p8313_p6 = scmp.lt.s32.totalorder %s8304_s15, %s8304_s15 }
  0x36   : > { %p8307_p5 = pnand %p8305_p4, %p8269_p8  ;;  %p8314_p1 = por %p8313_p6, %p8312_p10 }
  0x38   : > { %8060 = dma.hbm_to_vmem [thread:$0]  (!%p8642_p7), %s12519_s2, 128, %s246_s21, [#allocation10]  }
  0x39   : > { %p8308_p9 = pneg %p8307_p5 }
  0x3b   : > { %p8315_p12 = pnand %p8314_p1, %p8308_p9 }
  0x3d   : > { %8318 = shalt.err (!%p8315_p12)
}
  0x3e   : > { %s12520_s3 = sld [smem:[#allocation29_spill]]  ;;  %s8028_s21 = smul.u32 40, %s279_s13 }
  0x3f   : > { %s8029_s26 = smul.u32 640, %s8415_s30  ;;  %s12521_s0 = sld [smem:[#allocation26_spill]] }
  0x40   : > { %s283_s15 = scalar_lea.vmem [#allocation6], %s8028_s21  ;;  %s8679_s22 = scalar_lea.sflag [#allocation7], %s279_s13 }
  0x41   : > { %s291_s14 = sshll.u32 %s283_s15, 4  ;;  %p8321_p11 = pneg %p8648_p3  ;;  %s8677_s14 = int_to_ptr.vmem [resolvable:$true] %s291_s14 }
  0x44   : > { %8063 = dma.hbm_to_vmem [thread:$0]  (!%p8642_p7), %s12520_s3, 512, %s257_s25, [#allocation10]  }
  0x45   : > { %s8675_s2 = scalar_lea.hbm %s12521_s0, %s8029_s26  ;;  %s8324_s26 = scalar_lea.hbm %s12521_s0, 1280 }
  0x46   : > { %s8319_s20 = scalar_lea.hbm %s8675_s2, 640  ;;  %p8325_p2 = scmp.lt.s32.totalorder %s8675_s2, %s12521_s0 }
  0x47   : > { %p8320_p6 = scmp.ne.s32.totalorder %s8675_s2, %s8319_s20  ;;  %p8326_p0 = scmp.lt.s32.totalorder %s8324_s26, %s8319_s20 }
  0x49   : > { %p8322_p7 = pnand %p8321_p11, %p8320_p6  ;;  %p8327_p4 = por %p8326_p0, %p8325_p2 }
  0x4b   : > { %p8323_p8 = pneg %p8322_p7 }
  0x4d   : > { %p8328_p5 = pnand %p8327_p4, %p8323_p8 }
  0x4f   : > { %8331 = shalt.err (!%p8328_p5)
}
  0x50   : > { %s8332_s13 = scalar_lea.vmem %s8677_s14, 640  ;;  %s8419_s21 = smov [#allocation6]  }
  0x51   : > { %p8333_p9 = scmp.ne.s32.totalorder %s8677_s14, %s8332_s13  ;;  %s8337_s15 = sshll.u32 %s8419_s21, 4  ;;  %s8338_s15 = int_to_ptr.vmem [resolvable:$false] %s8337_s15 }
  0x52   : > { %s8339_s25 = scalar_lea.vmem %s8338_s15, 1280  ;;  %p8340_p12 = scmp.lt.s32.totalorder %s8677_s14, %s8338_s15 }
  0x53   : > { %p8335_p10 = pnand %p8333_p9, %p8321_p11  ;;  %p8341_p6 = scmp.lt.s32.totalorder %s8339_s25, %s8332_s13 }
  0x55   : > { %p8336_p1 = pneg %p8335_p10  ;;  %p8342_p7 = por %p8341_p6, %p8340_p12 }
  0x57   : > { %p8343_p13 = pnand %p8342_p7, %p8336_p1 }
  0x59   : > { %8346 = shalt.err (!%p8343_p13)
}
  0x5a   : > { %s8420_s20 = smov 320   ;;  %s8421_s24 = smov 20  }
  0x5b   : > { %8067 = dma.hbm_to_vmem [thread:$0]  (!%p8648_p3), %s8675_s2, 640, %s8677_s14, %s8679_s22, %s8420_s20, %s8420_s20, %s8421_s24  }
  0x5c   : > { %p12522_p11 = scmp.ne.s32.totalorder %s12515_s19, 0 }
  0x5e   : > { %303 = sbr.rel (%p12522_p11) target bundleno = 2820 (0xb04), region = 52 }
  0x63   : > { %s8703_s26 = sand.u32 1, %s8407_s28   ;;  %p12524_p13 = scmp.ne.s32.totalorder %s12510_s16, 0 }
  0x64   : > { %12523 = sst [smem:[#allocation25_spill]] %s8703_s26  ;;  %s8030_s10 = smul.u32 40, %s8703_s26 }
  0x65   : > { %s306_s12 = scalar_lea.sflag [#allocation7], %s8703_s26 }
  0x66   : > { %s8707_s13 = scalar_lea.vmem [#allocation6], %s8030_s10 }
  0x67   : > { %8390 = dma.done.wait (%p12524_p13), %s306_s12, 640  }
  0x68   : > { %8392 = vsyncadd (%p12524_p13), %s306_s12, 4294966656  ;;  %p12525_p3 = scmp.eq.s32.totalorder %s8593_s9, 0 }
  0x6a   : > { %8394 = dma.done.wait (%p12525_p3), [#allocation10], 640   ;;  %p12526_p8 = pmov %p12525_p3 }
  0x6b   : > { %v8718_v0 = vld [vmem:[%s8707_s13 + $0x8] sm:$0xff]  ;;  %v8721_v1 = vld [vmem:[%s8707_s13] sm:$0xff]  ;;  %s12323_s2 = smov 127   ;;  %v8735_v4 = vld [vmem:[%s8707_s13 + $0x14] sm:$0xff]  ;;  %s12321_s14 = smov 126   ;;  %vm12366_vm0 = vcmask 1039360  }
  0x6c   : > { %8396 = vsyncadd (%p12526_p8), [#allocation10], 4294966656  ;;  %490 = vrot.lane.b32.xlu1 %v8718_v0, %s12323_s2  ;;  %486 = vrot.lane.b32.xlu0 %v8721_v1, %s12323_s2  ;;  %v8729_v2 = vcombine.low %v8721_v1, %v8721_v1  ;;  %v8732_v3 = vld [vmem:[%s8707_s13] sm:$0xff]  ;;  %v8743_v6 = vld [vmem:[%s8707_s13 + $0x14] sm:$0xff]  ;;  %v8749_v8 = vcombine.low %v8718_v0, %v8718_v0  ;;  %v8753_v9 = vcombine.low %v8735_v4, %v8735_v4  ;;  %s12319_s16 = smov 125   ;;  %s12316_s19 = smov 124  }
  0x6d   : > { %466 = vst [vmem:[#allocation4 + $0x4c8] sm:$0xf] %v8732_v3  ;;  %v8740_v5 = vcombine.high %v8732_v3, %v8732_v3  ;;  %v462_v7 = vld [vmem:[%s8707_s13 + $0x8] sm:$0xf]  ;;  %475 = vst [vmem:[#allocation4 + $0x758] sm:$0xf] %v8743_v6  ;;  %v8765_v11 = vcombine.high %v8743_v6, %v8743_v6  ;;  %v8783_v14 = vcombine.high %v8721_v1, %v8721_v1 }
  0x6e   : > { %468 = vst [vmem:[#allocation4 + $0x7f8] sm:$0xf] %v462_v7  ;;  %v8761_v10 = vld [vmem:[%s8707_s13 + $0x1c] sm:$0xff]  ;;  %v8791_v15 = vcombine.high %v8718_v0, %v8718_v0  ;;  %v8799_v16 = vcombine.high %v8735_v4, %v8735_v4  ;;  %s12301_s23 = smov 123   ;;  %s12298_s22 = smov 122   ;;  %vm12365_vm1 = vcmask 1031168  }
  0x6f   : > { %467 = vst [vmem:[#allocation4 + $0x808] sm:$0xf] %v8740_v5  ;;  %v7899_v12 = vld [vmem:[%s8707_s13 + $0x1c] sm:$0xf]  ;;  %476 = vst [vmem:[#allocation4 + $0x320] sm:$0xf] %v8765_v11  ;;  %v8775_v13 = vcombine.low %v8761_v10, %v8761_v10  ;;  %v8807_v17 = vcombine.high %v8761_v10, %v8761_v10 }
  0x70   : > { %510 = vrot.lane.b32.xlu1 %v8735_v4, %s12323_s2  ;;  %484 = vrot.lane.b32.xlu0 %v8729_v2, %s12323_s2  ;;  %477 = vst [vmem:[#allocation4 + $0x438] sm:$0xf] %v7899_v12  ;;  %s12295_s21 = smov 104   ;;  %s12286_s15 = smov 103   ;;  %vm12364_vm2 = vcmask 1022976   ;;  %vm12363_vm3 = vcmask 1014784  }
  0x71   : > { %s12284_s25 = smov 102   ;;  %s12282_s20 = smov 101   ;;  %vm12362_vm4 = vcmask 1006592   ;;  %vm12361_vm5 = vcmask 998400   ;;  %vm12330_vm6 = vcmask 850944   ;;  %vm12325_vm7 = vcmask 842752  }
  0x72   : > { %s12272_s24 = smov 100   ;;  %s12274_s10 = smov 99   ;;  %vm12318_vm8 = vcmask 834560   ;;  %vm12306_vm9 = vcmask 826368   ;;  %vm12294_vm10 = vcmask 818176   ;;  %vm12300_vm11 = vcmask 809984  }
  0x73   : > { %s12276_s12 = smov 98   ;;  %vm12297_vm12 = vcmask 801792   ;;  %vm12379_vm13 = vcmask 654336   ;;  %vm12303_vm14 = vcmask 646144   ;;  %vm12367_vm15 = vcmask 637952   ;;  %s12527_s1 = sld [smem:[#allocation27_spill]] }
  0x74   : > { %488 = vrot.lane.b32.xlu1 %v8749_v8, %s12323_s2  ;;  %508 = vrot.lane.b32.xlu0 %v8753_v9, %s12323_s2  ;;  %s12539_s6 = sld [smem:[#allocation32_spill]]  ;;  %s12562_s0 = smov 75  }
  0x75   : > { %s12540_s5 = sld [smem:[#allocation31_spill]]  ;;  %s12580_s3 = smov 76  }
  0x76   : > { %s12581_s29 = smov 54   ;;  %s12582_s28 = smov 53  }
  0x77   : > { %s12583_s11 = smov 52   ;;  %s12585_s30 = smov 30  }
  0x78   : > { %514 = vrot.lane.b32.xlu1 %v8761_v10, %s12323_s2  ;;  %512 = vrot.lane.b32.xlu0 %v8775_v13, %s12323_s2  ;;  %s12398_s2 = smov 107   ;;  %s12589_s18 = smov 116  }
  0x79   : > { %s12590_s27 = smov 117   ;;  %s12591_s8 = smov 118  }
  0x7a   : > { %s8484_s26 = smov 88   ;;  %s8485_s9 = smov 87  }
  0x7b   : > { %s12594_s17 = smov 125   ;;  %s12639_s7 = smov 99  }
  0x7c   : > { %533 = vrot.lane.b32.xlu1 %v8783_v14, %s12321_s14  ;;  %531 = vrot.lane.b32.xlu0 %v8721_v1, %s12321_s14  ;;  %s12674_s4 = sld [smem:[#allocation30_spill]] }
  0x80   : > { %537 = vrot.lane.b32.xlu1 %v8791_v15, %s12321_s14  ;;  %535 = vrot.lane.b32.xlu0 %v8718_v0, %s12321_s14 }
  0x84   : > { %557 = vrot.lane.b32.xlu1 %v8799_v16, %s12321_s14  ;;  %555 = vrot.lane.b32.xlu0 %v8735_v4, %s12321_s14 }
  0x88   : > { %561 = vrot.lane.b32.xlu1 %v8807_v17, %s12321_s14  ;;  %559 = vrot.lane.b32.xlu0 %v8761_v10, %s12321_s14  ;;  %s12390_s14 = smov 108  }
  0x8c   : > { %580 = vrot.lane.b32.xlu1 %v8721_v1, %s12319_s16  ;;  %578 = vrot.lane.b32.xlu0 %v8729_v2, %s12319_s16 }
  0x90   : > { %584 = vrot.lane.b32.xlu1 %v8718_v0, %s12319_s16  ;;  %582 = vrot.lane.b32.xlu0 %v8749_v8, %s12319_s16 }
  0x94   : > { %604 = vrot.lane.b32.xlu1 %v8735_v4, %s12319_s16  ;;  %602 = vrot.lane.b32.xlu0 %v8753_v9, %s12319_s16 }
  0x98   : > { %608 = vrot.lane.b32.xlu1 %v8761_v10, %s12319_s16  ;;  %606 = vrot.lane.b32.xlu0 %v8775_v13, %s12319_s16  ;;  %s12388_s16 = smov 106  }
  0x9c   : > { %627 = vrot.lane.b32.xlu1 %v8783_v14, %s12316_s19  ;;  %625 = vrot.lane.b32.xlu0 %v8721_v1, %s12316_s19 }
  0xa0   : > { %631 = vrot.lane.b32.xlu1 %v8791_v15, %s12316_s19  ;;  %629 = vrot.lane.b32.xlu0 %v8718_v0, %s12316_s19 }
  0xa4   : > { %651 = vrot.lane.b32.xlu1 %v8799_v16, %s12316_s19  ;;  %649 = vrot.lane.b32.xlu0 %v8735_v4, %s12316_s19 }
  0xa8   : > { %655 = vrot.lane.b32.xlu1 %v8807_v17, %s12316_s19  ;;  %653 = vrot.lane.b32.xlu0 %v8761_v10, %s12316_s19  ;;  %s12347_s19 = smov 28  }
  0xac   : > { %674 = vrot.lane.b32.xlu1 %v8721_v1, %s12301_s23  ;;  %672 = vrot.lane.b32.xlu0 %v8729_v2, %s12301_s23 }
  0xb0   : > { %678 = vrot.lane.b32.xlu1 %v8718_v0, %s12301_s23  ;;  %676 = vrot.lane.b32.xlu0 %v8749_v8, %s12301_s23 }
  0xb4   : > { %698 = vrot.lane.b32.xlu1 %v8735_v4, %s12301_s23  ;;  %696 = vrot.lane.b32.xlu0 %v8753_v9, %s12301_s23 }
  0xb8   : > { %702 = vrot.lane.b32.xlu1 %v8761_v10, %s12301_s23  ;;  %700 = vrot.lane.b32.xlu0 %v8775_v13, %s12301_s23  ;;  %s12307_s23 = smov 50  }
  0xbc   : > { %721 = vrot.lane.b32.xlu1 %v8783_v14, %s12298_s22  ;;  %719 = vrot.lane.b32.xlu0 %v8721_v1, %s12298_s22 }
  0xc0   : > { %725 = vrot.lane.b32.xlu1 %v8791_v15, %s12298_s22  ;;  %723 = vrot.lane.b32.xlu0 %v8718_v0, %s12298_s22 }
  0xc4   : > { %745 = vrot.lane.b32.xlu1 %v8799_v16, %s12298_s22  ;;  %743 = vrot.lane.b32.xlu0 %v8735_v4, %s12298_s22 }
  0xc8   : > { %749 = vrot.lane.b32.xlu1 %v8807_v17, %s12298_s22  ;;  %747 = vrot.lane.b32.xlu0 %v8761_v10, %s12298_s22  ;;  %s12304_s22 = smov 51  }
  0xcc   : > { %768 = vrot.lane.b32.xlu1 %v8721_v1, %s12295_s21  ;;  %766 = vrot.lane.b32.xlu0 %v8729_v2, %s12295_s21 }
  0xd0   : > { %772 = vrot.lane.b32.xlu1 %v8718_v0, %s12295_s21  ;;  %770 = vrot.lane.b32.xlu0 %v8749_v8, %s12295_s21 }
  0xd4   : > { %792 = vrot.lane.b32.xlu1 %v8735_v4, %s12295_s21  ;;  %790 = vrot.lane.b32.xlu0 %v8753_v9, %s12295_s21 }
  0xd8   : > { %796 = vrot.lane.b32.xlu1 %v8761_v10, %s12295_s21  ;;  %794 = vrot.lane.b32.xlu0 %v8775_v13, %s12295_s21  ;;  %s12331_s21 = smov 52  }
  0xdc   : > { %815 = vrot.lane.b32.xlu1 %v8783_v14, %s12286_s15  ;;  %813 = vrot.lane.b32.xlu0 %v8721_v1, %s12286_s15 }
  0xde   : > { %v491_v18 = vpop.permute.xlu1 %490  ;;  %v487_v19 = vpop.permute.xlu0 %486 }
  0xe0   : > { %819 = vrot.lane.b32.xlu1 %v8791_v15, %s12286_s15  ;;  %817 = vrot.lane.b32.xlu0 %v8718_v0, %s12286_s15 }
  0xe2   : > { %v511_v20 = vpop.permute.xlu1 %510  ;;  %v485_v21 = vpop.permute.xlu0 %484 }
  0xe3   : > { %v493_v22 = vsel %vm12366_vm0, %v485_v21, %v487_v19 }
  0xe4   : > { %499 = vst [vmem:[#allocation4 + $0x4c8] sm:$0xf0] %v493_v22  ;;  %839 = vrot.lane.b32.xlu1 %v8799_v16, %s12286_s15  ;;  %837 = vrot.lane.b32.xlu0 %v8735_v4, %s12286_s15 }
  0xe6   : > { %v489_v23 = vpop.permute.xlu1 %488  ;;  %v509_v24 = vpop.permute.xlu0 %508 }
  0xe7   : > { %v494_v25 = vsel %vm12366_vm0, %v487_v19, %v489_v23  ;;  %v495_v26 = vsel %vm12366_vm0, %v489_v23, %v491_v18  ;;  %v516_v27 = vsel %vm12366_vm0, %v509_v24, %v511_v20 }
  0xe8   : > { %500 = vst [vmem:[#allocation4 + $0x808] sm:$0xf0] %v494_v25  ;;  %501 = vst [vmem:[#allocation4 + $0x7f8] sm:$0xf0] %v495_v26  ;;  %843 = vrot.lane.b32.xlu1 %v8807_v17, %s12286_s15  ;;  %841 = vrot.lane.b32.xlu0 %v8761_v10, %s12286_s15  ;;  %s12290_s15 = smov 56  }
  0xe9   : > { %522 = vst [vmem:[#allocation4 + $0x758] sm:$0xf0] %v516_v27 }
  0xea   : > { %v515_v28 = vpop.permute.xlu1 %514  ;;  %v513_v29 = vpop.permute.xlu0 %512 }
  0xeb   : > { %v517_v30 = vsel %vm12366_vm0, %v511_v20, %v513_v29  ;;  %v518_v31 = vsel %vm12366_vm0, %v513_v29, %v515_v28  ;;  %vm2895_vm0 = vcmask 1043456  }
  0xec   : > { %523 = vst [vmem:[#allocation4 + $0x320] sm:$0xf0] %v517_v30  ;;  %524 = vst [vmem:[#allocation4 + $0x438] sm:$0xf0] %v518_v31  ;;  %862 = vrot.lane.b32.xlu1 %v8721_v1, %s12284_s25  ;;  %860 = vrot.lane.b32.xlu0 %v8729_v2, %s12284_s25 }
  0xee   : > { %v534_v32 = vpop.permute.xlu1 %533  ;;  %v532_v33 = vpop.permute.xlu0 %531 }
  0xef   : > { %v540_v34 = vsel %vm12365_vm1, %v532_v33, %v534_v32 }
  0xf0   : > { %546 = vst [vmem:[#allocation4 + $0x8f8] sm:$0xf] %v540_v34  ;;  %866 = vrot.lane.b32.xlu1 %v8718_v0, %s12284_s25  ;;  %864 = vrot.lane.b32.xlu0 %v8749_v8, %s12284_s25 }
  0xf2   : > { %v538_v35 = vpop.permute.xlu1 %537  ;;  %v536_v36 = vpop.permute.xlu0 %535 }
  0xf3   : > { %v541_v37 = vsel %vm12365_vm1, %v534_v32, %v536_v36  ;;  %v542_v38 = vsel %vm12365_vm1, %v536_v36, %v538_v35 }
  0xf4   : > { %547 = vst [vmem:[#allocation4 + $0x4d0] sm:$0xf] %v541_v37  ;;  %548 = vst [vmem:[#allocation4 + $0x6e8] sm:$0xf] %v542_v38  ;;  %886 = vrot.lane.b32.xlu1 %v8735_v4, %s12284_s25  ;;  %884 = vrot.lane.b32.xlu0 %v8753_v9, %s12284_s25 }
  0xf6   : > { %v558_v39 = vpop.permute.xlu1 %557  ;;  %v556_v40 = vpop.permute.xlu0 %555 }
  0xf7   : > { %v563_v41 = vsel %vm12365_vm1, %v556_v40, %v558_v39 }
  0xf8   : > { %569 = vst [vmem:[#allocation4 + $0x6a8] sm:$0xf] %v563_v41  ;;  %890 = vrot.lane.b32.xlu1 %v8761_v10, %s12284_s25  ;;  %888 = vrot.lane.b32.xlu0 %v8775_v13, %s12284_s25  ;;  %s12288_s25 = smov 74  }
  0xfa   : > { %v562_v42 = vpop.permute.xlu1 %561  ;;  %v560_v43 = vpop.permute.xlu0 %559 }
  0xfb   : > { %v564_v44 = vsel %vm12365_vm1, %v558_v39, %v560_v43  ;;  %v565_v45 = vsel %vm12365_vm1, %v560_v43, %v562_v42  ;;  %vm2654_vm1 = vcmask 875520  }
  0xfc   : > { %570 = vst [vmem:[#allocation4 + $0x750] sm:$0xf] %v564_v44  ;;  %571 = vst [vmem:[#allocation4 + $0x300] sm:$0xf] %v565_v45  ;;  %909 = vrot.lane.b32.xlu1 %v8783_v14, %s12282_s20  ;;  %907 = vrot.lane.b32.xlu0 %v8721_v1, %s12282_s20 }
  0xfe   : > { %v581_v46 = vpop.permute.xlu1 %580  ;;  %v579_v47 = vpop.permute.xlu0 %578 }
  0xff   : > { %v587_v48 = vsel %vm12364_vm2, %v579_v47, %v581_v46 }
 0x100   : > { %593 = vst [vmem:[#allocation4 + $0x8f8] sm:$0xf0] %v587_v48  ;;  %913 = vrot.lane.b32.xlu1 %v8791_v15, %s12282_s20  ;;  %911 = vrot.lane.b32.xlu0 %v8718_v0, %s12282_s20 }
 0x102   : > { %v585_v49 = vpop.permute.xlu1 %584  ;;  %v583_v50 = vpop.permute.xlu0 %582 }
 0x103   : > { %v588_v51 = vsel %vm12364_vm2, %v581_v46, %v583_v50  ;;  %v589_v52 = vsel %vm12364_vm2, %v583_v50, %v585_v49 }
 0x104   : > { %594 = vst [vmem:[#allocation4 + $0x4d0] sm:$0xf0] %v588_v51  ;;  %595 = vst [vmem:[#allocation4 + $0x6e8] sm:$0xf0] %v589_v52  ;;  %933 = vrot.lane.b32.xlu1 %v8799_v16, %s12282_s20  ;;  %931 = vrot.lane.b32.xlu0 %v8735_v4, %s12282_s20 }
 0x106   : > { %v605_v53 = vpop.permute.xlu1 %604  ;;  %v603_v54 = vpop.permute.xlu0 %602 }
 0x107   : > { %v610_v55 = vsel %vm12364_vm2, %v603_v54, %v605_v53 }
 0x108   : > { %616 = vst [vmem:[#allocation4 + $0x6a8] sm:$0xf0] %v610_v55  ;;  %937 = vrot.lane.b32.xlu1 %v8807_v17, %s12282_s20  ;;  %935 = vrot.lane.b32.xlu0 %v8761_v10, %s12282_s20  ;;  %s12345_s20 = smov 75  }
 0x10a   : > { %v609_v56 = vpop.permute.xlu1 %608  ;;  %v607_v57 = vpop.permute.xlu0 %606 }
 0x10b   : > { %v611_v58 = vsel %vm12364_vm2, %v605_v53, %v607_v57  ;;  %v612_v59 = vsel %vm12364_vm2, %v607_v57, %v609_v56  ;;  %vm2607_vm2 = vcmask 883712  }
 0x10c   : > { %617 = vst [vmem:[#allocation4 + $0x750] sm:$0xf0] %v611_v58  ;;  %618 = vst [vmem:[#allocation4 + $0x300] sm:$0xf0] %v612_v59  ;;  %956 = vrot.lane.b32.xlu1 %v8721_v1, %s12272_s24  ;;  %954 = vrot.lane.b32.xlu0 %v8729_v2, %s12272_s24 }
 0x10e   : > { %v628_v60 = vpop.permute.xlu1 %627  ;;  %v626_v61 = vpop.permute.xlu0 %625 }
 0x10f   : > { %v634_v62 = vsel %vm12363_vm3, %v626_v61, %v628_v60 }
 0x110   : > { %640 = vst [vmem:[#allocation4 + $0x708] sm:$0xf] %v634_v62  ;;  %960 = vrot.lane.b32.xlu1 %v8718_v0, %s12272_s24  ;;  %958 = vrot.lane.b32.xlu0 %v8749_v8, %s12272_s24 }
 0x112   : > { %v632_v63 = vpop.permute.xlu1 %631  ;;  %v630_v7 = vpop.permute.xlu0 %629 }
 0x113   : > { %v635_v12 = vsel %vm12363_vm3, %v628_v60, %v630_v7  ;;  %v636_v18 = vsel %vm12363_vm3, %v630_v7, %v632_v63 }
 0x114   : > { %641 = vst [vmem:[#allocation4 + $0x7f0] sm:$0xf] %v635_v12  ;;  %642 = vst [vmem:[#allocation4 + $0x570] sm:$0xf] %v636_v18  ;;  %980 = vrot.lane.b32.xlu1 %v8735_v4, %s12272_s24  ;;  %978 = vrot.lane.b32.xlu0 %v8753_v9, %s12272_s24 }
 0x116   : > { %v652_v19 = vpop.permute.xlu1 %651  ;;  %v650_v20 = vpop.permute.xlu0 %649 }
 0x117   : > { %v657_v21 = vsel %vm12363_vm3, %v650_v20, %v652_v19 }
 0x118   : > { %663 = vst [vmem:[#allocation4 + $0x580] sm:$0xf] %v657_v21  ;;  %984 = vrot.lane.b32.xlu1 %v8761_v10, %s12272_s24  ;;  %982 = vrot.lane.b32.xlu0 %v8775_v13, %s12272_s24  ;;  %s12278_s24 = smov 80  }
 0x11a   : > { %v656_v22 = vpop.permute.xlu1 %655  ;;  %v654_v23 = vpop.permute.xlu0 %653 }
 0x11b   : > { %v658_v24 = vsel %vm12363_vm3, %v652_v19, %v654_v23  ;;  %v659_v25 = vsel %vm12363_vm3, %v654_v23, %v656_v22  ;;  %vm12406_vm3 = vcmask 867328  }
 0x11c   : > { %664 = vst [vmem:[#allocation4 + $0x3a8] sm:$0xf] %v658_v24  ;;  %665 = vst [vmem:[#allocation4 + $0x8e0] sm:$0xf] %v659_v25  ;;  %1003 = vrot.lane.b32.xlu1 %v8783_v14, %s12274_s10  ;;  %1001 = vrot.lane.b32.xlu0 %v8721_v1, %s12274_s10 }
 0x11e   : > { %v675_v26 = vpop.permute.xlu1 %674  ;;  %v673_v27 = vpop.permute.xlu0 %672 }
 0x11f   : > { %v681_v28 = vsel %vm12362_vm4, %v673_v27, %v675_v26 }
 0x120   : > { %687 = vst [vmem:[#allocation4 + $0x708] sm:$0xf0] %v681_v28  ;;  %1007 = vrot.lane.b32.xlu1 %v8791_v15, %s12274_s10  ;;  %1005 = vrot.lane.b32.xlu0 %v8718_v0, %s12274_s10 }
 0x122   : > { %v679_v29 = vpop.permute.xlu1 %678  ;;  %v677_v30 = vpop.permute.xlu0 %676 }
 0x123   : > { %v682_v31 = vsel %vm12362_vm4, %v675_v26, %v677_v30  ;;  %v683_v32 = vsel %vm12362_vm4, %v677_v30, %v679_v29 }
 0x124   : > { %688 = vst [vmem:[#allocation4 + $0x7f0] sm:$0xf0] %v682_v31  ;;  %689 = vst [vmem:[#allocation4 + $0x570] sm:$0xf0] %v683_v32  ;;  %1027 = vrot.lane.b32.xlu1 %v8799_v16, %s12274_s10  ;;  %1025 = vrot.lane.b32.xlu0 %v8735_v4, %s12274_s10 }
 0x126   : > { %v699_v33 = vpop.permute.xlu1 %698  ;;  %v697_v34 = vpop.permute.xlu0 %696 }
 0x127   : > { %v704_v35 = vsel %vm12362_vm4, %v697_v34, %v699_v33 }
 0x128   : > { %710 = vst [vmem:[#allocation4 + $0x580] sm:$0xf0] %v704_v35  ;;  %1031 = vrot.lane.b32.xlu1 %v8807_v17, %s12274_s10  ;;  %1029 = vrot.lane.b32.xlu0 %v8761_v10, %s12274_s10  ;;  %s12280_s10 = smov 79  }
 0x12a   : > { %v703_v36 = vpop.permute.xlu1 %702  ;;  %v701_v37 = vpop.permute.xlu0 %700 }
 0x12b   : > { %v705_v38 = vsel %vm12362_vm4, %v699_v33, %v701_v37  ;;  %v706_v39 = vsel %vm12362_vm4, %v701_v37, %v703_v36  ;;  %vm12385_vm4 = vcmask 228352  }
 0x12c   : > { %711 = vst [vmem:[#allocation4 + $0x3a8] sm:$0xf0] %v705_v38  ;;  %712 = vst [vmem:[#allocation4 + $0x8e0] sm:$0xf0] %v706_v39  ;;  %1050 = vrot.lane.b32.xlu1 %v8721_v1, %s12276_s12  ;;  %1048 = vrot.lane.b32.xlu0 %v8729_v2, %s12276_s12 }
 0x12e   : > { %v722_v40 = vpop.permute.xlu1 %721  ;;  %v720_v41 = vpop.permute.xlu0 %719 }
 0x12f   : > { %v728_v42 = vsel %vm12361_vm5, %v720_v41, %v722_v40 }
 0x130   : > { %734 = vst [vmem:[#allocation4 + $0x890] sm:$0xf] %v728_v42  ;;  %1054 = vrot.lane.b32.xlu1 %v8718_v0, %s12276_s12  ;;  %1052 = vrot.lane.b32.xlu0 %v8749_v8, %s12276_s12 }
 0x132   : > { %v726_v43 = vpop.permute.xlu1 %725  ;;  %v724_v44 = vpop.permute.xlu0 %723 }
 0x133   : > { %v729_v45 = vsel %vm12361_vm5, %v722_v40, %v724_v44  ;;  %v730_v46 = vsel %vm12361_vm5, %v724_v44, %v726_v43 }
 0x134   : > { %735 = vst [vmem:[#allocation4 + $0x7d0] sm:$0xf] %v729_v45  ;;  %736 = vst [vmem:[#allocation4 + $0x770] sm:$0xf] %v730_v46  ;;  %1074 = vrot.lane.b32.xlu1 %v8735_v4, %s12276_s12  ;;  %1072 = vrot.lane.b32.xlu0 %v8753_v9, %s12276_s12 }
 0x136   : > { %v746_v47 = vpop.permute.xlu1 %745  ;;  %v744_v48 = vpop.permute.xlu0 %743 }
 0x137   : > { %v751_v49 = vsel %vm12361_vm5, %v744_v48, %v746_v47 }
 0x138   : > { %757 = vst [vmem:[#allocation4 + $0x480] sm:$0xf] %v751_v49  ;;  %1078 = vrot.lane.b32.xlu1 %v8761_v10, %s12276_s12  ;;  %1076 = vrot.lane.b32.xlu0 %v8775_v13, %s12276_s12  ;;  %s12342_s12 = smov 78  }
 0x13a   : > { %v750_v50 = vpop.permute.xlu1 %749  ;;  %v748_v51 = vpop.permute.xlu0 %747 }
 0x13b   : > { %v752_v52 = vsel %vm12361_vm5, %v746_v47, %v748_v51  ;;  %v753_v53 = vsel %vm12361_vm5, %v748_v51, %v750_v50  ;;  %vm12405_vm5 = vcmask 556032  }
 0x13c   : > { %758 = vst [vmem:[#allocation4 + $0x370] sm:$0xf] %v752_v52  ;;  %759 = vst [vmem:[#allocation4 + $0x90] sm:$0xf] %v753_v53  ;;  %1097 = vrot.lane.b32.xlu1 %v8783_v14, %s12278_s24  ;;  %1095 = vrot.lane.b32.xlu0 %v8721_v1, %s12278_s24 }
 0x13e   : > { %v769_v54 = vpop.permute.xlu1 %768  ;;  %v767_v55 = vpop.permute.xlu0 %766 }
 0x13f   : > { %v775_v56 = vsel %vm12330_vm6, %v767_v55, %v769_v54 }
 0x140   : > { %781 = vst [vmem:[#allocation4 + $0x890] sm:$0xf0] %v775_v56  ;;  %1101 = vrot.lane.b32.xlu1 %v8791_v15, %s12278_s24  ;;  %1099 = vrot.lane.b32.xlu0 %v8718_v0, %s12278_s24 }
 0x142   : > { %v773_v57 = vpop.permute.xlu1 %772  ;;  %v771_v58 = vpop.permute.xlu0 %770 }
 0x143   : > { %v776_v59 = vsel %vm12330_vm6, %v769_v54, %v771_v58  ;;  %v777_v60 = vsel %vm12330_vm6, %v771_v58, %v773_v57 }
 0x144   : > { %782 = vst [vmem:[#allocation4 + $0x7d0] sm:$0xf0] %v776_v59  ;;  %783 = vst [vmem:[#allocation4 + $0x770] sm:$0xf0] %v777_v60  ;;  %1121 = vrot.lane.b32.xlu1 %v8799_v16, %s12278_s24  ;;  %1119 = vrot.lane.b32.xlu0 %v8735_v4, %s12278_s24  ;;  %v9123_v59 = vld [vmem:[%s8707_s13 + $0x1c] sm:$0xff] }
 0x146   : > { %v793_v61 = vpop.permute.xlu1 %792  ;;  %v791_v62 = vpop.permute.xlu0 %790 }
 0x147   : > { %v798_v63 = vsel %vm12330_vm6, %v791_v62, %v793_v61 }
 0x148   : > { %804 = vst [vmem:[#allocation4 + $0x480] sm:$0xf0] %v798_v63  ;;  %1125 = vrot.lane.b32.xlu1 %v8807_v17, %s12278_s24  ;;  %1123 = vrot.lane.b32.xlu0 %v8761_v10, %s12278_s24  ;;  %s12340_s24 = smov 77  }
 0x14a   : > { %v797_v7 = vpop.permute.xlu1 %796  ;;  %v795_v12 = vpop.permute.xlu0 %794 }
 0x14b   : > { %v799_v18 = vsel %vm12330_vm6, %v793_v61, %v795_v12  ;;  %v800_v19 = vsel %vm12330_vm6, %v795_v12, %v797_v7  ;;  %vm12344_vm6 = vcmask 408576  }
 0x14c   : > { %805 = vst [vmem:[#allocation4 + $0x370] sm:$0xf0] %v799_v18  ;;  %806 = vst [vmem:[#allocation4 + $0x90] sm:$0xf0] %v800_v19  ;;  %1144 = vrot.lane.b32.xlu1 %v8721_v1, %s12280_s10  ;;  %1142 = vrot.lane.b32.xlu0 %v8729_v2, %s12280_s10 }
 0x14e   : > { %v816_v20 = vpop.permute.xlu1 %815  ;;  %v814_v21 = vpop.permute.xlu0 %813 }
 0x14f   : > { %v822_v22 = vsel %vm12325_vm7, %v814_v21, %v816_v20 }
 0x150   : > { %828 = vst [vmem:[#allocation4 + $0x368] sm:$0xf] %v822_v22  ;;  %1148 = vrot.lane.b32.xlu1 %v8718_v0, %s12280_s10  ;;  %1146 = vrot.lane.b32.xlu0 %v8749_v8, %s12280_s10  ;;  %v9161_v22 = vld [vmem:[%s8707_s13 + $0x14] sm:$0xff] }
 0x152   : > { %v820_v23 = vpop.permute.xlu1 %819  ;;  %v818_v24 = vpop.permute.xlu0 %817 }
 0x153   : > { %v823_v25 = vsel %vm12325_vm7, %v816_v20, %v818_v24  ;;  %v824_v26 = vsel %vm12325_vm7, %v818_v24, %v820_v23 }
 0x154   : > { %829 = vst [vmem:[#allocation4 + $0x830] sm:$0xf] %v823_v25  ;;  %830 = vst [vmem:[#allocation4 + $0x10] sm:$0xf] %v824_v26  ;;  %1168 = vrot.lane.b32.xlu1 %v8735_v4, %s12280_s10  ;;  %1166 = vrot.lane.b32.xlu0 %v8753_v9, %s12280_s10  ;;  %v9170_v26 = vcombine.low %v9161_v22, %v9161_v22 }
 0x156   : > { %v840_v27 = vpop.permute.xlu1 %839  ;;  %v838_v28 = vpop.permute.xlu0 %837 }
 0x157   : > { %v845_v29 = vsel %vm12325_vm7, %v838_v28, %v840_v27 }
 0x158   : > { %851 = vst [vmem:[#allocation4 + $0x268] sm:$0xf] %v845_v29  ;;  %1172 = vrot.lane.b32.xlu1 %v8761_v10, %s12280_s10  ;;  %1170 = vrot.lane.b32.xlu0 %v8775_v13, %s12280_s10  ;;  %s12338_s10 = smov 76  }
 0x15a   : > { %v844_v30 = vpop.permute.xlu1 %843  ;;  %v842_v31 = vpop.permute.xlu0 %841 }
 0x15b   : > { %v846_v32 = vsel %vm12325_vm7, %v840_v27, %v842_v31  ;;  %v847_v33 = vsel %vm12325_vm7, %v842_v31, %v844_v30  ;;  %v9180_v31 = vcombine.low %v9123_v59, %v9123_v59  ;;  %vm12337_vm7 = vcmask 416768  }
 0x15c   : > { %852 = vst [vmem:[#allocation4 + $0x648] sm:$0xf] %v846_v32  ;;  %853 = vst [vmem:[#allocation4 + $0x540] sm:$0xf] %v847_v33  ;;  %1191 = vrot.lane.b32.xlu1 %v8783_v14, %s12342_s12  ;;  %1189 = vrot.lane.b32.xlu0 %v8721_v1, %s12342_s12 }
 0x15e   : > { %v863_v34 = vpop.permute.xlu1 %862  ;;  %v861_v35 = vpop.permute.xlu0 %860 }
 0x15f   : > { %v869_v36 = vsel %vm12318_vm8, %v861_v35, %v863_v34 }
 0x160   : > { %875 = vst [vmem:[#allocation4 + $0x368] sm:$0xf0] %v869_v36  ;;  %1195 = vrot.lane.b32.xlu1 %v8791_v15, %s12342_s12  ;;  %1193 = vrot.lane.b32.xlu0 %v8718_v0, %s12342_s12 }
 0x162   : > { %v867_v37 = vpop.permute.xlu1 %866  ;;  %v865_v38 = vpop.permute.xlu0 %864 }
 0x163   : > { %v870_v39 = vsel %vm12318_vm8, %v863_v34, %v865_v38  ;;  %v871_v40 = vsel %vm12318_vm8, %v865_v38, %v867_v37 }
 0x164   : > { %876 = vst [vmem:[#allocation4 + $0x830] sm:$0xf0] %v870_v39  ;;  %877 = vst [vmem:[#allocation4 + $0x10] sm:$0xf0] %v871_v40  ;;  %1215 = vrot.lane.b32.xlu1 %v8799_v16, %s12342_s12  ;;  %1213 = vrot.lane.b32.xlu0 %v8735_v4, %s12342_s12 }
 0x166   : > { %v887_v41 = vpop.permute.xlu1 %886  ;;  %v885_v42 = vpop.permute.xlu0 %884 }
 0x167   : > { %v892_v43 = vsel %vm12318_vm8, %v885_v42, %v887_v41 }
 0x168   : > { %898 = vst [vmem:[#allocation4 + $0x268] sm:$0xf0] %v892_v43  ;;  %1219 = vrot.lane.b32.xlu1 %v8807_v17, %s12342_s12  ;;  %1217 = vrot.lane.b32.xlu0 %v8761_v10, %s12342_s12  ;;  %s12350_s12 = smov 4  }
 0x16a   : > { %v891_v44 = vpop.permute.xlu1 %890  ;;  %v889_v45 = vpop.permute.xlu0 %888 }
 0x16b   : > { %v893_v46 = vsel %vm12318_vm8, %v887_v41, %v889_v45  ;;  %v894_v47 = vsel %vm12318_vm8, %v889_v45, %v891_v44  ;;  %v9208_v44 = vcombine.high %v9161_v22, %v9161_v22  ;;  %vm12372_vm8 = vcmask 424960  }
 0x16c   : > { %899 = vst [vmem:[#allocation4 + $0x648] sm:$0xf0] %v893_v46  ;;  %900 = vst [vmem:[#allocation4 + $0x540] sm:$0xf0] %v894_v47  ;;  %1238 = vrot.lane.b32.xlu1 %v8721_v1, %s12340_s24  ;;  %1236 = vrot.lane.b32.xlu0 %v8729_v2, %s12340_s24 }
 0x16e   : > { %v910_v17 = vpop.permute.xlu1 %909  ;;  %v908_v48 = vpop.permute.xlu0 %907 }
 0x16f   : > { %v916_v49 = vsel %vm12306_vm9, %v908_v48, %v910_v17 }
 0x170   : > { %922 = vst [vmem:[#allocation4 + $0x568] sm:$0xf] %v916_v49  ;;  %1242 = vrot.lane.b32.xlu1 %v8718_v0, %s12340_s24  ;;  %1240 = vrot.lane.b32.xlu0 %v8749_v8, %s12340_s24 }
 0x172   : > { %v914_v50 = vpop.permute.xlu1 %913  ;;  %v912_v51 = vpop.permute.xlu0 %911 }
 0x173   : > { %v917_v52 = vsel %vm12306_vm9, %v910_v17, %v912_v51  ;;  %v918_v53 = vsel %vm12306_vm9, %v912_v51, %v914_v50 }
 0x174   : > { %923 = vst [vmem:[#allocation4 + $0x578] sm:$0xf] %v917_v52  ;;  %924 = vst [vmem:[#allocation4 + $0x6f0] sm:$0xf] %v918_v53  ;;  %1262 = vrot.lane.b32.xlu1 %v8735_v4, %s12340_s24  ;;  %1260 = vrot.lane.b32.xlu0 %v8753_v9, %s12340_s24 }
 0x176   : > { %v934_v2 = vpop.permute.xlu1 %933  ;;  %v932_v54 = vpop.permute.xlu0 %931 }
 0x177   : > { %v939_v55 = vsel %vm12306_vm9, %v932_v54, %v934_v2 }
 0x178   : > { %945 = vst [vmem:[#allocation4 + $0x5b8] sm:$0xf] %v939_v55  ;;  %1266 = vrot.lane.b32.xlu1 %v8761_v10, %s12340_s24  ;;  %1264 = vrot.lane.b32.xlu0 %v8775_v13, %s12340_s24  ;;  %s12374_s24 = smov 5  }
 0x17a   : > { %v938_v8 = vpop.permute.xlu1 %937  ;;  %v936_v56 = vpop.permute.xlu0 %935 }
 0x17b   : > { %v940_v57 = vsel %vm12306_vm9, %v934_v2, %v936_v56  ;;  %v941_v58 = vsel %vm12306_vm9, %v936_v56, %v938_v8  ;;  %vm12312_vm9 = vcmask 457728  }
 0x17c   : > { %946 = vst [vmem:[#allocation4 + $0x800] sm:$0xf] %v940_v57  ;;  %947 = vst [vmem:[#allocation4 + $0x900] sm:$0xf] %v941_v58  ;;  %1285 = vrot.lane.b32.xlu1 %v8783_v14, %s12338_s10  ;;  %1283 = vrot.lane.b32.xlu0 %v8721_v1, %s12338_s10 }
 0x17e   : > { %v957_v9 = vpop.permute.xlu1 %956  ;;  %v955_v10 = vpop.permute.xlu0 %954 }
 0x17f   : > { %v963_v13 = vsel %vm12294_vm10, %v955_v10, %v957_v9 }
 0x180   : > { %969 = vst [vmem:[#allocation4 + $0x568] sm:$0xf0] %v963_v13  ;;  %1289 = vrot.lane.b32.xlu1 %v8791_v15, %s12338_s10  ;;  %1287 = vrot.lane.b32.xlu0 %v8718_v0, %s12338_s10  ;;  %v9133_v0 = vcombine.high %v9123_v59, %v9123_v59  ;;  %v9136_v15 = vld [vmem:[%s8707_s13] sm:$0xff] }
 0x181   : > { %v9189_v35 = vcombine.high %v9136_v15, %v9136_v15 }
 0x182   : > { %v961_v60 = vpop.permute.xlu1 %960  ;;  %v959_v14 = vpop.permute.xlu0 %958 }
 0x183   : > { %v964_v1 = vsel %vm12294_vm10, %v957_v9, %v959_v14  ;;  %v965_v61 = vsel %vm12294_vm10, %v959_v14, %v961_v60 }
 0x184   : > { %970 = vst [vmem:[#allocation4 + $0x578] sm:$0xf0] %v964_v1  ;;  %971 = vst [vmem:[#allocation4 + $0x6f0] sm:$0xf0] %v965_v61  ;;  %1309 = vrot.lane.b32.xlu1 %v8799_v16, %s12338_s10  ;;  %1307 = vrot.lane.b32.xlu0 %v8735_v4, %s12338_s10  ;;  %v9145_v4 = vcombine.low %v9136_v15, %v9136_v15  ;;  %v9148_v16 = vld [vmem:[%s8707_s13 + $0x8] sm:$0xff] }
 0x185   : > { %v9158_v21 = vcombine.low %v9148_v16, %v9148_v16  ;;  %v9199_v40 = vcombine.high %v9148_v16, %v9148_v16 }
 0x186   : > { %v981_v62 = vpop.permute.xlu1 %980  ;;  %v979_v63 = vpop.permute.xlu0 %978 }
 0x187   : > { %v986_v7 = vsel %vm12294_vm10, %v979_v63, %v981_v62 }
 0x188   : > { %992 = vst [vmem:[#allocation4 + $0x5b8] sm:$0xf0] %v986_v7  ;;  %1313 = vrot.lane.b32.xlu1 %v9133_v0, %s12338_s10  ;;  %1311 = vrot.lane.b32.xlu0 %v9123_v59, %s12338_s10  ;;  %s12377_s10 = smov 2  }
 0x18a   : > { %v985_v12 = vpop.permute.xlu1 %984  ;;  %v983_v18 = vpop.permute.xlu0 %982 }
 0x18b   : > { %v987_v19 = vsel %vm12294_vm10, %v981_v62, %v983_v18  ;;  %v988_v20 = vsel %vm12294_vm10, %v983_v18, %v985_v12  ;;  %vm12368_vm10 = vcmask 629760  }
 0x18c   : > { %993 = vst [vmem:[#allocation4 + $0x800] sm:$0xf0] %v987_v19  ;;  %994 = vst [vmem:[#allocation4 + $0x900] sm:$0xf0] %v988_v20  ;;  %1332 = vrot.lane.b32.xlu1 %v9136_v15, %s12345_s20  ;;  %1330 = vrot.lane.b32.xlu0 %v9145_v4, %s12345_s20 }
 0x18e   : > { %v1004_v23 = vpop.permute.xlu1 %1003  ;;  %v1002_v24 = vpop.permute.xlu0 %1001 }
 0x18f   : > { %v1010_v25 = vsel %vm12300_vm11, %v1002_v24, %v1004_v23 }
 0x190   : > { %1016 = vst [vmem:[#allocation4 + $0x728] sm:$0xf] %v1010_v25  ;;  %1336 = vrot.lane.b32.xlu1 %v9148_v16, %s12345_s20  ;;  %1334 = vrot.lane.b32.xlu0 %v9158_v21, %s12345_s20 }
 0x192   : > { %v1008_v27 = vpop.permute.xlu1 %1007  ;;  %v1006_v28 = vpop.permute.xlu0 %1005 }
 0x193   : > { %v1011_v29 = vsel %vm12300_vm11, %v1004_v23, %v1006_v28  ;;  %v1012_v30 = vsel %vm12300_vm11, %v1006_v28, %v1008_v27 }
 0x194   : > { %1017 = vst [vmem:[#allocation4 + $0x610] sm:$0xf] %v1011_v29  ;;  %1018 = vst [vmem:[#allocation4 + $0x308] sm:$0xf] %v1012_v30  ;;  %1356 = vrot.lane.b32.xlu1 %v9161_v22, %s12345_s20  ;;  %1354 = vrot.lane.b32.xlu0 %v9170_v26, %s12345_s20 }
 0x196   : > { %v1028_v32 = vpop.permute.xlu1 %1027  ;;  %v1026_v33 = vpop.permute.xlu0 %1025 }
 0x197   : > { %v1033_v34 = vsel %vm12300_vm11, %v1026_v33, %v1028_v32 }
 0x198   : > { %1039 = vst [vmem:[#allocation4 + $0x450] sm:$0xf] %v1033_v34  ;;  %1360 = vrot.lane.b32.xlu1 %v9123_v59, %s12345_s20  ;;  %1358 = vrot.lane.b32.xlu0 %v9180_v31, %s12345_s20  ;;  %s12352_s20 = smov 7  }
 0x19a   : > { %v1032_v36 = vpop.permute.xlu1 %1031  ;;  %v1030_v37 = vpop.permute.xlu0 %1029 }
 0x19b   : > { %v1034_v38 = vsel %vm12300_vm11, %v1028_v32, %v1030_v37  ;;  %v1035_v39 = vsel %vm12300_vm11, %v1030_v37, %v1032_v36  ;;  %vm12382_vm11 = vcmask 613376  }
 0x19c   : > { %1040 = vst [vmem:[#allocation4 + $0x7c8] sm:$0xf] %v1034_v38  ;;  %1041 = vst [vmem:[#allocation4 + $0x280] sm:$0xf] %v1035_v39  ;;  %1379 = vrot.lane.b32.xlu1 %v9189_v35, %s12288_s25  ;;  %1377 = vrot.lane.b32.xlu0 %v9136_v15, %s12288_s25 }
 0x19e   : > { %v1051_v41 = vpop.permute.xlu1 %1050  ;;  %v1049_v42 = vpop.permute.xlu0 %1048 }
 0x19f   : > { %v1057_v43 = vsel %vm12297_vm12, %v1049_v42, %v1051_v41 }
 0x1a0   : > { %1063 = vst [vmem:[#allocation4 + $0x728] sm:$0xf0] %v1057_v43  ;;  %1383 = vrot.lane.b32.xlu1 %v9199_v40, %s12288_s25  ;;  %1381 = vrot.lane.b32.xlu0 %v9148_v16, %s12288_s25 }
 0x1a2   : > { %v1055_v45 = vpop.permute.xlu1 %1054  ;;  %v1053_v46 = vpop.permute.xlu0 %1052 }
 0x1a3   : > { %v1058_v47 = vsel %vm12297_vm12, %v1051_v41, %v1053_v46  ;;  %v1059_v17 = vsel %vm12297_vm12, %v1053_v46, %v1055_v45 }
 0x1a4   : > { %1064 = vst [vmem:[#allocation4 + $0x610] sm:$0xf0] %v1058_v47  ;;  %1065 = vst [vmem:[#allocation4 + $0x308] sm:$0xf0] %v1059_v17  ;;  %1403 = vrot.lane.b32.xlu1 %v9208_v44, %s12288_s25  ;;  %1401 = vrot.lane.b32.xlu0 %v9161_v22, %s12288_s25 }
 0x1a6   : > { %v1075_v48 = vpop.permute.xlu1 %1074  ;;  %v1073_v49 = vpop.permute.xlu0 %1072 }
 0x1a7   : > { %v1080_v50 = vsel %vm12297_vm12, %v1073_v49, %v1075_v48 }
 0x1a8   : > { %1086 = vst [vmem:[#allocation4 + $0x450] sm:$0xf0] %v1080_v50  ;;  %1407 = vrot.lane.b32.xlu1 %v9133_v0, %s12288_s25  ;;  %1405 = vrot.lane.b32.xlu0 %v9123_v59, %s12288_s25  ;;  %s12292_s25 = smov 55  }
 0x1aa   : > { %v1079_v51 = vpop.permute.xlu1 %1078  ;;  %v1077_v52 = vpop.permute.xlu0 %1076 }
 0x1ab   : > { %v1081_v53 = vsel %vm12297_vm12, %v1075_v48, %v1077_v52  ;;  %v1082_v2 = vsel %vm12297_vm12, %v1077_v52, %v1079_v51  ;;  %vm12369_vm12 = vcmask 621568  }
 0x1ac   : > { %1087 = vst [vmem:[#allocation4 + $0x7c8] sm:$0xf0] %v1081_v53  ;;  %1088 = vst [vmem:[#allocation4 + $0x280] sm:$0xf0] %v1082_v2  ;;  %1426 = vrot.lane.b32.xlu1 %v9136_v15, %s12290_s15  ;;  %1424 = vrot.lane.b32.xlu0 %v9145_v4, %s12290_s15 }
 0x1ae   : > { %v1098_v54 = vpop.permute.xlu1 %1097  ;;  %v1096_v55 = vpop.permute.xlu0 %1095 }
 0x1af   : > { %v1104_v8 = vsel %vm12379_vm13, %v1096_v55, %v1098_v54 }
 0x1b0   : > { %1110 = vst [vmem:[#allocation4 + $0x3b8] sm:$0xf] %v1104_v8  ;;  %1430 = vrot.lane.b32.xlu1 %v9148_v16, %s12290_s15  ;;  %1428 = vrot.lane.b32.xlu0 %v9158_v21, %s12290_s15 }
 0x1b2   : > { %v1102_v56 = vpop.permute.xlu1 %1101  ;;  %v1100_v57 = vpop.permute.xlu0 %1099 }
 0x1b3   : > { %v1105_v58 = vsel %vm12379_vm13, %v1098_v54, %v1100_v57  ;;  %v1106_v9 = vsel %vm12379_vm13, %v1100_v57, %v1102_v56 }
 0x1b4   : > { %1111 = vst [vmem:[#allocation4 + $0x3b0] sm:$0xf] %v1105_v58  ;;  %1112 = vst [vmem:[#allocation4 + $0x488] sm:$0xf] %v1106_v9  ;;  %1450 = vrot.lane.b32.xlu1 %v9161_v22, %s12290_s15  ;;  %1448 = vrot.lane.b32.xlu0 %v9170_v26, %s12290_s15 }
 0x1b6   : > { %v1122_v10 = vpop.permute.xlu1 %1121  ;;  %v1120_v13 = vpop.permute.xlu0 %1119 }
 0x1b7   : > { %v1127_v60 = vsel %vm12379_vm13, %v1120_v13, %v1122_v10 }
 0x1b8   : > { %1133 = vst [vmem:[#allocation4 + $0x58] sm:$0xf] %v1127_v60  ;;  %1454 = vrot.lane.b32.xlu1 %v9123_v59, %s12290_s15  ;;  %1452 = vrot.lane.b32.xlu0 %v9180_v31, %s12290_s15  ;;  %s12335_s15 = smov 54  }
 0x1ba   : > { %v1126_v14 = vpop.permute.xlu1 %1125  ;;  %v1124_v1 = vpop.permute.xlu0 %1123 }
 0x1bb   : > { %v1128_v61 = vsel %vm12379_vm13, %v1122_v10, %v1124_v1  ;;  %v1129_v62 = vsel %vm12379_vm13, %v1124_v1, %v1126_v14  ;;  %vm12387_vm13 = vcmask 56320  }
 0x1bc   : > { %1134 = vst [vmem:[#allocation4 + $0x4a8] sm:$0xf] %v1128_v61  ;;  %1135 = vst [vmem:[#allocation4 + $0x618] sm:$0xf] %v1129_v62  ;;  %1473 = vrot.lane.b32.xlu1 %v9189_v35, %s12292_s25  ;;  %1471 = vrot.lane.b32.xlu0 %v9136_v15, %s12292_s25 }
 0x1be   : > { %v1145_v63 = vpop.permute.xlu1 %1144  ;;  %v1143_v7 = vpop.permute.xlu0 %1142 }
 0x1bf   : > { %v1151_v12 = vsel %vm12303_vm14, %v1143_v7, %v1145_v63 }
 0x1c0   : > { %1157 = vst [vmem:[#allocation4 + $0x3b8] sm:$0xf0] %v1151_v12  ;;  %1477 = vrot.lane.b32.xlu1 %v9199_v40, %s12292_s25  ;;  %1475 = vrot.lane.b32.xlu0 %v9148_v16, %s12292_s25 }
 0x1c2   : > { %v1149_v18 = vpop.permute.xlu1 %1148  ;;  %v1147_v19 = vpop.permute.xlu0 %1146 }
 0x1c3   : > { %v1152_v20 = vsel %vm12303_vm14, %v1145_v63, %v1147_v19  ;;  %v1153_v23 = vsel %vm12303_vm14, %v1147_v19, %v1149_v18 }
 0x1c4   : > { %1158 = vst [vmem:[#allocation4 + $0x3b0] sm:$0xf0] %v1152_v20  ;;  %1159 = vst [vmem:[#allocation4 + $0x488] sm:$0xf0] %v1153_v23  ;;  %1497 = vrot.lane.b32.xlu1 %v9208_v44, %s12292_s25  ;;  %1495 = vrot.lane.b32.xlu0 %v9161_v22, %s12292_s25 }
 0x1c6   : > { %v1169_v24 = vpop.permute.xlu1 %1168  ;;  %v1167_v25 = vpop.permute.xlu0 %1166 }
 0x1c7   : > { %v1174_v27 = vsel %vm12303_vm14, %v1167_v25, %v1169_v24 }
 0x1c8   : > { %1180 = vst [vmem:[#allocation4 + $0x58] sm:$0xf0] %v1174_v27  ;;  %1501 = vrot.lane.b32.xlu1 %v9133_v0, %s12292_s25  ;;  %1499 = vrot.lane.b32.xlu0 %v9123_v59, %s12292_s25  ;;  %s12333_s25 = smov 53  }
 0x1ca   : > { %v1173_v28 = vpop.permute.xlu1 %1172  ;;  %v1171_v29 = vpop.permute.xlu0 %1170 }
 0x1cb   : > { %v1175_v30 = vsel %vm12303_vm14, %v1169_v24, %v1171_v29  ;;  %v1176_v32 = vsel %vm12303_vm14, %v1171_v29, %v1173_v28  ;;  %vm12309_vm14 = vcmask 605184  }
 0x1cc   : > { %1181 = vst [vmem:[#allocation4 + $0x4a8] sm:$0xf0] %v1175_v30  ;;  %1182 = vst [vmem:[#allocation4 + $0x618] sm:$0xf0] %v1176_v32  ;;  %1520 = vrot.lane.b32.xlu1 %v9136_v15, %s12335_s15  ;;  %1518 = vrot.lane.b32.xlu0 %v9145_v4, %s12335_s15 }
 0x1ce   : > { %v1192_v33 = vpop.permute.xlu1 %1191  ;;  %v1190_v34 = vpop.permute.xlu0 %1189 }
 0x1cf   : > { %v1198_v36 = vsel %vm12367_vm15, %v1190_v34, %v1192_v33 }
 0x1d0   : > { %1204 = vst [vmem:[#allocation4 + $0x700] sm:$0xf] %v1198_v36  ;;  %1524 = vrot.lane.b32.xlu1 %v9148_v16, %s12335_s15  ;;  %1522 = vrot.lane.b32.xlu0 %v9158_v21, %s12335_s15 }
 0x1d2   : > { %v1196_v37 = vpop.permute.xlu1 %1195  ;;  %v1194_v38 = vpop.permute.xlu0 %1193 }
 0x1d3   : > { %v1199_v39 = vsel %vm12367_vm15, %v1192_v33, %v1194_v38  ;;  %v1200_v41 = vsel %vm12367_vm15, %v1194_v38, %v1196_v37 }
 0x1d4   : > { %1205 = vst [vmem:[#allocation4 + $0x5f0] sm:$0xf] %v1199_v39  ;;  %1206 = vst [vmem:[#allocation4 + $0x4d8] sm:$0xf] %v1200_v41  ;;  %1544 = vrot.lane.b32.xlu1 %v9161_v22, %s12335_s15  ;;  %1542 = vrot.lane.b32.xlu0 %v9170_v26, %s12335_s15 }
 0x1d6   : > { %v1216_v42 = vpop.permute.xlu1 %1215  ;;  %v1214_v43 = vpop.permute.xlu0 %1213 }
 0x1d7   : > { %v1221_v45 = vsel %vm12367_vm15, %v1214_v43, %v1216_v42 }
 0x1d8   : > { %1227 = vst [vmem:[#allocation4 + $0x588] sm:$0xf] %v1221_v45  ;;  %1548 = vrot.lane.b32.xlu1 %v9123_v59, %s12335_s15  ;;  %1546 = vrot.lane.b32.xlu0 %v9180_v31, %s12335_s15  ;;  %s12380_s15 = smov 3  }
 0x1da   : > { %v1220_v46 = vpop.permute.xlu1 %1219  ;;  %v1218_v47 = vpop.permute.xlu0 %1217 }
 0x1db   : > { %v1222_v17 = vsel %vm12367_vm15, %v1216_v42, %v1218_v47  ;;  %v1223_v48 = vsel %vm12367_vm15, %v1218_v47, %v1220_v46  ;;  %vm12413_vm15 = vcmask 900096  }
 0x1dc   : > { %1228 = vst [vmem:[#allocation4 + $0x600] sm:$0xf] %v1222_v17  ;;  %1229 = vst [vmem:[#allocation4 + $0x2f0] sm:$0xf] %v1223_v48  ;;  %1567 = vrot.lane.b32.xlu1 %v9189_v35, %s12333_s25  ;;  %1565 = vrot.lane.b32.xlu0 %v9136_v15, %s12333_s25 }
 0x1de   : > { %v1239_v49 = vpop.permute.xlu1 %1238  ;;  %v1237_v50 = vpop.permute.xlu0 %1236 }
 0x1df   : > { %v1245_v51 = vsel %vm12368_vm10, %v1237_v50, %v1239_v49 }
 0x1e0   : > { %1251 = vst [vmem:[#allocation4 + $0x700] sm:$0xf0] %v1245_v51  ;;  %1571 = vrot.lane.b32.xlu1 %v9199_v40, %s12333_s25  ;;  %1569 = vrot.lane.b32.xlu0 %v9148_v16, %s12333_s25 }
 0x1e2   : > { %v1243_v52 = vpop.permute.xlu1 %1242  ;;  %v1241_v53 = vpop.permute.xlu0 %1240 }
 0x1e3   : > { %v1246_v2 = vsel %vm12368_vm10, %v1239_v49, %v1241_v53  ;;  %v1247_v54 = vsel %vm12368_vm10, %v1241_v53, %v1243_v52 }
 0x1e4   : > { %1252 = vst [vmem:[#allocation4 + $0x5f0] sm:$0xf0] %v1246_v2  ;;  %1253 = vst [vmem:[#allocation4 + $0x4d8] sm:$0xf0] %v1247_v54  ;;  %1591 = vrot.lane.b32.xlu1 %v9208_v44, %s12333_s25  ;;  %1589 = vrot.lane.b32.xlu0 %v9161_v22, %s12333_s25 }
 0x1e6   : > { %v1263_v55 = vpop.permute.xlu1 %1262  ;;  %v1261_v8 = vpop.permute.xlu0 %1260 }
 0x1e7   : > { %v1268_v56 = vsel %vm12368_vm10, %v1261_v8, %v1263_v55 }
 0x1e8   : > { %1274 = vst [vmem:[#allocation4 + $0x588] sm:$0xf0] %v1268_v56  ;;  %1595 = vrot.lane.b32.xlu1 %v9133_v0, %s12333_s25  ;;  %1593 = vrot.lane.b32.xlu0 %v9123_v59, %s12333_s25  ;;  %s12383_s25 = smov 111  }
 0x1ea   : > { %v1267_v57 = vpop.permute.xlu1 %1266  ;;  %v1265_v58 = vpop.permute.xlu0 %1264 }
 0x1eb   : > { %v1269_v9 = vsel %vm12368_vm10, %v1263_v55, %v1265_v58  ;;  %v1270_v10 = vsel %vm12368_vm10, %v1265_v58, %v1267_v57  ;;  %vm2560_vm10 = vcmask 891904  }
 0x1ec   : > { %1275 = vst [vmem:[#allocation4 + $0x600] sm:$0xf0] %v1269_v9  ;;  %1276 = vst [vmem:[#allocation4 + $0x2f0] sm:$0xf0] %v1270_v10  ;;  %1614 = vrot.lane.b32.xlu1 %v9136_v15, %s12331_s21  ;;  %1612 = vrot.lane.b32.xlu0 %v9145_v4, %s12331_s21 }
 0x1ee   : > { %v1286_v13 = vpop.permute.xlu1 %1285  ;;  %v1284_v60 = vpop.permute.xlu0 %1283 }
 0x1ef   : > { %v1292_v14 = vsel %vm12369_vm12, %v1284_v60, %v1286_v13 }
 0x1f0   : > { %1298 = vst [vmem:[#allocation4 + $0x660] sm:$0xf] %v1292_v14  ;;  %1618 = vrot.lane.b32.xlu1 %v9148_v16, %s12331_s21  ;;  %1616 = vrot.lane.b32.xlu0 %v9158_v21, %s12331_s21 }
 0x1f2   : > { %v1290_v1 = vpop.permute.xlu1 %1289  ;;  %v1288_v61 = vpop.permute.xlu0 %1287 }
 0x1f3   : > { %v1293_v62 = vsel %vm12369_vm12, %v1286_v13, %v1288_v61  ;;  %v1294_v63 = vsel %vm12369_vm12, %v1288_v61, %v1290_v1 }
 0x1f4   : > { %1299 = vst [vmem:[#allocation4 + $0xd8] sm:$0xf] %v1293_v62  ;;  %1300 = vst [vmem:[#allocation4 + $0x6c8] sm:$0xf] %v1294_v63  ;;  %1638 = vrot.lane.b32.xlu1 %v9161_v22, %s12331_s21  ;;  %1636 = vrot.lane.b32.xlu0 %v9170_v26, %s12331_s21 }
 0x1f6   : > { %v1310_v7 = vpop.permute.xlu1 %1309  ;;  %v1308_v12 = vpop.permute.xlu0 %1307 }
 0x1f7   : > { %v1315_v18 = vsel %vm12369_vm12, %v1308_v12, %v1310_v7 }
 0x1f8   : > { %1321 = vst [vmem:[#allocation4 + $0x98] sm:$0xf] %v1315_v18  ;;  %1642 = vrot.lane.b32.xlu1 %v9123_v59, %s12331_s21  ;;  %1640 = vrot.lane.b32.xlu0 %v9180_v31, %s12331_s21  ;;  %s12392_s21 = smov 112  }
 0x1fa   : > { %v1314_v19 = vpop.permute.xlu1 %1313  ;;  %v1312_v20 = vpop.permute.xlu0 %1311 }
 0x1fb   : > { %v1316_v23 = vsel %vm12369_vm12, %v1310_v7, %v1312_v20  ;;  %v1317_v24 = vsel %vm12369_vm12, %v1312_v20, %v1314_v19  ;;  %vm12410_vm12 = vcmask 916480  }
 0x1fc   : > { %1322 = vst [vmem:[#allocation4 + $0x70] sm:$0xf] %v1316_v23  ;;  %1323 = vst [vmem:[#allocation4 + $0x6b0] sm:$0xf] %v1317_v24  ;;  %1661 = vrot.lane.b32.xlu1 %v9189_v35, %s12304_s22  ;;  %1659 = vrot.lane.b32.xlu0 %v9136_v15, %s12304_s22 }
 0x1fe   : > { %v1333_v25 = vpop.permute.xlu1 %1332  ;;  %v1331_v27 = vpop.permute.xlu0 %1330 }
 0x1ff   : > { %v1339_v28 = vsel %vm12382_vm11, %v1331_v27, %v1333_v25 }
 0x200   : > { %1345 = vst [vmem:[#allocation4 + $0x660] sm:$0xf0] %v1339_v28  ;;  %1665 = vrot.lane.b32.xlu1 %v9199_v40, %s12304_s22  ;;  %1663 = vrot.lane.b32.xlu0 %v9148_v16, %s12304_s22 }
 0x202   : > { %v1337_v29 = vpop.permute.xlu1 %1336  ;;  %v1335_v30 = vpop.permute.xlu0 %1334 }
 0x203   : > { %v1340_v32 = vsel %vm12382_vm11, %v1333_v25, %v1335_v30  ;;  %v1341_v33 = vsel %vm12382_vm11, %v1335_v30, %v1337_v29 }
 0x204   : > { %1346 = vst [vmem:[#allocation4 + $0xd8] sm:$0xf0] %v1340_v32  ;;  %1347 = vst [vmem:[#allocation4 + $0x6c8] sm:$0xf0] %v1341_v33  ;;  %1685 = vrot.lane.b32.xlu1 %v9208_v44, %s12304_s22  ;;  %1683 = vrot.lane.b32.xlu0 %v9161_v22, %s12304_s22 }
 0x206   : > { %v1357_v34 = vpop.permute.xlu1 %1356  ;;  %v1355_v36 = vpop.permute.xlu0 %1354 }
 0x207   : > { %v1362_v37 = vsel %vm12382_vm11, %v1355_v36, %v1357_v34 }
 0x208   : > { %1368 = vst [vmem:[#allocation4 + $0x98] sm:$0xf0] %v1362_v37  ;;  %1689 = vrot.lane.b32.xlu1 %v9133_v0, %s12304_s22  ;;  %1687 = vrot.lane.b32.xlu0 %v9123_v59, %s12304_s22  ;;  %s12310_s22 = smov 32  }
 0x20a   : > { %v1361_v38 = vpop.permute.xlu1 %1360  ;;  %v1359_v39 = vpop.permute.xlu0 %1358 }
 0x20b   : > { %v1363_v41 = vsel %vm12382_vm11, %v1357_v34, %v1359_v39  ;;  %v1364_v42 = vsel %vm12382_vm11, %v1359_v39, %v1361_v38  ;;  %vm12386_vm11 = vcmask 48128  }
 0x20c   : > { %1369 = vst [vmem:[#allocation4 + $0x70] sm:$0xf0] %v1363_v41  ;;  %1370 = vst [vmem:[#allocation4 + $0x6b0] sm:$0xf0] %v1364_v42  ;;  %1708 = vrot.lane.b32.xlu1 %v9136_v15, %s12307_s23  ;;  %1706 = vrot.lane.b32.xlu0 %v9145_v4, %s12307_s23 }
 0x20e   : > { %v1380_v43 = vpop.permute.xlu1 %1379  ;;  %v1378_v45 = vpop.permute.xlu0 %1377 }
 0x20f   : > { %v1386_v46 = vsel %vm12309_vm14, %v1378_v45, %v1380_v43 }
 0x210   : > { %1392 = vst [vmem:[#allocation4 + $0x7a8] sm:$0xf] %v1386_v46  ;;  %1712 = vrot.lane.b32.xlu1 %v9148_v16, %s12307_s23  ;;  %1710 = vrot.lane.b32.xlu0 %v9158_v21, %s12307_s23 }
 0x212   : > { %v1384_v47 = vpop.permute.xlu1 %1383  ;;  %v1382_v17 = vpop.permute.xlu0 %1381 }
 0x213   : > { %v1387_v48 = vsel %vm12309_vm14, %v1380_v43, %v1382_v17  ;;  %v1388_v49 = vsel %vm12309_vm14, %v1382_v17, %v1384_v47 }
 0x214   : > { %1393 = vst [vmem:[#allocation4 + $0x518] sm:$0xf] %v1387_v48  ;;  %1394 = vst [vmem:[#allocation4 + $0x8d8] sm:$0xf] %v1388_v49  ;;  %1732 = vrot.lane.b32.xlu1 %v9161_v22, %s12307_s23  ;;  %1730 = vrot.lane.b32.xlu0 %v9170_v26, %s12307_s23 }
 0x216   : > { %v1404_v50 = vpop.permute.xlu1 %1403  ;;  %v1402_v51 = vpop.permute.xlu0 %1401 }
 0x217   : > { %v1409_v52 = vsel %vm12309_vm14, %v1402_v51, %v1404_v50 }
 0x218   : > { %1415 = vst [vmem:[#allocation4 + $0x810] sm:$0xf] %v1409_v52  ;;  %1736 = vrot.lane.b32.xlu1 %v9123_v59, %s12307_s23  ;;  %1734 = vrot.lane.b32.xlu0 %v9180_v31, %s12307_s23  ;;  %s12313_s23 = smov 31  }
 0x21a   : > { %v1408_v53 = vpop.permute.xlu1 %1407  ;;  %v1406_v2 = vpop.permute.xlu0 %1405 }
 0x21b   : > { %v1410_v54 = vsel %vm12309_vm14, %v1404_v50, %v1406_v2  ;;  %v1411_v55 = vsel %vm12309_vm14, %v1406_v2, %v1408_v53  ;;  %vm12315_vm14 = vcmask 449536  }
 0x21c   : > { %1416 = vst [vmem:[#allocation4 + $0x768] sm:$0xf] %v1410_v54  ;;  %1417 = vst [vmem:[#allocation4 + $0x668] sm:$0xf] %v1411_v55  ;;  %1755 = vrot.lane.b32.xlu1 %v9189_v35, %s12310_s22  ;;  %1753 = vrot.lane.b32.xlu0 %v9136_v15, %s12310_s22 }
 0x21e   : > { %v1427_v8 = vpop.permute.xlu1 %1426  ;;  %v1425_v56 = vpop.permute.xlu0 %1424 }
 0x21f   : > { %v1433_v57 = vsel %vm12312_vm9, %v1425_v56, %v1427_v8 }
 0x220   : > { %1439 = vst [vmem:[#allocation4 + $0x7a8] sm:$0xf0] %v1433_v57  ;;  %1759 = vrot.lane.b32.xlu1 %v9199_v40, %s12310_s22  ;;  %1757 = vrot.lane.b32.xlu0 %v9148_v16, %s12310_s22 }
 0x222   : > { %v1431_v58 = vpop.permute.xlu1 %1430  ;;  %v1429_v9 = vpop.permute.xlu0 %1428 }
 0x223   : > { %v1434_v10 = vsel %vm12312_vm9, %v1427_v8, %v1429_v9  ;;  %v1435_v13 = vsel %vm12312_vm9, %v1429_v9, %v1431_v58  ;;  %v9482_v9 = vld [vmem:[%s8707_s13 + $0xc] sm:$0xff] }
 0x224   : > { %1440 = vst [vmem:[#allocation4 + $0x518] sm:$0xf0] %v1434_v10  ;;  %1441 = vst [vmem:[#allocation4 + $0x8d8] sm:$0xf0] %v1435_v13  ;;  %1779 = vrot.lane.b32.xlu1 %v9208_v44, %s12310_s22  ;;  %1777 = vrot.lane.b32.xlu0 %v9161_v22, %s12310_s22 }
 0x226   : > { %v1451_v60 = vpop.permute.xlu1 %1450  ;;  %v1449_v14 = vpop.permute.xlu0 %1448 }
 0x227   : > { %v1456_v1 = vsel %vm12312_vm9, %v1449_v14, %v1451_v60 }
 0x228   : > { %1462 = vst [vmem:[#allocation4 + $0x810] sm:$0xf0] %v1456_v1  ;;  %1783 = vrot.lane.b32.xlu1 %v9133_v0, %s12310_s22  ;;  %1781 = vrot.lane.b32.xlu0 %v9123_v59, %s12310_s22  ;;  %s12326_s22 = smov 30  }
 0x22a   : > { %v1455_v61 = vpop.permute.xlu1 %1454  ;;  %v1453_v62 = vpop.permute.xlu0 %1452 }
 0x22b   : > { %v1457_v63 = vsel %vm12312_vm9, %v1451_v60, %v1453_v62  ;;  %v1458_v7 = vsel %vm12312_vm9, %v1453_v62, %v1455_v61  ;;  %vm12370_vm9 = vcmask 441344  }
 0x22c   : > { %1463 = vst [vmem:[#allocation4 + $0x768] sm:$0xf0] %v1457_v63  ;;  %1464 = vst [vmem:[#allocation4 + $0x668] sm:$0xf0] %v1458_v7  ;;  %1802 = vrot.lane.b32.xlu1 %v9136_v15, %s12313_s23  ;;  %1800 = vrot.lane.b32.xlu0 %v9145_v4, %s12313_s23  ;;  %v2645_v7 = vcombine.low %v9482_v9, %v9482_v9 }
 0x22e   : > { %v1474_v12 = vpop.permute.xlu1 %1473  ;;  %v1472_v18 = vpop.permute.xlu0 %1471 }
 0x22f   : > { %v1480_v19 = vsel %vm12315_vm14, %v1472_v18, %v1474_v12 }
 0x230   : > { %1486 = vst [vmem:[#allocation4 + $0x1f8] sm:$0xf] %v1480_v19  ;;  %1806 = vrot.lane.b32.xlu1 %v9148_v16, %s12313_s23  ;;  %1804 = vrot.lane.b32.xlu0 %v9158_v21, %s12313_s23 }
 0x232   : > { %v1478_v20 = vpop.permute.xlu1 %1477  ;;  %v1476_v23 = vpop.permute.xlu0 %1475 }
 0x233   : > { %v1481_v24 = vsel %vm12315_vm14, %v1474_v12, %v1476_v23  ;;  %v1482_v25 = vsel %vm12315_vm14, %v1476_v23, %v1478_v20 }
 0x234   : > { %1487 = vst [vmem:[#allocation4 + $0x330] sm:$0xf] %v1481_v24  ;;  %1488 = vst [vmem:[#allocation4 + $0x150] sm:$0xf] %v1482_v25  ;;  %1826 = vrot.lane.b32.xlu1 %v9161_v22, %s12313_s23  ;;  %1824 = vrot.lane.b32.xlu0 %v9170_v26, %s12313_s23 }
 0x236   : > { %v1498_v27 = vpop.permute.xlu1 %1497  ;;  %v1496_v28 = vpop.permute.xlu0 %1495 }
 0x237   : > { %v1503_v29 = vsel %vm12315_vm14, %v1496_v28, %v1498_v27 }
 0x238   : > { %1509 = vst [vmem:[#allocation4 + $0x798] sm:$0xf] %v1503_v29  ;;  %1830 = vrot.lane.b32.xlu1 %v9123_v59, %s12313_s23  ;;  %1828 = vrot.lane.b32.xlu0 %v9180_v31, %s12313_s23  ;;  %s12328_s23 = smov 29  }
 0x23a   : > { %v1502_v30 = vpop.permute.xlu1 %1501  ;;  %v1500_v32 = vpop.permute.xlu0 %1499 }
 0x23b   : > { %v1504_v33 = vsel %vm12315_vm14, %v1498_v27, %v1500_v32  ;;  %v1505_v34 = vsel %vm12315_vm14, %v1500_v32, %v1502_v30  ;;  %vm12371_vm14 = vcmask 433152  }
 0x23c   : > { %1510 = vst [vmem:[#allocation4 + $0x818] sm:$0xf] %v1504_v33  ;;  %1511 = vst [vmem:[#allocation4 + $0x640] sm:$0xf] %v1505_v34  ;;  %1849 = vrot.lane.b32.xlu1 %v9189_v35, %s12326_s22  ;;  %1847 = vrot.lane.b32.xlu0 %v9136_v15, %s12326_s22 }
 0x23e   : > { %v1521_v36 = vpop.permute.xlu1 %1520  ;;  %v1519_v37 = vpop.permute.xlu0 %1518 }
 0x23f   : > { %v1527_v38 = vsel %vm12370_vm9, %v1519_v37, %v1521_v36 }
 0x240   : > { %1533 = vst [vmem:[#allocation4 + $0x1f8] sm:$0xf0] %v1527_v38  ;;  %1853 = vrot.lane.b32.xlu1 %v9199_v40, %s12326_s22  ;;  %1851 = vrot.lane.b32.xlu0 %v9148_v16, %s12326_s22 }
 0x242   : > { %v1525_v39 = vpop.permute.xlu1 %1524  ;;  %v1523_v41 = vpop.permute.xlu0 %1522 }
 0x243   : > { %v1528_v42 = vsel %vm12370_vm9, %v1521_v36, %v1523_v41  ;;  %v1529_v43 = vsel %vm12370_vm9, %v1523_v41, %v1525_v39 }
 0x244   : > { %1534 = vst [vmem:[#allocation4 + $0x330] sm:$0xf0] %v1528_v42  ;;  %1535 = vst [vmem:[#allocation4 + $0x150] sm:$0xf0] %v1529_v43  ;;  %1898 = vrot.lane.b32.xlu1 %v9158_v21, %s12328_s23  ;;  %1896 = vrot.lane.b32.xlu0 %v9136_v15, %s12328_s23 }
 0x246   : > { %v1545_v45 = vpop.permute.xlu1 %1544  ;;  %v1543_v46 = vpop.permute.xlu0 %1542 }
 0x247   : > { %v1550_v47 = vsel %vm12370_vm9, %v1543_v46, %v1545_v45 }
 0x248   : > { %1556 = vst [vmem:[#allocation4 + $0x798] sm:$0xf0] %v1550_v47  ;;  %1871 = vrot.lane.b32.xlu1 %v9161_v22, %s12326_s22  ;;  %1894 = vrot.lane.b32.xlu0 %v9145_v4, %s12328_s23 }
 0x24a   : > { %v1549_v17 = vpop.permute.xlu1 %1548  ;;  %v1547_v48 = vpop.permute.xlu0 %1546 }
 0x24b   : > { %v1551_v49 = vsel %vm12370_vm9, %v1545_v45, %v1547_v48  ;;  %v1552_v21 = vsel %vm12370_vm9, %v1547_v48, %v1549_v17  ;;  %vm12411_vm9 = vcmask 908288  }
 0x24c   : > { %1557 = vst [vmem:[#allocation4 + $0x818] sm:$0xf0] %v1551_v49  ;;  %1558 = vst [vmem:[#allocation4 + $0x640] sm:$0xf0] %v1552_v21  ;;  %1875 = vrot.lane.b32.xlu1 %v9123_v59, %s12326_s22  ;;  %1873 = vrot.lane.b32.xlu0 %v9208_v44, %s12326_s22 }
 0x24e   : > { %v1568_v50 = vpop.permute.xlu1 %1567  ;;  %v1566_v51 = vpop.permute.xlu0 %1565 }
 0x24f   : > { %v1574_v52 = vsel %vm12371_vm14, %v1566_v51, %v1568_v50  ;;  %v9544_v51 = vld [vmem:[%s8707_s13 + $0x8] sm:$0xff] }
 0x250   : > { %1580 = vst [vmem:[#allocation4 + $0x360] sm:$0xf] %v1574_v52  ;;  %1900 = vrot.lane.b32.xlu1 %v9148_v16, %s12328_s23  ;;  %1877 = vrot.lane.b32.xlu0 %v9133_v0, %s12326_s22  ;;  %s12394_s22 = smov 110  }
 0x252   : > { %v1572_v4 = vpop.permute.xlu1 %1571  ;;  %v1570_v53 = vpop.permute.xlu0 %1569 }
 0x253   : > { %v1575_v2 = vsel %vm12371_vm14, %v1568_v50, %v1570_v53  ;;  %v1576_v54 = vsel %vm12371_vm14, %v1570_v53, %v1572_v4 }
 0x254   : > { %1581 = vst [vmem:[#allocation4 + $0x78] sm:$0xf] %v1575_v2  ;;  %1582 = vst [vmem:[#allocation4 + $0x108] sm:$0xf] %v1576_v54  ;;  %1920 = vrot.lane.b32.xlu1 %v9161_v22, %s12328_s23  ;;  %1918 = vrot.lane.b32.xlu0 %v9170_v26, %s12328_s23  ;;  %v9553_v2 = vcombine.low %v9544_v51, %v9544_v51 }
 0x256   : > { %v1592_v44 = vpop.permute.xlu1 %1591  ;;  %v1590_v55 = vpop.permute.xlu0 %1589 }
 0x257   : > { %v1597_v8 = vsel %vm12371_vm14, %v1590_v55, %v1592_v44 }
 0x258   : > { %1603 = vst [vmem:[#allocation4 + $0x628] sm:$0xf] %v1597_v8  ;;  %1924 = vrot.lane.b32.xlu1 %v9123_v59, %s12328_s23  ;;  %1922 = vrot.lane.b32.xlu0 %v9180_v31, %s12328_s23  ;;  %v9470_v59 = vld [vmem:[%s8707_s13 + $0x4] sm:$0xff]  ;;  %s12396_s23 = smov 109  }
 0x259   : > { %v2644_v20 = vcombine.low %v9470_v59, %v9470_v59 }
 0x25a   : > { %v1596_v0 = vpop.permute.xlu1 %1595  ;;  %v1594_v56 = vpop.permute.xlu0 %1593 }
 0x25b   : > { %v1598_v57 = vsel %vm12371_vm14, %v1592_v44, %v1594_v56  ;;  %v1599_v22 = vsel %vm12371_vm14, %v1594_v56, %v1596_v0  ;;  %v9559_v0 = vcombine.low %v8732_v3, %v8732_v3  ;;  %vm12404_vm14 = vcmask 23552  }
 0x25c   : > { %1604 = vst [vmem:[#allocation4 + $0x2b8] sm:$0xf] %v1598_v57  ;;  %1605 = vst [vmem:[#allocation4 + $0xb8] sm:$0xf] %v1599_v22  ;;  %1943 = vrot.lane.b32.xlu1 %v9189_v35, %s12347_s19  ;;  %1941 = vrot.lane.b32.xlu0 %v9136_v15, %s12347_s19  ;;  %v9479_v35 = vcombine.high %v9470_v59, %v9470_v59 }
 0x25e   : > { %v1615_v26 = vpop.permute.xlu1 %1614  ;;  %v1613_v31 = vpop.permute.xlu0 %1612 }
 0x25f   : > { %v1621_v58 = vsel %vm12372_vm8, %v1613_v31, %v1615_v26 }
 0x260   : > { %1627 = vst [vmem:[#allocation4 + $0x360] sm:$0xf0] %v1621_v58  ;;  %1947 = vrot.lane.b32.xlu1 %v9199_v40, %s12347_s19  ;;  %1945 = vrot.lane.b32.xlu0 %v9148_v16, %s12347_s19  ;;  %s12355_s19 = smov 6  }
 0x262   : > { %v1619_v15 = vpop.permute.xlu1 %1618  ;;  %v1617_v10 = vpop.permute.xlu0 %1616 }
 0x263   : > { %v1622_v13 = vsel %vm12372_vm8, %v1615_v26, %v1617_v10  ;;  %v1623_v60 = vsel %vm12372_vm8, %v1617_v10, %v1619_v15 }
 0x264   : > { %1628 = vst [vmem:[#allocation4 + $0x78] sm:$0xf0] %v1622_v13  ;;  %1629 = vst [vmem:[#allocation4 + $0x108] sm:$0xf0] %v1623_v60  ;;  %2697 = vrot.lane.b32.xlu1 %v9482_v9, %s12388_s16  ;;  %2695 = vrot.lane.b32.xlu0 %v9479_v35, %s12388_s16 }
 0x266   : > { %v1639_v16 = vpop.permute.xlu1 %1638  ;;  %v1637_v40 = vpop.permute.xlu0 %1636 }
 0x267   : > { %v1644_v14 = vsel %vm12372_vm8, %v1637_v40, %v1639_v16 }
 0x268   : > { %1650 = vst [vmem:[#allocation4 + $0x628] sm:$0xf0] %v1644_v14  ;;  %2601 = vrot.lane.b32.xlu1 %v9479_v35, %s12390_s14  ;;  %2693 = vrot.lane.b32.xlu0 %v9470_v59, %s12388_s16 }
 0x26a   : > { %v1643_v1 = vpop.permute.xlu1 %1642  ;;  %v1641_v61 = vpop.permute.xlu0 %1640 }
 0x26b   : > { %v1645_v62 = vsel %vm12372_vm8, %v1639_v16, %v1641_v61  ;;  %v1646_v63 = vsel %vm12372_vm8, %v1641_v61, %v1643_v1  ;;  %vm12403_vm8 = vcmask 15360  }
 0x26c   : > { %1651 = vst [vmem:[#allocation4 + $0x2b8] sm:$0xf0] %v1645_v62  ;;  %1652 = vst [vmem:[#allocation4 + $0xb8] sm:$0xf0] %v1646_v63  ;;  %2648 = vrot.lane.b32.xlu1 %v9470_v59, %s12398_s2  ;;  %2603 = vrot.lane.b32.xlu0 %v9482_v9, %s12390_s14 }
 0x26e   : > { %v1662_v12 = vpop.permute.xlu1 %1661  ;;  %v1660_v18 = vpop.permute.xlu0 %1659 }
 0x26f   : > { %v1668_v19 = vsel %vm12337_vm7, %v1660_v18, %v1662_v12 }
 0x270   : > { %1674 = vst [vmem:[#allocation4 + $0x88] sm:$0xf] %v1668_v19  ;;  %2599 = vrot.lane.b32.xlu1 %v9470_v59, %s12390_s14  ;;  %2650 = vrot.lane.b32.xlu0 %v2645_v7, %s12398_s2 }
 0x272   : > { %v1666_v23 = vpop.permute.xlu1 %1665  ;;  %v1664_v24 = vpop.permute.xlu0 %1663 }
 0x273   : > { %v1669_v25 = vsel %vm12337_vm7, %v1662_v12, %v1664_v24  ;;  %v1670_v27 = vsel %vm12337_vm7, %v1664_v24, %v1666_v23 }
 0x274   : > { %1675 = vst [vmem:[#allocation4 + $0x5e0] sm:$0xf] %v1669_v25  ;;  %1676 = vst [vmem:[#allocation4 + $0x30] sm:$0xf] %v1670_v27  ;;  %2507 = vrot.lane.b32.xlu1 %v9479_v35, %s12394_s22  ;;  %2646 = vrot.lane.b32.xlu0 %v2644_v20, %s12398_s2 }
 0x276   : > { %v1686_v28 = vpop.permute.xlu1 %1685  ;;  %v1684_v29 = vpop.permute.xlu0 %1683 }
 0x277   : > { %v1691_v30 = vsel %vm12337_vm7, %v1684_v29, %v1686_v28 }
 0x278   : > { %1697 = vst [vmem:[#allocation4 + $0x350] sm:$0xf] %v1691_v30  ;;  %2554 = vrot.lane.b32.xlu1 %v9470_v59, %s12396_s23  ;;  %2509 = vrot.lane.b32.xlu0 %v9482_v9, %s12394_s22 }
 0x27a   : > { %v1690_v32 = vpop.permute.xlu1 %1689  ;;  %v1688_v33 = vpop.permute.xlu0 %1687 }
 0x27b   : > { %v1692_v34 = vsel %vm12337_vm7, %v1686_v28, %v1688_v33  ;;  %v1693_v36 = vsel %vm12337_vm7, %v1688_v33, %v1690_v32  ;;  %vm12349_vm7 = vcmask 261120  }
 0x27c   : > { %1698 = vst [vmem:[#allocation4 + $0x348] sm:$0xf] %v1692_v34  ;;  %1699 = vst [vmem:[#allocation4 + $0x698] sm:$0xf] %v1693_v36  ;;  %2505 = vrot.lane.b32.xlu1 %v9470_v59, %s12394_s22  ;;  %2556 = vrot.lane.b32.xlu0 %v2645_v7, %s12396_s23  ;;  %v9620_v34 = vld [vmem:[%s8707_s13 + $0x18] sm:$0xff] }
 0x27e   : > { %v1709_v37 = vpop.permute.xlu1 %1708  ;;  %v1707_v38 = vpop.permute.xlu0 %1706 }
 0x27f   : > { %v1715_v39 = vsel %vm12344_vm6, %v1707_v38, %v1709_v37 }
 0x280   : > { %1721 = vst [vmem:[#allocation4 + $0x88] sm:$0xf0] %v1715_v39  ;;  %2413 = vrot.lane.b32.xlu1 %v9479_v35, %s12392_s21  ;;  %2552 = vrot.lane.b32.xlu0 %v2644_v20, %s12396_s23 }
 0x282   : > { %v1713_v41 = vpop.permute.xlu1 %1712  ;;  %v1711_v42 = vpop.permute.xlu0 %1710 }
 0x283   : > { %v1716_v43 = vsel %vm12344_vm6, %v1709_v37, %v1711_v42  ;;  %v1717_v45 = vsel %vm12344_vm6, %v1711_v42, %v1713_v41 }
 0x284   : > { %1722 = vst [vmem:[#allocation4 + $0x5e0] sm:$0xf0] %v1716_v43  ;;  %1723 = vst [vmem:[#allocation4 + $0x30] sm:$0xf0] %v1717_v45  ;;  %2460 = vrot.lane.b32.xlu1 %v9470_v59, %s12383_s25  ;;  %2415 = vrot.lane.b32.xlu0 %v9482_v9, %s12392_s21  ;;  %v2735_v45 = vld [vmem:[%s12527_s1 + $0x8] sm:$0xff] }
 0x285   : > { %7998 = vmatprep.mubr.msk.f32.mxu0 %vm12405_vm5, %v2735_v45  ;;  %8002 = vmatprep.mubr.msk.f32.mxu1 %vm12405_vm5, %v2735_v45  ;;  %v2801_v45 = vld [vmem:[#allocation4 + $0x810] sm:$0xff] }
 0x286   : > { %v1733_v46 = vpop.permute.xlu1 %1732  ;;  %v1731_v47 = vpop.permute.xlu0 %1730 }
 0x287   : > { %v1738_v17 = vsel %vm12344_vm6, %v1731_v47, %v1733_v46 }
 0x288   : > { %1744 = vst [vmem:[#allocation4 + $0x350] sm:$0xf0] %v1738_v17  ;;  %2411 = vrot.lane.b32.xlu1 %v9470_v59, %s12392_s21  ;;  %2462 = vrot.lane.b32.xlu0 %v2645_v7, %s12383_s25 }
 0x28a   : > { %v1737_v48 = vpop.permute.xlu1 %1736  ;;  %v1735_v49 = vpop.permute.xlu0 %1734 }
 0x28b   : > { %v1739_v21 = vsel %vm12344_vm6, %v1733_v46, %v1735_v49  ;;  %v1740_v50 = vsel %vm12344_vm6, %v1735_v49, %v1737_v48  ;;  %vm12354_vm6 = vcmask 252928   ;;  %v9645_v48 = vcombine.high %v9482_v9, %v9482_v9 }
 0x28c   : > { %1745 = vst [vmem:[#allocation4 + $0x348] sm:$0xf0] %v1739_v21  ;;  %1746 = vst [vmem:[#allocation4 + $0x698] sm:$0xf0] %v1740_v50  ;;  %2319 = vrot.lane.b32.xlu1 %v8740_v5, %s12380_s15  ;;  %2458 = vrot.lane.b32.xlu0 %v2644_v20, %s12383_s25 }
 0x28e   : > { %v1756_v52 = vpop.permute.xlu1 %1755  ;;  %v1754_v4 = vpop.permute.xlu0 %1753 }
 0x28f   : > { %v1762_v53 = vsel %vm12349_vm7, %v1754_v4, %v1756_v52 }
 0x290   : > { %1768 = vst [vmem:[#allocation4 + $0x68] sm:$0xf] %v1762_v53  ;;  %2366 = vrot.lane.b32.xlu1 %v8732_v3, %s12377_s10  ;;  %2321 = vrot.lane.b32.xlu0 %v9544_v51, %s12380_s15  ;;  %v2817_v53 = vld [vmem:[#allocation4 + $0x5e0] sm:$0xff] }
 0x292   : > { %v1760_v54 = vpop.permute.xlu1 %1759  ;;  %v1758_v44 = vpop.permute.xlu0 %1757 }
 0x293   : > { %v1763_v55 = vsel %vm12349_vm7, %v1756_v52, %v1758_v44  ;;  %v1764_v8 = vsel %vm12349_vm7, %v1758_v44, %v1760_v54  ;;  %v9652_v54 = vcombine.low %v9620_v34, %v9620_v34  ;;  %v2811_v44 = vld [vmem:[#allocation4 + $0x78] sm:$0xff] }
 0x294   : > { %1769 = vst [vmem:[#allocation4 + $0x920] sm:$0xf] %v1763_v55  ;;  %1770 = vst [vmem:[#allocation4 + $0x910] sm:$0xf] %v1764_v8  ;;  %2317 = vrot.lane.b32.xlu1 %v8732_v3, %s12380_s15  ;;  %2368 = vrot.lane.b32.xlu0 %v9553_v2, %s12377_s10  ;;  %v2810_v8 = vld [vmem:[#allocation4 + $0x360] sm:$0xff] }
 0x296   : > { %v1780_v56 = vpop.permute.xlu1 %1779  ;;  %v1778_v57 = vpop.permute.xlu0 %1777 }
 0x297   : > { %v1785_v22 = vsel %vm12349_vm7, %v1778_v57, %v1780_v56 }
 0x298   : > { %1791 = vst [vmem:[#allocation4 + $0x138] sm:$0xf] %v1785_v22  ;;  %2225 = vrot.lane.b32.xlu1 %v8740_v5, %s12374_s24  ;;  %2364 = vrot.lane.b32.xlu0 %v9559_v0, %s12377_s10  ;;  %v2805_v22 = vld [vmem:[#allocation4 + $0x330] sm:$0xff] }
 0x29a   : > { %v1784_v59 = vpop.permute.xlu1 %1783  ;;  %v1782_v26 = vpop.permute.xlu0 %1781 }
 0x29b   : > { %v1786_v31 = vsel %vm12349_vm7, %v1780_v56, %v1782_v26  ;;  %v1787_v58 = vsel %vm12349_vm7, %v1782_v26, %v1784_v59  ;;  %vm12373_vm7 = vcmask 244736   ;;  %v2804_v59 = vld [vmem:[#allocation4 + $0x1f8] sm:$0xff] }
 0x29c   : > { %1792 = vst [vmem:[#allocation4 + $0x1a0] sm:$0xf] %v1786_v31  ;;  %1793 = vst [vmem:[#allocation4 + $0x378] sm:$0xf] %v1787_v58  ;;  %2272 = vrot.lane.b32.xlu1 %v8732_v3, %s12350_s12  ;;  %2227 = vrot.lane.b32.xlu0 %v9544_v51, %s12374_s24  ;;  %v2799_v26 = vld [vmem:[#allocation4 + $0x518] sm:$0xff]  ;;  %v2798_v58 = vld [vmem:[#allocation4 + $0x7a8] sm:$0xff] }
 0x29e   : > { %v1803_v35 = vpop.permute.xlu1 %1802  ;;  %v1801_v15 = vpop.permute.xlu0 %1800 }
 0x29f   : > { %v1809_v10 = vsel %vm12354_vm6, %v1801_v15, %v1803_v35 }
 0x2a0   : > { %1815 = vst [vmem:[#allocation4 + $0x68] sm:$0xf0] %v1809_v10  ;;  %2223 = vrot.lane.b32.xlu1 %v8732_v3, %s12374_s24  ;;  %2274 = vrot.lane.b32.xlu0 %v9553_v2, %s12350_s12  ;;  %v2793_v10 = vld [vmem:[#allocation4 + $0xd8] sm:$0xff] }
 0x2a2   : > { %v1807_v13 = vpop.permute.xlu1 %1806  ;;  %v1805_v60 = vpop.permute.xlu0 %1804 }
 0x2a3   : > { %v1810_v16 = vsel %vm12354_vm6, %v1803_v35, %v1805_v60  ;;  %v1811_v40 = vsel %vm12354_vm6, %v1805_v60, %v1807_v13  ;;  %v2792_v60 = vld [vmem:[#allocation4 + $0x660] sm:$0xff] }
 0x2a4   : > { %1816 = vst [vmem:[#allocation4 + $0x920] sm:$0xf0] %v1810_v16  ;;  %1817 = vst [vmem:[#allocation4 + $0x910] sm:$0xf0] %v1811_v40  ;;  %2131 = vrot.lane.b32.xlu1 %v8740_v5, %s12352_s20  ;;  %2270 = vrot.lane.b32.xlu0 %v9559_v0, %s12350_s12  ;;  %s12359_s12 = smov 26   ;;  %v2787_v16 = vld [vmem:[#allocation4 + $0x5f0] sm:$0xff] }
 0x2a6   : > { %v1827_v14 = vpop.permute.xlu1 %1826  ;;  %v1825_v1 = vpop.permute.xlu0 %1824 }
 0x2a7   : > { %v1832_v61 = vsel %vm12354_vm6, %v1825_v1, %v1827_v14  ;;  %v2822_v50 = vld [vmem:[#allocation4 + $0x68] sm:$0xff]  ;;  %v2786_v1 = vld [vmem:[#allocation4 + $0x700] sm:$0xff] }
 0x2a8   : > { %1838 = vst [vmem:[#allocation4 + $0x138] sm:$0xf0] %v1832_v61  ;;  %2178 = vrot.lane.b32.xlu1 %v8732_v3, %s12355_s19  ;;  %2133 = vrot.lane.b32.xlu0 %v9544_v51, %s12352_s20 }
 0x2aa   : > { %v1831_v62 = vpop.permute.xlu1 %1830  ;;  %v1829_v63 = vpop.permute.xlu0 %1828 }
 0x2ab   : > { %v1833_v7 = vsel %vm12354_vm6, %v1827_v14, %v1829_v63  ;;  %v1834_v12 = vsel %vm12354_vm6, %v1829_v63, %v1831_v62  ;;  %vm12376_vm6 = vcmask 236544   ;;  %v2823_v49 = vld [vmem:[#allocation4 + $0x920] sm:$0xff] }
 0x2ac   : > { %1839 = vst [vmem:[#allocation4 + $0x1a0] sm:$0xf0] %v1833_v7  ;;  %1840 = vst [vmem:[#allocation4 + $0x378] sm:$0xf0] %v1834_v12  ;;  %2129 = vrot.lane.b32.xlu1 %v8732_v3, %s12352_s20  ;;  %2180 = vrot.lane.b32.xlu0 %v9553_v2, %s12355_s19  ;;  %s12357_s20 = smov 8   ;;  %v2781_v12 = vld [vmem:[#allocation4 + $0x3b0] sm:$0xff] }
 0x2ae   : > { %v1850_v18 = vpop.permute.xlu1 %1849  ;;  %v1848_v19 = vpop.permute.xlu0 %1847 }
 0x2af   : > { %v1856_v20 = vsel %vm12373_vm7, %v1848_v19, %v1850_v18  ;;  %v2825_v62 = vld [vmem:[#allocation4 + $0x138] sm:$0xff] }
 0x2b0   : > { %1862 = vst [vmem:[#allocation4 + $0x228] sm:$0xf] %v1856_v20  ;;  %2037 = vrot.lane.b32.xlu1 %v8740_v5, %s12359_s12  ;;  %2176 = vrot.lane.b32.xlu0 %v9559_v0, %s12355_s19  ;;  %s12400_s19 = smov 27   ;;  %v2780_v19 = vld [vmem:[#allocation4 + $0x3b8] sm:$0xff]  ;;  %v2819_v20 = vld [vmem:[#allocation4 + $0x350] sm:$0xff] }
 0x2b2   : > { %v1854_v23 = vpop.permute.xlu1 %1853  ;;  %v1852_v24 = vpop.permute.xlu0 %1851 }
 0x2b3   : > { %v1857_v25 = vsel %vm12373_vm7, %v1850_v18, %v1852_v24  ;;  %v1858_v27 = vsel %vm12373_vm7, %v1852_v24, %v1854_v23  ;;  %v2824_v18 = vld [vmem:[#allocation4 + $0x910] sm:$0xff] }
 0x2b4   : > { %1863 = vst [vmem:[#allocation4 + $0x3f0] sm:$0xf] %v1857_v25  ;;  %1864 = vst [vmem:[#allocation4 + $0x140] sm:$0xf] %v1858_v27  ;;  %2084 = vrot.lane.b32.xlu1 %v8732_v3, %s12357_s20  ;;  %2039 = vrot.lane.b32.xlu0 %v9544_v51, %s12359_s12  ;;  %v2775_v23 = vld [vmem:[#allocation4 + $0x610] sm:$0xff] }
 0x2b5   : > { %v2818_v27 = vld [vmem:[#allocation4 + $0x30] sm:$0xff] }
 0x2b6   : > { %v1899_v5 = vpop.permute.xlu1 %1898  ;;  %v1897_v28 = vpop.permute.xlu0 %1896 }
 0x2b7   : > { %v1904_v29 = vsel %vm12376_vm6, %v1897_v28, %v1899_v5 }
 0x2b8   : > { %1910 = vst [vmem:[#allocation4 + $0x3f0] sm:$0xf0] %v1904_v29  ;;  %2035 = vrot.lane.b32.xlu1 %v8732_v3, %s12359_s12  ;;  %2086 = vrot.lane.b32.xlu0 %v9553_v2, %s12357_s20  ;;  %v2813_v29 = vld [vmem:[#allocation4 + $0x628] sm:$0xff]  ;;  %s12529_s12 = smov 7  }
 0x2ba   : > { %v1872_v30 = vpop.permute.xlu1 %1871  ;;  %v1895_v32 = vpop.permute.xlu0 %1894 }
 0x2bb   : > { %v1903_v33 = vsel %vm12376_vm6, %v1895_v32, %v1897_v28  ;;  %v2812_v32 = vld [vmem:[#allocation4 + $0x108] sm:$0xff] }
 0x2bc   : > { %1909 = vst [vmem:[#allocation4 + $0x228] sm:$0xf0] %v1903_v33  ;;  %1990 = vrot.lane.b32.xlu1 %v8732_v3, %s12400_s19  ;;  %2082 = vrot.lane.b32.xlu0 %v9559_v0, %s12357_s20  ;;  %v9630_v3 = vcombine.high %v9620_v34, %v9620_v34  ;;  %v2768_v33 = vld [vmem:[#allocation4 + $0x568] sm:$0xff]  ;;  %s12528_s20 = smov 4  }
 0x2be   : > { %v1876_v36 = vpop.permute.xlu1 %1875  ;;  %v1874_v37 = vpop.permute.xlu0 %1873 }
 0x2bf   : > { %v1879_v38 = vsel %vm12373_vm7, %v1872_v30, %v1874_v37  ;;  %v1880_v39 = vsel %vm12373_vm7, %v1874_v37, %v1876_v36  ;;  %v2829_v41 = vld [vmem:[#allocation4 + $0x3f0] sm:$0xff]  ;;  %v2769_v30 = vld [vmem:[#allocation4 + $0x578] sm:$0xff] }
 0x2c0   : > { %1885 = vst [vmem:[#allocation4 + $0x160] sm:$0xf] %v1879_v38  ;;  %1886 = vst [vmem:[#allocation4 + $0x1a8] sm:$0xf] %v1880_v39  ;;  %1988 = vrot.lane.b32.xlu1 %v9559_v0, %s12400_s19  ;;  %1992 = vrot.lane.b32.xlu0 %v9553_v2, %s12400_s19  ;;  %v2816_v2 = vld [vmem:[#allocation4 + $0x88] sm:$0xff]  ;;  %v2807_v38 = vld [vmem:[#allocation4 + $0x798] sm:$0xff] }
 0x2c1   : > { %2914 = vmatprep.subr.mxu0 %v2829_v41  ;;  %v2763_v39 = vld [vmem:[#allocation4 + $0x830] sm:$0xff] }
 0x2c2   : > { %v1901_v42 = vpop.permute.xlu1 %1900  ;;  %v1878_v43 = vpop.permute.xlu0 %1877 }
 0x2c3   : > { %v1905_v46 = vsel %vm12376_vm6, %v1899_v5, %v1901_v42  ;;  %v1881_v47 = vsel %vm12373_vm7, %v1876_v36, %v1878_v43  ;;  %v2828_v17 = vld [vmem:[#allocation4 + $0x228] sm:$0xff]  ;;  %v2806_v42 = vld [vmem:[#allocation4 + $0x150] sm:$0xff]  ;;  %vm12402_vm7 = vcmask 39936  }
 0x2c4   : > { %1911 = vst [vmem:[#allocation4 + $0x140] sm:$0xf0] %v1905_v46  ;;  %1887 = vst [vmem:[#allocation4 + $0x310] sm:$0xf] %v1881_v47  ;;  %2719 = vrot.lane.b32.xlu1 %v9630_v3, %s12388_s16  ;;  %2717 = vrot.lane.b32.xlu0 %v9620_v34, %s12388_s16  ;;  %v2774_v5 = vld [vmem:[#allocation4 + $0x728] sm:$0xff]  ;;  %v2757_v46 = vld [vmem:[#allocation4 + $0x7d0] sm:$0xff] }
 0x2c5   : > { %2915 = vmatpush1.msra.mxu0 %v2828_v17  ;;  %v2762_v43 = vld [vmem:[#allocation4 + $0x368] sm:$0xff]  ;;  %v2800_v47 = vld [vmem:[#allocation4 + $0x8d8] sm:$0xff] }
 0x2c6   : > { %2916 = vmatprep.subr.mxu0 %v2823_v49  ;;  %v1921_v21 = vpop.permute.xlu1 %1920  ;;  %v1919_v52 = vpop.permute.xlu0 %1918 }
 0x2c7   : > { %2917 = vmatpush1.msra.mxu0 %v2822_v50  ;;  %v1926_v4 = vsel %vm12376_vm6, %v1919_v52, %v1921_v21  ;;  %v2795_v52 = vld [vmem:[#allocation4 + $0x98] sm:$0xff] }
 0x2c8   : > { %1932 = vst [vmem:[#allocation4 + $0x160] sm:$0xf0] %v1926_v4  ;;  %2918 = vmatprep.subr.mxu0 %v2817_v53  ;;  %2623 = vrot.lane.b32.xlu1 %v9620_v34, %s12390_s14  ;;  %v2751_v4 = vld [vmem:[#allocation4 + $0x7f0] sm:$0xff]  ;;  %v2794_v53 = vld [vmem:[#allocation4 + $0x6c8] sm:$0xff] }
 0x2c9   : > { %2699 = vrot.lane.b32.xlu0 %v9645_v48, %s12388_s16  ;;  %2919 = vmatpush1.msra.mxu0 %v2816_v2  ;;  %v2750_v2 = vld [vmem:[#allocation4 + $0x708] sm:$0xff] }
 0x2ca   : > { %2920 = vmatprep.subr.mxu0 %v2811_v44  ;;  %v1925_v55 = vpop.permute.xlu1 %1924  ;;  %v1923_v0 = vpop.permute.xlu0 %1922  ;;  %v2789_v44 = vld [vmem:[#allocation4 + $0x588] sm:$0xff] }
 0x2cb   : > { %2921 = vmatpush1.msra.mxu0 %v2810_v8  ;;  %v1927_v56 = vsel %vm12376_vm6, %v1921_v21, %v1923_v0  ;;  %v1928_v57 = vsel %vm12376_vm6, %v1923_v0, %v1925_v55  ;;  %v2830_v40 = vld [vmem:[#allocation4 + $0x140] sm:$0xff]  ;;  %v2756_v21 = vld [vmem:[#allocation4 + $0x890] sm:$0xff]  ;;  %vm12409_vm6 = vcmask 31744  }
 0x2cc   : > { %1933 = vst [vmem:[#allocation4 + $0x1a8] sm:$0xf0] %v1927_v56  ;;  %1934 = vst [vmem:[#allocation4 + $0x310] sm:$0xf0] %v1928_v57  ;;  %2922 = vmatprep.subr.mxu0 %v2805_v22  ;;  %2670 = vrot.lane.b32.xlu1 %v9652_v54, %s12398_s2  ;;  %v2745_v55 = vld [vmem:[#allocation4 + $0x4d0] sm:$0xff]  ;;  %v2788_v56 = vld [vmem:[#allocation4 + $0x4d8] sm:$0xff] }
 0x2cd   : > { %2625 = vrot.lane.b32.xlu0 %v9630_v3, %s12390_s14  ;;  %2923 = vmatpush1.msra.mxu0 %v2804_v59  ;;  %v2744_v59 = vld [vmem:[#allocation4 + $0x8f8] sm:$0xff] }
 0x2ce   : > { %2924 = vmatprep.subr.mxu0 %v2799_v26  ;;  %v1944_v31 = vpop.permute.xlu1 %1943  ;;  %v1942_v35 = vpop.permute.xlu0 %1941  ;;  %v2783_v26 = vld [vmem:[#allocation4 + $0x58] sm:$0xff] }
 0x2cf   : > { %2925 = vmatpush1.msra.mxu0 %v2798_v58  ;;  %v1950_v15 = vsel %vm12385_vm4, %v1942_v35, %v1944_v31  ;;  %v2831_v13 = vld [vmem:[#allocation4 + $0x160] sm:$0xff]  ;;  %v2782_v58 = vld [vmem:[#allocation4 + $0x488] sm:$0xff] }
 0x2d0   : > { %1956 = vst [vmem:[#allocation4 + $0x1e8] sm:$0xf] %v1950_v15  ;;  %2926 = vmatprep.subr.mxu0 %v2793_v10  ;;  %2605 = vrot.lane.b32.xlu1 %v9645_v48, %s12390_s14  ;;  %v2738_v35 = vld [vmem:[#allocation4 + $0x4c8] sm:$0xff] }
 0x2d1   : > { %2672 = vrot.lane.b32.xlu0 %v9620_v34, %s12398_s2  ;;  %2927 = vmatpush1.msra.mxu0 %v2792_v60 }
 0x2d2   : > { %2991 = vmatprep.subr.mxu1 %v2831_v13  ;;  %2928 = vmatprep.subr.mxu0 %v2787_v16  ;;  %v1948_v14 = vpop.permute.xlu1 %1947  ;;  %v1946_v61 = vpop.permute.xlu0 %1945  ;;  %v2777_v13 = vld [vmem:[#allocation4 + $0x450] sm:$0xff] }
 0x2d3   : > { %2992 = vmatpush1.msra.mxu1 %v2830_v40  ;;  %2929 = vmatpush1.msra.mxu0 %v2786_v1  ;;  %v1951_v63 = vsel %vm12385_vm4, %v1944_v31, %v1946_v61  ;;  %v1952_v7 = vsel %vm12385_vm4, %v1946_v61, %v1948_v14  ;;  %v2739_v31 = vld [vmem:[#allocation4 + $0x808] sm:$0xff]  ;;  %v2771_v1 = vld [vmem:[#allocation4 + $0x5b8] sm:$0xff]  ;;  %vm12408_vm4 = vcmask 211968  }
 0x2d4   : > { %2993 = vmatprep.subr.mxu1 %v2825_v62  ;;  %1957 = vst [vmem:[#allocation4 + $0x8b8] sm:$0xf] %v1951_v63  ;;  %1958 = vst [vmem:[#allocation4 + $0x8c8] sm:$0xf] %v1952_v7  ;;  %2930 = vmatprep.subr.mxu0 %v2781_v12  ;;  %v2776_v14 = vld [vmem:[#allocation4 + $0x308] sm:$0xff]  ;;  %v2770_v63 = vld [vmem:[#allocation4 + $0x6f0] sm:$0xff] }
 0x2d5   : > { %2994 = vmatpush1.msra.mxu1 %v2824_v18  ;;  %2529 = vrot.lane.b32.xlu1 %v9620_v34, %s12394_s22  ;;  %v2765_v18 = vld [vmem:[#allocation4 + $0x268] sm:$0xff] }
 0x2d6   : > { %2652 = vrot.lane.b32.xlu0 %v9482_v9, %s12398_s2  ;;  %2931 = vmatpush1.msra.mxu0 %v2780_v19  ;;  %v9673_v24 = vpop.permute.xlu1 %2697  ;;  %v2696_v25 = vpop.permute.xlu0 %2695 }
 0x2d7   : > { %2995 = vmatprep.subr.mxu1 %v2819_v20  ;;  %2932 = vmatprep.subr.mxu0 %v2775_v23  ;;  %v2703_v28 = vsel %vm12406_vm3, %v2696_v25, %v9673_v24  ;;  %v2758_v23 = vld [vmem:[#allocation4 + $0x770] sm:$0xff] }
 0x2d8   : > { %2996 = vmatpush1.msra.mxu1 %v2818_v27  ;;  %2933 = vmatpush1.msra.mxu0 %v2774_v5  ;;  %2709 = vst [vmem:[#allocation4 + $0x678] sm:$0xf] %v2703_v28  ;;  %v2753_v28 = vld [vmem:[#allocation4 + $0x580] sm:$0xff] }
 0x2d9   : > { %2997 = vmatprep.subr.mxu1 %v2813_v29  ;;  %2934 = vmatprep.subr.mxu0 %v2769_v30  ;;  %v2747_v29 = vld [vmem:[#allocation4 + $0x6a8] sm:$0xff] }
 0x2da   : > { %2998 = vmatpush1.msra.mxu1 %v2812_v32  ;;  %2576 = vrot.lane.b32.xlu1 %v9652_v54, %s12396_s23  ;;  %v2602_v36 = vpop.permute.xlu1 %2601  ;;  %v2694_v37 = vpop.permute.xlu0 %2693 }
 0x2db   : > { %2531 = vrot.lane.b32.xlu0 %v9630_v3, %s12394_s22  ;;  %2935 = vmatpush1.msra.mxu0 %v2768_v33  ;;  %v2702_v41 = vsel %vm12406_vm3, %v2694_v37, %v2696_v25  ;;  %v2746_v33 = vld [vmem:[#allocation4 + $0x6e8] sm:$0xff]  ;;  %v2741_v37 = vld [vmem:[#allocation4 + $0x758] sm:$0xff] }
 0x2dc   : > { %2999 = vmatprep.subr.mxu1 %v2807_v38  ;;  %2936 = vmatprep.subr.mxu0 %v2763_v39  ;;  %2708 = vst [vmem:[#allocation4 + $0x50] sm:$0xf] %v2702_v41  ;;  %v9730_v38 = vcombine.high %v9544_v51, %v9544_v51  ;;  %v2740_v39 = vld [vmem:[#allocation4 + $0x7f8] sm:$0xff] }
 0x2dd   : > { %3000 = vmatpush1.msra.mxu1 %v2806_v42  ;;  %2937 = vmatpush1.msra.mxu0 %v2762_v43 }
 0x2de   : > { %3001 = vmatprep.subr.mxu1 %v2801_v45  ;;  %2938 = vmatprep.subr.mxu0 %v2757_v46  ;;  %v2649_v17 = vpop.permute.xlu1 %2648  ;;  %v9682_v49 = vpop.permute.xlu0 %2603 }
 0x2df   : > { %3002 = vmatpush1.msra.mxu1 %v2800_v47  ;;  %2511 = vrot.lane.b32.xlu1 %v9645_v48, %s12394_s22  ;;  %v2609_v50 = vsel %vm2607_vm2, %v2602_v36, %v9682_v49  ;;  %v2883_v60 = vld [vmem:[#allocation4 + $0x678] sm:$0xf] }
 0x2e0   : > { %2578 = vrot.lane.b32.xlu0 %v9620_v34, %s12396_s23  ;;  %2939 = vmatpush1.msra.mxu0 %v2756_v21  ;;  %2615 = vst [vmem:[#allocation4 + $0x3e0] sm:$0xf] %v2609_v50 }
 0x2e1   : > { %3003 = vmatprep.subr.mxu1 %v2795_v52  ;;  %2940 = vmatprep.subr.mxu0 %v2751_v4 }
 0x2e2   : > { %3004 = vmatpush1.msra.mxu1 %v2794_v53  ;;  %2941 = vmatpush1.msra.mxu0 %v2750_v2  ;;  %v2600_v8 = vpop.permute.xlu1 %2599  ;;  %v9690_v0 = vpop.permute.xlu0 %2650 }
 0x2e3   : > { %3005 = vmatprep.subr.mxu1 %v2789_v44  ;;  %2942 = vmatprep.subr.mxu0 %v2745_v55  ;;  %v2608_v57 = vsel %vm2607_vm2, %v2600_v8, %v2602_v36  ;;  %v2656_v22 = vsel %vm2654_vm1, %v2649_v17, %v9690_v0  ;;  %v2882_v16 = vld [vmem:[#allocation4 + $0x50] sm:$0xf] }
 0x2e4   : > { %3006 = vmatpush1.msra.mxu1 %v2788_v56  ;;  %2435 = vrot.lane.b32.xlu1 %v9620_v34, %s12392_s21  ;;  %2614 = vst [vmem:[#allocation4 + $0x7e0] sm:$0xf] %v2608_v57  ;;  %2662 = vst [vmem:[#allocation4 + $0x3e0] sm:$0xf0] %v2656_v22 }
 0x2e5   : > { %2558 = vrot.lane.b32.xlu0 %v9482_v9, %s12396_s23  ;;  %2943 = vmatpush1.msra.mxu0 %v2744_v59 }
 0x2e6   : > { %3007 = vmatprep.subr.mxu1 %v2783_v26  ;;  %2944 = vmatprep.subr.mxu0 %v2739_v31  ;;  %v2508_v15 = vpop.permute.xlu1 %2507  ;;  %v2647_v10 = vpop.permute.xlu0 %2646 }
 0x2e7   : > { %3008 = vmatpush1.msra.mxu1 %v2782_v58  ;;  %2945 = vmatpush1.msra.mxu0 %v2738_v35  ;;  %v2655_v40 = vsel %vm2654_vm1, %v2647_v10, %v2649_v17 }
 0x2e8   : > { %3009 = vmatprep.subr.mxu1 %v2777_v13  ;;  %7996 = vmatprep.subr.msk.mxu0 %vm2895_vm0, %v2883_v60  ;;  %2661 = vst [vmem:[#allocation4 + $0x7e0] sm:$0xf0] %v2655_v40 }
 0x2e9   : > { %3010 = vmatpush1.msra.mxu1 %v2776_v14  ;;  %2482 = vrot.lane.b32.xlu1 %v9652_v54, %s12383_s25  ;;  %v2764_v54 = vld [vmem:[#allocation4 + $0x10] sm:$0xff] }
 0x2ea   : > { %2437 = vrot.lane.b32.xlu0 %v9630_v3, %s12392_s21  ;;  %7997 = vmatpush2.msk.msra.mxu0 %vm2895_vm0, %v2882_v16  ;;  %v2555_v61 = vpop.permute.xlu1 %2554  ;;  %v9706_v62 = vpop.permute.xlu0 %2509  ;;  %v2759_v3 = vld [vmem:[#allocation4 + $0x480] sm:$0xff] }
 0x2eb   : > { %3011 = vmatprep.subr.mxu1 %v2771_v1  ;;  %v2515_v7 = vsel %vm12413_vm15, %v2508_v15, %v9706_v62  ;;  %v2877_v12 = vld [vmem:[#allocation4 + $0x3e0] sm:$0xff] }
 0x2ec   : > { %3012 = vmatpush1.msra.mxu1 %v2770_v63  ;;  %2521 = vst [vmem:[#allocation4 + $0x730] sm:$0xf] %v2515_v7  ;;  %2962 = vmatprep.subr.mxu0 %v2877_v12 }
 0x2ed   : > { %3013 = vmatprep.subr.mxu1 %v2765_v18  ;;  %2417 = vrot.lane.b32.xlu1 %v9645_v48, %s12392_s21  ;;  %v2752_v48 = vld [vmem:[#allocation4 + $0x570] sm:$0xff] }
 0x2ee   : > { %3014 = vmatpush1.msra.mxu1 %v2764_v54  ;;  %2484 = vrot.lane.b32.xlu0 %v9620_v34, %s12383_s25  ;;  %v2506_v19 = vpop.permute.xlu1 %2505  ;;  %v9714_v20 = vpop.permute.xlu0 %2556  ;;  %v9723_v34 = vcombine.low %v8743_v6, %v8743_v6 }
 0x2ef   : > { %3015 = vmatprep.subr.mxu1 %v2759_v3  ;;  %v2514_v25 = vsel %vm12413_vm15, %v2506_v19, %v2508_v15  ;;  %v2562_v27 = vsel %vm2560_vm10, %v2555_v61, %v9714_v20  ;;  %v2876_v5 = vld [vmem:[#allocation4 + $0x7e0] sm:$0xff] }
 0x2f0   : > { %3016 = vmatpush1.msra.mxu1 %v2758_v23  ;;  %2520 = vst [vmem:[#allocation4 + $0x1d8] sm:$0xf] %v2514_v25  ;;  %2568 = vst [vmem:[#allocation4 + $0x730] sm:$0xf0] %v2562_v27  ;;  %2963 = vmatpush2.msra.mxu0 %v2876_v5 }
 0x2f1   : > { %3017 = vmatprep.subr.mxu1 %v2753_v28  ;;  %2341 = vrot.lane.b32.xlu1 %v8743_v6, %s12380_s15 }
 0x2f2   : > { %3018 = vmatpush1.msra.mxu1 %v2752_v48  ;;  %2464 = vrot.lane.b32.xlu0 %v9482_v9, %s12383_s25  ;;  %v2414_v30 = vpop.permute.xlu1 %2413  ;;  %v2553_v32 = vpop.permute.xlu0 %2552  ;;  %s12533_s25 = smov 28  }
 0x2f3   : > { %3019 = vmatprep.subr.mxu1 %v2747_v29  ;;  %v2561_v36 = vsel %vm2560_vm10, %v2553_v32, %v2555_v61 }
 0x2f4   : > { %3020 = vmatpush1.msra.mxu1 %v2746_v33  ;;  %2567 = vst [vmem:[#allocation4 + $0x1d8] sm:$0xf0] %v2561_v36 }
 0x2f5   : > { %3021 = vmatprep.subr.mxu1 %v2741_v37  ;;  %2388 = vrot.lane.b32.xlu1 %v9723_v34, %s12377_s10 }
 0x2f6   : > { %3022 = vmatpush1.msra.mxu1 %v2740_v39  ;;  %2343 = vrot.lane.b32.xlu0 %v8765_v11, %s12380_s15  ;;  %v2461_v9 = vpop.permute.xlu1 %2460  ;;  %v9736_v41 = vpop.permute.xlu0 %2415 }
 0x2f7   : > { %v2421_v42 = vsel %vm12410_vm12, %v2414_v30, %v9736_v41  ;;  %v2871_v43 = vld [vmem:[#allocation4 + $0x730] sm:$0xff] }
 0x2f8   : > { %2427 = vst [vmem:[#allocation4 + $0x858] sm:$0xf] %v2421_v42  ;;  %2964 = vmatprep.subr.mxu0 %v2871_v43 }
 0x2f9   : > { %2323 = vrot.lane.b32.xlu1 %v9730_v38, %s12380_s15  ;;  %s12532_s15 = smov 8  }
 0x2fa   : > { %2390 = vrot.lane.b32.xlu0 %v8743_v6, %s12377_s10  ;;  %v2412_v45 = vpop.permute.xlu1 %2411  ;;  %v9744_v46 = vpop.permute.xlu0 %2462 }
 0x2fb   : > { %v2420_v47 = vsel %vm12410_vm12, %v2412_v45, %v2414_v30  ;;  %v2468_v17 = vsel %vm12411_vm9, %v2461_v9, %v9744_v46  ;;  %v2870_v21 = vld [vmem:[#allocation4 + $0x1d8] sm:$0xff] }
 0x2fc   : > { %2426 = vst [vmem:[#allocation4 + $0x3d0] sm:$0xf] %v2420_v47  ;;  %2474 = vst [vmem:[#allocation4 + $0x858] sm:$0xf0] %v2468_v17  ;;  %2965 = vmatpush2.msra.mxu0 %v2870_v21  ;;  %v9825_v30 = vld [vmem:[%s8707_s13 + $0x20] sm:$0xff] }
 0x2fd   : > { %2247 = vrot.lane.b32.xlu1 %v8743_v6, %s12374_s24  ;;  %v2669_v47 = vcombine.low %v9825_v30, %v9825_v30 }
 0x2fe   : > { %2370 = vrot.lane.b32.xlu0 %v9544_v51, %s12377_s10  ;;  %v2320_v50 = vpop.permute.xlu1 %2319  ;;  %v2459_v52 = vpop.permute.xlu0 %2458  ;;  %s12531_s10 = smov 26  }
 0x2ff   : > { %v2467_v4 = vsel %vm12411_vm9, %v2459_v52, %v2461_v9 }
 0x300   : > { %2473 = vst [vmem:[#allocation4 + $0x3d0] sm:$0xf0] %v2467_v4 }
 0x301   : > { %2294 = vrot.lane.b32.xlu1 %v9723_v34, %s12528_s20 }
 0x302   : > { %2249 = vrot.lane.b32.xlu0 %v8765_v11, %s12374_s24  ;;  %v2367_v53 = vpop.permute.xlu1 %2366  ;;  %v9758_v2 = vpop.permute.xlu0 %2321 }
 0x303   : > { %v2327_v44 = vsel %vm12404_vm14, %v2320_v50, %v9758_v2  ;;  %v2865_v55 = vld [vmem:[#allocation4 + $0x858] sm:$0xff] }
 0x304   : > { %2333 = vst [vmem:[#allocation4 + $0x100] sm:$0xf] %v2327_v44  ;;  %2966 = vmatprep.subr.mxu0 %v2865_v55 }
 0x305   : > { %2229 = vrot.lane.b32.xlu1 %v9730_v38, %s12374_s24  ;;  %s12530_s24 = smov 6  }
 0x306   : > { %2296 = vrot.lane.b32.xlu0 %v8743_v6, %s12528_s20  ;;  %v2318_v8 = vpop.permute.xlu1 %2317  ;;  %v9766_v56 = vpop.permute.xlu0 %2368 }
 0x307   : > { %v2326_v57 = vsel %vm12404_vm14, %v2318_v8, %v2320_v50  ;;  %v2374_v22 = vsel %vm12403_vm8, %v2367_v53, %v9766_v56  ;;  %v2864_v59 = vld [vmem:[#allocation4 + $0x3d0] sm:$0xff] }
 0x308   : > { %2332 = vst [vmem:[#allocation4 + $0x8d0] sm:$0xf] %v2326_v57  ;;  %2380 = vst [vmem:[#allocation4 + $0x100] sm:$0xf0] %v2374_v22  ;;  %2967 = vmatpush2.msra.mxu0 %v2864_v59 }
 0x309   : > { %2153 = vrot.lane.b32.xlu1 %v8743_v6, %s12529_s12 }
 0x30a   : > { %2276 = vrot.lane.b32.xlu0 %v9544_v51, %s12528_s20  ;;  %v2226_v26 = vpop.permute.xlu1 %2225  ;;  %v2365_v31 = vpop.permute.xlu0 %2364 }
 0x30b   : > { %v2373_v58 = vsel %vm12403_vm8, %v2365_v31, %v2367_v53  ;;  %v9871_v31 = vld [vmem:[%s12527_s1] sm:$0xff] }
 0x30c   : > { %2379 = vst [vmem:[#allocation4 + $0x8d0] sm:$0xf0] %v2373_v58  ;;  %v2833_v58 = vld [vmem:[#allocation4 + $0x310] sm:$0xff] }
 0x30d   : > { %2200 = vrot.lane.b32.xlu1 %v9723_v34, %s12530_s24 }
 0x30e   : > { %2155 = vrot.lane.b32.xlu0 %v8765_v11, %s12529_s12  ;;  %v2273_v35 = vpop.permute.xlu1 %2272  ;;  %v9780_v15 = vpop.permute.xlu0 %2227 }
 0x30f   : > { %v2233_v10 = vsel %vm12402_vm7, %v2226_v26, %v9780_v15  ;;  %v2859_v13 = vld [vmem:[#allocation4 + $0x100] sm:$0xff] }
 0x310   : > { %2239 = vst [vmem:[#allocation4 + $0x388] sm:$0xf] %v2233_v10  ;;  %2968 = vmatprep.subr.mxu0 %v2859_v13 }
 0x311   : > { %2135 = vrot.lane.b32.xlu1 %v9730_v38, %s12529_s12 }
 0x312   : > { %2202 = vrot.lane.b32.xlu0 %v8743_v6, %s12530_s24  ;;  %v2224_v60 = vpop.permute.xlu1 %2223  ;;  %v9788_v16 = vpop.permute.xlu0 %2274 }
 0x313   : > { %v2232_v40 = vsel %vm12402_vm7, %v2224_v60, %v2226_v26  ;;  %v2280_v14 = vsel %vm12409_vm6, %v2273_v35, %v9788_v16  ;;  %v2858_v1 = vld [vmem:[#allocation4 + $0x8d0] sm:$0xff] }
 0x314   : > { %2238 = vst [vmem:[#allocation4 + $0x238] sm:$0xf] %v2232_v40  ;;  %2286 = vst [vmem:[#allocation4 + $0x388] sm:$0xf0] %v2280_v14  ;;  %2969 = vmatpush2.msra.mxu0 %v2858_v1  ;;  %v2827_v40 = vld [vmem:[#allocation4 + $0x378] sm:$0xff]  ;;  %v2826_v14 = vld [vmem:[#allocation4 + $0x1a0] sm:$0xff] }
 0x315   : > { %2059 = vrot.lane.b32.xlu1 %v8743_v6, %s12531_s10 }
 0x316   : > { %2182 = vrot.lane.b32.xlu0 %v9544_v51, %s12530_s24  ;;  %v2132_v61 = vpop.permute.xlu1 %2131  ;;  %v2271_v63 = vpop.permute.xlu0 %2270 }
 0x317   : > { %v2279_v7 = vsel %vm12409_vm6, %v2271_v63, %v2273_v35  ;;  %v9886_v63 = vld [vmem:[%s8707_s13 + $0x1c] sm:$0xff]  ;;  %s12535_s13 = smov 3  }
 0x318   : > { %2285 = vst [vmem:[#allocation4 + $0x238] sm:$0xf0] %v2279_v7 }
 0x319   : > { %2106 = vrot.lane.b32.xlu1 %v9723_v34, %s12532_s15 }
 0x31a   : > { %2061 = vrot.lane.b32.xlu0 %v8765_v11, %s12531_s10  ;;  %v2179_v12 = vpop.permute.xlu1 %2178  ;;  %v9802_v18 = vpop.permute.xlu0 %2133 }
 0x31b   : > { %v2139_v54 = vsel %vm12387_vm13, %v2132_v61, %v9802_v18  ;;  %v2853_v3 = vld [vmem:[#allocation4 + $0x388] sm:$0xff] }
 0x31c   : > { %2145 = vst [vmem:[#allocation4 + $0x158] sm:$0xf] %v2139_v54  ;;  %2970 = vmatprep.subr.mxu0 %v2853_v3  ;;  %v2820_v54 = vld [vmem:[#allocation4 + $0x348] sm:$0xff] }
 0x31d   : > { %2041 = vrot.lane.b32.xlu1 %v9730_v38, %s12531_s10 }
 0x31e   : > { %2108 = vrot.lane.b32.xlu0 %v8743_v6, %s12532_s15  ;;  %v2130_v19 = vpop.permute.xlu1 %2129  ;;  %v9810_v23 = vpop.permute.xlu0 %2180 }
 0x31f   : > { %v2138_v25 = vsel %vm12387_vm13, %v2130_v19, %v2132_v61  ;;  %v2186_v27 = vsel %vm12386_vm11, %v2179_v12, %v9810_v23  ;;  %v2852_v5 = vld [vmem:[#allocation4 + $0x238] sm:$0xff]  ;;  %vm12407_vm13 = vcmask 220160  }
 0x320   : > { %2144 = vst [vmem:[#allocation4 + $0x608] sm:$0xf] %v2138_v25  ;;  %2192 = vst [vmem:[#allocation4 + $0x158] sm:$0xf0] %v2186_v27  ;;  %2971 = vmatpush2.msra.mxu0 %v2852_v5  ;;  %v2821_v61 = vld [vmem:[#allocation4 + $0x698] sm:$0xff]  ;;  %v9898_v25 = vcombine.high %v9886_v63, %v9886_v63 }
 0x321   : > { %1965 = vrot.lane.b32.xlu1 %v8743_v6, %s12533_s25  ;;  %v2814_v27 = vld [vmem:[#allocation4 + $0x2b8] sm:$0xff] }
 0x322   : > { %2088 = vrot.lane.b32.xlu0 %v9544_v51, %s12532_s15  ;;  %v2038_v28 = vpop.permute.xlu1 %2037  ;;  %v2177_v48 = vpop.permute.xlu0 %2176 }
 0x323   : > { %v2185_v29 = vsel %vm12386_vm11, %v2177_v48, %v2179_v12  ;;  %vm2090_vm11 = vcmask 64512  }
 0x324   : > { %2191 = vst [vmem:[#allocation4 + $0x608] sm:$0xf0] %v2185_v29  ;;  %v2808_v29 = vld [vmem:[#allocation4 + $0x818] sm:$0xff] }
 0x325   : > { %2012 = vrot.lane.b32.xlu1 %v9723_v34, %s12400_s19  ;;  %v2716_v34 = vcombine.high %v9825_v30, %v9825_v30 }
 0x326   : > { %1967 = vrot.lane.b32.xlu0 %v8765_v11, %s12533_s25  ;;  %v2085_v32 = vpop.permute.xlu1 %2084  ;;  %v9827_v33 = vpop.permute.xlu0 %2039 }
 0x327   : > { %v2045_v36 = vsel %vm12408_vm4, %v2038_v28, %v9827_v33  ;;  %v2847_v37 = vld [vmem:[#allocation4 + $0x158] sm:$0xff] }
 0x328   : > { %2051 = vst [vmem:[#allocation4 + $0x2f8] sm:$0xf] %v2045_v36  ;;  %2972 = vmatprep.subr.mxu0 %v2847_v37  ;;  %v9910_v36 = vcombine.low %v9886_v63, %v9886_v63  ;;  %v2802_v37 = vld [vmem:[#allocation4 + $0x768] sm:$0xff] }
 0x329   : > { %2721 = vrot.lane.b32.xlu1 %v9825_v30, %s12388_s16 }
 0x32a   : > { %2014 = vrot.lane.b32.xlu0 %v8743_v6, %s12400_s19  ;;  %v2036_v11 = vpop.permute.xlu1 %2035  ;;  %v9837_v38 = vpop.permute.xlu0 %2086 }
 0x32b   : > { %v2044_v39 = vsel %vm12408_vm4, %v2036_v11, %v2038_v28  ;;  %v2092_v9 = vsel %vm2090_vm11, %v2085_v32, %v9837_v38  ;;  %v2846_v42 = vld [vmem:[#allocation4 + $0x608] sm:$0xff]  ;;  %v2809_v28 = vld [vmem:[#allocation4 + $0x640] sm:$0xff] }
 0x32c   : > { %2050 = vst [vmem:[#allocation4 + $0x2e8] sm:$0xf] %v2044_v39  ;;  %2098 = vst [vmem:[#allocation4 + $0x2f8] sm:$0xf0] %v2092_v9  ;;  %2973 = vmatpush2.msra.mxu0 %v2846_v42  ;;  %v2796_v39 = vld [vmem:[#allocation4 + $0x70] sm:$0xff] }
 0x32d   : > { %1994 = vrot.lane.b32.xlu1 %v9544_v51, %s12400_s19  ;;  %s12538_s19 = smov 27  }
 0x32e   : > { %2723 = vrot.lane.b32.xlu0 %v2716_v34, %s12388_s16  ;;  %v1991_v43 = vpop.permute.xlu1 %1990  ;;  %v2083_v45 = vpop.permute.xlu0 %2082  ;;  %s12536_s16 = smov 2  }
 0x32f   : > { %v2091_v6 = vsel %vm2090_vm11, %v2083_v45, %v2085_v32  ;;  %v2803_v32 = vld [vmem:[#allocation4 + $0x668] sm:$0xff]  ;;  %v2790_v45 = vld [vmem:[#allocation4 + $0x600] sm:$0xff] }
 0x330   : > { %2097 = vst [vmem:[#allocation4 + $0x2e8] sm:$0xf0] %v2091_v6  ;;  %v2785_v6 = vld [vmem:[#allocation4 + $0x618] sm:$0xff] }
 0x331   : > { %2629 = vrot.lane.b32.xlu1 %v2716_v34, %s12390_s14 }
 0x332   : > { %2627 = vrot.lane.b32.xlu0 %v9825_v30, %s12390_s14  ;;  %v1989_v17 = vpop.permute.xlu1 %1988  ;;  %v9851_v21 = vpop.permute.xlu0 %1992  ;;  %s12534_s14 = smov 111  }
 0x333   : > { %v1997_v51 = vsel %vm12407_vm13, %v1989_v17, %v1991_v43  ;;  %v1998_v50 = vsel %vm12407_vm13, %v1991_v43, %v9851_v21  ;;  %v2841_v52 = vld [vmem:[#allocation4 + $0x2f8] sm:$0xff]  ;;  %v2791_v43 = vld [vmem:[#allocation4 + $0x2f0] sm:$0xff]  ;;  %v2784_v17 = vld [vmem:[#allocation4 + $0x4a8] sm:$0xff] }
 0x334   : > { %2003 = vst [vmem:[#allocation4 + $0x1e8] sm:$0xf0] %v1997_v51  ;;  %2004 = vst [vmem:[#allocation4 + $0x8b8] sm:$0xf0] %v1998_v50  ;;  %2974 = vmatprep.subr.mxu0 %v2841_v52 }
 0x335   : > { %2676 = vrot.lane.b32.xlu1 %v9825_v30, %s12398_s2 }
 0x336   : > { %2674 = vrot.lane.b32.xlu0 %v2669_v47, %s12398_s2  ;;  %v9859_v4 = vpop.permute.xlu1 %2719  ;;  %v2718_v53 = vpop.permute.xlu0 %2717  ;;  %s12416_s2 = smov 38  }
 0x337   : > { %v2725_v44 = vsel %vm12406_vm3, %v2718_v53, %v9859_v4  ;;  %v2840_v55 = vld [vmem:[#allocation4 + $0x2e8] sm:$0xff]  ;;  %v2779_v53 = vld [vmem:[#allocation4 + $0x280] sm:$0xff] }
 0x338   : > { %2731 = vst [vmem:[#allocation4 + $0x530] sm:$0xf] %v2725_v44  ;;  %2975 = vmatpush2.msra.mxu0 %v2840_v55  ;;  %v2778_v55 = vld [vmem:[#allocation4 + $0x7c8] sm:$0xff] }
 0x339   : > { %2535 = vrot.lane.b32.xlu1 %v2716_v34, %s12394_s22 }
 0x33a   : > { %2533 = vrot.lane.b32.xlu0 %v9825_v30, %s12394_s22  ;;  %v2624_v8 = vpop.permute.xlu1 %2623  ;;  %s12414_s22 = smov 115  }
 0x33b   : > { %v2700_v57 = vpop.permute.xlu0 %2699  ;;  %v2835_v22 = vld [vmem:[#allocation4 + $0x8b8] sm:$0xff]  ;;  %v2834_v59 = vld [vmem:[#allocation4 + $0x1e8] sm:$0xff] }
 0x33c   : > { %v2704_v26 = vsel %vm12406_vm3, %v9673_v24, %v2700_v57  ;;  %2976 = vmatprep.subr.mxu0 %v2835_v22  ;;  %v2832_v24 = vld [vmem:[#allocation4 + $0x1a8] sm:$0xff]  ;;  %v2772_v57 = vld [vmem:[#allocation4 + $0x800] sm:$0xff] }
 0x33d   : > { %2582 = vrot.lane.b32.xlu1 %v9825_v30, %s12396_s23  ;;  %2710 = vst [vmem:[#allocation4 + $0x148] sm:$0xf] %v2704_v26  ;;  %2977 = vmatpush2.msra.mxu0 %v2834_v59  ;;  %v2767_v22 = vld [vmem:[#allocation4 + $0x540] sm:$0xff]  ;;  %v2766_v26 = vld [vmem:[#allocation4 + $0x648] sm:$0xff] }
 0x33e   : > { %2580 = vrot.lane.b32.xlu0 %v2669_v47, %s12396_s23  ;;  %v2671_v35 = vpop.permute.xlu1 %2670  ;;  %3068 = vmatprep.subr.mxu0 %v2833_v58  ;;  %s12578_s23 = smov 78  }
 0x33f   : > { %v9876_v10 = vpop.permute.xlu0 %2625  ;;  %2979 = vmatmul.mubr.f32.vlgmr.msra.gmra.mxu0 %v9871_v31  ;;  %v2885_v13 = vld [vmem:[#allocation4 + $0x530] sm:$0xf] }
 0x340   : > { %v2631_v60 = vsel %vm2607_vm2, %v2624_v8, %v9876_v10  ;;  %3069 = vmatpush1.msra.mxu0 %v2832_v24  ;;  %8000 = vmatprep.subr.msk.mxu1 %vm2895_vm0, %v2885_v13  ;;  %v2773_v8 = vld [vmem:[#allocation4 + $0x900] sm:$0xff]  ;;  %v2760_v24 = vld [vmem:[#allocation4 + $0x370] sm:$0xff] }
 0x341   : > { %2441 = vrot.lane.b32.xlu1 %v2716_v34, %s12392_s21  ;;  %2637 = vst [vmem:[#allocation4 + $0x8e8] sm:$0xf] %v2631_v60  ;;  %3070 = vmatprep.subr.mxu0 %v2827_v40  ;;  %v2797_v34 = vld [vmem:[#allocation4 + $0x6b0] sm:$0xff]  ;;  %v2755_v13 = vld [vmem:[#allocation4 + $0x8e0] sm:$0xff] }
 0x342   : > { %2439 = vrot.lane.b32.xlu0 %v9825_v30, %s12392_s21  ;;  %3071 = vmatpush1.msra.mxu0 %v2826_v14  ;;  %v2606_v1 = vpop.permute.xlu1 %2605  ;;  %s12537_s21 = smov 5   ;;  %v2754_v14 = vld [vmem:[#allocation4 + $0x3a8] sm:$0xff] }
 0x343   : > { %v2610_v7 = vsel %vm2607_vm2, %v9682_v49, %v2606_v1  ;;  %v9890_v12 = vpop.permute.xlu0 %2672  ;;  %3072 = vmatprep.subr.mxu0 %v2821_v61  ;;  %v2815_v49 = vld [vmem:[#allocation4 + $0xb8] sm:$0xff] }
 0x344   : > { %2616 = vst [vmem:[#allocation4 + $0x4b8] sm:$0xf] %v2610_v7  ;;  %v2678_v3 = vsel %vm2654_vm1, %v2671_v35, %v9890_v12  ;;  %3073 = vmatpush1.msra.mxu0 %v2820_v54  ;;  %v2884_v19 = vld [vmem:[#allocation4 + $0x148] sm:$0xf]  ;;  %v2761_v35 = vld [vmem:[#allocation4 + $0x90] sm:$0xff]  ;;  %v2743_v54 = vld [vmem:[#allocation4 + $0x438] sm:$0xff] }
 0x345   : > { %2488 = vrot.lane.b32.xlu1 %v9825_v30, %s12534_s14  ;;  %2684 = vst [vmem:[#allocation4 + $0x8e8] sm:$0xf0] %v2678_v3  ;;  %8001 = vmatpush2.msk.msra.mxu1 %vm2895_vm0, %v2884_v19  ;;  %v2748_v7 = vld [vmem:[#allocation4 + $0x750] sm:$0xff]  ;;  %v2742_v19 = vld [vmem:[#allocation4 + $0x320] sm:$0xff] }
 0x346   : > { %2486 = vrot.lane.b32.xlu0 %v2669_v47, %s12534_s14  ;;  %3074 = vmatprep.subr.mxu0 %v2815_v49 }
 0x347   : > { %3075 = vmatpush1.msra.mxu0 %v2814_v27  ;;  %v2530_v5 = vpop.permute.xlu1 %2529 }
 0x348   : > { %v2653_v48 = vpop.permute.xlu0 %2652  ;;  %3076 = vmatprep.subr.mxu0 %v2809_v28 }
 0x349   : > { %2347 = vrot.lane.b32.xlu1 %v9898_v25, %s12535_s13  ;;  %v2657_v30 = vsel %vm2654_vm1, %v9690_v0, %v2653_v48  ;;  %3077 = vmatpush1.msra.mxu0 %v2808_v29  ;;  %v9966_v29 = vld [vmem:[%s12527_s1 + $0x10] sm:$0xff] }
 0x34a   : > { %2345 = vrot.lane.b32.xlu0 %v9886_v63, %s12535_s13  ;;  %2663 = vst [vmem:[#allocation4 + $0x4b8] sm:$0xf0] %v2657_v30  ;;  %3078 = vmatprep.subr.mxu0 %v2803_v32 }
 0x34b   : > { %3079 = vmatpush1.msra.mxu0 %v2802_v37  ;;  %v8260_v37 = vld [vmem:[%s12527_s1 + $0x8] sm:$0xff] }
 0x34c   : > { %v2577_v11 = vpop.permute.xlu1 %2576  ;;  %3080 = vmatprep.subr.mxu0 %v2797_v34  ;;  %v2879_v9 = vld [vmem:[#allocation4 + $0x8e8] sm:$0xff] }
 0x34d   : > { %2394 = vrot.lane.b32.xlu1 %v9886_v63, %s12536_s16  ;;  %v9914_v0 = vpop.permute.xlu0 %2531  ;;  %3081 = vmatpush1.msra.mxu0 %v2796_v39 }
 0x34e   : > { %2392 = vrot.lane.b32.xlu0 %v9910_v36, %s12536_s16  ;;  %v2537_v42 = vsel %vm12413_vm15, %v2530_v5, %v9914_v0  ;;  %3039 = vmatprep.subr.mxu1 %v2879_v9 }
 0x34f   : > { %2543 = vst [vmem:[#allocation4 + $0x5d8] sm:$0xf] %v2537_v42  ;;  %3082 = vmatprep.subr.mxu0 %v2791_v43 }
 0x350   : > { %3083 = vmatpush1.msra.mxu0 %v2790_v45 }
 0x351   : > { %2253 = vrot.lane.b32.xlu1 %v9898_v25, %s12537_s21  ;;  %v2512_v47 = vpop.permute.xlu1 %2511  ;;  %3084 = vmatprep.subr.mxu0 %v2785_v6  ;;  %v2878_v51 = vld [vmem:[#allocation4 + $0x4b8] sm:$0xff]  ;;  %v8470_v6 = vmov 0  }
 0x352   : > { %2251 = vrot.lane.b32.xlu0 %v9886_v63, %s12537_s21  ;;  %v2516_v50 = vsel %vm12413_vm15, %v9706_v62, %v2512_v47  ;;  %v9926_v52 = vpop.permute.xlu0 %2578  ;;  %3085 = vmatpush1.msra.mxu0 %v2784_v17  ;;  %v10008_v17 = vld [vmem:[%s12540_s5] sm:$0xff] }
 0x353   : > { %2522 = vst [vmem:[#allocation4 + $0x420] sm:$0xf] %v2516_v50  ;;  %v2584_v44 = vsel %vm2560_vm10, %v2577_v11, %v9926_v52  ;;  %3040 = vmatpush2.msra.mxu1 %v2878_v51  ;;  %3086 = vmatprep.subr.mxu0 %v2779_v53 }
 0x354   : > { %2590 = vst [vmem:[#allocation4 + $0x5d8] sm:$0xf0] %v2584_v44  ;;  %3087 = vmatpush1.msra.mxu0 %v2778_v55  ;;  %8218 = vset.pattern.permute.xlu0 %v8470_v6 }
 0x355   : > { %2300 = vrot.lane.b32.xlu1 %v9886_v63, %s12528_s20  ;;  %3088 = vmatprep.subr.mxu0 %v2773_v8 }
 0x356   : > { %2298 = vrot.lane.b32.xlu0 %v9910_v36, %s12528_s20  ;;  %v2436_v62 = vpop.permute.xlu1 %2435  ;;  %3089 = vmatpush1.msra.mxu0 %v2772_v57 }
 0x357   : > { %v2559_v59 = vpop.permute.xlu0 %2558  ;;  %3090 = vmatprep.subr.mxu0 %v2767_v22  ;;  %8219 = vset.pattern.permute.xlu1 %v8470_v6 }
 0x358   : > { %v2563_v58 = vsel %vm2560_vm10, %v9714_v20, %v2559_v59  ;;  %3091 = vmatpush1.msra.mxu0 %v2766_v26  ;;  %v2749_v20 = vld [vmem:[#allocation4 + $0x300] sm:$0xff] }
 0x359   : > { %2569 = vst [vmem:[#allocation4 + $0x420] sm:$0xf0] %v2563_v58  ;;  %2159 = vrot.lane.b32.xlu1 %v9898_v25, %s12529_s12  ;;  %3092 = vmatprep.subr.mxu0 %v2761_v35 }
 0x35a   : > { %2157 = vrot.lane.b32.xlu0 %v9886_v63, %s12529_s12  ;;  %3093 = vmatpush1.msra.mxu0 %v2760_v24 }
 0x35b   : > { %v2483_v60 = vpop.permute.xlu1 %2482  ;;  %v2873_v40 = vld [vmem:[#allocation4 + $0x5d8] sm:$0xff]  ;;  %3094 = vmatprep.subr.mxu0 %v2755_v13 }
 0x35c   : > { %v9940_v1 = vpop.permute.xlu0 %2437  ;;  %3041 = vmatprep.subr.mxu1 %v2873_v40  ;;  %3095 = vmatpush1.msra.mxu0 %v2754_v14 }
 0x35d   : > { %v2443_v61 = vsel %vm12410_vm12, %v2436_v62, %v9940_v1  ;;  %2206 = vrot.lane.b32.xlu1 %v9886_v63, %s12530_s24  ;;  %3096 = vmatprep.subr.mxu0 %v2749_v20 }
 0x35e   : > { %2449 = vst [vmem:[#allocation4 + $0x500] sm:$0xf] %v2443_v61  ;;  %2204 = vrot.lane.b32.xlu0 %v9910_v36, %s12530_s24  ;;  %3097 = vmatpush1.msra.mxu0 %v2748_v7 }
 0x35f   : > { %v2418_v3 = vpop.permute.xlu1 %2417  ;;  %3098 = vmatprep.subr.mxu0 %v2743_v54 }
 0x360   : > { %v2422_v49 = vsel %vm12410_vm12, %v9736_v41, %v2418_v3  ;;  %v9950_v27 = vpop.permute.xlu0 %2484  ;;  %v2872_v5 = vld [vmem:[#allocation4 + $0x420] sm:$0xff]  ;;  %3099 = vmatpush1.msra.mxu0 %v2742_v19  ;;  %v9961_v41 = vld [vmem:[%s12527_s1 + $0x18] sm:$0xff]  ;;  %s12579_s1 = smov 77  }
 0x361   : > { %2428 = vst [vmem:[#allocation4 + $0x2c8] sm:$0xf] %v2422_v49  ;;  %v2490_v28 = vsel %vm12411_vm9, %v2483_v60, %v9950_v27  ;;  %2065 = vrot.lane.b32.xlu1 %v9898_v25, %s12531_s10  ;;  %3042 = vmatpush2.msra.mxu1 %v2872_v5 }
 0x362   : > { %2496 = vst [vmem:[#allocation4 + $0x500] sm:$0xf0] %v2490_v28  ;;  %2063 = vrot.lane.b32.xlu0 %v9886_v63, %s12531_s10  ;;  %7999 = vmatprep.mubr.msk.f32.mxu0 %vm12405_vm5, %v9961_v41 }
 0x363   : > { %v2342_v48 = vpop.permute.xlu1 %2341  ;;  %2985 = vmatmul.mubr.f32.gmra.mxu0 %v9966_v29 }
 0x364   : > { %v2465_v30 = vpop.permute.xlu0 %2464  ;;  %8006 = vmatprep.mubr.msk.f32.mxu0 %vm12405_vm5, %v8260_v37 }
 0x365   : > { %v2469_v32 = vsel %vm12411_vm9, %v9744_v46, %v2465_v30  ;;  %2112 = vrot.lane.b32.xlu1 %v9886_v63, %s12532_s15 }
 0x366   : > { %2475 = vst [vmem:[#allocation4 + $0x2c8] sm:$0xf0] %v2469_v32  ;;  %2110 = vrot.lane.b32.xlu0 %v9910_v36, %s12532_s15 }
 0x367   : > { %v2389_v34 = vpop.permute.xlu1 %2388 }
 0x368   : > { %v9981_v11 = vpop.permute.xlu0 %2343 }
 0x369   : > { %v2349_v46 = vsel %vm12404_vm14, %v2342_v48, %v9981_v11  ;;  %1971 = vrot.lane.b32.xlu1 %v9898_v25, %s12533_s25  ;;  %v2867_v39 = vld [vmem:[#allocation4 + $0x500] sm:$0xff] }
 0x36a   : > { %2355 = vst [vmem:[#allocation4 + $0x130] sm:$0xf] %v2349_v46  ;;  %1969 = vrot.lane.b32.xlu0 %v9886_v63, %s12533_s25  ;;  %3043 = vmatprep.subr.mxu1 %v2867_v39 }
 0x36b   : > { %v2324_v9 = vpop.permute.xlu1 %2323 }
 0x36c   : > { %v2328_v42 = vsel %vm12404_vm14, %v9758_v2, %v2324_v9  ;;  %v9991_v43 = vpop.permute.xlu0 %2390  ;;  %v10003_v2 = vld [vmem:[%s12539_s6] sm:$0xff]  ;;  %vm12543_vm14 = vcmask 48128  }
 0x36d   : > { %2334 = vst [vmem:[#allocation4 + $0x5e8] sm:$0xf] %v2328_v42  ;;  %v2396_v45 = vsel %vm12403_vm8, %v2389_v34, %v9991_v43  ;;  %2018 = vrot.lane.b32.xlu1 %v9886_v63, %s12538_s19  ;;  %v2866_v25 = vld [vmem:[#allocation4 + $0x2c8] sm:$0xff] }
 0x36e   : > { %2402 = vst [vmem:[#allocation4 + $0x130] sm:$0xf0] %v2396_v45  ;;  %2016 = vrot.lane.b32.xlu0 %v9910_v36, %s12538_s19  ;;  %3044 = vmatpush2.msra.mxu1 %v2866_v25 }
 0x36f   : > { %v2248_v47 = vpop.permute.xlu1 %2247 }
 0x370   : > { %v2371_v63 = vpop.permute.xlu0 %2370 }
 0x371   : > { %v2375_v51 = vsel %vm12403_vm8, %v9766_v56, %v2371_v63  ;;  %3160 = vperm.xlu1 %8219, %v10003_v2  }
 0x372   : > { %2381 = vst [vmem:[#allocation4 + $0x5e8] sm:$0xf0] %v2375_v51  ;;  %3148 = vperm.xlu0 %8218, %v10008_v17  }
 0x373   : > { %v2295_v36 = vpop.permute.xlu1 %2294 }
 0x374   : > { %v10015_v50 = vpop.permute.xlu0 %2249 }
 0x375   : > { %v2255_v53 = vsel %vm12402_vm7, %v2248_v47, %v10015_v50  ;;  %v2861_v44 = vld [vmem:[#allocation4 + $0x130] sm:$0xff] }
 0x376   : > { %2261 = vst [vmem:[#allocation4 + $0x468] sm:$0xf] %v2255_v53  ;;  %3045 = vmatprep.subr.mxu1 %v2861_v44 }
 0x377   : > { %v2230_v55 = vpop.permute.xlu1 %2229 }
 0x378   : > { %v2234_v8 = vsel %vm12402_vm7, %v9780_v15, %v2230_v55  ;;  %v10021_v57 = vpop.permute.xlu0 %2296  ;;  %vm12541_vm7 = vcmask 56320  }
 0x379   : > { %2240 = vst [vmem:[#allocation4 + $0x850] sm:$0xf] %v2234_v8  ;;  %v2302_v56 = vsel %vm12409_vm6, %v2295_v36, %v10021_v57  ;;  %v2860_v62 = vld [vmem:[#allocation4 + $0x5e8] sm:$0xff]  ;;  %vm12542_vm8 = vmmov %vm12541_vm7 }
 0x37a   : > { %2308 = vst [vmem:[#allocation4 + $0x468] sm:$0xf0] %v2302_v56  ;;  %3046 = vmatpush2.msra.mxu1 %v2860_v62 }
 0x37b   : > { %v2154_v22 = vpop.permute.xlu1 %2153 }
 0x37c   : > { %v2277_v59 = vpop.permute.xlu0 %2276 }
 0x37d   : > { %v2281_v26 = vsel %vm12409_vm6, %v9788_v16, %v2277_v59 }
 0x37e   : > { %2287 = vst [vmem:[#allocation4 + $0x850] sm:$0xf0] %v2281_v26 }
 0x37f   : > { %v2201_v58 = vpop.permute.xlu1 %2200 }
 0x380   : > { %v10027_v35 = vpop.permute.xlu0 %2155 }
 0x381   : > { %v2161_v15 = vsel %vm12541_vm7, %v2154_v22, %v10027_v35  ;;  %v2855_v24 = vld [vmem:[#allocation4 + $0x468] sm:$0xff]  ;;  %vm12544_vm7 = vmmov %vm12543_vm14 }
 0x382   : > { %2167 = vst [vmem:[#allocation4 + $0x5c8] sm:$0xf] %v2161_v15  ;;  %3047 = vmatprep.subr.mxu1 %v2855_v24 }
 0x383   : > { %v2136_v13 = vpop.permute.xlu1 %2135 }
 0x384   : > { %v2140_v60 = vsel %vm12542_vm8, %v9802_v18, %v2136_v13  ;;  %v10033_v40 = vpop.permute.xlu0 %2202  ;;  %vm12545_vm8 = vcmask 228352  }
 0x385   : > { %2146 = vst [vmem:[#allocation4 + $0x880] sm:$0xf] %v2140_v60  ;;  %v2208_v16 = vsel %vm12543_vm14, %v2201_v58, %v10033_v40  ;;  %v2854_v14 = vld [vmem:[#allocation4 + $0x850] sm:$0xff] }
 0x386   : > { %2214 = vst [vmem:[#allocation4 + $0x5c8] sm:$0xf0] %v2208_v16  ;;  %3048 = vmatpush2.msra.mxu1 %v2854_v14 }
 0x387   : > { %v2060_v20 = vpop.permute.xlu1 %2059 }
 0x388   : > { %v2183_v61 = vpop.permute.xlu0 %2182 }
 0x389   : > { %v2187_v7 = vsel %vm12544_vm7, %v9810_v23, %v2183_v61  ;;  %vm12548_vm7 = vcmask 15360  }
 0x38a   : > { %2193 = vst [vmem:[#allocation4 + $0x880] sm:$0xf0] %v2187_v7 }
 0x38b   : > { %v2107_v54 = vpop.permute.xlu1 %2106 }
 0x38c   : > { %v10039_v3 = vpop.permute.xlu0 %2061 }
 0x38d   : > { %v2067_v18 = vsel %vm12408_vm4, %v2060_v20, %v10039_v3  ;;  %v2849_v19 = vld [vmem:[#allocation4 + $0x5c8] sm:$0xff] }
 0x38e   : > { %2073 = vst [vmem:[#allocation4 + $0x18] sm:$0xf] %v2067_v18  ;;  %3049 = vmatprep.subr.mxu1 %v2849_v19 }
 0x38f   : > { %v2042_v49 = vpop.permute.xlu1 %2041 }
 0x390   : > { %v2046_v5 = vsel %vm12408_vm4, %v9827_v33, %v2042_v49  ;;  %v10045_v28 = vpop.permute.xlu0 %2108 }
 0x391   : > { %2052 = vst [vmem:[#allocation4 + $0xc8] sm:$0xf] %v2046_v5  ;;  %v2114_v23 = vsel %vm2090_vm11, %v2107_v54, %v10045_v28  ;;  %v2848_v48 = vld [vmem:[#allocation4 + $0x880] sm:$0xff] }
 0x392   : > { %2120 = vst [vmem:[#allocation4 + $0x18] sm:$0xf0] %v2114_v23  ;;  %3050 = vmatpush2.msra.mxu1 %v2848_v48 }
 0x393   : > { %v1966_v30 = vpop.permute.xlu1 %1965 }
 0x394   : > { %v2089_v32 = vpop.permute.xlu0 %2088 }
 0x395   : > { %v2093_v37 = vsel %vm2090_vm11, %v9837_v38, %v2089_v32 }
 0x396   : > { %2099 = vst [vmem:[#allocation4 + $0xc8] sm:$0xf0] %v2093_v37 }
 0x397   : > { %v2013_v34 = vpop.permute.xlu1 %2012 }
 0x398   : > { %v10051_v46 = vpop.permute.xlu0 %1967 }
 0x399   : > { %v1973_v33 = vsel %vm12545_vm8, %v1966_v30, %v10051_v46  ;;  %v2843_v39 = vld [vmem:[#allocation4 + $0x18] sm:$0xff]  ;;  %vm12549_vm8 = vmmov %vm12548_vm7 }
 0x39a   : > { %1979 = vst [vmem:[#allocation4 + $0x1b8] sm:$0xf] %v1973_v33  ;;  %3051 = vmatprep.subr.mxu1 %v2843_v39 }
 0x39b   : > { %v2722_v9 = vpop.permute.xlu1 %2721 }
 0x39c   : > { %v2726_v42 = vsel %vm12406_vm3, %v9859_v4, %v2722_v9  ;;  %v10057_v45 = vpop.permute.xlu0 %2014 }
 0x39d   : > { %2732 = vst [vmem:[#allocation4 + $0x2c0] sm:$0xf] %v2726_v42  ;;  %v2020_v38 = vsel %vm12407_vm13, %v2013_v34, %v10057_v45  ;;  %v2842_v25 = vld [vmem:[#allocation4 + $0xc8] sm:$0xff] }
 0x39e   : > { %2026 = vst [vmem:[#allocation4 + $0x1b8] sm:$0xf0] %v2020_v38  ;;  %3052 = vmatpush2.msra.mxu1 %v2842_v25 }
 0x39f   : > { %v1995_v47 = vpop.permute.xlu1 %1994 }
 0x3a0   : > { %v1999_v63 = vsel %vm12407_vm13, %v9851_v21, %v1995_v47  ;;  %v2724_v51 = vpop.permute.xlu0 %2723 }
 0x3a1   : > { %2005 = vst [vmem:[#allocation4 + $0x8c8] sm:$0xf0] %v1999_v63  ;;  %v2727_v36 = vsel %vm12406_vm3, %v2722_v9, %v2724_v51 }
 0x3a2   : > { %2733 = vst [vmem:[#allocation4 + $0x1f0] sm:$0xf] %v2727_v36 }
 0x3a3   : > { %v2630_v53 = vpop.permute.xlu1 %2629 }
 0x3a4   : > { %v2628_v4 = vpop.permute.xlu0 %2627 }
 0x3a5   : > { %v2632_v44 = vsel %vm2607_vm2, %v9876_v10, %v2628_v4  ;;  %v2633_v55 = vsel %vm2607_vm2, %v2628_v4, %v2630_v53  ;;  %v2837_v8 = vld [vmem:[#allocation4 + $0x1b8] sm:$0xff]  ;;  %v2886_v10 = vld [vmem:[#allocation4 + $0x2c0] sm:$0xf] }
 0x3a6   : > { %2638 = vst [vmem:[#allocation4 + $0x440] sm:$0xf] %v2632_v44  ;;  %2639 = vst [vmem:[#allocation4 + $0x6f8] sm:$0xf] %v2633_v55  ;;  %3053 = vmatprep.subr.mxu1 %v2837_v8 }
 0x3a7   : > { %v2677_v56 = vpop.permute.xlu1 %2676 }
 0x3a8   : > { %v2675_v62 = vpop.permute.xlu0 %2674  ;;  %v2836_v22 = vld [vmem:[#allocation4 + $0x8c8] sm:$0xff] }
 0x3a9   : > { %v2679_v21 = vsel %vm2654_vm1, %v9890_v12, %v2675_v62  ;;  %v2680_v59 = vsel %vm2654_vm1, %v2675_v62, %v2677_v56  ;;  %3054 = vmatpush2.msra.mxu1 %v2836_v22  ;;  %v2887_v26 = vld [vmem:[#allocation4 + $0x1f0] sm:$0xf] }
 0x3aa   : > { %2685 = vst [vmem:[#allocation4 + $0x440] sm:$0xf0] %v2679_v21  ;;  %2686 = vst [vmem:[#allocation4 + $0x6f8] sm:$0xf0] %v2680_v59  ;;  %8004 = vmatprep.subr.msk.mxu0 %vm2895_vm0, %v2887_v26  ;;  %3056 = vmatmul.mubr.f32.vlgmr.msra.gmra.mxu1 %v9871_v31 }
 0x3ab   : > { %8005 = vmatpush2.msk.msra.mxu0 %vm2895_vm0, %v2886_v10  ;;  %v2536_v58 = vpop.permute.xlu1 %2535  ;;  %8003 = vmatprep.mubr.msk.f32.mxu1 %vm12405_vm5, %v9961_v41  ;;  %vm12546_vm0 = vcmask 23552  }
 0x3ac   : > { %v2534_v15 = vpop.permute.xlu0 %2533  ;;  %vm12547_vm14 = vmmov %vm12546_vm0 }
 0x3ad   : > { %v2538_v12 = vsel %vm12413_vm15, %v9914_v0, %v2534_v15  ;;  %v2539_v24 = vsel %vm12413_vm15, %v2534_v15, %v2536_v58 }
 0x3ae   : > { %2544 = vst [vmem:[#allocation4 + $0x4e8] sm:$0xf] %v2538_v12  ;;  %2545 = vst [vmem:[#allocation4 + $0x470] sm:$0xf] %v2539_v24  ;;  %3062 = vmatmul.mubr.f32.gmra.mxu1 %v9966_v29 }
 0x3af   : > { %v2583_v13 = vpop.permute.xlu1 %2582 }
 0x3b0   : > { %v2581_v60 = vpop.permute.xlu0 %2580 }
 0x3b1   : > { %v2585_v16 = vsel %vm2560_vm10, %v9926_v52, %v2581_v60  ;;  %v2586_v14 = vsel %vm2560_vm10, %v2581_v60, %v2583_v13  ;;  %v2881_v20 = vld [vmem:[#allocation4 + $0x6f8] sm:$0xff]  ;;  %v2880_v61 = vld [vmem:[#allocation4 + $0x440] sm:$0xff] }
 0x3b2   : > { %2591 = vst [vmem:[#allocation4 + $0x4e8] sm:$0xf0] %v2585_v16  ;;  %2592 = vst [vmem:[#allocation4 + $0x470] sm:$0xf0] %v2586_v14  ;;  %3116 = vmatprep.subr.mxu0 %v2881_v20 }
 0x3b3   : > { %3117 = vmatpush2.msra.mxu0 %v2880_v61  ;;  %v2442_v0 = vpop.permute.xlu1 %2441 }
 0x3b4   : > { %v2440_v7 = vpop.permute.xlu0 %2439 }
 0x3b5   : > { %v2444_v54 = vsel %vm12410_vm12, %v9940_v1, %v2440_v7  ;;  %v2445_v18 = vsel %vm12410_vm12, %v2440_v7, %v2442_v0 }
 0x3b6   : > { %2450 = vst [vmem:[#allocation4 + $0x2d0] sm:$0xf] %v2444_v54  ;;  %2451 = vst [vmem:[#allocation4 + $0x630] sm:$0xf] %v2445_v18 }
 0x3b7   : > { %v2489_v19 = vpop.permute.xlu1 %2488 }
 0x3b8   : > { %v2487_v49 = vpop.permute.xlu0 %2486 }
 0x3b9   : > { %v2491_v52 = vsel %vm12411_vm9, %v9950_v27, %v2487_v49  ;;  %v2492_v5 = vsel %vm12411_vm9, %v2487_v49, %v2489_v19  ;;  %v2875_v23 = vld [vmem:[#allocation4 + $0x470] sm:$0xff]  ;;  %v2874_v48 = vld [vmem:[#allocation4 + $0x4e8] sm:$0xff] }
 0x3ba   : > { %2497 = vst [vmem:[#allocation4 + $0x2d0] sm:$0xf0] %v2491_v52  ;;  %2498 = vst [vmem:[#allocation4 + $0x630] sm:$0xf0] %v2492_v5  ;;  %3118 = vmatprep.subr.mxu0 %v2875_v23 }
 0x3bb   : > { %3119 = vmatpush2.msra.mxu0 %v2874_v48  ;;  %v2348_v30 = vpop.permute.xlu1 %2347 }
 0x3bc   : > { %v2346_v32 = vpop.permute.xlu0 %2345 }
 0x3bd   : > { %v2350_v1 = vsel %vm12546_vm0, %v9981_v11, %v2346_v32  ;;  %v2351_v37 = vsel %vm12547_vm14, %v2346_v32, %v2348_v30  ;;  %vm12550_vm0 = vcmask 39936  }
 0x3be   : > { %2356 = vst [vmem:[#allocation4 + $0x3c8] sm:$0xf] %v2350_v1  ;;  %2357 = vst [vmem:[#allocation4 + $0x28] sm:$0xf] %v2351_v37 }
 0x3bf   : > { %v2395_v34 = vpop.permute.xlu1 %2394  ;;  %vm12551_vm14 = vmmov %vm12550_vm0 }
 0x3c0   : > { %v2393_v33 = vpop.permute.xlu0 %2392 }
 0x3c1   : > { %v2397_v27 = vsel %vm12548_vm7, %v9991_v43, %v2393_v33  ;;  %v2398_v39 = vsel %vm12549_vm8, %v2393_v33, %v2395_v34  ;;  %v2869_v9 = vld [vmem:[#allocation4 + $0x630] sm:$0xff]  ;;  %vm12552_vm7 = vcmask 56320  }
 0x3c2   : > { %v2868_v42 = vld [vmem:[#allocation4 + $0x2d0] sm:$0xff]  ;;  %2403 = vst [vmem:[#allocation4 + $0x3c8] sm:$0xf0] %v2397_v27  ;;  %2404 = vst [vmem:[#allocation4 + $0x28] sm:$0xf0] %v2398_v39  ;;  %3120 = vmatprep.subr.mxu0 %v2869_v9 }
 0x3c3   : > { %3121 = vmatpush2.msra.mxu0 %v2868_v42  ;;  %v2254_v38 = vpop.permute.xlu1 %2253  ;;  %vm12553_vm8 = vmmov %vm12552_vm7 }
 0x3c4   : > { %v2252_v25 = vpop.permute.xlu0 %2251 }
 0x3c5   : > { %v2256_v11 = vsel %vm12550_vm0, %v10015_v50, %v2252_v25  ;;  %v2257_v47 = vsel %vm12551_vm14, %v2252_v25, %v2254_v38  ;;  %vm12554_vm0 = vcmask 48128  }
 0x3c6   : > { %2262 = vst [vmem:[#allocation4 + $0x838] sm:$0xf] %v2256_v11  ;;  %2263 = vst [vmem:[#allocation4 + $0x7d8] sm:$0xf] %v2257_v47 }
 0x3c7   : > { %v2301_v63 = vpop.permute.xlu1 %2300  ;;  %vm12555_vm14 = vmmov %vm12554_vm0 }
 0x3c8   : > { %v2299_v51 = vpop.permute.xlu0 %2298 }
 0x3c9   : > { %v2303_v43 = vsel %vm12409_vm6, %v10021_v57, %v2299_v51  ;;  %v2304_v36 = vsel %vm12409_vm6, %v2299_v51, %v2301_v63  ;;  %v2863_v53 = vld [vmem:[#allocation4 + $0x28] sm:$0xff] }
 0x3ca   : > { %v2862_v4 = vld [vmem:[#allocation4 + $0x3c8] sm:$0xff]  ;;  %2309 = vst [vmem:[#allocation4 + $0x838] sm:$0xf0] %v2303_v43  ;;  %2310 = vst [vmem:[#allocation4 + $0x7d8] sm:$0xf0] %v2304_v36  ;;  %3122 = vmatprep.subr.mxu0 %v2863_v53 }
 0x3cb   : > { %3123 = vmatpush2.msra.mxu0 %v2862_v4  ;;  %v2160_v44 = vpop.permute.xlu1 %2159 }
 0x3cc   : > { %v2158_v55 = vpop.permute.xlu0 %2157 }
 0x3cd   : > { %v2162_v50 = vsel %vm12552_vm7, %v10027_v35, %v2158_v55  ;;  %v2163_v8 = vsel %vm12553_vm8, %v2158_v55, %v2160_v44  ;;  %vm12556_vm7 = vcmask 228352  }
 0x3ce   : > { %2168 = vst [vmem:[#allocation4 + $0x230] sm:$0xf] %v2162_v50  ;;  %2169 = vst [vmem:[#allocation4 + $0xe0] sm:$0xf] %v2163_v8  ;;  %v8471_v50 = vmov 2   ;;  %v8472_v8 = vmov 0.0  }
 0x3cf   : > { %v2207_v56 = vpop.permute.xlu1 %2206  ;;  %vm12557_vm8 = vmmov %vm12556_vm7  ;;  %8220 = vset.pattern.permute.xlu1 %v8471_v50  ;;  %8221 = vset.pattern.permute.xlu0 %v8471_v50 }
 0x3d0   : > { %v2205_v62 = vpop.permute.xlu0 %2204  ;;  %3904 = vmatprep.mubr.f32.mxu1 %v8472_v8 }
 0x3d1   : > { %v2209_v57 = vsel %vm12554_vm0, %v10033_v40, %v2205_v62  ;;  %v2210_v22 = vsel %vm12555_vm14, %v2205_v62, %v2207_v56  ;;  %v2857_v21 = vld [vmem:[#allocation4 + $0x7d8] sm:$0xff] }
 0x3d2   : > { %v2856_v59 = vld [vmem:[#allocation4 + $0x838] sm:$0xff]  ;;  %2215 = vst [vmem:[#allocation4 + $0x230] sm:$0xf0] %v2209_v57  ;;  %2216 = vst [vmem:[#allocation4 + $0xe0] sm:$0xf0] %v2210_v22  ;;  %3124 = vmatprep.subr.mxu0 %v2857_v21 }
 0x3d3   : > { %3125 = vmatpush2.msra.mxu0 %v2856_v59  ;;  %v2066_v26 = vpop.permute.xlu1 %2065 }
 0x3d4   : > { %v2064_v10 = vpop.permute.xlu0 %2063 }
 0x3d5   : > { %v2068_v35 = vsel %vm12408_vm4, %v10039_v3, %v2064_v10  ;;  %v2069_v58 = vsel %vm12408_vm4, %v2064_v10, %v2066_v26 }
 0x3d6   : > { %2074 = vst [vmem:[#allocation4 + $0x110] sm:$0xf] %v2068_v35  ;;  %2075 = vst [vmem:[#allocation4 + $0x558] sm:$0xf] %v2069_v58 }
 0x3d7   : > { %v2113_v15 = vpop.permute.xlu1 %2112 }
 0x3d8   : > { %v2111_v12 = vpop.permute.xlu0 %2110 }
 0x3d9   : > { %v2115_v40 = vsel %vm2090_vm11, %v10045_v28, %v2111_v12  ;;  %v2116_v24 = vsel %vm2090_vm11, %v2111_v12, %v2113_v15  ;;  %v2851_v13 = vld [vmem:[#allocation4 + $0xe0] sm:$0xff]  ;;  %v2850_v60 = vld [vmem:[#allocation4 + $0x230] sm:$0xff] }
 0x3da   : > { %2121 = vst [vmem:[#allocation4 + $0x110] sm:$0xf0] %v2115_v40  ;;  %2122 = vst [vmem:[#allocation4 + $0x558] sm:$0xf0] %v2116_v24  ;;  %3126 = vmatprep.subr.mxu0 %v2851_v13 }
 0x3db   : > { %3127 = vmatpush2.msra.mxu0 %v2850_v60  ;;  %v1972_v16 = vpop.permute.xlu1 %1971 }
 0x3dc   : > { %v1970_v14 = vpop.permute.xlu0 %1969 }
 0x3dd   : > { %v1974_v3 = vsel %vm12556_vm7, %v10051_v46, %v1970_v14  ;;  %v1975_v20 = vsel %vm12557_vm8, %v1970_v14, %v1972_v16  ;;  %v352_v46 = vlaneseq }
 0x3de   : > { %1980 = vst [vmem:[#allocation4 + $0xf8] sm:$0xf] %v1974_v3  ;;  %1981 = vst [vmem:[#allocation4 + $0x638] sm:$0xf] %v1975_v20 }
 0x3df   : > { %v2019_v61 = vpop.permute.xlu1 %2018  ;;  %v10121_v52 = vand.u32 127, %v352_v46 }
 0x3e0   : > { %v2017_v0 = vpop.permute.xlu0 %2016 }
 0x3e1   : > { %v2021_v28 = vsel %vm12407_vm13, %v10057_v45, %v2017_v0  ;;  %v2022_v7 = vsel %vm12407_vm13, %v2017_v0, %v2019_v61  ;;  %v2845_v54 = vld [vmem:[#allocation4 + $0x558] sm:$0xff]  ;;  %v2844_v18 = vld [vmem:[#allocation4 + $0x110] sm:$0xff]  ;;  %v10125_v45 = vmul.u32.u64.low 2863311531, %v10121_v52  ;;  %v10126_v5 = vmul.u32.u64.high 2863311531, %v10121_v52, %v10125_v45 }
 0x3e2   : > { %2027 = vst [vmem:[#allocation4 + $0xf8] sm:$0xf0] %v2021_v28  ;;  %2028 = vst [vmem:[#allocation4 + $0x638] sm:$0xf0] %v2022_v7  ;;  %3128 = vmatprep.subr.mxu0 %v2845_v54  ;;  %v354_v23 = vadd.s32 128, %v10121_v52  ;;  %v355_v56 = vadd.s32 256, %v10121_v52 }
 0x3e3   : > { %3129 = vmatpush2.msra.mxu0 %v2844_v18  ;;  %v365_v32 = vshrl.u32 %v10126_v5, 4  ;;  %v356_v62 = vadd.s32 384, %v10121_v52 }
 0x3e4   : > { %v10129_v48 = vmul.u32.u64.low 2863311531, %v354_v23  ;;  %v10130_v30 = vmul.u32.u64.high 2863311531, %v354_v23, %v10129_v48  ;;  %v10169_v57 = vmul.u32.u64.low 2863311531, %v355_v56  ;;  %v10170_v22 = vmul.u32.u64.high 2863311531, %v355_v56, %v10169_v57 }
 0x3e5   : > { %v10172_v21 = vmul.u32.u64.low 2863311531, %v356_v62  ;;  %v10173_v59 = vmul.u32.u64.high 2863311531, %v356_v62, %v10172_v21  ;;  %v358_v48 = vadd.s32 640, %v10121_v52 }
 0x3e6   : > { %v376_v1 = vshrl.u32 %v10130_v30, 4  ;;  %v387_v26 = vshrl.u32 %v10170_v22, 4 }
 0x3e7   : > { %v398_v10 = vshrl.u32 %v10173_v59, 4 }
 0x3e8   : > { %v377_v37 = vmul.u32 24, %v376_v1  ;;  %v388_v35 = vmul.u32 24, %v387_v26 }
 0x3e9   : > { %v2839_v19 = vld [vmem:[#allocation4 + $0x638] sm:$0xff]  ;;  %v399_v58 = vmul.u32 24, %v398_v10 }
 0x3ea   : > { %v2838_v49 = vld [vmem:[#allocation4 + $0xf8] sm:$0xff]  ;;  %3130 = vmatprep.subr.mxu0 %v2839_v19  ;;  %v378_v34 = vsub.s32 %v354_v23, %v377_v37  ;;  %v389_v15 = vsub.s32 %v355_v56, %v388_v35  ;;  %v357_v23 = vadd.s32 512, %v10121_v52 }
 0x3eb   : > { %3131 = vmatpush2.msra.mxu0 %v2838_v49  ;;  %v400_v12 = vsub.s32 %v356_v62, %v399_v58 }
 0x3ec   : > { %3133 = vmatmul.mubr.f32.vlgmr.msra.gmra.mxu0 %v9871_v31  ;;  %v366_v31 = vmul.u32 24, %v365_v32  ;;  %vm426_vm8 = vcmp.ne.s32.totalorder %v378_v34, 0  ;;  %v444_v27 = vadd.s32 24, %v378_v34  ;;  %v10137_v9 = vpop.permute.xlu1 %3160  ;;  %v445_v40 = vadd.s32 24, %v389_v15 }
 0x3ed   : > { %8007 = vmatprep.mubr.msk.f32.mxu0 %vm12405_vm5, %v9961_v41  ;;  %v10135_v33 = vpop.permute.xlu0 %3148  ;;  %vm432_vm5 = vcmp.lt.s32.totalorder %v378_v34, 0  ;;  %vm434_vm4 = vcmp.lt.s32.totalorder %v400_v12, 0  ;;  %v446_v24 = vadd.s32 24, %v400_v12 }
 0x3ee   : > { %v367_v41 = vsub.s32 %v10121_v52, %v366_v31  ;;  %vm438_vm3 = vmand %vm432_vm5, %vm426_vm8  ;;  %vm12564_vm5 = vcmask 654336   ;;  %vm427_vm8 = vcmp.ne.s32.totalorder %v389_v15, 0 }
 0x3ef   : > { %v450_v63 = vsel %vm438_vm3, %v444_v27, %v378_v34  ;;  %vm12563_vm3 = vcmask 613376   ;;  %3241 = vst.msk [vmem:[#allocation2 + $0x40] sm:$0xff] %vm12564_vm5, %v8472_v8  ;;  %v10207_v30 = vmul.u32.u64.low 2863311531, %v357_v23  ;;  %v10208_v32 = vmul.u32.u64.high 2863311531, %v357_v23, %v10207_v30 }
 0x3f0   : > { %3139 = vmatmul.mubr.f32.gmra.mxu0 %v9966_v29  ;;  %vm425_vm0 = vcmp.ne.s32.totalorder %v367_v41, 0  ;;  %vm431_vm14 = vcmp.lt.s32.totalorder %v367_v41, 0  ;;  %v443_v29 = vadd.s32 24, %v367_v41  ;;  %3193 = vst.msk [vmem:[#allocation2] sm:$0xff] %vm12563_vm3, %v8472_v8 }
 0x3f1   : > { %vm437_vm7 = vmand %vm431_vm14, %vm425_vm0  ;;  %vm10147_vm0 = vcmp.lt.s32.totalorder %v450_v63, 16  ;;  %4151 = vmatprep.mubr.f32.mxu0 %v8472_v8  ;;  %v10210_v31 = vmul.u32.u64.low 2863311531, %v358_v48  ;;  %v10211_v1 = vmul.u32.u64.high 2863311531, %v358_v48, %v10210_v31 }
 0x3f2   : > { %v449_v38 = vsel %vm437_vm7, %v443_v29, %v367_v41  ;;  %vm12565_vm14 = vmmov %vm12563_vm3  ;;  %vm433_vm3 = vcmp.lt.s32.totalorder %v389_v15, 0  ;;  %v409_v41 = vshrl.u32 %v10208_v32, 4 }
 0x3f3   : > { %vm10142_vm13 = vcmp.lt.s32.totalorder %v449_v38, 16  ;;  %3278 = vst.msk [vmem:[#allocation3] sm:$0xff] %vm12565_vm14, %v8472_v8  ;;  %vm12566_vm7 = vmmov %vm12564_vm5  ;;  %vm12412_vm5 = vcmask 326656   ;;  %vm3217_vm14 = vcmask 941376   ;;  %v420_v37 = vshrl.u32 %v10211_v1, 4 }
 0x3f4   : > { %3321 = vst.msk [vmem:[#allocation3 + $0x40] sm:$0xff] %vm12566_vm7, %v8472_v8  ;;  %vm428_vm7 = vcmp.ne.s32.totalorder %v400_v12, 0  ;;  %vm439_vm6 = vmand %vm433_vm3, %vm427_vm8  ;;  %v410_v29 = vmul.u32 24, %v409_v41 }
 0x3f5   : > { %3216 = vst.msk [vmem:[#allocation2 + $0x20] sm:$0xff] %vm12412_vm5, %v8472_v8  ;;  %3299 = vst.msk [vmem:[#allocation3 + $0x20] sm:$0xff] %vm12412_vm5, %v8472_v8  ;;  %v451_v16 = vsel %vm439_vm6, %v445_v40, %v389_v15  ;;  %vm12571_vm6 = vcmask 613376   ;;  %v421_v34 = vmul.u32 24, %v420_v37 }
 0x3f6   : > { %3218 = vst.msk [vmem:[#allocation2 + $0x20] sm:$0xff] %vm3217_vm14, %v8472_v8  ;;  %3300 = vst.msk [vmem:[#allocation3 + $0x20] sm:$0xff] %vm3217_vm14, %v8472_v8  ;;  %vm10186_vm9 = vcmp.lt.s32.totalorder %v451_v16, 16  ;;  %v411_v27 = vsub.s32 %v357_v23, %v410_v29 }
 0x3f7   : > { %vm440_vm12 = vmand %vm434_vm4, %vm428_vm7  ;;  %vm3209_vm4 = vcmask 1048152  }
 0x3f8   : > { %v452_v61 = vsel %vm440_vm12, %v446_v24, %v400_v12  ;;  %vm429_vm12 = vcmp.ne.s32.totalorder %v411_v27, 0  ;;  %vm435_vm3 = vcmp.lt.s32.totalorder %v411_v27, 0  ;;  %v447_v38 = vadd.s32 24, %v411_v27 }
 0x3f9   : > { %vm10191_vm8 = vcmp.lt.s32.totalorder %v452_v61, 16 }
 0x3ff   : > { %v2980_v39 = vpop.f32.mrf.mxu0 }
 0x400   : > { %v3151_v42 = vmul.f32 %v10135_v33, %v2980_v39  ;;  %v422_v39 = vsub.s32 %v358_v48, %v421_v34 }
 0x401   : > { %v2982_v25 = vpop.f32.mrf.mxu0 }
 0x402   : > { %v3152_v11 = vmul.f32 %v10135_v33, %v2982_v25  ;;  %v3163_v47 = vadd.f32 %v10137_v9, %v3151_v42  ;;  %vm430_vm14 = vcmp.ne.s32.totalorder %v422_v39, 0  ;;  %vm436_vm7 = vcmp.lt.s32.totalorder %v422_v39, 0 }
 0x403   : > { %v448_v25 = vadd.s32 24, %v422_v39  ;;  %vm442_vm5 = vmand %vm436_vm7, %vm430_vm14  ;;  %vm12447_vm7 = vcmask 941056  }
 0x404   : > { %v3164_v43 = vadd.f32 %v10137_v9, %v3152_v11  ;;  %v3169_v36 = vmax.f32 %v3163_v47, 0.0 }
 0x406   : > { %v3170_v4 = vmax.f32 %v3164_v43, 0.0  ;;  %v3187_v44 = vsel %vm10142_vm13, %v3169_v36, 0.0 }
 0x407   : > { %3197 = vrot.lane.b32.xlu1 %v3187_v44, %s12562_s0  ;;  %v454_v44 = vsel %vm442_vm5, %v448_v25, %v422_v39  ;;  %vm3235_vm5 = vcmask 1048472  }
 0x408   : > { %v3188_v55 = vsel %vm10147_vm0, %v3170_v4, 0.0 }
 0x409   : > { %3199 = vrot.lane.b32.xlu0 %v3188_v55, %s12562_s0 }
 0x423   : > { %v2986_v42 = vpop.f32.mrf.mxu0 }
 0x425   : > { %v2988_v52 = vpop.f32.mrf.mxu0 }
 0x46a   : > { %v3057_v13 = vpop.f32.mrf.mxu1 }
 0x46b   : > { %v3153_v60 = vmul.f32 %v10135_v33, %v3057_v13 }
 0x46c   : > { %v3059_v14 = vpop.f32.mrf.mxu1 }
 0x46d   : > { %v3165_v3 = vadd.f32 %v10137_v9, %v3153_v60  ;;  %v3154_v20 = vmul.f32 %v10135_v33, %v3059_v14 }
 0x46e   : > { %v3063_v35 = vpop.f32.mrf.mxu1 }
 0x46f   : > { %v3171_v28 = vmax.f32 %v3165_v3, 0.0  ;;  %v3166_v7 = vadd.f32 %v10137_v9, %v3154_v20 }
 0x470   : > { %v3065_v15 = vpop.f32.mrf.mxu1 }
 0x471   : > { %v3189_v18 = vsel %vm10186_vm9, %v3171_v28, 0.0  ;;  %v3172_v19 = vmax.f32 %v3166_v7, 0.0 }
 0x472   : > { %3201 = vrot.lane.b32.xlu1 %v3189_v18, %s12562_s0 }
 0x473   : > { %v3190_v49 = vsel %vm10191_vm8, %v3172_v19, 0.0 }
 0x474   : > { %3222 = vrot.lane.b32.xlu0 %v3190_v49, %s12414_s22 }
 0x479   : > { %v3198_v46 = vpop.permute.xlu1 %3197 }
 0x47a   : > { %3210 = vst.msk [vmem:[#allocation2] sm:$0xff] %vm3209_vm4, %v3198_v46 }
 0x47b   : > { %v3200_v45 = vpop.permute.xlu0 %3199 }
 0x47c   : > { %v10203_v5 = vsel %vm12571_vm6, %v3198_v46, %v3200_v45  ;;  %vm441_vm6 = vmand %vm435_vm3, %vm429_vm12  ;;  %vm10223_vm12 = vcmp.lt.s32.totalorder %v454_v44, 16  ;;  %vm12576_vm3 = vcmask 613376  }
 0x47d   : > { %v453_v63 = vsel %vm441_vm6, %v447_v38, %v411_v27  ;;  %vm12577_vm14 = vmmov %vm12576_vm3  ;;  %v8475_v27 = vmov 1  }
 0x47e   : > { %vm10218_vm15 = vcmp.lt.s32.totalorder %v453_v63, 16 }
 0x481   : > { %v10265_v0 = vld [vmem:[#allocation2] sm:$0xff] }
 0x4ac   : > { %v3134_v11 = vpop.f32.mrf.mxu0 }
 0x4ad   : > { %v3155_v47 = vmul.f32 %v10135_v33, %v3134_v11 }
 0x4ae   : > { %v3136_v43 = vpop.f32.mrf.mxu0 }
 0x4af   : > { %v3167_v36 = vadd.f32 %v10137_v9, %v3155_v47  ;;  %v3156_v4 = vmul.f32 %v10135_v33, %v3136_v43 }
 0x4b0   : > { %v3140_v58 = vpop.f32.mrf.mxu0 }
 0x4b1   : > { %v3173_v50 = vmax.f32 %v3167_v36, 0.0  ;;  %v3168_v56 = vadd.f32 %v10137_v9, %v3156_v4 }
 0x4b2   : > { %v3142_v3 = vpop.f32.mrf.mxu0 }
 0x4b3   : > { %v3174_v57 = vmax.f32 %v3168_v56, 0.0  ;;  %v3191_v22 = vsel %vm10218_vm15, %v3173_v50, 0.0 }
 0x4b4   : > { %3224 = vrot.lane.b32.xlu1 %v3191_v22, %s12414_s22 }
 0x4b5   : > { %v3192_v33 = vsel %vm10223_vm12, %v3174_v57, 0.0 }
 0x4b6   : > { %3226 = vrot.lane.b32.xlu0 %v3192_v33, %s12414_s22  ;;  %v3758_v33 = vld [vmem:[#allocation2 + $0x40] sm:$0xff] }
 0x4b8   : > { %3245 = vperm.xlu1 %8220, %v10008_v17  }
 0x4ba   : > { %3257 = vperm.xlu0 %8221, %v10003_v2  }
 0x4bc   : > { %8223 = vset.pattern.permute.xlu1 %v8475_v27 }
 0x4be   : > { %8222 = vset.pattern.permute.xlu0 %v8475_v27 }
 0x4e4   : > { %v3202_v9 = vpop.permute.xlu1 %3201 }
 0x4e5   : > { %3213 = vst.msk [vmem:[#allocation2 + $0x18] sm:$0xff] %vm12576_vm3, %v3202_v9  ;;  %v10237_v21 = vsel %vm12577_vm14, %v3200_v45, %v3202_v9 }
 0x4e6   : > { %3214 = vst.msk [vmem:[#allocation2 + $0x18] sm:$0xff] %vm3209_vm4, %v8472_v8  ;;  %v3223_v59 = vpop.permute.xlu0 %3222 }
 0x4e7   : > { %3236 = vst.msk [vmem:[#allocation2 + $0x20] sm:$0xff] %vm3235_vm5, %v3223_v59 }
 0x4ed   : > { %v10281_v54 = vld [vmem:[#allocation2 + $0x18] sm:$0xff] }
 0x4ee   : > { %v10275_v29 = vld [vmem:[#allocation2 + $0x20] sm:$0xff] }
 0x526   : > { %v3225_v26 = vpop.permute.xlu1 %3224 }
 0x527   : > { %v10243_v10 = vsel %vm12447_vm7, %v3223_v59, %v3225_v26 }
 0x528   : > { %v3227_v17 = vpop.permute.xlu0 %3226 }
 0x529   : > { %v10246_v2 = vsel %vm12447_vm7, %v3225_v26, %v3227_v17  ;;  %3239 = vst.msk [vmem:[#allocation2 + $0x38] sm:$0xff] %vm12447_vm7, %v3227_v17 }
 0x52a   : > { %3240 = vst.msk [vmem:[#allocation2 + $0x38] sm:$0xff] %vm3235_vm5, %v8472_v8 }
 0x531   : > { %v10291_v34 = vld [vmem:[#allocation2 + $0x38] sm:$0xff] }
 0x533   : > { %v3246_v12 = vpop.permute.xlu1 %3245 }
 0x534   : > { %v3250_v40 = vmul.f32 %v3246_v12, %v3063_v35  ;;  %v3248_v24 = vmul.f32 %v3246_v12, %v2986_v42  ;;  %v3249_v13 = vmul.f32 %v3246_v12, %v2988_v52  ;;  %v3252_v16 = vmul.f32 %v3246_v12, %v3140_v58  ;;  %v8261_v35 = vld [vmem:[%s12540_s5] sm:$0xff]  ;;  %s12642_s5 = smov 100  }
 0x535   : > { %v3258_v60 = vpop.permute.xlu0 %3257  ;;  %v3251_v14 = vmul.f32 %v3246_v12, %v3065_v15  ;;  %v3253_v49 = vmul.f32 %v3246_v12, %v3142_v3 }
 0x536   : > { %v3262_v20 = vadd.f32 %v3258_v60, %v3250_v40  ;;  %v3260_v61 = vadd.f32 %v3258_v60, %v3248_v24  ;;  %v3261_v28 = vadd.f32 %v3258_v60, %v3249_v13  ;;  %v3264_v7 = vadd.f32 %v3258_v60, %v3252_v16  ;;  %v8262_v24 = vld [vmem:[%s12539_s6] sm:$0xff]  ;;  %s12644_s6 = smov 107  }
 0x537   : > { %v3263_v46 = vadd.f32 %v3258_v60, %v3251_v14  ;;  %v3265_v41 = vadd.f32 %v3258_v60, %v3253_v49 }
 0x538   : > { %v3268_v18 = vmax.f32 %v3262_v20, 0.0  ;;  %v3266_v19 = vmax.f32 %v3260_v61, 0.0  ;;  %v3267_v48 = vmax.f32 %v3261_v28, 0.0  ;;  %v3270_v30 = vmax.f32 %v3264_v7, 0.0 }
 0x539   : > { %v3269_v1 = vmax.f32 %v3263_v46, 0.0  ;;  %v3271_v37 = vmax.f32 %v3265_v41, 0.0 }
 0x53a   : > { %v3274_v45 = vsel %vm10186_vm9, %v3268_v18, 0.0  ;;  %v3272_v23 = vsel %vm10142_vm13, %v3266_v19, 0.0  ;;  %v3273_v32 = vsel %vm10147_vm0, %v3267_v48, 0.0  ;;  %v3276_v31 = vsel %vm10218_vm15, %v3270_v30, 0.0  ;;  %vm12586_vm9 = vmmov %vm12576_vm3 }
 0x53b   : > { %3286 = vrot.lane.b32.xlu0 %v3274_v45, %s12562_s0  ;;  %3282 = vrot.lane.b32.xlu1 %v3272_v23, %s12562_s0  ;;  %v3275_v51 = vsel %vm10191_vm8, %v3269_v1, 0.0  ;;  %v3277_v53 = vsel %vm10223_vm12, %v3271_v37, 0.0  ;;  %vm12587_vm13 = vmmov %vm12576_vm3  ;;  %vm12595_vm0 = vcmask 228352   ;;  %vm12600_vm12 = vcmask 244736  }
 0x53c   : > { %vm12588_vm15 = vmmov %vm12576_vm3  ;;  %vm12603_vm3 = vcmask 424960  }
 0x53d   : > { %vm12597_vm8 = vmmov %vm12595_vm0 }
 0x53e   : > { %vm12604_vm14 = vmmov %vm12603_vm3 }
 0x53f   : > { %3284 = vrot.lane.b32.xlu1 %v3273_v32, %s12562_s0  ;;  %3306 = vrot.lane.b32.xlu0 %v3276_v31, %s12414_s22 }
 0x543   : > { %3304 = vrot.lane.b32.xlu1 %v3275_v51, %s12414_s22  ;;  %3330 = vrot.lane.b32.xlu0 %v10265_v0, %s12578_s23 }
 0x547   : > { %3334 = vrot.lane.b32.xlu0 %v10237_v21, %s12578_s23  ;;  %3308 = vrot.lane.b32.xlu1 %v3277_v53, %s12414_s22  ;;  %s12419_s22 = smov 37  }
 0x54b   : > { %3355 = vrot.lane.b32.xlu0 %v10275_v29, %s12416_s2  ;;  %3332 = vrot.lane.b32.xlu1 %v10203_v5, %s12578_s23 }
 0x54f   : > { %3359 = vrot.lane.b32.xlu0 %v10246_v2, %s12416_s2  ;;  %3336 = vrot.lane.b32.xlu1 %v10281_v54, %s12578_s23 }
 0x553   : > { %3381 = vrot.lane.b32.xlu0 %v10265_v0, %s12579_s1  ;;  %3357 = vrot.lane.b32.xlu1 %v10243_v10, %s12416_s2 }
 0x557   : > { %3385 = vrot.lane.b32.xlu0 %v10237_v21, %s12579_s1  ;;  %3361 = vrot.lane.b32.xlu1 %v10291_v34, %s12416_s2  ;;  %s12422_s2 = smov 36  }
 0x55b   : > { %3406 = vrot.lane.b32.xlu0 %v10275_v29, %s12419_s22  ;;  %3383 = vrot.lane.b32.xlu1 %v10203_v5, %s12579_s1 }
 0x55f   : > { %3410 = vrot.lane.b32.xlu0 %v10246_v2, %s12419_s22  ;;  %3387 = vrot.lane.b32.xlu1 %v10281_v54, %s12579_s1 }
 0x563   : > { %3432 = vrot.lane.b32.xlu0 %v10265_v0, %s12580_s3  ;;  %3408 = vrot.lane.b32.xlu1 %v10243_v10, %s12419_s22 }
 0x567   : > { %3436 = vrot.lane.b32.xlu0 %v10237_v21, %s12580_s3  ;;  %3412 = vrot.lane.b32.xlu1 %v10291_v34, %s12419_s22  ;;  %s12426_s22 = smov 14  }
 0x56b   : > { %3457 = vrot.lane.b32.xlu0 %v10275_v29, %s12422_s2  ;;  %3434 = vrot.lane.b32.xlu1 %v10203_v5, %s12580_s3 }
 0x56f   : > { %3461 = vrot.lane.b32.xlu0 %v10246_v2, %s12422_s2  ;;  %3438 = vrot.lane.b32.xlu1 %v10281_v54, %s12580_s3 }
 0x573   : > { %3483 = vrot.lane.b32.xlu0 %v10265_v0, %s12581_s29  ;;  %3459 = vrot.lane.b32.xlu1 %v10243_v10, %s12422_s2 }
 0x577   : > { %3487 = vrot.lane.b32.xlu0 %v10237_v21, %s12581_s29  ;;  %3463 = vrot.lane.b32.xlu1 %v10291_v34, %s12422_s2  ;;  %s12429_s2 = smov 13  }
 0x57b   : > { %3508 = vrot.lane.b32.xlu0 %v10275_v29, %s12426_s22  ;;  %3485 = vrot.lane.b32.xlu1 %v10203_v5, %s12581_s29 }
 0x57f   : > { %3512 = vrot.lane.b32.xlu0 %v10246_v2, %s12426_s22  ;;  %3489 = vrot.lane.b32.xlu1 %v10281_v54, %s12581_s29 }
 0x583   : > { %3534 = vrot.lane.b32.xlu0 %v10265_v0, %s12582_s28  ;;  %3510 = vrot.lane.b32.xlu1 %v10243_v10, %s12426_s22 }
 0x587   : > { %3538 = vrot.lane.b32.xlu0 %v10237_v21, %s12582_s28  ;;  %3514 = vrot.lane.b32.xlu1 %v10291_v34, %s12426_s22  ;;  %s12584_s22 = smov 29  }
 0x58b   : > { %3559 = vrot.lane.b32.xlu0 %v10275_v29, %s12429_s2  ;;  %3536 = vrot.lane.b32.xlu1 %v10203_v5, %s12582_s28 }
 0x58f   : > { %3563 = vrot.lane.b32.xlu0 %v10246_v2, %s12429_s2  ;;  %3540 = vrot.lane.b32.xlu1 %v10281_v54, %s12582_s28 }
 0x593   : > { %3585 = vrot.lane.b32.xlu0 %v10265_v0, %s12583_s11  ;;  %3561 = vrot.lane.b32.xlu1 %v10243_v10, %s12429_s2 }
 0x597   : > { %3742 = vrot.lane.b32.xlu0 %v10237_v21, %s12533_s25  ;;  %3565 = vrot.lane.b32.xlu1 %v10291_v34, %s12429_s2  ;;  %s12431_s2 = smov 116  }
 0x59b   : > { %3689 = vrot.lane.b32.xlu0 %v10203_v5, %s12584_s22  ;;  %3740 = vrot.lane.b32.xlu1 %v10203_v5, %s12533_s25 }
 0x59f   : > { %3687 = vrot.lane.b32.xlu0 %v10265_v0, %s12584_s22  ;;  %3738 = vrot.lane.b32.xlu1 %v10265_v0, %s12533_s25 }
 0x5a3   : > { %3640 = vrot.lane.b32.xlu0 %v10237_v21, %s12585_s30  ;;  %3691 = vrot.lane.b32.xlu1 %v10237_v21, %s12584_s22 }
 0x5a7   : > { %3587 = vrot.lane.b32.xlu0 %v10203_v5, %s12583_s11  ;;  %3638 = vrot.lane.b32.xlu1 %v10203_v5, %s12585_s30 }
 0x5ab   : > { %3763 = vrot.lane.b32.xlu0 %v10243_v10, %s12431_s2  ;;  %3636 = vrot.lane.b32.xlu1 %v10265_v0, %s12585_s30  ;;  %s12434_s2 = smov 117  }
 0x5ad   : > { %v3287_v39 = vpop.permute.xlu0 %3286  ;;  %v3283_v42 = vpop.permute.xlu1 %3282 }
 0x5ae   : > { %3297 = vst.msk [vmem:[#allocation3 + $0x18] sm:$0xff] %vm12586_vm9, %v3287_v39  ;;  %vm12605_vm9 = vcmask 433152  }
 0x5af   : > { %3294 = vst.msk [vmem:[#allocation3] sm:$0xff] %vm3209_vm4, %v3283_v42  ;;  %3298 = vst.msk [vmem:[#allocation3 + $0x18] sm:$0xff] %vm3209_vm4, %v8472_v8  ;;  %3744 = vrot.lane.b32.xlu0 %v10281_v54, %s12533_s25  ;;  %3589 = vrot.lane.b32.xlu1 %v10237_v21, %s12583_s11  ;;  %vm12598_vm4 = vcmask 236544  }
 0x5b0   : > { %vm12599_vm6 = vmmov %vm12598_vm4 }
 0x5b1   : > { %v3285_v5 = vpop.permute.xlu1 %3284  ;;  %v3307_v38 = vpop.permute.xlu0 %3306 }
 0x5b2   : > { %v10390_v52 = vsel %vm12587_vm13, %v3283_v42, %v3285_v5  ;;  %v10393_v25 = vsel %vm12588_vm15, %v3285_v5, %v3287_v39  ;;  %vm12606_vm13 = vmmov %vm12605_vm9  ;;  %vm12607_vm15 = vcmask 441344  }
 0x5b3   : > { %3295 = vst [vmem:[#allocation3 + $0x8] sm:$0xff] %v10390_v52  ;;  %3296 = vst [vmem:[#allocation3 + $0x10] sm:$0xff] %v10393_v25  ;;  %3714 = vrot.lane.b32.xlu0 %v10246_v2, %s12434_s2  ;;  %3765 = vrot.lane.b32.xlu1 %v10246_v2, %s12589_s18  ;;  %s12437_s2 = smov 118  }
 0x5b4   : > { %4310 = vst [vmem:[#allocation4 + $0x808] sm:$0xff] %v10390_v52  ;;  %4311 = vst [vmem:[#allocation4 + $0x7f8] sm:$0xff] %v10393_v25 }
 0x5b5   : > { %v3305_v11 = vpop.permute.xlu1 %3304  ;;  %v10403_v47 = vpop.permute.xlu0 %3330 }
 0x5b6   : > { %v10405_v63 = vld [vmem:[#allocation3] sm:$0xff]  ;;  %v10408_v43 = vsel %vm12447_vm7, %v3305_v11, %v3307_v38  ;;  %3316 = vst.msk [vmem:[#allocation3 + $0x20] sm:$0xff] %vm3235_vm5, %v3305_v11  ;;  %v10502_v14 = vld [vmem:[#allocation3 + $0x18] sm:$0xff] }
 0x5b7   : > { %4309 = vst [vmem:[#allocation4 + $0x4c8] sm:$0xff] %v10405_v63  ;;  %3317 = vst [vmem:[#allocation3 + $0x28] sm:$0xff] %v10408_v43  ;;  %3661 = vrot.lane.b32.xlu0 %v10243_v10, %s12437_s2  ;;  %3712 = vrot.lane.b32.xlu1 %v10243_v10, %s12590_s27  ;;  %s12445_s2 = smov 12  }
 0x5b9   : > { %v10417_v36 = vpop.permute.xlu0 %3334  ;;  %v3309_v4 = vpop.permute.xlu1 %3308 }
 0x5ba   : > { %v10420_v44 = vsel %vm12447_vm7, %v3307_v38, %v3309_v4  ;;  %3319 = vst.msk [vmem:[#allocation3 + $0x38] sm:$0xff] %vm12447_vm7, %v3309_v4  ;;  %vm12624_vm7 = vcmask 629760  }
 0x5bb   : > { %3318 = vst [vmem:[#allocation3 + $0x30] sm:$0xff] %v10420_v44  ;;  %3320 = vst.msk [vmem:[#allocation3 + $0x38] sm:$0xff] %vm3235_vm5, %v8472_v8  ;;  %3642 = vrot.lane.b32.xlu0 %v10281_v54, %s12585_s30  ;;  %3693 = vrot.lane.b32.xlu1 %v10281_v54, %s12584_s22 }
 0x5bc   : > { %vm12601_vm5 = vmmov %vm12600_vm12 }
 0x5bd   : > { %v10430_v55 = vpop.permute.xlu0 %3355  ;;  %v10432_v50 = vpop.permute.xlu1 %3332  ;;  %v10497_v16 = vld [vmem:[#allocation3 + $0x20] sm:$0xff] }
 0x5bf   : > { %3612 = vrot.lane.b32.xlu0 %v10243_v10, %s12445_s2  ;;  %3663 = vrot.lane.b32.xlu1 %v10246_v2, %s12591_s8 }
 0x5c1   : > { %v10438_v56 = vpop.permute.xlu0 %3359  ;;  %v10440_v62 = vpop.permute.xlu1 %3336 }
 0x5c3   : > { %3767 = vrot.lane.b32.xlu0 %v10291_v34, %s12589_s18  ;;  %3610 = vrot.lane.b32.xlu1 %v10275_v29, %s12445_s2 }
 0x5c5   : > { %v10446_v57 = vpop.permute.xlu0 %3381  ;;  %v10448_v22 = vpop.permute.xlu1 %3357 }
 0x5c7   : > { %3716 = vrot.lane.b32.xlu0 %v10291_v34, %s12590_s27  ;;  %3591 = vrot.lane.b32.xlu1 %v10281_v54, %s12583_s11 }
 0x5c9   : > { %v10454_v9 = vpop.permute.xlu0 %3385  ;;  %v10456_v21 = vpop.permute.xlu1 %3361 }
 0x5cb   : > { %3665 = vrot.lane.b32.xlu0 %v10291_v34, %s12591_s8  ;;  %3769 = vrot.lane.b32.xlu1 %v3758_v33, %s12589_s18  ;;  %s12654_s18 = smov 110  }
 0x5cd   : > { %v10461_v59 = vpop.permute.xlu0 %3406  ;;  %v10463_v26 = vpop.permute.xlu1 %3383 }
 0x5cf   : > { %3614 = vrot.lane.b32.xlu0 %v10246_v2, %s12445_s2  ;;  %3718 = vrot.lane.b32.xlu1 %v3758_v33, %s12590_s27  ;;  %v10483_v2 = vld [vmem:[#allocation3 + $0x38] sm:$0xff]  ;;  %s12651_s27 = smov 109  }
 0x5d1   : > { %v10468_v10 = vpop.permute.xlu0 %3410  ;;  %v10470_v17 = vpop.permute.xlu1 %3387 }
 0x5d3   : > { %4056 = vperm.xlu0 %8222, %v8261_v35   ;;  %3667 = vrot.lane.b32.xlu1 %v3758_v33, %s12591_s8  ;;  %s12647_s8 = smov 108  }
 0x5d5   : > { %v10476_v58 = vpop.permute.xlu0 %3432  ;;  %v10478_v15 = vpop.permute.xlu1 %3408 }
 0x5d7   : > { %4322 = vrot.lane.b32.xlu0 %v10408_v43, %s8484_s26  ;;  %3616 = vrot.lane.b32.xlu1 %v10291_v34, %s12445_s2  ;;  %s12592_s2 = smov 127  }
 0x5d9   : > { %v10485_v12 = vpop.permute.xlu0 %3436  ;;  %v10487_v40 = vpop.permute.xlu1 %3412 }
 0x5db   : > { %4068 = vperm.xlu1 %8223, %v8262_v24   ;;  %4326 = vrot.lane.b32.xlu0 %v10483_v2, %s8484_s26 }
 0x5dd   : > { %v10493_v13 = vpop.permute.xlu0 %3457  ;;  %v10495_v60 = vpop.permute.xlu1 %3434 }
 0x5df   : > { %4320 = vrot.lane.b32.xlu1 %v10497_v16, %s8484_s26  ;;  %4348 = vrot.lane.b32.xlu0 %v10390_v52, %s12592_s2 }
 0x5e1   : > { %v10504_v3 = vpop.permute.xlu0 %3461  ;;  %v10506_v20 = vpop.permute.xlu1 %3438 }
 0x5e3   : > { %4352 = vrot.lane.b32.xlu0 %v10502_v14, %s12592_s2  ;;  %4324 = vrot.lane.b32.xlu1 %v10420_v44, %s8484_s26  ;;  %s12593_s26 = smov 126  }
 0x5e5   : > { %v10511_v61 = vpop.permute.xlu0 %3483  ;;  %v10513_v28 = vpop.permute.xlu1 %3459 }
 0x5e7   : > { %4373 = vrot.lane.b32.xlu0 %v10408_v43, %s8485_s9  ;;  %4346 = vrot.lane.b32.xlu1 %v10405_v63, %s12592_s2 }
 0x5e9   : > { %v10518_v7 = vpop.permute.xlu0 %3487  ;;  %v10520_v18 = vpop.permute.xlu1 %3463 }
 0x5eb   : > { %4377 = vrot.lane.b32.xlu0 %v10483_v2, %s8485_s9  ;;  %4350 = vrot.lane.b32.xlu1 %v10393_v25, %s12592_s2  ;;  %s8486_s2 = smov 86  }
 0x5ed   : > { %v10525_v19 = vpop.permute.xlu0 %3508  ;;  %v10527_v49 = vpop.permute.xlu1 %3485 }
 0x5ef   : > { %4399 = vrot.lane.b32.xlu0 %v10390_v52, %s12593_s26  ;;  %4371 = vrot.lane.b32.xlu1 %v10497_v16, %s8485_s9 }
 0x5f1   : > { %v10532_v46 = vpop.permute.xlu0 %3512  ;;  %v10534_v45 = vpop.permute.xlu1 %3489 }
 0x5f3   : > { %4403 = vrot.lane.b32.xlu0 %v10502_v14, %s12593_s26  ;;  %4375 = vrot.lane.b32.xlu1 %v10420_v44, %s8485_s9  ;;  %s8487_s9 = smov 85  }
 0x5f5   : > { %v10539_v23 = vpop.permute.xlu0 %3534  ;;  %v10541_v48 = vpop.permute.xlu1 %3510 }
 0x5f7   : > { %4424 = vrot.lane.b32.xlu0 %v10408_v43, %s8486_s2  ;;  %4397 = vrot.lane.b32.xlu1 %v10405_v63, %s12593_s26 }
 0x5f9   : > { %v10546_v30 = vpop.permute.xlu0 %3538  ;;  %v10548_v32 = vpop.permute.xlu1 %3514 }
 0x5fb   : > { %4428 = vrot.lane.b32.xlu0 %v10483_v2, %s8486_s2  ;;  %4401 = vrot.lane.b32.xlu1 %v10393_v25, %s12593_s26  ;;  %s12596_s26 = smov 124  }
 0x5fd   : > { %v10553_v31 = vpop.permute.xlu0 %3559  ;;  %v3537_v1 = vpop.permute.xlu1 %3536 }
 0x5ff   : > { %4450 = vrot.lane.b32.xlu0 %v10390_v52, %s12594_s17  ;;  %4422 = vrot.lane.b32.xlu1 %v10497_v16, %s8486_s2 }
 0x601   : > { %v10558_v41 = vpop.permute.xlu0 %3563  ;;  %v10560_v51 = vpop.permute.xlu1 %3540 }
 0x603   : > { %4454 = vrot.lane.b32.xlu0 %v10502_v14, %s12594_s17  ;;  %4426 = vrot.lane.b32.xlu1 %v10420_v44, %s8486_s2  ;;  %s8488_s2 = smov 84  }
 0x605   : > { %v3586_v0 = vpop.permute.xlu0 %3585  ;;  %v10565_v37 = vpop.permute.xlu1 %3561 }
 0x607   : > { %4475 = vrot.lane.b32.xlu0 %v10408_v43, %s8487_s9  ;;  %4448 = vrot.lane.b32.xlu1 %v10405_v63, %s12594_s17 }
 0x609   : > { %v10570_v53 = vpop.permute.xlu0 %3742  ;;  %v10572_v29 = vpop.permute.xlu1 %3565 }
 0x60b   : > { %4479 = vrot.lane.b32.xlu0 %v10483_v2, %s8487_s9  ;;  %4452 = vrot.lane.b32.xlu1 %v10393_v25, %s12594_s17  ;;  %s12602_s17 = smov 123  }
 0x60d   : > { %v3690_v54 = vpop.permute.xlu0 %3689  ;;  %v3741_v34 = vpop.permute.xlu1 %3740 }
 0x60e   : > { %v3747_v27 = vsel %vm12595_vm0, %v3741_v34, %v10570_v53  ;;  %vm12608_vm0 = vmmov %vm12607_vm15 }
 0x60f   : > { %4501 = vrot.lane.b32.xlu0 %v10390_v52, %s12596_s26  ;;  %4473 = vrot.lane.b32.xlu1 %v10497_v16, %s8487_s9 }
 0x610   : > { %3854 = vmatprep.subr.mxu1 %v3747_v27 }
 0x611   : > { %v3688_v39 = vpop.permute.xlu0 %3687  ;;  %v3739_v42 = vpop.permute.xlu1 %3738 }
 0x612   : > { %v3746_v5 = vsel %vm12597_vm8, %v3739_v42, %v3741_v34  ;;  %v3695_v33 = vsel %vm12599_vm6, %v3688_v39, %v3690_v54  ;;  %vm12609_vm8 = vcmask 621568   ;;  %vm12611_vm6 = vcmask 629760  }
 0x613   : > { %4505 = vrot.lane.b32.xlu0 %v10502_v14, %s12596_s26  ;;  %4477 = vrot.lane.b32.xlu1 %v10420_v44, %s8487_s9  ;;  %s8489_s9 = smov 83  }
 0x614   : > { %3855 = vmatpush1.msra.mxu1 %v3746_v5 }
 0x615   : > { %v10586_v38 = vpop.permute.xlu0 %3640  ;;  %v10588_v11 = vpop.permute.xlu1 %3691 }
 0x616   : > { %v3696_v4 = vsel %vm12598_vm4, %v3690_v54, %v10588_v11  ;;  %vm12610_vm4 = vmmov %vm12609_vm8 }
 0x617   : > { %4526 = vrot.lane.b32.xlu0 %v10408_v43, %s8488_s2  ;;  %4499 = vrot.lane.b32.xlu1 %v10405_v63, %s12596_s26 }
 0x618   : > { %3856 = vmatprep.subr.mxu1 %v3696_v4 }
 0x619   : > { %v3588_v35 = vpop.permute.xlu0 %3587  ;;  %v3639_v24 = vpop.permute.xlu1 %3638  ;;  %3857 = vmatpush1.msra.mxu1 %v3695_v33 }
 0x61a   : > { %v3645_v34 = vsel %vm12600_vm12, %v3639_v24, %v10586_v38  ;;  %v3593_v33 = vsel %vm12604_vm14, %v3586_v0, %v3588_v35  ;;  %v3492_v0 = vsel %vm12607_vm15, %v10527_v49, %v10518_v7  ;;  %vm12612_vm12 = vmmov %vm12611_vm6  ;;  %vm3669_vm15 = vcmask 965632  }
 0x61b   : > { %4530 = vrot.lane.b32.xlu0 %v10483_v2, %s8488_s2  ;;  %4503 = vrot.lane.b32.xlu1 %v10393_v25, %s12596_s26  ;;  %s12613_s26 = smov 122  }
 0x61c   : > { %3858 = vmatprep.subr.mxu1 %v3645_v34 }
 0x61d   : > { %v3764_v27 = vpop.permute.xlu0 %3763  ;;  %v3637_v42 = vpop.permute.xlu1 %3636 }
 0x61e   : > { %v3644_v5 = vsel %vm12601_vm5, %v3637_v42, %v3639_v24  ;;  %v3543_v24 = vsel %vm12605_vm9, %v3537_v1, %v10546_v30  ;;  %vm12614_vm5 = vcmask 637952   ;;  %vm12478_vm9 = vcmask 588800  }
 0x61f   : > { %4552 = vrot.lane.b32.xlu0 %v10390_v52, %s12602_s17  ;;  %4524 = vrot.lane.b32.xlu1 %v10497_v16, %s8488_s2  ;;  %vm12615_vm14 = vmmov %vm12614_vm5 }
 0x620   : > { %3859 = vmatpush1.msra.mxu1 %v3644_v5  ;;  %v3542_v5 = vsel %vm12606_vm13, %v10539_v23, %v3537_v1  ;;  %v3441_v23 = vsel %vm12609_vm8, %v10495_v60, %v10485_v12  ;;  %v3440_v1 = vsel %vm12610_vm4, %v10476_v58, %v10495_v60  ;;  %v3339_v58 = vsel %vm12614_vm5, %v10432_v50, %v10417_v36 }
 0x621   : > { %v3745_v54 = vpop.permute.xlu0 %3744  ;;  %v10605_v39 = vpop.permute.xlu1 %3589  ;;  %v3338_v60 = vsel %vm12615_vm14, %v10403_v47, %v10432_v50  ;;  %vm3720_vm13 = vcmask 957440   ;;  %vm3618_vm8 = vcmask 97280   ;;  %vm12617_vm4 = vcmask 236544  }
 0x622   : > { %v3594_v4 = vsel %vm12603_vm3, %v3588_v35, %v10605_v39  ;;  %v3491_v35 = vsel %vm12608_vm0, %v10511_v61, %v10527_v49  ;;  %v3390_v61 = vsel %vm12611_vm6, %v10463_v26, %v10454_v9  ;;  %vm12488_vm3 = vcmask 949248  }
 0x623   : > { %4556 = vrot.lane.b32.xlu0 %v10502_v14, %s12602_s17  ;;  %4528 = vrot.lane.b32.xlu1 %v10420_v44, %s8488_s2  ;;  %vm12616_vm0 = vcmask 228352   ;;  %s8490_s2 = smov 82   ;;  %vm12618_vm6 = vcmask 244736   ;;  %vm12619_vm5 = vcmask 424960   ;;  %vm3516_vm14 = vcmask 113664  }
 0x624   : > { %3860 = vmatprep.subr.mxu1 %v3594_v4  ;;  %v3748_v47 = vsel %vm12616_vm0, %v10570_v53, %v3745_v54  ;;  %vm12620_vm0 = vcmask 433152  }
 0x625   : > { %v10615_v34 = vpop.permute.xlu0 %3714  ;;  %v10617_v42 = vpop.permute.xlu1 %3765  ;;  %3861 = vmatpush1.msra.mxu1 %v3593_v33 }
 0x626   : > { %3862 = vmatprep.subr.mxu1 %v3543_v24 }
 0x627   : > { %4577 = vrot.lane.b32.xlu0 %v10408_v43, %s8489_s9  ;;  %4550 = vrot.lane.b32.xlu1 %v10405_v63, %s12602_s17 }
 0x628   : > { %3863 = vmatpush1.msra.mxu1 %v3542_v5  ;;  %v3389_v5 = vsel %vm12612_vm12, %v10446_v57, %v10463_v26  ;;  %v10659_v57 = vld [vmem:[#allocation9] sm:$0xff]  ;;  %vm3567_vm12 = vcmask 105472  }
 0x629   : > { %v3662_v4 = vpop.permute.xlu0 %3661  ;;  %v3713_v33 = vpop.permute.xlu1 %3712  ;;  %3864 = vmatprep.subr.mxu1 %v3492_v0 }
 0x62a   : > { %3865 = vmatpush1.msra.mxu1 %v3491_v35  ;;  %v3772_v35 = vsel %vm12488_vm3, %v3764_v27, %v10617_v42  ;;  %v3721_v50 = vsel %vm3720_vm13, %v3713_v33, %v10615_v34 }
 0x62b   : > { %4581 = vrot.lane.b32.xlu0 %v10483_v2, %s8489_s9  ;;  %4554 = vrot.lane.b32.xlu1 %v10393_v25, %s12602_s17  ;;  %s12621_s17 = smov 104  }
 0x62c   : > { %3866 = vmatprep.subr.mxu1 %v3441_v23 }
 0x62d   : > { %v3643_v49 = vpop.permute.xlu0 %3642  ;;  %v3694_v24 = vpop.permute.xlu1 %3693  ;;  %3867 = vmatpush1.msra.mxu1 %v3440_v1 }
 0x62e   : > { %3868 = vmatprep.subr.mxu1 %v3390_v61  ;;  %v3697_v1 = vsel %vm12617_vm4, %v10588_v11, %v3694_v24  ;;  %v3646_v54 = vsel %vm12618_vm6, %v10586_v38, %v3643_v49  ;;  %v3568_v38 = vsel %vm3567_vm12, %v10553_v31, %v10565_v37  ;;  %vm12492_vm4 = vcmask 293888  }
 0x62f   : > { %4603 = vrot.lane.b32.xlu0 %v10390_v52, %s12613_s26  ;;  %4575 = vrot.lane.b32.xlu1 %v10497_v16, %s8489_s9  ;;  %v3517_v24 = vsel %vm3516_vm14, %v10525_v19, %v10541_v48  ;;  %vm12622_vm6 = vcmask 441344  }
 0x630   : > { %3869 = vmatpush1.msra.mxu1 %v3389_v5  ;;  %v3493_v31 = vsel %vm12622_vm6, %v10518_v7, %v10534_v45  ;;  %vm12448_vm6 = vcmask 310272  }
 0x631   : > { %v10657_v0 = vpop.permute.xlu1 %3663  ;;  %3870 = vmatprep.subr.mxu1 %v3339_v58  ;;  %v10661_v26 = vpop.permute.xlu0 %3612 }
 0x632   : > { %3871 = vmatpush1.msra.mxu1 %v3338_v60  ;;  %v3670_v27 = vsel %vm3669_vm15, %v3662_v4, %v10657_v0 }
 0x633   : > { %4607 = vrot.lane.b32.xlu0 %v10502_v14, %s12613_s26  ;;  %4579 = vrot.lane.b32.xlu1 %v10420_v44, %s8489_s9  ;;  %s8491_s9 = smov 64  }
 0x634   : > { %8008 = vmatmul.mubr.msk.f32.vlgmr.msra.gmra.mxu1 %vm12478_vm9, %v10659_v57  ;;  %3925 = vmatprep.subr.mxu1 %v3772_v35 }
 0x635   : > { %v3611_v23 = vpop.permute.xlu1 %3610  ;;  %3926 = vmatpush1.msra.mxu1 %v3748_v47  ;;  %3975 = vmatprep.mubr.f32.mxu1 %v8472_v8  ;;  %v3768_v53 = vpop.permute.xlu0 %3767 }
 0x636   : > { %3927 = vmatprep.subr.mxu1 %v3721_v50  ;;  %v3619_v4 = vsel %vm3618_vm8, %v3611_v23, %v10661_v26  ;;  %v3569_v23 = vsel %vm3567_vm12, %v10565_v37, %v10558_v41 }
 0x637   : > { %4628 = vrot.lane.b32.xlu0 %v10408_v43, %s8490_s2  ;;  %4601 = vrot.lane.b32.xlu1 %v10405_v63, %s12613_s26 }
 0x638   : > { %3928 = vmatpush1.msra.mxu1 %v3697_v1 }
 0x639   : > { %v3592_v33 = vpop.permute.xlu1 %3591  ;;  %3929 = vmatprep.subr.mxu1 %v3670_v27  ;;  %v3717_v49 = vpop.permute.xlu0 %3716  ;;  %v10803_v27 = vld [vmem:[#allocation3 + $0x8] sm:$0xff] }
 0x63a   : > { %v3595_v11 = vsel %vm12619_vm5, %v10605_v39, %v3592_v33  ;;  %3930 = vmatpush1.msra.mxu1 %v3646_v54  ;;  %v3544_v39 = vsel %vm12620_vm0, %v10546_v30, %v10560_v51  ;;  %vm12474_vm5 = vcmask 302080   ;;  %v3466_v30 = vsel %vm12492_vm4, %v10493_v13, %v10513_v28  ;;  %v4772_v54 = vld [vmem:[#allocation3 + $0x28] sm:$0xff] }
 0x63b   : > { %4632 = vrot.lane.b32.xlu0 %v10483_v2, %s8490_s2  ;;  %4605 = vrot.lane.b32.xlu1 %v10393_v25, %s12613_s26  ;;  %vm12623_vm0 = vcmask 621568   ;;  %v3415_v7 = vsel %vm12474_vm5, %v10461_v59, %v10478_v15  ;;  %v3391_v13 = vsel %vm12624_vm7, %v10454_v9, %v10470_v17  ;;  %v3722_v58 = vsel %vm3720_vm13, %v10615_v34, %v3717_v49  ;;  %s12626_s26 = smov 103  }
 0x63c   : > { %3931 = vmatprep.subr.mxu1 %v3619_v4  ;;  %v3442_v19 = vsel %vm12623_vm0, %v10485_v12, %v10506_v20  ;;  %v3364_v12 = vsel %vm12448_vm6, %v10430_v55, %v10448_v22  ;;  %vm12625_vm0 = vcmask 637952   ;;  %v3773_v55 = vsel %vm12488_vm3, %v10617_v42, %v3768_v53 }
 0x63d   : > { %v3770_v61 = vpop.permute.xlu1 %3769  ;;  %3932 = vmatpush1.msra.mxu1 %v3595_v11  ;;  %v3666_v51 = vpop.permute.xlu0 %3665  ;;  %v3340_v59 = vsel %vm12625_vm0, %v10417_v36, %v10440_v62  ;;  %v3570_v34 = vsel %vm3567_vm12, %v10558_v41, %v10572_v29  ;;  %vm4328_vm7 = vcmask 719872   ;;  %v3518_v29 = vsel %vm3516_vm14, %v10541_v48, %v10532_v46 }
 0x63e   : > { %3933 = vmatprep.subr.mxu1 %v3568_v38  ;;  %v3774_v9 = vsel %vm12488_vm3, %v3768_v53, %v3770_v61  ;;  %v3671_v60 = vsel %vm3669_vm15, %v10657_v0, %v3666_v51  ;;  %v3468_v41 = vsel %vm12492_vm4, %v10504_v3, %v10520_v18  ;;  %v3416_v18 = vsel %vm12474_vm5, %v10478_v15, %v10468_v10  ;;  %v10825_v38 = vld [vmem:[#allocation3 + $0x10] sm:$0xff] }
 0x63f   : > { %4654 = vrot.lane.b32.xlu0 %v10390_v52, %s12621_s17  ;;  %4626 = vrot.lane.b32.xlu1 %v10497_v16, %s8490_s2  ;;  %vm12628_vm0 = vcmask 1039360  }
 0x640   : > { %3934 = vmatpush1.msra.mxu1 %v3544_v39 }
 0x641   : > { %3935 = vmatprep.subr.mxu1 %v3517_v24  ;;  %v3719_v5 = vpop.permute.xlu1 %3718  ;;  %v3615_v45 = vpop.permute.xlu0 %3614 }
 0x642   : > { %3936 = vmatpush1.msra.mxu1 %v3493_v31  ;;  %v3723_v36 = vsel %vm3720_vm13, %v3717_v49, %v3719_v5 }
 0x643   : > { %4658 = vrot.lane.b32.xlu0 %v10502_v14, %s12621_s17  ;;  %4630 = vrot.lane.b32.xlu1 %v10420_v44, %s8490_s2  ;;  %s8492_s2 = smov 63  }
 0x644   : > { %3937 = vmatprep.subr.mxu1 %v3466_v30 }
 0x645   : > { %3938 = vmatpush1.msra.mxu1 %v3442_v19  ;;  %v3668_v20 = vpop.permute.xlu1 %3667 }
 0x646   : > { %3939 = vmatprep.subr.mxu1 %v3415_v7  ;;  %v3672_v42 = vsel %vm3669_vm15, %v3666_v51, %v3668_v20 }
 0x647   : > { %4679 = vrot.lane.b32.xlu0 %v10408_v43, %s8491_s9  ;;  %4652 = vrot.lane.b32.xlu1 %v10405_v63, %s12621_s17 }
 0x648   : > { %3940 = vmatpush1.msra.mxu1 %v3391_v13 }
 0x649   : > { %3941 = vmatprep.subr.mxu1 %v3364_v12  ;;  %v3617_v62 = vpop.permute.xlu1 %3616 }
 0x64a   : > { %3942 = vmatpush1.msra.mxu1 %v3340_v59  ;;  %v3621_v35 = vsel %vm3618_vm8, %v3615_v45, %v3617_v62 }
 0x64b   : > { %4683 = vrot.lane.b32.xlu0 %v10483_v2, %s8491_s9  ;;  %4656 = vrot.lane.b32.xlu1 %v10393_v25, %s12621_s17  ;;  %s12627_s17 = smov 102  }
 0x64c   : > { %8009 = vmatmul.mubr.msk.f32.vlgmr.msra.gmra.mxu1 %vm12478_vm9, %v10659_v57  ;;  %3996 = vmatprep.subr.mxu1 %v3774_v9 }
 0x64d   : > { %3997 = vmatpush1.msra.mxu1 %v3773_v55  ;;  %4046 = vmatprep.mubr.f32.mxu1 %v8472_v8 }
 0x64e   : > { %v10747_v17 = vpop.permute.xlu0 %4056  ;;  %3998 = vmatprep.subr.mxu1 %v3723_v36 }
 0x64f   : > { %4705 = vrot.lane.b32.xlu0 %v10390_v52, %s12626_s26  ;;  %4677 = vrot.lane.b32.xlu1 %v10497_v16, %s8491_s9  ;;  %v3620_v52 = vsel %vm3618_vm8, %v10661_v26, %v3615_v45  ;;  %v3467_v26 = vsel %vm12492_vm4, %v10513_v28, %v10504_v3  ;;  %v3366_v3 = vsel %vm12448_vm6, %v10438_v56, %v10456_v21 }
 0x650   : > { %3999 = vmatpush1.msra.mxu1 %v3722_v58 }
 0x651   : > { %4000 = vmatprep.subr.mxu1 %v3672_v42 }
 0x652   : > { %v4323_v47 = vpop.permute.xlu0 %4322  ;;  %4001 = vmatpush1.msra.mxu1 %v3671_v60 }
 0x653   : > { %4709 = vrot.lane.b32.xlu0 %v10502_v14, %s12626_s26  ;;  %4681 = vrot.lane.b32.xlu1 %v10420_v44, %s8491_s9  ;;  %v3519_v44 = vsel %vm3516_vm14, %v10532_v46, %v10548_v32  ;;  %v3417_v46 = vsel %vm12474_vm5, %v10468_v10, %v10487_v40  ;;  %v3365_v40 = vsel %vm12448_vm6, %v10448_v22, %v10438_v56  ;;  %v4722_v22 = vld [vmem:[#allocation3 + $0x30] sm:$0xff]  ;;  %vm12630_vm6 = vmmov %vm12628_vm0  ;;  %s8493_s9 = smov 62   ;;  %vm12764_vm5 = vcmask 908288  }
 0x654   : > { %4002 = vmatprep.subr.mxu1 %v3621_v35 }
 0x655   : > { %4003 = vmatpush1.msra.mxu1 %v3620_v52 }
 0x656   : > { %v4327_v0 = vpop.permute.xlu0 %4326  ;;  %4004 = vmatprep.subr.mxu1 %v3570_v34  ;;  %v10768_v50 = vpop.permute.xlu1 %4068 }
 0x657   : > { %4730 = vrot.lane.b32.xlu0 %v10408_v43, %s8492_s2  ;;  %4703 = vrot.lane.b32.xlu1 %v10405_v63, %s12626_s26 }
 0x658   : > { %4005 = vmatpush1.msra.mxu1 %v3569_v23 }
 0x659   : > { %4006 = vmatprep.subr.mxu1 %v3519_v44 }
 0x65a   : > { %4007 = vmatpush1.msra.mxu1 %v3518_v29  ;;  %v4349_v43 = vpop.permute.xlu0 %4348  ;;  %v4321_v37 = vpop.permute.xlu1 %4320 }
 0x65b   : > { %4008 = vmatprep.subr.mxu1 %v3468_v41  ;;  %v4329_v32 = vsel %vm4328_vm7, %v4321_v37, %v4323_v47  ;;  %4734 = vrot.lane.b32.xlu0 %v10483_v2, %s8492_s2  ;;  %v10877_v41 = vld [vmem:[#allocation3 + $0x18] sm:$0xff] }
 0x65c   : > { %4335 = vst [vmem:[#allocation4 + $0x758] sm:$0xff] %v4329_v32  ;;  %4707 = vrot.lane.b32.xlu1 %v10393_v25, %s12626_s26  ;;  %4009 = vmatpush1.msra.mxu1 %v3467_v26  ;;  %s12631_s26 = smov 101  }
 0x65d   : > { %4010 = vmatprep.subr.mxu1 %v3417_v46 }
 0x65e   : > { %4011 = vmatpush1.msra.mxu1 %v3416_v18  ;;  %v4353_v28 = vpop.permute.xlu0 %4352  ;;  %v4325_v48 = vpop.permute.xlu1 %4324 }
 0x65f   : > { %4012 = vmatprep.subr.mxu1 %v3366_v3  ;;  %v4330_v25 = vsel %vm4328_vm7, %v4323_v47, %v4325_v48  ;;  %v4331_v1 = vsel %vm4328_vm7, %v4325_v48, %v4327_v0  ;;  %4756 = vrot.lane.b32.xlu0 %v10803_v27, %s12627_s17  ;;  %vm12629_vm7 = vmmov %vm12628_vm0  ;;  %v10893_v3 = vld [vmem:[#allocation3] sm:$0xff] }
 0x660   : > { %4337 = vst [vmem:[#allocation4 + $0x438] sm:$0xff] %v4331_v1  ;;  %4728 = vrot.lane.b32.xlu1 %v10497_v16, %s8492_s2  ;;  %4013 = vmatpush1.msra.mxu1 %v3365_v40  ;;  %4336 = vst [vmem:[#allocation4 + $0x320] sm:$0xff] %v4330_v25 }
 0x661   : > { %8010 = vmatmul.mubr.msk.f32.vlgmr.msra.gmra.mxu1 %vm12478_vm9, %v10659_v57 }
 0x662   : > { %v4374_v21 = vpop.permute.xlu0 %4373  ;;  %v4347_v10 = vpop.permute.xlu1 %4346 }
 0x663   : > { %v4354_v56 = vsel %vm12628_vm0, %v4347_v10, %v4349_v43  ;;  %4760 = vrot.lane.b32.xlu0 %v10502_v14, %s12627_s17  ;;  %vm4379_vm0 = vcmask 711680  }
 0x664   : > { %4360 = vst [vmem:[#allocation4 + $0x8f8] sm:$0xff] %v4354_v56  ;;  %4732 = vrot.lane.b32.xlu1 %v4722_v22, %s8492_s2  ;;  %s12633_s2 = smov 79  }
 0x666   : > { %v4378_v15 = vpop.permute.xlu0 %4377  ;;  %v4351_v53 = vpop.permute.xlu1 %4350 }
 0x667   : > { %v4355_v4 = vsel %vm12629_vm7, %v4349_v43, %v4351_v53  ;;  %v4356_v33 = vsel %vm12630_vm6, %v4351_v53, %v4353_v28  ;;  %4781 = vrot.lane.b32.xlu0 %v4772_v54, %s8493_s9  ;;  %vm12632_vm6 = vcmask 1031168  }
 0x668   : > { %4361 = vst [vmem:[#allocation4 + $0x4d0] sm:$0xff] %v4355_v4  ;;  %4362 = vst [vmem:[#allocation4 + $0x6e8] sm:$0xff] %v4356_v33  ;;  %4754 = vrot.lane.b32.xlu1 %v10405_v63, %s12627_s17 }
 0x669   : > { %vm12634_vm7 = vmmov %vm12632_vm6 }
 0x66a   : > { %v4400_v14 = vpop.permute.xlu0 %4399  ;;  %v4372_v57 = vpop.permute.xlu1 %4371 }
 0x66b   : > { %v4380_v11 = vsel %vm4379_vm0, %v4372_v57, %v4374_v21  ;;  %4785 = vrot.lane.b32.xlu0 %v10483_v2, %s8493_s9 }
 0x66c   : > { %4386 = vst [vmem:[#allocation4 + $0x6a8] sm:$0xff] %v4380_v11  ;;  %4758 = vrot.lane.b32.xlu1 %v10825_v38, %s12627_s17  ;;  %s12636_s17 = smov 80  }
 0x66e   : > { %v4404_v61 = vpop.permute.xlu0 %4403  ;;  %v4376_v49 = vpop.permute.xlu1 %4375 }
 0x66f   : > { %v4381_v39 = vsel %vm4379_vm0, %v4374_v21, %v4376_v49  ;;  %v4382_v24 = vsel %vm4379_vm0, %v4376_v49, %v4378_v15  ;;  %4807 = vrot.lane.b32.xlu0 %v10803_v27, %s12631_s26  ;;  %vm12635_vm0 = vmmov %vm12632_vm6 }
 0x670   : > { %4387 = vst [vmem:[#allocation4 + $0x750] sm:$0xff] %v4381_v39  ;;  %4388 = vst [vmem:[#allocation4 + $0x300] sm:$0xff] %v4382_v24  ;;  %4779 = vrot.lane.b32.xlu1 %v10497_v16, %s8493_s9 }
 0x672   : > { %v4425_v31 = vpop.permute.xlu0 %4424  ;;  %v4398_v5 = vpop.permute.xlu1 %4397 }
 0x673   : > { %v4405_v2 = vsel %vm12632_vm6, %v4398_v5, %v4400_v14  ;;  %5063 = vrot.lane.b32.xlu0 %v10825_v38, %s12633_s2  ;;  %vm4430_vm6 = vcmask 703488  }
 0x674   : > { %4411 = vst [vmem:[#allocation4 + $0x708] sm:$0xff] %v4405_v2  ;;  %4783 = vrot.lane.b32.xlu1 %v4722_v22, %s8493_s9  ;;  %s12637_s9 = smov 98  }
 0x676   : > { %v4429_v30 = vpop.permute.xlu0 %4428  ;;  %v4402_v19 = vpop.permute.xlu1 %4401 }
 0x677   : > { %v10836_v51 = vsel %vm12634_vm7, %v4400_v14, %v4402_v19  ;;  %v4407_v7 = vsel %vm12635_vm0, %v4402_v19, %v4404_v61  ;;  %5011 = vrot.lane.b32.xlu0 %v10803_v27, %s12636_s17  ;;  %vm12638_vm7 = vcmask 1022976  }
 0x678   : > { %4412 = vst [vmem:[#allocation4 + $0x7f0] sm:$0xff] %v10836_v51  ;;  %4413 = vst [vmem:[#allocation4 + $0x570] sm:$0xff] %v4407_v7  ;;  %4805 = vrot.lane.b32.xlu1 %v10405_v63, %s12631_s26 }
 0x679   : > { %vm12640_vm0 = vmmov %vm12638_vm7 }
 0x67a   : > { %v4451_v16 = vpop.permute.xlu0 %4450  ;;  %v4423_v13 = vpop.permute.xlu1 %4422 }
 0x67b   : > { %v4431_v12 = vsel %vm4430_vm6, %v4423_v13, %v4425_v31  ;;  %5009 = vrot.lane.b32.xlu0 %v10405_v63, %s12636_s17 }
 0x67c   : > { %4437 = vst [vmem:[#allocation4 + $0x580] sm:$0xff] %v4431_v12  ;;  %5061 = vrot.lane.b32.xlu1 %v10803_v27, %s12633_s2 }
 0x67e   : > { %v4455_v20 = vpop.permute.xlu0 %4454  ;;  %v4427_v59 = vpop.permute.xlu1 %4426 }
 0x67f   : > { %v4432_v45 = vsel %vm4430_vm6, %v4425_v31, %v4427_v59  ;;  %v4433_v9 = vsel %vm4430_vm6, %v4427_v59, %v4429_v30  ;;  %4962 = vrot.lane.b32.xlu0 %v10825_v38, %s12637_s9  ;;  %vm12641_vm6 = vmmov %vm12640_vm0 }
 0x680   : > { %4438 = vst [vmem:[#allocation4 + $0x3a8] sm:$0xff] %v4432_v45  ;;  %4439 = vst [vmem:[#allocation4 + $0x8e0] sm:$0xff] %v4433_v9  ;;  %5059 = vrot.lane.b32.xlu1 %v10405_v63, %s12633_s2 }
 0x682   : > { %v4476_v55 = vpop.permute.xlu0 %4475  ;;  %v4449_v36 = vpop.permute.xlu1 %4448 }
 0x683   : > { %v10853_v62 = vsel %vm12638_vm7, %v4449_v36, %v4451_v16  ;;  %4909 = vrot.lane.b32.xlu0 %v10803_v27, %s12639_s7  ;;  %vm4481_vm7 = vcmask 695296  }
 0x684   : > { %4462 = vst [vmem:[#allocation4 + $0x890] sm:$0xff] %v10853_v62  ;;  %5013 = vrot.lane.b32.xlu1 %v10825_v38, %s12636_s17 }
 0x686   : > { %v4480_v58 = vpop.permute.xlu0 %4479  ;;  %v4453_v42 = vpop.permute.xlu1 %4452 }
 0x687   : > { %v10861_v60 = vsel %vm12640_vm0, %v4451_v16, %v4453_v42  ;;  %v4458_v35 = vsel %vm12641_vm6, %v4453_v42, %v4455_v20  ;;  %4907 = vrot.lane.b32.xlu0 %v10405_v63, %s12639_s7  ;;  %vm12643_vm0 = vcmask 1014784  }
 0x688   : > { %4463 = vst [vmem:[#allocation4 + $0x7d0] sm:$0xff] %v10861_v60  ;;  %4464 = vst [vmem:[#allocation4 + $0x770] sm:$0xff] %v4458_v35  ;;  %4960 = vrot.lane.b32.xlu1 %v10803_v27, %s12637_s9 }
 0x689   : > { %vm12645_vm6 = vmmov %vm12643_vm0 }
 0x68a   : > { %v4502_v47 = vpop.permute.xlu0 %4501  ;;  %v4474_v52 = vpop.permute.xlu1 %4473 }
 0x68b   : > { %v4482_v34 = vsel %vm4481_vm7, %v4474_v52, %v4476_v55  ;;  %4860 = vrot.lane.b32.xlu0 %v10825_v38, %s12642_s5 }
 0x68c   : > { %4488 = vst [vmem:[#allocation4 + $0x480] sm:$0xff] %v4482_v34  ;;  %4958 = vrot.lane.b32.xlu1 %v10405_v63, %s12637_s9 }
 0x68e   : > { %v4506_v0 = vpop.permute.xlu0 %4505  ;;  %v4478_v23 = vpop.permute.xlu1 %4477 }
 0x68f   : > { %v4483_v44 = vsel %vm4481_vm7, %v4476_v55, %v4478_v23  ;;  %v4484_v29 = vsel %vm4481_vm7, %v4478_v23, %v4480_v58  ;;  %4809 = vrot.lane.b32.xlu0 %v10825_v38, %s12631_s26  ;;  %vm12646_vm7 = vmmov %vm12643_vm0  ;;  %s12662_s26 = smov 112  }
 0x690   : > { %4489 = vst [vmem:[#allocation4 + $0x370] sm:$0xff] %v4483_v44  ;;  %4490 = vst [vmem:[#allocation4 + $0x90] sm:$0xff] %v4484_v29  ;;  %4911 = vrot.lane.b32.xlu1 %v10825_v38, %s12639_s7 }
 0x692   : > { %v4527_v43 = vpop.permute.xlu0 %4526  ;;  %v4500_v37 = vpop.permute.xlu1 %4499 }
 0x693   : > { %v10880_v26 = vsel %vm12643_vm0, %v4500_v37, %v4502_v47  ;;  %6683 = vrot.lane.b32.xlu0 %v10877_v41, %s12644_s6  ;;  %vm4532_vm0 = vcmask 687104  }
 0x694   : > { %4513 = vst [vmem:[#allocation4 + $0x368] sm:$0xff] %v10880_v26  ;;  %4858 = vrot.lane.b32.xlu1 %v10803_v27, %s12642_s5 }
 0x696   : > { %v4531_v63 = vpop.permute.xlu0 %4530  ;;  %v4504_v32 = vpop.permute.xlu1 %4503 }
 0x697   : > { %v10888_v46 = vsel %vm12645_vm6, %v4502_v47, %v4504_v32  ;;  %v4509_v18 = vsel %vm12646_vm7, %v4504_v32, %v4506_v0  ;;  %5870 = vrot.lane.b32.xlu0 %v10803_v27, %s12584_s22  ;;  %vm12648_vm6 = vcmask 1006592  }
 0x698   : > { %4514 = vst [vmem:[#allocation4 + $0x830] sm:$0xff] %v10888_v46  ;;  %4515 = vst [vmem:[#allocation4 + $0x10] sm:$0xff] %v4509_v18  ;;  %4856 = vrot.lane.b32.xlu1 %v10893_v3, %s12642_s5 }
 0x699   : > { %vm12649_vm7 = vmmov %vm12648_vm6 }
 0x69a   : > { %v4553_v28 = vpop.permute.xlu0 %4552  ;;  %v4525_v48 = vpop.permute.xlu1 %4524 }
 0x69b   : > { %v4533_v40 = vsel %vm4532_vm0, %v4525_v48, %v4527_v43  ;;  %6631 = vrot.lane.b32.xlu0 %v10825_v38, %s12647_s8 }
 0x69c   : > { %4539 = vst [vmem:[#allocation4 + $0x268] sm:$0xff] %v4533_v40  ;;  %6681 = vrot.lane.b32.xlu1 %v10825_v38, %s12644_s6 }
 0x69e   : > { %v4557_v25 = vpop.permute.xlu0 %4556  ;;  %v4529_v1 = vpop.permute.xlu1 %4528 }
 0x69f   : > { %v4534_v21 = vsel %vm4532_vm0, %v4527_v43, %v4529_v1  ;;  %v4535_v10 = vsel %vm4532_vm0, %v4529_v1, %v4531_v63  ;;  %5868 = vrot.lane.b32.xlu0 %v10893_v3, %s12584_s22  ;;  %vm12650_vm0 = vmmov %vm12648_vm6 }
 0x6a0   : > { %4540 = vst [vmem:[#allocation4 + $0x648] sm:$0xff] %v4534_v21  ;;  %4541 = vst [vmem:[#allocation4 + $0x540] sm:$0xff] %v4535_v10  ;;  %6679 = vrot.lane.b32.xlu1 %v10803_v27, %s12644_s6 }
 0x6a2   : > { %v4578_v56 = vpop.permute.xlu0 %4577  ;;  %v4551_v22 = vpop.permute.xlu1 %4550 }
 0x6a3   : > { %v10907_v15 = vsel %vm12648_vm6, %v4551_v22, %v4553_v28  ;;  %5820 = vrot.lane.b32.xlu0 %v10803_v27, %s12585_s30  ;;  %vm4583_vm6 = vcmask 678912  }
 0x6a4   : > { %4564 = vst [vmem:[#allocation4 + $0x568] sm:$0xff] %v10907_v15  ;;  %5872 = vrot.lane.b32.xlu1 %v10825_v38, %s12584_s22  ;;  %s12652_s22 = smov 31  }
 0x6a6   : > { %v4582_v53 = vpop.permute.xlu0 %4581  ;;  %v4555_v54 = vpop.permute.xlu1 %4554 }
 0x6a7   : > { %v10915_v4 = vsel %vm12649_vm7, %v4553_v28, %v4555_v54  ;;  %v4560_v33 = vsel %vm12650_vm0, %v4555_v54, %v4557_v25  ;;  %6580 = vrot.lane.b32.xlu0 %v10825_v38, %s12651_s27  ;;  %vm12653_vm7 = vcmask 998400  }
 0x6a8   : > { %4565 = vst [vmem:[#allocation4 + $0x578] sm:$0xff] %v10915_v4  ;;  %4566 = vst [vmem:[#allocation4 + $0x6f0] sm:$0xff] %v4560_v33  ;;  %6633 = vrot.lane.b32.xlu1 %v10877_v41, %s12647_s8 }
 0x6a9   : > { %vm12655_vm0 = vmmov %vm12653_vm7 }
 0x6aa   : > { %v4604_v14 = vpop.permute.xlu0 %4603  ;;  %v4576_v57 = vpop.permute.xlu1 %4575 }
 0x6ab   : > { %v4584_v11 = vsel %vm4583_vm6, %v4576_v57, %v4578_v56  ;;  %5818 = vrot.lane.b32.xlu0 %v10893_v3, %s12585_s30 }
 0x6ac   : > { %4590 = vst [vmem:[#allocation4 + $0x5b8] sm:$0xff] %v4584_v11  ;;  %6629 = vrot.lane.b32.xlu1 %v10803_v27, %s12647_s8 }
 0x6ae   : > { %v4608_v61 = vpop.permute.xlu0 %4607  ;;  %v4580_v49 = vpop.permute.xlu1 %4579 }
 0x6af   : > { %v4585_v39 = vsel %vm4583_vm6, %v4578_v56, %v4580_v49  ;;  %v4586_v24 = vsel %vm4583_vm6, %v4580_v49, %v4582_v53  ;;  %5769 = vrot.lane.b32.xlu0 %v10803_v27, %s12652_s22  ;;  %vm12656_vm6 = vmmov %vm12655_vm0 }
 0x6b0   : > { %4591 = vst [vmem:[#allocation4 + $0x800] sm:$0xff] %v4585_v39  ;;  %4592 = vst [vmem:[#allocation4 + $0x900] sm:$0xff] %v4586_v24  ;;  %5822 = vrot.lane.b32.xlu1 %v10825_v38, %s12585_s30  ;;  %s12657_s30 = smov 32  }
 0x6b2   : > { %v4629_v31 = vpop.permute.xlu0 %4628  ;;  %v4602_v5 = vpop.permute.xlu1 %4601 }
 0x6b3   : > { %v10932_v2 = vsel %vm12653_vm7, %v4602_v5, %v4604_v14  ;;  %6529 = vrot.lane.b32.xlu0 %v10825_v38, %s12654_s18  ;;  %vm4634_vm7 = vcmask 670720  }
 0x6b4   : > { %4615 = vst [vmem:[#allocation4 + $0x728] sm:$0xff] %v10932_v2  ;;  %6582 = vrot.lane.b32.xlu1 %v10877_v41, %s12651_s27 }
 0x6b6   : > { %v4633_v30 = vpop.permute.xlu0 %4632  ;;  %v4606_v19 = vpop.permute.xlu1 %4605 }
 0x6b7   : > { %v10940_v7 = vsel %vm12655_vm0, %v4604_v14, %v4606_v19  ;;  %v4611_v16 = vsel %vm12656_vm6, %v4606_v19, %v4608_v61  ;;  %5767 = vrot.lane.b32.xlu0 %v10893_v3, %s12652_s22  ;;  %vm12658_vm0 = vcmask 850944  }
 0x6b8   : > { %4616 = vst [vmem:[#allocation4 + $0x610] sm:$0xff] %v10940_v7  ;;  %4617 = vst [vmem:[#allocation4 + $0x308] sm:$0xff] %v4611_v16  ;;  %6578 = vrot.lane.b32.xlu1 %v10803_v27, %s12651_s27 }
 0x6b9   : > { %vm12659_vm6 = vmmov %vm12658_vm0 }
 0x6ba   : > { %v4655_v13 = vpop.permute.xlu0 %4654  ;;  %v4627_v12 = vpop.permute.xlu1 %4626 }
 0x6bb   : > { %v4635_v20 = vsel %vm4634_vm7, %v4627_v12, %v4629_v31  ;;  %5718 = vrot.lane.b32.xlu0 %v10803_v27, %s12657_s30 }
 0x6bc   : > { %4641 = vst [vmem:[#allocation4 + $0x450] sm:$0xff] %v4635_v20  ;;  %5771 = vrot.lane.b32.xlu1 %v10825_v38, %s12652_s22  ;;  %s12661_s22 = smov 50  }
 0x6be   : > { %v4659_v59 = vpop.permute.xlu0 %4658  ;;  %v4631_v45 = vpop.permute.xlu1 %4630 }
 0x6bf   : > { %v4636_v9 = vsel %vm4634_vm7, %v4629_v31, %v4631_v45  ;;  %v4637_v55 = vsel %vm4634_vm7, %v4631_v45, %v4633_v30  ;;  %6478 = vrot.lane.b32.xlu0 %v10825_v38, %s12534_s14  ;;  %vm12660_vm7 = vmmov %vm12658_vm0 }
 0x6c0   : > { %4642 = vst [vmem:[#allocation4 + $0x7c8] sm:$0xff] %v4636_v9  ;;  %4643 = vst [vmem:[#allocation4 + $0x280] sm:$0xff] %v4637_v55  ;;  %6531 = vrot.lane.b32.xlu1 %v10877_v41, %s12654_s18 }
 0x6c2   : > { %v4680_v36 = vpop.permute.xlu0 %4679  ;;  %v4653_v58 = vpop.permute.xlu1 %4652 }
 0x6c3   : > { %v10957_v42 = vsel %vm12658_vm0, %v4653_v58, %v4655_v13  ;;  %5716 = vrot.lane.b32.xlu0 %v10893_v3, %s12657_s30  ;;  %vm4685_vm0 = vcmask 523264  }
 0x6c4   : > { %4666 = vst [vmem:[#allocation4 + $0x3b8] sm:$0xff] %v10957_v42  ;;  %6527 = vrot.lane.b32.xlu1 %v10803_v27, %s12654_s18 }
 0x6c6   : > { %v4684_v35 = vpop.permute.xlu0 %4683  ;;  %v4657_v47 = vpop.permute.xlu1 %4656 }
 0x6c7   : > { %v10965_v52 = vsel %vm12659_vm6, %v4655_v13, %v4657_v47  ;;  %v4662_v34 = vsel %vm12660_vm7, %v4657_v47, %v4659_v59  ;;  %5667 = vrot.lane.b32.xlu0 %v10803_v27, %s12661_s22  ;;  %vm12663_vm6 = vcmask 842752  }
 0x6c8   : > { %4667 = vst [vmem:[#allocation4 + $0x3b0] sm:$0xff] %v10965_v52  ;;  %4668 = vst [vmem:[#allocation4 + $0x488] sm:$0xff] %v4662_v34  ;;  %5720 = vrot.lane.b32.xlu1 %v10825_v38, %s12657_s30  ;;  %s12664_s30 = smov 51  }
 0x6c9   : > { %vm12665_vm7 = vmmov %vm12663_vm6 }
 0x6ca   : > { %v4706_v0 = vpop.permute.xlu0 %4705  ;;  %v4678_v23 = vpop.permute.xlu1 %4677 }
 0x6cb   : > { %v4686_v44 = vsel %vm4685_vm0, %v4678_v23, %v4680_v36  ;;  %6428 = vrot.lane.b32.xlu0 %v10825_v38, %s12662_s26 }
 0x6cc   : > { %4692 = vst [vmem:[#allocation4 + $0x58] sm:$0xff] %v4686_v44  ;;  %6480 = vrot.lane.b32.xlu1 %v10877_v41, %s12534_s14 }
 0x6ce   : > { %v4710_v29 = vpop.permute.xlu0 %4709  ;;  %v4682_v43 = vpop.permute.xlu1 %4681 }
 0x6cf   : > { %v4687_v37 = vsel %vm4685_vm0, %v4680_v36, %v4682_v43  ;;  %v4688_v63 = vsel %vm4685_vm0, %v4682_v43, %v4684_v35  ;;  %5665 = vrot.lane.b32.xlu0 %v10893_v3, %s12661_s22  ;;  %vm12666_vm0 = vmmov %vm12663_vm6 }
 0x6d0   : > { %4693 = vst [vmem:[#allocation4 + $0x4a8] sm:$0xff] %v4687_v37  ;;  %4694 = vst [vmem:[#allocation4 + $0x618] sm:$0xff] %v4688_v63  ;;  %6476 = vrot.lane.b32.xlu1 %v10803_v27, %s12534_s14 }
 0x6d2   : > { %v4731_v32 = vpop.permute.xlu0 %4730  ;;  %v4704_v18 = vpop.permute.xlu1 %4703 }
 0x6d3   : > { %v10982_v28 = vsel %vm12663_vm6, %v4704_v18, %v4706_v0  ;;  %5616 = vrot.lane.b32.xlu0 %v10803_v27, %s12664_s30  ;;  %vm4736_vm6 = vcmask 515072  }
 0x6d4   : > { %4717 = vst [vmem:[#allocation4 + $0x700] sm:$0xff] %v10982_v28  ;;  %5669 = vrot.lane.b32.xlu1 %v10825_v38, %s12661_s22 }
 0x6d6   : > { %v4735_v48 = vpop.permute.xlu0 %4734  ;;  %v4708_v40 = vpop.permute.xlu1 %4707 }
 0x6d7   : > { %v10990_v25 = vsel %vm12665_vm7, %v4706_v0, %v4708_v40  ;;  %v4713_v1 = vsel %vm12666_vm0, %v4708_v40, %v4710_v29  ;;  %6377 = vrot.lane.b32.xlu0 %v10803_v27, %s12536_s16  ;;  %vm12667_vm7 = vcmask 834560  }
 0x6d8   : > { %4718 = vst [vmem:[#allocation4 + $0x5f0] sm:$0xff] %v10990_v25  ;;  %4719 = vst [vmem:[#allocation4 + $0x4d8] sm:$0xff] %v4713_v1  ;;  %6430 = vrot.lane.b32.xlu1 %v10877_v41, %s12662_s26 }
 0x6d9   : > { %vm12668_vm0 = vmmov %vm12667_vm7 }
 0x6da   : > { %v4757_v21 = vpop.permute.xlu0 %4756  ;;  %v4729_v10 = vpop.permute.xlu1 %4728 }
 0x6db   : > { %v4737_v56 = vsel %vm4736_vm6, %v4729_v10, %v4731_v32  ;;  %5614 = vrot.lane.b32.xlu0 %v10893_v3, %s12664_s30 }
 0x6dc   : > { %4743 = vst [vmem:[#allocation4 + $0x588] sm:$0xff] %v4737_v56  ;;  %6426 = vrot.lane.b32.xlu1 %v10803_v27, %s12662_s26 }
 0x6de   : > { %v4761_v22 = vpop.permute.xlu0 %4760  ;;  %v4733_v53 = vpop.permute.xlu1 %4732 }
 0x6df   : > { %v4738_v54 = vsel %vm4736_vm6, %v4731_v32, %v4733_v53  ;;  %v4739_v33 = vsel %vm4736_vm6, %v4733_v53, %v4735_v48  ;;  %5566 = vrot.lane.b32.xlu0 %v10803_v27, %s12583_s11  ;;  %vm12669_vm6 = vmmov %vm12668_vm0  ;;  %v11067_v48 = vld [vmem:[%s12674_s4] sm:$0xff]  ;;  %s12685_s4 = smov 74  }
 0x6e0   : > { %4744 = vst [vmem:[#allocation4 + $0x600] sm:$0xff] %v4738_v54  ;;  %4745 = vst [vmem:[#allocation4 + $0x2f0] sm:$0xff] %v4739_v33  ;;  %5618 = vrot.lane.b32.xlu1 %v10825_v38, %s12664_s30 }
 0x6e2   : > { %v4782_v41 = vpop.permute.xlu0 %4781  ;;  %v4755_v14 = vpop.permute.xlu1 %4754 }
 0x6e3   : > { %v11007_v57 = vsel %vm12667_vm7, %v4755_v14, %v4757_v21  ;;  %6326 = vrot.lane.b32.xlu0 %v10803_v27, %s12535_s13  ;;  %vm4787_vm7 = vcmask 506880  }
 0x6e4   : > { %4768 = vst [vmem:[#allocation4 + $0x660] sm:$0xff] %v11007_v57  ;;  %6379 = vrot.lane.b32.xlu1 %v10825_v38, %s12536_s16 }
 0x6e6   : > { %v4786_v11 = vpop.permute.xlu0 %4785  ;;  %v4759_v61 = vpop.permute.xlu1 %4758 }
 0x6e7   : > { %v11015_v49 = vsel %vm12668_vm0, %v4757_v21, %v4759_v61  ;;  %v4764_v39 = vsel %vm12669_vm6, %v4759_v61, %v4761_v22  ;;  %5564 = vrot.lane.b32.xlu0 %v10893_v3, %s12583_s11  ;;  %vm12670_vm0 = vcmask 826368   ;;  %vm12671_vm6 = vcmask 654336  }
 0x6e8   : > { %4769 = vst [vmem:[#allocation4 + $0xd8] sm:$0xff] %v11015_v49  ;;  %4770 = vst [vmem:[#allocation4 + $0x6c8] sm:$0xff] %v4764_v39  ;;  %6375 = vrot.lane.b32.xlu1 %v10893_v3, %s12536_s16 }
 0x6ea   : > { %v11023_v24 = vpop.permute.xlu0 %4807  ;;  %v4780_v31 = vpop.permute.xlu1 %4779 }
 0x6eb   : > { %v4788_v5 = vsel %vm4787_vm7, %v4780_v31, %v4782_v41  ;;  %5516 = vrot.lane.b32.xlu0 %v10803_v27, %s12582_s28 }
 0x6ec   : > { %4794 = vst [vmem:[#allocation4 + $0x98] sm:$0xff] %v4788_v5  ;;  %5568 = vrot.lane.b32.xlu1 %v10825_v38, %s12583_s11  ;;  %s12682_s11 = smov 56  }
 0x6ee   : > { %v11029_v30 = vpop.permute.xlu0 %5063  ;;  %v4784_v19 = vpop.permute.xlu1 %4783 }
 0x6ef   : > { %v4789_v16 = vsel %vm4787_vm7, %v4782_v41, %v4784_v19  ;;  %v4790_v13 = vsel %vm4787_vm7, %v4784_v19, %v4786_v11  ;;  %6275 = vrot.lane.b32.xlu0 %v10803_v27, %s12528_s20  ;;  %vm12672_vm7 = vcmask 646144  }
 0x6f0   : > { %4795 = vst [vmem:[#allocation4 + $0x70] sm:$0xff] %v4789_v16  ;;  %4796 = vst [vmem:[#allocation4 + $0x6b0] sm:$0xff] %v4790_v13  ;;  %6328 = vrot.lane.b32.xlu1 %v10825_v38, %s12535_s13 }
 0x6f2   : > { %v5012_v12 = vpop.permute.xlu0 %5011  ;;  %v4806_v20 = vpop.permute.xlu1 %4805 }
 0x6f3   : > { %v11037_v59 = vsel %vm12670_vm0, %v4806_v20, %v11023_v24  ;;  %5514 = vrot.lane.b32.xlu0 %v10893_v3, %s12582_s28  ;;  %vm12673_vm0 = vmmov %vm12672_vm7 }
 0x6f4   : > { %4819 = vst [vmem:[#allocation4 + $0x7a8] sm:$0xff] %v11037_v59  ;;  %6324 = vrot.lane.b32.xlu1 %v10893_v3, %s12535_s13  ;;  %v3906_v45 = vpop.f32.mrf.mxu1 }
 0x6f5   : > { %v4059_v9 = vmul.f32 %v10747_v17, %v3906_v45 }
 0x6f6   : > { %v5010_v55 = vpop.permute.xlu0 %5009  ;;  %v5062_v36 = vpop.permute.xlu1 %5061 }
 0x6f7   : > { %v5017_v58 = vsel %vm12671_vm6, %v5010_v55, %v5012_v12  ;;  %v5068_v35 = vsel %vm12672_vm7, %v5062_v36, %v11029_v30  ;;  %5466 = vrot.lane.b32.xlu0 %v10803_v27, %s12581_s29  ;;  %v3908_v47 = vpop.f32.mrf.mxu1  ;;  %v4071_v0 = vadd.f32 %v10768_v50, %v4059_v9  ;;  %vm12675_vm7 = vcmask 809984  }
 0x6f8   : > { %5023 = vst [vmem:[#allocation4 + $0x68] sm:$0xff] %v5017_v58  ;;  %5074 = vst [vmem:[#allocation4 + $0x3f0] sm:$0xff] %v5068_v35  ;;  %5518 = vrot.lane.b32.xlu1 %v10825_v38, %s12582_s28  ;;  %v4060_v34 = vmul.f32 %v10747_v17, %v3908_v47  ;;  %7074 = vmatprep.subr.mxu1 %v5068_v35  ;;  %s12677_s28 = smov 55  }
 0x6f9   : > { %v4077_v63 = vmax.f32 %v4071_v0, 0.0 }
 0x6fa   : > { %v4072_v23 = vadd.f32 %v10768_v50, %v4060_v34  ;;  %v11055_v44 = vpop.permute.xlu0 %4962  ;;  %v5060_v29 = vpop.permute.xlu1 %5059 }
 0x6fb   : > { %v5067_v43 = vsel %vm12673_vm0, %v5060_v29, %v5062_v36  ;;  %6224 = vrot.lane.b32.xlu0 %v10803_v27, %s12537_s21  ;;  %vm12676_vm0 = vcmask 801792  }
 0x6fc   : > { %v4078_v37 = vmax.f32 %v4072_v23, 0.0  ;;  %5073 = vst [vmem:[#allocation4 + $0x228] sm:$0xff] %v5067_v43  ;;  %6277 = vrot.lane.b32.xlu1 %v10825_v38, %s12528_s20  ;;  %7075 = vmatpush1.msra.mxu1 %v5067_v43 }
 0x6fe   : > { %v4910_v32 = vpop.permute.xlu0 %4909  ;;  %v11062_v18 = vpop.permute.xlu1 %5013  ;;  %4117 = vmatprep.subr.mxu0 %v4078_v37  ;;  %v11176_v37 = vld [vmem:[#allocation3 + $0x8] sm:$0xff] }
 0x6ff   : > { %v5018_v40 = vsel %vm12671_vm6, %v5012_v12, %v11062_v18  ;;  %5464 = vrot.lane.b32.xlu0 %v10893_v3, %s12581_s29  ;;  %4118 = vmatpush1.msra.mxu0 %v4077_v63  ;;  %vm12678_vm6 = vmmov %vm12676_vm0 }
 0x700   : > { %5024 = vst [vmem:[#allocation4 + $0x920] sm:$0xff] %v5018_v40  ;;  %6273 = vrot.lane.b32.xlu1 %v10893_v3, %s12528_s20  ;;  %7076 = vmatprep.subr.mxu1 %v5018_v40  ;;  %v6778_v40 = vld [vmem:[#allocation4 + $0x808] sm:$0xff] }
 0x701   : > { %7077 = vmatpush1.msra.mxu1 %v5017_v58  ;;  %8011 = vmatmul.mubr.msk.f32.vlgmr.msra.gmra.mxu0 %vm2090_vm11, %v11067_v48 }
 0x702   : > { %v4908_v1 = vpop.permute.xlu0 %4907  ;;  %v4961_v21 = vpop.permute.xlu1 %4960  ;;  %4222 = vmatprep.mubr.f32.mxu0 %v8472_v8 }
 0x703   : > { %v4915_v10 = vsel %vm12675_vm7, %v4908_v1, %v4910_v32  ;;  %v4967_v56 = vsel %vm12676_vm0, %v4961_v21, %v11055_v44  ;;  %5415 = vrot.lane.b32.xlu0 %v10803_v27, %s12677_s28  ;;  %vm12679_vm7 = vcmask 826368   ;;  %vm12680_vm0 = vcmask 809984  }
 0x704   : > { %4921 = vst [vmem:[#allocation4 + $0x360] sm:$0xff] %v4915_v10  ;;  %4973 = vst [vmem:[#allocation4 + $0x5e0] sm:$0xff] %v4967_v56  ;;  %5468 = vrot.lane.b32.xlu1 %v10825_v38, %s12581_s29  ;;  %7078 = vmatprep.subr.mxu1 %v4967_v56 }
 0x706   : > { %v11085_v22 = vpop.permute.xlu0 %4860  ;;  %v4959_v53 = vpop.permute.xlu1 %4958 }
 0x707   : > { %v4966_v54 = vsel %vm12678_vm6, %v4959_v53, %v4961_v21  ;;  %6173 = vrot.lane.b32.xlu0 %v10803_v27, %s12530_s24  ;;  %vm12681_vm6 = vcmask 818176  }
 0x708   : > { %4972 = vst [vmem:[#allocation4 + $0x88] sm:$0xff] %v4966_v54  ;;  %6226 = vrot.lane.b32.xlu1 %v10825_v38, %s12537_s21  ;;  %7079 = vmatpush1.msra.mxu1 %v4966_v54 }
 0x70a   : > { %v11092_v33 = vpop.permute.xlu0 %4809  ;;  %v11094_v41 = vpop.permute.xlu1 %4911 }
 0x70b   : > { %v4814_v14 = vsel %vm12679_vm7, %v11023_v24, %v11092_v33  ;;  %v4916_v11 = vsel %vm12680_vm0, %v4910_v32, %v11094_v41  ;;  %5413 = vrot.lane.b32.xlu0 %v10893_v3, %s12677_s28  ;;  %vm12683_vm7 = vmmov %vm12681_vm6  ;;  %vm12684_vm0 = vcmask 236544  }
 0x70c   : > { %4820 = vst [vmem:[#allocation4 + $0x518] sm:$0xff] %v4814_v14  ;;  %4922 = vst [vmem:[#allocation4 + $0x78] sm:$0xff] %v4916_v11  ;;  %6222 = vrot.lane.b32.xlu1 %v10893_v3, %s12537_s21  ;;  %v3977_v61 = vpop.f32.mrf.mxu1  ;;  %7080 = vmatprep.subr.mxu1 %v4916_v11 }
 0x70d   : > { %v4061_v39 = vmul.f32 %v10747_v17, %v3977_v61  ;;  %7081 = vmatpush1.msra.mxu1 %v4915_v10  ;;  %v11191_v10 = vld [vmem:[#allocation3 + $0x10] sm:$0xff] }
 0x70e   : > { %v11106_v31 = vpop.permute.xlu0 %6683  ;;  %v4859_v5 = vpop.permute.xlu1 %4858 }
 0x70f   : > { %v4865_v24 = vsel %vm12681_vm6, %v4859_v5, %v11085_v22  ;;  %5364 = vrot.lane.b32.xlu0 %v10803_v27, %s12682_s11  ;;  %v3979_v19 = vpop.f32.mrf.mxu1  ;;  %v4073_v13 = vadd.f32 %v10768_v50, %v4061_v39  ;;  %vm12686_vm6 = vmmov %vm12684_vm0 }
 0x710   : > { %4871 = vst [vmem:[#allocation4 + $0x330] sm:$0xff] %v4865_v24  ;;  %5417 = vrot.lane.b32.xlu1 %v10825_v38, %s12677_s28  ;;  %v4062_v16 = vmul.f32 %v10747_v17, %v3979_v19  ;;  %7082 = vmatprep.subr.mxu1 %v4865_v24 }
 0x711   : > { %v4079_v36 = vmax.f32 %v4073_v13, 0.0 }
 0x712   : > { %v4074_v12 = vadd.f32 %v10768_v50, %v4062_v16  ;;  %v5871_v20 = vpop.permute.xlu0 %5870  ;;  %v4857_v45 = vpop.permute.xlu1 %4856 }
 0x713   : > { %v4864_v9 = vsel %vm12683_vm7, %v4857_v45, %v4859_v5  ;;  %6122 = vrot.lane.b32.xlu0 %v10803_v27, %s12529_s12  ;;  %vm12687_vm7 = vcmask 244736  }
 0x714   : > { %v4080_v55 = vmax.f32 %v4074_v12, 0.0  ;;  %4870 = vst [vmem:[#allocation4 + $0x1f8] sm:$0xff] %v4864_v9  ;;  %6175 = vrot.lane.b32.xlu1 %v10825_v38, %s12530_s24  ;;  %7083 = vmatpush1.msra.mxu1 %v4864_v9 }
 0x715   : > { %7084 = vmatprep.subr.mxu1 %v4814_v14 }
 0x716   : > { %v6632_v58 = vpop.permute.xlu0 %6631  ;;  %v6682_v35 = vpop.permute.xlu1 %6681  ;;  %4188 = vmatprep.subr.mxu0 %v4080_v55  ;;  %7085 = vmatpush1.msra.mxu1 %v11037_v59 }
 0x717   : > { %v11125_v47 = vsel %vm2654_vm1, %v6682_v35, %v11106_v31  ;;  %5362 = vrot.lane.b32.xlu0 %v10893_v3, %s12682_s11  ;;  %4189 = vmatpush1.msra.mxu0 %v4079_v36 }
 0x718   : > { %6171 = vrot.lane.b32.xlu1 %v10893_v3, %s12530_s24  ;;  %7086 = vmatprep.subr.mxu1 %v11015_v49 }
 0x719   : > { %7087 = vmatpush1.msra.mxu1 %v11007_v57  ;;  %8012 = vmatmul.mubr.msk.f32.vlgmr.msra.gmra.mxu0 %vm2090_vm11, %v11067_v48 }
 0x71a   : > { %v5869_v34 = vpop.permute.xlu0 %5868  ;;  %v6680_v59 = vpop.permute.xlu1 %6679  ;;  %7088 = vmatprep.subr.mxu1 %v10990_v25  ;;  %4293 = vmatprep.mubr.f32.mxu0 %v8472_v8 }
 0x71b   : > { %v11138_v0 = vsel %vm12684_vm0, %v5869_v34, %v5871_v20  ;;  %v6687_v23 = vsel %vm2654_vm1, %v6680_v59, %v6682_v35  ;;  %5313 = vrot.lane.b32.xlu0 %v10803_v27, %s12685_s4  ;;  %7089 = vmatpush1.msra.mxu1 %v10982_v28  ;;  %vm12688_vm0 = vmmov %vm12687_vm7 }
 0x71c   : > { %5366 = vrot.lane.b32.xlu1 %v10825_v38, %s12682_s11  ;;  %7090 = vmatprep.subr.mxu1 %v10965_v52 }
 0x71d   : > { %7091 = vmatpush1.msra.mxu1 %v10957_v42 }
 0x71e   : > { %v5821_v25 = vpop.permute.xlu0 %5820  ;;  %v11148_v57 = vpop.permute.xlu1 %5872  ;;  %7092 = vmatprep.subr.mxu1 %v10940_v7 }
 0x71f   : > { %v5877_v49 = vsel %vm12686_vm6, %v5871_v20, %v11148_v57  ;;  %6071 = vrot.lane.b32.xlu0 %v10803_v27, %s12532_s15  ;;  %7093 = vmatpush1.msra.mxu1 %v10932_v2  ;;  %vm12689_vm6 = vcmask 252928  }
 0x720   : > { %6124 = vrot.lane.b32.xlu1 %v10825_v38, %s12529_s12  ;;  %7094 = vmatprep.subr.mxu1 %v10915_v4 }
 0x721   : > { %v4048_v52 = vpop.f32.mrf.mxu1  ;;  %7095 = vmatpush1.msra.mxu1 %v10907_v15 }
 0x722   : > { %v4063_v42 = vmul.f32 %v10747_v17, %v4048_v52  ;;  %v6581_v28 = vpop.permute.xlu0 %6580  ;;  %v11161_v7 = vpop.permute.xlu1 %6633  ;;  %7096 = vmatprep.subr.mxu1 %v10888_v46 }
 0x723   : > { %v4050_v29 = vpop.f32.mrf.mxu1  ;;  %v6638_v27 = vsel %vm2607_vm2, %v6632_v58, %v11161_v7  ;;  %5311 = vrot.lane.b32.xlu0 %v10893_v3, %s12685_s4  ;;  %7097 = vmatpush1.msra.mxu1 %v10880_v26  ;;  %v6789_v26 = vld [vmem:[#allocation4 + $0x708] sm:$0xff] }
 0x724   : > { %v4064_v4 = vmul.f32 %v10747_v17, %v4050_v29  ;;  %6120 = vrot.lane.b32.xlu1 %v10893_v3, %s12529_s12  ;;  %7098 = vmatprep.subr.mxu1 %v10861_v60  ;;  %v4075_v15 = vadd.f32 %v10768_v50, %v4063_v42  ;;  %v6784_v60 = vld [vmem:[#allocation4 + $0x4d0] sm:$0xff] }
 0x725   : > { %7099 = vmatpush1.msra.mxu1 %v10853_v62 }
 0x726   : > { %v4076_v46 = vadd.f32 %v10768_v50, %v4064_v4  ;;  %v5819_v2 = vpop.permute.xlu0 %5818  ;;  %v6630_v43 = vpop.permute.xlu1 %6629  ;;  %7100 = vmatprep.subr.mxu1 %v10836_v51  ;;  %v6783_v50 = vld [vmem:[#allocation4 + $0x8f8] sm:$0xff]  ;;  %v4081_v62 = vmax.f32 %v4075_v15, 0.0 }
 0x727   : > { %v5826_v17 = vsel %vm12687_vm7, %v5819_v2, %v5821_v25  ;;  %v6637_v63 = vsel %vm2607_vm2, %v6630_v43, %v6632_v58  ;;  %5262 = vrot.lane.b32.xlu0 %v11176_v37, %s12562_s0  ;;  %7101 = vmatpush1.msra.mxu1 %v6789_v26  ;;  %vm12690_vm7 = vmmov %vm12689_vm6  ;;  %v11277_v26 = vld [vmem:[#allocation3 + $0x18] sm:$0xff] }
 0x728   : > { %v4082_v32 = vmax.f32 %v4076_v46, 0.0  ;;  %5315 = vrot.lane.b32.xlu1 %v10825_v38, %s12685_s4  ;;  %7102 = vmatprep.subr.mxu1 %v6784_v60  ;;  %v6777_v38 = vld [vmem:[#allocation4 + $0x4c8] sm:$0xff]  ;;  %v11269_v46 = vld [vmem:[#allocation3 + $0x20] sm:$0xff]  ;;  %v11281_v60 = vld [vmem:[#allocation3 + $0x28] sm:$0xff] }
 0x729   : > { %7103 = vmatpush1.msra.mxu1 %v6783_v50 }
 0x72a   : > { %4259 = vmatprep.subr.mxu0 %v4082_v32  ;;  %v5770_v51 = vpop.permute.xlu0 %5769  ;;  %v11185_v1 = vpop.permute.xlu1 %5822  ;;  %7104 = vmatprep.subr.mxu1 %v6778_v40 }
 0x72b   : > { %4260 = vmatpush1.msra.mxu0 %v4081_v62  ;;  %v5827_v21 = vsel %vm12688_vm0, %v5821_v25, %v11185_v1  ;;  %6020 = vrot.lane.b32.xlu0 %v11176_v37, %s12531_s10  ;;  %vm12691_vm0 = vcmask 900096  }
 0x72c   : > { %6073 = vrot.lane.b32.xlu1 %v11191_v10, %s12532_s15  ;;  %7145 = vmatprep.subr.mxu0 %v11125_v47  ;;  %v5152_v47 = vld [vmem:[#allocation3] sm:$0xff] }
 0x72d   : > { %8013 = vmatmul.mubr.msk.f32.vlgmr.msra.gmra.mxu0 %vm2090_vm11, %v11067_v48  ;;  %7105 = vmatpush1.msra.mxu1 %v6777_v38 }
 0x72e   : > { %7146 = vmatpush1.msra.mxu0 %v6687_v23  ;;  %v6530_v56 = vpop.permute.xlu0 %6529  ;;  %v11198_v53 = vpop.permute.xlu1 %6582  ;;  %7106 = vmatprep.subr.mxu1 %v5877_v49 }
 0x72f   : > { %7147 = vmatprep.subr.mxu0 %v6638_v27  ;;  %v6587_v54 = vsel %vm2560_vm10, %v6581_v28, %v11198_v53  ;;  %5260 = vrot.lane.b32.xlu0 %v10893_v3, %s12562_s0 }
 0x730   : > { %6069 = vrot.lane.b32.xlu1 %v10893_v3, %s12532_s15  ;;  %7148 = vmatpush1.msra.mxu0 %v6637_v63 }
 0x731   : > { %7107 = vmatpush2.msra.mxu1 %v11138_v0  ;;  %7149 = vmatprep.subr.mxu0 %v6587_v54 }
 0x732   : > { %v5768_v48 = vpop.permute.xlu0 %5767  ;;  %v6579_v14 = vpop.permute.xlu1 %6578  ;;  %7108 = vmatprep.subr.mxu1 %v5827_v21 }
 0x733   : > { %v5775_v11 = vsel %vm12689_vm6, %v5768_v48, %v5770_v51  ;;  %v6586_v61 = vsel %vm2560_vm10, %v6579_v14, %v6581_v28  ;;  %5212 = vrot.lane.b32.xlu0 %v11176_v37, %s12580_s3  ;;  %7109 = vmatpush2.msra.mxu1 %v5826_v17  ;;  %vm12692_vm6 = vcmask 261120   ;;  %v11309_v48 = vld [vmem:[#allocation3 + $0x30] sm:$0xff]  ;;  %v11313_v14 = vld [vmem:[#allocation11 + $0x18] sm:$0xff] }
 0x734   : > { %5264 = vrot.lane.b32.xlu1 %v11191_v10, %s12562_s0  ;;  %7150 = vmatpush1.msra.mxu0 %v6586_v61  ;;  %s12699_s0 = smov 106  }
 0x735   : > { %8014 = vmatprep.mubr.msk.f32.mxu0 %vm2090_vm11, %v11313_v14 }
 0x736   : > { %v5719_v39 = vpop.permute.xlu0 %5718  ;;  %v11213_v5 = vpop.permute.xlu1 %5771 }
 0x737   : > { %v5776_v24 = vsel %vm12690_vm7, %v5770_v51, %v11213_v5  ;;  %5970 = vrot.lane.b32.xlu0 %v11176_v37, %s12538_s19  ;;  %vm12693_vm7 = vmmov %vm12691_vm0 }
 0x738   : > { %6022 = vrot.lane.b32.xlu1 %v11191_v10, %s12531_s10  ;;  %7110 = vmatprep.subr.mxu1 %v5776_v24 }
 0x739   : > { %7111 = vmatpush2.msra.mxu1 %v5775_v11 }
 0x73a   : > { %v6479_v19 = vpop.permute.xlu0 %6478  ;;  %v11221_v16 = vpop.permute.xlu1 %6531 }
 0x73b   : > { %v6536_v13 = vsel %vm12691_vm0, %v6530_v56, %v11221_v16  ;;  %5210 = vrot.lane.b32.xlu0 %v10893_v3, %s12580_s3  ;;  %vm12694_vm0 = vmmov %vm12692_vm6 }
 0x73c   : > { %6018 = vrot.lane.b32.xlu1 %v10893_v3, %s12531_s10  ;;  %7151 = vmatprep.subr.mxu0 %v6536_v13 }
 0x73e   : > { %v5717_v12 = vpop.permute.xlu0 %5716  ;;  %v6528_v20 = vpop.permute.xlu1 %6527 }
 0x73f   : > { %v5724_v45 = vsel %vm12692_vm6, %v5717_v12, %v5719_v39  ;;  %v6535_v9 = vsel %vm12693_vm7, %v6528_v20, %v6530_v56  ;;  %5162 = vrot.lane.b32.xlu0 %v11176_v37, %s12579_s1  ;;  %vm12695_vm6 = vcmask 908288   ;;  %vm12696_vm7 = vcmask 408576   ;;  %v11331_v20 = vld [vmem:[#allocation11 + $0x8] sm:$0xff] }
 0x740   : > { %5214 = vrot.lane.b32.xlu1 %v11191_v10, %s12580_s3  ;;  %7152 = vmatpush1.msra.mxu0 %v6535_v9  ;;  %s12462_s3 = smov 67  }
 0x741   : > { %7138 = vmatprep.mubr.f32.mxu1 %v11331_v20 }
 0x742   : > { %v5668_v55 = vpop.permute.xlu0 %5667  ;;  %v11235_v36 = vpop.permute.xlu1 %5720 }
 0x743   : > { %v5725_v3 = vsel %vm12694_vm0, %v5719_v39, %v11235_v36  ;;  %5920 = vrot.lane.b32.xlu0 %v11176_v37, %s12533_s25  ;;  %vm12697_vm0 = vmmov %vm12695_vm6 }
 0x744   : > { %5972 = vrot.lane.b32.xlu1 %v11191_v10, %s12538_s19  ;;  %7112 = vmatprep.subr.mxu1 %v5725_v3 }
 0x745   : > { %7113 = vmatpush2.msra.mxu1 %v5724_v45 }
 0x746   : > { %v6429_v58 = vpop.permute.xlu0 %6428  ;;  %v11243_v35 = vpop.permute.xlu1 %6480 }
 0x747   : > { %v6485_v34 = vsel %vm12695_vm6, %v6479_v19, %v11243_v35  ;;  %5160 = vrot.lane.b32.xlu0 %v5152_v47, %s12579_s1  ;;  %vm12698_vm6 = vmmov %vm12696_vm7 }
 0x748   : > { %5968 = vrot.lane.b32.xlu1 %v5152_v47, %s12538_s19  ;;  %7153 = vmatprep.subr.mxu0 %v6485_v34 }
 0x74a   : > { %v5666_v59 = vpop.permute.xlu0 %5665  ;;  %v6477_v0 = vpop.permute.xlu1 %6476 }
 0x74b   : > { %v5673_v23 = vsel %vm12696_vm7, %v5666_v59, %v5668_v55  ;;  %v6484_v25 = vsel %vm12697_vm0, %v6477_v0, %v6479_v19  ;;  %5112 = vrot.lane.b32.xlu0 %v11176_v37, %s12578_s23  ;;  %vm12700_vm7 = vcmask 916480   ;;  %vm12701_vm0 = vcmask 416768  }
 0x74c   : > { %5164 = vrot.lane.b32.xlu1 %v11191_v10, %s12579_s1  ;;  %7154 = vmatpush1.msra.mxu0 %v6484_v25  ;;  %s12465_s1 = smov 39  }
 0x74e   : > { %v5617_v49 = vpop.permute.xlu0 %5616  ;;  %v11255_v52 = vpop.permute.xlu1 %5669 }
 0x74f   : > { %v5674_v42 = vsel %vm12698_vm6, %v5668_v55, %v11255_v52  ;;  %6732 = vrot.lane.b32.xlu0 %v11191_v10, %s12699_s0  ;;  %vm12702_vm6 = vmmov %vm12700_vm7 }
 0x750   : > { %5922 = vrot.lane.b32.xlu1 %v11191_v10, %s12533_s25  ;;  %7114 = vmatprep.subr.mxu1 %v5674_v42 }
 0x751   : > { %7115 = vmatpush2.msra.mxu1 %v5673_v23 }
 0x752   : > { %v6378_v28 = vpop.permute.xlu0 %6377  ;;  %v11263_v29 = vpop.permute.xlu1 %6430 }
 0x753   : > { %v6435_v27 = vsel %vm12700_vm7, %v6429_v58, %v11263_v29  ;;  %5110 = vrot.lane.b32.xlu0 %v5152_v47, %s12578_s23  ;;  %vm12703_vm7 = vmmov %vm12701_vm0 }
 0x754   : > { %5918 = vrot.lane.b32.xlu1 %v5152_v47, %s12533_s25  ;;  %7155 = vmatprep.subr.mxu0 %v6435_v27 }
 0x756   : > { %v5615_v4 = vpop.permute.xlu0 %5614  ;;  %v6427_v15 = vpop.permute.xlu1 %6426 }
 0x757   : > { %v5622_v2 = vsel %vm12701_vm0, %v5615_v4, %v5617_v49  ;;  %v6434_v43 = vsel %vm12702_vm6, %v6427_v15, %v6429_v58  ;;  %5084 = vrot.lane.b32.xlu0 %v11269_v46, %s12465_s1  ;;  %vm12704_vm0 = vcmask 15360   ;;  %vm12705_vm6 = vcmask 424960  }
 0x758   : > { %5114 = vrot.lane.b32.xlu1 %v11191_v10, %s12578_s23  ;;  %7156 = vmatpush1.msra.mxu0 %v6434_v43  ;;  %s12708_s23 = smov 67  }
 0x75a   : > { %v5567_v17 = vpop.permute.xlu0 %5566  ;;  %v11279_v63 = vpop.permute.xlu1 %5618 }
 0x75b   : > { %v5623_v32 = vsel %vm12703_vm7, %v5617_v49, %v11279_v63  ;;  %6704 = vrot.lane.b32.xlu0 %v11281_v60, %s12462_s3  ;;  %vm12706_vm7 = vmmov %vm12704_vm0  ;;  %s8496_s3 = smov 40  }
 0x75c   : > { %6734 = vrot.lane.b32.xlu1 %v11277_v26, %s12699_s0  ;;  %7116 = vmatprep.subr.mxu1 %v5623_v32 }
 0x75d   : > { %7117 = vmatpush2.msra.mxu1 %v5622_v2 }
 0x75e   : > { %v6327_v50 = vpop.permute.xlu0 %6326  ;;  %v11289_v62 = vpop.permute.xlu1 %6379 }
 0x75f   : > { %v6384_v40 = vsel %vm12704_vm0, %v6378_v28, %v11289_v62  ;;  %5065 = vrot.lane.b32.xlu0 %v11277_v26, %s12633_s2  ;;  %vm12707_vm0 = vmmov %vm12705_vm6  ;;  %s8497_s2 = smov 68  }
 0x760   : > { %6730 = vrot.lane.b32.xlu1 %v11176_v37, %s12699_s0  ;;  %7157 = vmatprep.subr.mxu0 %v6384_v40 }
 0x762   : > { %v5565_v51 = vpop.permute.xlu0 %5564  ;;  %v6376_v21 = vpop.permute.xlu1 %6375 }
 0x763   : > { %v5572_v10 = vsel %vm12705_vm6, %v5565_v51, %v5567_v17  ;;  %v6383_v38 = vsel %vm12706_vm7, %v6376_v21, %v6378_v28  ;;  %5034 = vrot.lane.b32.xlu0 %v11269_v46, %s8496_s3  ;;  %vm12709_vm6 = vcmask 23552   ;;  %vm12710_vm7 = vcmask 433152  }
 0x764   : > { %5086 = vrot.lane.b32.xlu1 %v11281_v60, %s12465_s1  ;;  %7158 = vmatpush1.msra.mxu0 %v6383_v38  ;;  %s8498_s1 = smov 58  }
 0x766   : > { %v5517_v56 = vpop.permute.xlu0 %5516  ;;  %v11303_v54 = vpop.permute.xlu1 %5568 }
 0x767   : > { %v5573_v37 = vsel %vm12707_vm0, %v5567_v17, %v11303_v54  ;;  %6654 = vrot.lane.b32.xlu0 %v11281_v60, %s8497_s2  ;;  %vm12711_vm0 = vmmov %vm12709_vm6 }
 0x768   : > { %6706 = vrot.lane.b32.xlu1 %v11309_v48, %s12708_s23  ;;  %7118 = vmatprep.subr.mxu1 %v5573_v37 }
 0x769   : > { %7119 = vmatpush2.msra.mxu1 %v5572_v10 }
 0x76a   : > { %v6276_v11 = vpop.permute.xlu0 %6275  ;;  %v11317_v61 = vpop.permute.xlu1 %6328 }
 0x76b   : > { %v6333_v39 = vsel %vm12709_vm6, %v6327_v50, %v11317_v61  ;;  %5015 = vrot.lane.b32.xlu0 %v11277_v26, %s12636_s17  ;;  %vm12712_vm6 = vmmov %vm12710_vm7  ;;  %s8500_s17 = smov 59  }
 0x76c   : > { %6685 = vrot.lane.b32.xlu1 %v11269_v46, %s12644_s6  ;;  %7159 = vmatprep.subr.mxu0 %v6333_v39  ;;  %s8499_s6 = smov 69  }
 0x76e   : > { %v5515_v24 = vpop.permute.xlu0 %5514  ;;  %v6325_v19 = vpop.permute.xlu1 %6324 }
 0x76f   : > { %v5522_v13 = vsel %vm12710_vm7, %v5515_v24, %v5517_v56  ;;  %v6332_v12 = vsel %vm12711_vm0, %v6325_v19, %v6327_v50  ;;  %4983 = vrot.lane.b32.xlu0 %v11269_v46, %s8498_s1  ;;  %vm12713_vm7 = vcmask 31744   ;;  %vm12714_vm0 = vcmask 441344  }
 0x770   : > { %5528 = vst [vmem:[#allocation4 + $0x50] sm:$0xff] %v5522_v13  ;;  %5036 = vrot.lane.b32.xlu1 %v11281_v60, %s8496_s3  ;;  %7160 = vmatpush1.msra.mxu0 %v6332_v12 }
 0x772   : > { %v5467_v45 = vpop.permute.xlu0 %5466  ;;  %v11334_v9 = vpop.permute.xlu1 %5518 }
 0x773   : > { %v5523_v55 = vsel %vm12712_vm6, %v5517_v56, %v11334_v9  ;;  %6603 = vrot.lane.b32.xlu0 %v11281_v60, %s8499_s6  ;;  %vm12715_vm6 = vmmov %vm12713_vm7 }
 0x774   : > { %5529 = vst [vmem:[#allocation4 + $0x678] sm:$0xff] %v5523_v55  ;;  %6656 = vrot.lane.b32.xlu1 %v11309_v48, %s8497_s2  ;;  %7120 = vmatprep.subr.mxu1 %v5523_v55 }
 0x775   : > { %7121 = vmatpush2.msra.mxu1 %v5522_v13 }
 0x776   : > { %v6225_v3 = vpop.permute.xlu0 %6224  ;;  %v11342_v58 = vpop.permute.xlu1 %6277 }
 0x777   : > { %v6282_v47 = vsel %vm12713_vm7, %v6276_v11, %v11342_v58  ;;  %4964 = vrot.lane.b32.xlu0 %v11277_v26, %s12637_s9  ;;  %vm12716_vm7 = vmmov %vm12714_vm0  ;;  %s8502_s9 = smov 60  }
 0x778   : > { %6635 = vrot.lane.b32.xlu1 %v11269_v46, %s12647_s8  ;;  %7161 = vmatprep.subr.mxu0 %v6282_v47  ;;  %s8501_s8 = smov 70  }
 0x77a   : > { %v5465_v34 = vpop.permute.xlu0 %5464  ;;  %v6274_v59 = vpop.permute.xlu1 %6273 }
 0x77b   : > { %v5472_v0 = vsel %vm12714_vm0, %v5465_v34, %v5467_v45  ;;  %v6281_v23 = vsel %vm12715_vm6, %v6274_v59, %v6276_v11  ;;  %4932 = vrot.lane.b32.xlu0 %v11269_v46, %s8500_s17  ;;  %vm12717_vm0 = vcmask 39936   ;;  %vm12718_vm6 = vcmask 449536  }
 0x77c   : > { %5478 = vst [vmem:[#allocation4 + $0x7e0] sm:$0xff] %v5472_v0  ;;  %4985 = vrot.lane.b32.xlu1 %v11281_v60, %s8498_s1  ;;  %7162 = vmatpush1.msra.mxu0 %v6281_v23 }
 0x77e   : > { %v5416_v25 = vpop.permute.xlu0 %5415  ;;  %v11356_v49 = vpop.permute.xlu1 %5468 }
 0x77f   : > { %v5473_v42 = vsel %vm12716_vm7, %v5467_v45, %v11356_v49  ;;  %6552 = vrot.lane.b32.xlu0 %v11281_v60, %s8501_s8  ;;  %vm12719_vm7 = vmmov %vm12717_vm0 }
 0x780   : > { %5479 = vst [vmem:[#allocation4 + $0x3e0] sm:$0xff] %v5473_v42  ;;  %6605 = vrot.lane.b32.xlu1 %v11309_v48, %s8499_s6  ;;  %7122 = vmatprep.subr.mxu1 %v5473_v42 }
 0x781   : > { %7123 = vmatpush2.msra.mxu1 %v5472_v0 }
 0x782   : > { %v6174_v28 = vpop.permute.xlu0 %6173  ;;  %v11364_v27 = vpop.permute.xlu1 %6226 }
 0x783   : > { %v6231_v4 = vsel %vm12717_vm0, %v6225_v3, %v11364_v27  ;;  %4913 = vrot.lane.b32.xlu0 %v11277_v26, %s12639_s7  ;;  %vm12720_vm0 = vmmov %vm12718_vm6  ;;  %s12467_s7 = smov 71  }
 0x784   : > { %6584 = vrot.lane.b32.xlu1 %v11269_v46, %s12651_s27  ;;  %7163 = vmatprep.subr.mxu0 %v6231_v4  ;;  %s8504_s27 = smov 61  }
 0x786   : > { %v5414_v15 = vpop.permute.xlu0 %5413  ;;  %v6223_v2 = vpop.permute.xlu1 %6222 }
 0x787   : > { %v5421_v43 = vsel %vm12718_vm6, %v5414_v15, %v5416_v25  ;;  %v6230_v17 = vsel %vm12719_vm7, %v6223_v2, %v6225_v3  ;;  %4881 = vrot.lane.b32.xlu0 %v11269_v46, %s8502_s9  ;;  %vm12721_vm6 = vcmask 48128   ;;  %vm12722_vm7 = vcmask 457728  }
 0x788   : > { %5427 = vst [vmem:[#allocation4 + $0x1d8] sm:$0xff] %v5421_v43  ;;  %4934 = vrot.lane.b32.xlu1 %v11281_v60, %s8500_s17  ;;  %7164 = vmatpush1.msra.mxu0 %v6230_v17 }
 0x78a   : > { %v5365_v32 = vpop.permute.xlu0 %5364  ;;  %v11378_v50 = vpop.permute.xlu1 %5417 }
 0x78b   : > { %v5422_v40 = vsel %vm12720_vm0, %v5416_v25, %v11378_v50  ;;  %6501 = vrot.lane.b32.xlu0 %v11281_v60, %s12467_s7  ;;  %vm12723_vm0 = vmmov %vm12721_vm6 }
 0x78c   : > { %5428 = vst [vmem:[#allocation4 + $0x730] sm:$0xff] %v5422_v40  ;;  %6554 = vrot.lane.b32.xlu1 %v11309_v48, %s8501_s8  ;;  %7124 = vmatprep.subr.mxu1 %v5422_v40 }
 0x78d   : > { %7125 = vmatpush2.msra.mxu1 %v5421_v43 }
 0x78e   : > { %v6123_v51 = vpop.permute.xlu0 %6122  ;;  %v11386_v21 = vpop.permute.xlu1 %6175 }
 0x78f   : > { %v6180_v10 = vsel %vm12721_vm6, %v6174_v28, %v11386_v21  ;;  %4862 = vrot.lane.b32.xlu0 %v11277_v26, %s12642_s5  ;;  %vm12724_vm6 = vmmov %vm12722_vm7  ;;  %s8505_s5 = smov 72  }
 0x790   : > { %6533 = vrot.lane.b32.xlu1 %v11269_v46, %s12654_s18  ;;  %7165 = vmatprep.subr.mxu0 %v6180_v10  ;;  %s12726_s18 = smov 101  }
 0x792   : > { %v5363_v38 = vpop.permute.xlu0 %5362  ;;  %v6172_v56 = vpop.permute.xlu1 %6171 }
 0x793   : > { %v5370_v37 = vsel %vm12722_vm7, %v5363_v38, %v5365_v32  ;;  %v6179_v11 = vsel %vm12723_vm0, %v6172_v56, %v6174_v28  ;;  %4830 = vrot.lane.b32.xlu0 %v11269_v46, %s8504_s27  ;;  %vm12725_vm7 = vcmask 56320   ;;  %vm12727_vm0 = vcmask 605184  }
 0x794   : > { %5376 = vst [vmem:[#allocation4 + $0x3d0] sm:$0xff] %v5370_v37  ;;  %4883 = vrot.lane.b32.xlu1 %v11281_v60, %s8502_s9  ;;  %7166 = vmatpush1.msra.mxu0 %v6179_v11 }
 0x796   : > { %v5314_v39 = vpop.permute.xlu0 %5313  ;;  %v11400_v24 = vpop.permute.xlu1 %5366 }
 0x797   : > { %v5371_v19 = vsel %vm12724_vm6, %v5365_v32, %v11400_v24  ;;  %6451 = vrot.lane.b32.xlu0 %v11281_v60, %s8505_s5  ;;  %vm12728_vm6 = vmmov %vm12725_vm7 }
 0x798   : > { %5377 = vst [vmem:[#allocation4 + $0x858] sm:$0xff] %v5371_v19  ;;  %6503 = vrot.lane.b32.xlu1 %v11309_v48, %s12467_s7  ;;  %7126 = vmatprep.subr.mxu1 %v5371_v19  ;;  %s8506_s7 = smov 90  }
 0x799   : > { %7127 = vmatpush2.msra.mxu1 %v5370_v37 }
 0x79a   : > { %v6072_v13 = vpop.permute.xlu0 %6071  ;;  %v11408_v12 = vpop.permute.xlu1 %6124 }
 0x79b   : > { %v6129_v45 = vsel %vm12725_vm7, %v6123_v51, %v11408_v12  ;;  %4811 = vrot.lane.b32.xlu0 %v11277_v26, %s12726_s18  ;;  %vm12729_vm7 = vmmov %vm12727_vm0  ;;  %s12750_s18 = smov 29  }
 0x79c   : > { %6482 = vrot.lane.b32.xlu1 %v11269_v46, %s12534_s14  ;;  %7167 = vmatprep.subr.mxu0 %v6129_v45  ;;  %s8507_s14 = smov 91  }
 0x79e   : > { %v5312_v55 = vpop.permute.xlu0 %5311  ;;  %v6121_v3 = vpop.permute.xlu1 %6120 }
 0x79f   : > { %v5319_v47 = vsel %vm12727_vm0, %v5312_v55, %v5314_v39  ;;  %v6128_v34 = vsel %vm12728_vm6, %v6121_v3, %v6123_v51  ;;  %6400 = vrot.lane.b32.xlu0 %v11281_v60, %s8506_s7  ;;  %vm12730_vm0 = vcmask 613376  }
 0x7a0   : > { %5325 = vst [vmem:[#allocation4 + $0x8d0] sm:$0xff] %v5319_v47  ;;  %4832 = vrot.lane.b32.xlu1 %v11281_v60, %s8504_s27  ;;  %7168 = vmatpush1.msra.mxu0 %v6128_v34  ;;  %vm12731_vm6 = vmmov %vm12730_vm0 }
 0x7a2   : > { %v5263_v59 = vpop.permute.xlu0 %5262  ;;  %v11422_v0 = vpop.permute.xlu1 %5315 }
 0x7a3   : > { %v5320_v23 = vsel %vm12729_vm7, %v5314_v39, %v11422_v0  ;;  %6381 = vrot.lane.b32.xlu0 %v11277_v26, %s12536_s16  ;;  %s8508_s16 = smov 92   ;;  %vm12732_vm7 = vcmask 211968  }
 0x7a4   : > { %5326 = vst [vmem:[#allocation4 + $0x100] sm:$0xff] %v5320_v23  ;;  %6453 = vrot.lane.b32.xlu1 %v11309_v48, %s8505_s5  ;;  %7128 = vmatprep.subr.mxu1 %v5320_v23 }
 0x7a5   : > { %7129 = vmatpush2.msra.mxu1 %v5319_v47 }
 0x7a6   : > { %v6021_v25 = vpop.permute.xlu0 %6020  ;;  %v11430_v42 = vpop.permute.xlu1 %6073 }
 0x7a7   : > { %v6078_v28 = vsel %vm2090_vm11, %v6072_v13, %v11430_v42  ;;  %6351 = vrot.lane.b32.xlu0 %v11309_v48, %s8507_s14 }
 0x7a8   : > { %6432 = vrot.lane.b32.xlu1 %v11269_v46, %s12662_s26  ;;  %7169 = vmatprep.subr.mxu0 %v6078_v28  ;;  %s8509_s26 = smov 93  }
 0x7aa   : > { %v5261_v4 = vpop.permute.xlu0 %5260  ;;  %v6070_v15 = vpop.permute.xlu1 %6069 }
 0x7ab   : > { %v5268_v2 = vsel %vm12730_vm0, %v5261_v4, %v5263_v59  ;;  %v6077_v43 = vsel %vm2090_vm11, %v6070_v15, %v6072_v13  ;;  %6298 = vrot.lane.b32.xlu0 %v11281_v60, %s8508_s16  ;;  %vm12733_vm0 = vcmask 621568  }
 0x7ac   : > { %5274 = vst [vmem:[#allocation4 + $0x238] sm:$0xff] %v5268_v2  ;;  %6402 = vrot.lane.b32.xlu1 %v11309_v48, %s8506_s7  ;;  %7170 = vmatpush1.msra.mxu0 %v6077_v43 }
 0x7ae   : > { %v5213_v17 = vpop.permute.xlu0 %5212  ;;  %v11444_v32 = vpop.permute.xlu1 %5264 }
 0x7af   : > { %v5269_v40 = vsel %vm12731_vm6, %v5263_v59, %v11444_v32  ;;  %6279 = vrot.lane.b32.xlu0 %v11277_v26, %s12528_s20  ;;  %vm12734_vm6 = vmmov %vm12732_vm7  ;;  %s8510_s20 = smov 94  }
 0x7b0   : > { %5275 = vst [vmem:[#allocation4 + $0x388] sm:$0xff] %v5269_v40  ;;  %6349 = vrot.lane.b32.xlu1 %v11281_v60, %s8507_s14  ;;  %7130 = vmatprep.subr.mxu1 %v5269_v40 }
 0x7b1   : > { %7131 = vmatpush2.msra.mxu1 %v5268_v2 }
 0x7b2   : > { %v5971_v51 = vpop.permute.xlu0 %5970  ;;  %v11452_v10 = vpop.permute.xlu1 %6022 }
 0x7b3   : > { %v6027_v38 = vsel %vm12732_vm7, %v6021_v25, %v11452_v10  ;;  %6249 = vrot.lane.b32.xlu0 %v11309_v48, %s8509_s26  ;;  %vm12735_vm7 = vmmov %vm12733_vm0 }
 0x7b4   : > { %6330 = vrot.lane.b32.xlu1 %v11277_v26, %s12535_s13  ;;  %7171 = vmatprep.subr.mxu0 %v6027_v38  ;;  %s8511_s13 = smov 95  }
 0x7b6   : > { %v5211_v56 = vpop.permute.xlu0 %5210  ;;  %v6019_v37 = vpop.permute.xlu1 %6018 }
 0x7b7   : > { %v5218_v11 = vsel %vm12733_vm0, %v5211_v56, %v5213_v17  ;;  %v6026_v39 = vsel %vm12734_vm6, %v6019_v37, %v6021_v25  ;;  %6196 = vrot.lane.b32.xlu0 %v11281_v60, %s8510_s20  ;;  %vm12736_vm0 = vcmask 220160   ;;  %vm12737_vm6 = vcmask 629760  }
 0x7b8   : > { %5224 = vst [vmem:[#allocation4 + $0x608] sm:$0xff] %v5218_v11  ;;  %6300 = vrot.lane.b32.xlu1 %v11309_v48, %s8508_s16  ;;  %7172 = vmatpush1.msra.mxu0 %v6026_v39 }
 0x7ba   : > { %v5163_v19 = vpop.permute.xlu0 %5162  ;;  %v11466_v13 = vpop.permute.xlu1 %5214 }
 0x7bb   : > { %v5219_v45 = vsel %vm12735_vm7, %v5213_v17, %v11466_v13  ;;  %6177 = vrot.lane.b32.xlu0 %v11277_v26, %s12530_s24  ;;  %vm12738_vm7 = vmmov %vm12736_vm0  ;;  %s8512_s24 = smov 96  }
 0x7bc   : > { %5225 = vst [vmem:[#allocation4 + $0x158] sm:$0xff] %v5219_v45  ;;  %6247 = vrot.lane.b32.xlu1 %v11281_v60, %s8509_s26  ;;  %7132 = vmatprep.subr.mxu1 %v5219_v45 }
 0x7bd   : > { %7133 = vmatpush2.msra.mxu1 %v5218_v11 }
 0x7be   : > { %v5921_v55 = vpop.permute.xlu0 %5920  ;;  %v11474_v3 = vpop.permute.xlu1 %5972 }
 0x7bf   : > { %v5977_v47 = vsel %vm12736_vm0, %v5971_v51, %v11474_v3  ;;  %6147 = vrot.lane.b32.xlu0 %v11309_v48, %s8511_s13  ;;  %vm12739_vm0 = vmmov %vm12737_vm6 }
 0x7c0   : > { %6228 = vrot.lane.b32.xlu1 %v11277_v26, %s12537_s21  ;;  %7173 = vmatprep.subr.mxu0 %v5977_v47  ;;  %s12469_s21 = smov 114  }
 0x7c2   : > { %v5161_v34 = vpop.permute.xlu0 %5160  ;;  %v5969_v59 = vpop.permute.xlu1 %5968 }
 0x7c3   : > { %v5168_v23 = vsel %vm12737_vm6, %v5161_v34, %v5163_v19  ;;  %v5976_v25 = vsel %vm12738_vm7, %v5969_v59, %v5971_v51  ;;  %6094 = vrot.lane.b32.xlu0 %v11281_v60, %s8512_s24  ;;  %vm12740_vm6 = vcmask 228352   ;;  %vm12741_vm7 = vcmask 637952  }
 0x7c4   : > { %5174 = vst [vmem:[#allocation4 + $0x2e8] sm:$0xff] %v5168_v23  ;;  %6198 = vrot.lane.b32.xlu1 %v11309_v48, %s8510_s20  ;;  %7174 = vmatpush1.msra.mxu0 %v5976_v25 }
 0x7c6   : > { %v5113_v28 = vpop.permute.xlu0 %5112  ;;  %v11488_v4 = vpop.permute.xlu1 %5164 }
 0x7c7   : > { %v5169_v15 = vsel %vm12739_vm0, %v5163_v19, %v11488_v4  ;;  %6075 = vrot.lane.b32.xlu0 %v11277_v26, %s12532_s15  ;;  %vm12742_vm0 = vmmov %vm12740_vm6  ;;  %s12743_s15 = smov 115   ;;  %v6773_v19 = vld [vmem:[#allocation11] sm:$0xff] }
 0x7c8   : > { %5175 = vst [vmem:[#allocation4 + $0x2f8] sm:$0xff] %v5169_v15  ;;  %6145 = vrot.lane.b32.xlu1 %v11281_v60, %s8511_s13  ;;  %7134 = vmatprep.subr.mxu1 %v5169_v15 }
 0x7c9   : > { %7135 = vmatpush2.msra.mxu1 %v5168_v23  ;;  %v11528_v23 = vld [vmem:[#allocation11 + $0x10] sm:$0xff] }
 0x7ca   : > { %v6733_v2 = vpop.permute.xlu0 %6732  ;;  %v11496_v43 = vpop.permute.xlu1 %5922 }
 0x7cb   : > { %v5927_v17 = vsel %vm12740_vm6, %v5921_v55, %v11496_v43  ;;  %6045 = vrot.lane.b32.xlu0 %v11309_v48, %s12469_s21  ;;  %vm12744_vm6 = vmmov %vm12741_vm7 }
 0x7cc   : > { %6126 = vrot.lane.b32.xlu1 %v11277_v26, %s12529_s12  ;;  %7175 = vmatprep.subr.mxu0 %v5927_v17  ;;  %s12746_s12 = smov 116  }
 0x7ce   : > { %v5111_v40 = vpop.permute.xlu0 %5110  ;;  %v5919_v51 = vpop.permute.xlu1 %5918 }
 0x7cf   : > { %v5118_v38 = vsel %vm12741_vm7, %v5111_v40, %v5113_v28  ;;  %v5926_v56 = vsel %vm12742_vm0, %v5919_v51, %v5921_v55  ;;  %5993 = vrot.lane.b32.xlu0 %v11281_v60, %s12743_s15  ;;  %vm12745_vm7 = vcmask 867328   ;;  %vm12747_vm0 = vcmask 646144  }
 0x7d0   : > { %5124 = vst [vmem:[#allocation4 + $0x1e8] sm:$0xff] %v5118_v38  ;;  %6096 = vrot.lane.b32.xlu1 %v11309_v48, %s8512_s24  ;;  %7176 = vmatpush1.msra.mxu0 %v5926_v56 }
 0x7d2   : > { %v5085_v37 = vpop.permute.xlu0 %5084  ;;  %v11510_v11 = vpop.permute.xlu1 %5114 }
 0x7d3   : > { %v5119_v39 = vsel %vm12744_vm6, %v5113_v28, %v11510_v11  ;;  %5974 = vrot.lane.b32.xlu0 %v11277_v26, %s12538_s19  ;;  %vm12748_vm6 = vmmov %vm12745_vm7  ;;  %s12749_s19 = smov 117  }
 0x7d4   : > { %5125 = vst [vmem:[#allocation4 + $0x8b8] sm:$0xff] %v5119_v39  ;;  %6043 = vrot.lane.b32.xlu1 %v11281_v60, %s12469_s21  ;;  %7136 = vmatprep.subr.mxu1 %v5119_v39  ;;  %s12752_s21 = smov 39  }
 0x7d5   : > { %7137 = vmatpush2.msra.mxu1 %v5118_v38 }
 0x7d6   : > { %v6705_v45 = vpop.permute.xlu0 %6704  ;;  %v11518_v55 = vpop.permute.xlu1 %6734  ;;  %7139 = vmatmul.mubr.f32.vlgmr.msra.gmra.mxu1 %v6773_v19 }
 0x7d7   : > { %v6739_v47 = vsel %vm12745_vm7, %v6733_v2, %v11518_v55  ;;  %5945 = vrot.lane.b32.xlu0 %v11309_v48, %s12746_s12  ;;  %8015 = vmatprep.mubr.msk.f32.mxu1 %vm2090_vm11, %v11313_v14  ;;  %vm5092_vm7 = vcmask 318464  }
 0x7d8   : > { %6024 = vrot.lane.b32.xlu1 %v11277_v26, %s12531_s10  ;;  %7207 = vmatprep.subr.mxu0 %v6739_v47  ;;  %s12483_s10 = smov 66   ;;  %v11579_v47 = vld [vmem:[#allocation3 + $0x38] sm:$0xff] }
 0x7da   : > { %v5066_v34 = vpop.permute.xlu0 %5065  ;;  %v6731_v59 = vpop.permute.xlu1 %6730 }
 0x7db   : > { %v5069_v25 = vsel %vm12747_vm0, %v11029_v30, %v5066_v34  ;;  %v6738_v28 = vsel %vm12748_vm6, %v6731_v59, %v6733_v2  ;;  %5893 = vrot.lane.b32.xlu0 %v11281_v60, %s12749_s19  ;;  %vm12471_vm0 = vcmask 547840   ;;  %vm12751_vm6 = vcmask 654336  }
 0x7dc   : > { %5075 = vst [vmem:[#allocation4 + $0x140] sm:$0xff] %v5069_v25  ;;  %5995 = vrot.lane.b32.xlu1 %v11309_v48, %s12743_s15  ;;  %7208 = vmatpush2.msra.mxu0 %v6738_v28 }
 0x7dd   : > { %7210 = vmatmul.mubr.f32.vlgmr.msra.gmra.mxu0 %v11528_v23 }
 0x7de   : > { %v5035_v14 = vpop.permute.xlu0 %5034  ;;  %v11538_v15 = vpop.permute.xlu1 %5086  ;;  %7280 = vmatprep.mubr.f32.mxu0 %v11331_v20 }
 0x7df   : > { %v5093_v30 = vsel %vm5092_vm7, %v5085_v37, %v11538_v15  ;;  %6755 = vrot.lane.b32.xlu0 %v11281_v60, %s12483_s10 }
 0x7e0   : > { %5099 = vst [vmem:[#allocation4 + $0x160] sm:$0xff] %v5093_v30  ;;  %5943 = vrot.lane.b32.xlu1 %v11281_v60, %s12746_s12  ;;  %7216 = vmatprep.subr.mxu0 %v5093_v30 }
 0x7e1   : > { %7217 = vmatpush1.msra.mxu0 %v5069_v25 }
 0x7e2   : > { %v6655_v2 = vpop.permute.xlu0 %6654  ;;  %v11547_v17 = vpop.permute.xlu1 %6706 }
 0x7e3   : > { %v6713_v20 = vsel %vm12471_vm0, %v6705_v45, %v11547_v17  ;;  %5874 = vrot.lane.b32.xlu0 %v11277_v26, %s12750_s18  ;;  %vm12753_vm0 = vcmask 326656   ;;  %s12756_s18 = smov 30  }
 0x7e4   : > { %5924 = vrot.lane.b32.xlu1 %v11277_v26, %s12533_s25  ;;  %7287 = vmatprep.subr.mxu1 %v6713_v20  ;;  %s12754_s25 = smov 118  }
 0x7e6   : > { %v5016_v40 = vpop.permute.xlu0 %5015  ;;  %v6686_v51 = vpop.permute.xlu1 %6685 }
 0x7e7   : > { %v5019_v38 = vsel %vm12751_vm6, %v11062_v18, %v5016_v40  ;;  %v6689_v56 = vsel %vm2654_vm1, %v11106_v31, %v6686_v51  ;;  %5088 = vrot.lane.b32.xlu0 %v11309_v48, %s12752_s21  ;;  %vm12755_vm1 = vcmask 556032   ;;  %vm4991_vm6 = vcmask 474112  }
 0x7e8   : > { %5025 = vst [vmem:[#allocation4 + $0x910] sm:$0xff] %v5019_v38  ;;  %5895 = vrot.lane.b32.xlu1 %v11309_v48, %s12749_s19  ;;  %7288 = vmatpush1.msra.mxu1 %v6689_v56 }
 0x7ea   : > { %v4984_v37 = vpop.permute.xlu0 %4983  ;;  %v11563_v39 = vpop.permute.xlu1 %5036 }
 0x7eb   : > { %v5042_v19 = vsel %vm12753_vm0, %v5035_v14, %v11563_v39  ;;  %5843 = vrot.lane.b32.xlu0 %v11281_v60, %s12754_s25  ;;  %vm12757_vm0 = vcmask 801792  }
 0x7ec   : > { %5048 = vst [vmem:[#allocation4 + $0x138] sm:$0xff] %v5042_v19  ;;  %6757 = vrot.lane.b32.xlu1 %v11309_v48, %s12483_s10  ;;  %7218 = vmatprep.subr.mxu0 %v5042_v19  ;;  %s12781_s10 = smov 75  }
 0x7ed   : > { %7219 = vmatpush1.msra.mxu0 %v5019_v38 }
 0x7ee   : > { %v6604_v18 = vpop.permute.xlu0 %6603  ;;  %v11571_v31 = vpop.permute.xlu1 %6656 }
 0x7ef   : > { %v6662_v45 = vsel %vm12755_vm1, %v6655_v2, %v11571_v31  ;;  %5824 = vrot.lane.b32.xlu0 %v11277_v26, %s12756_s18  ;;  %vm12758_vm1 = vcmask 809984   ;;  %s12760_s18 = smov 31  }
 0x7f0   : > { %6736 = vrot.lane.b32.xlu1 %v11269_v46, %s12699_s0  ;;  %7289 = vmatprep.subr.mxu1 %v6662_v45  ;;  %s8515_s0 = smov 119  }
 0x7f2   : > { %v4965_v34 = vpop.permute.xlu0 %4964  ;;  %v6636_v59 = vpop.permute.xlu1 %6635 }
 0x7f3   : > { %v4968_v25 = vsel %vm12757_vm0, %v11055_v44, %v4965_v34  ;;  %v6639_v28 = vsel %vm2607_vm2, %v11161_v7, %v6636_v59  ;;  %5040 = vrot.lane.b32.xlu0 %v11579_v47, %s8496_s3  ;;  %vm12472_vm2 = vcmask 564224   ;;  %vm4940_vm0 = vcmask 482304   ;;  %v11629_v34 = vld [vmem:[#allocation3 + $0x28] sm:$0xff] }
 0x7f4   : > { %4974 = vst [vmem:[#allocation4 + $0x30] sm:$0xff] %v4968_v25  ;;  %5090 = vrot.lane.b32.xlu1 %v11579_v47, %s12752_s21  ;;  %7290 = vmatpush1.msra.mxu1 %v6639_v28  ;;  %s8516_s21 = smov 120  }
 0x7f6   : > { %v4933_v46 = vpop.permute.xlu0 %4932  ;;  %v11589_v14 = vpop.permute.xlu1 %4985 }
 0x7f7   : > { %v4992_v30 = vsel %vm4991_vm6, %v4984_v37, %v11589_v14  ;;  %5794 = vrot.lane.b32.xlu0 %v11309_v48, %s8515_s0 }
 0x7f8   : > { %4998 = vst [vmem:[#allocation4 + $0x350] sm:$0xff] %v4992_v30  ;;  %5845 = vrot.lane.b32.xlu1 %v11309_v48, %s12754_s25  ;;  %7220 = vmatprep.subr.mxu0 %v4992_v30  ;;  %v11649_v30 = vld [vmem:[#allocation3 + $0x20] sm:$0xff] }
 0x7f9   : > { %7221 = vmatpush1.msra.mxu0 %v4968_v25 }
 0x7fa   : > { %v6553_v44 = vpop.permute.xlu0 %6552  ;;  %v11597_v7 = vpop.permute.xlu1 %6605 }
 0x7fb   : > { %v6612_v2 = vsel %vm12472_vm2, %v6604_v18, %v11597_v7  ;;  %4987 = vrot.lane.b32.xlu0 %v11309_v48, %s8498_s1  ;;  %vm12762_vm2 = vcmask 900096  }
 0x7fc   : > { %5038 = vrot.lane.b32.xlu1 %v11309_v48, %s8496_s3  ;;  %7291 = vmatprep.subr.mxu1 %v6612_v2  ;;  %s12759_s3 = smov 32   ;;  %v11657_v2 = vld [vmem:[#allocation3 + $0x18] sm:$0xff] }
 0x7fe   : > { %v4914_v20 = vpop.permute.xlu0 %4913  ;;  %v6585_v40 = vpop.permute.xlu1 %6584 }
 0x7ff   : > { %v4917_v51 = vsel %vm12758_vm1, %v11094_v41, %v4914_v20  ;;  %v6588_v38 = vsel %vm2560_vm10, %v11198_v53, %v6585_v40  ;;  %5741 = vrot.lane.b32.xlu0 %v11281_v60, %s8516_s21  ;;  %vm12473_vm10 = vcmask 572416   ;;  %vm12761_vm1 = vcmask 818176  }
 0x800   : > { %4923 = vst [vmem:[#allocation4 + $0x108] sm:$0xff] %v4917_v51  ;;  %5792 = vrot.lane.b32.xlu1 %v11281_v60, %s8515_s0  ;;  %7292 = vmatpush1.msra.mxu1 %v6588_v38 }
 0x802   : > { %v4882_v56 = vpop.permute.xlu0 %4881  ;;  %v11613_v37 = vpop.permute.xlu1 %4934 }
 0x803   : > { %v4941_v19 = vsel %vm4940_vm0, %v4933_v46, %v11613_v37  ;;  %5722 = vrot.lane.b32.xlu0 %v11277_v26, %s12759_s3  ;;  %s8517_s3 = smov 10  }
 0x804   : > { %4947 = vst [vmem:[#allocation4 + $0x628] sm:$0xff] %v4941_v19  ;;  %5773 = vrot.lane.b32.xlu1 %v11277_v26, %s12760_s18  ;;  %7222 = vmatprep.subr.mxu0 %v4941_v19  ;;  %s8519_s18 = smov 15  }
 0x805   : > { %7223 = vmatpush1.msra.mxu0 %v4917_v51 }
 0x806   : > { %v6502_v41 = vpop.permute.xlu0 %6501  ;;  %v11621_v53 = vpop.permute.xlu1 %6554 }
 0x807   : > { %v6561_v60 = vsel %vm12473_vm10, %v6553_v44, %v11621_v53  ;;  %4938 = vrot.lane.b32.xlu0 %v11579_v47, %s8500_s17  ;;  %vm4889_vm10 = vcmask 490496  }
 0x808   : > { %4989 = vrot.lane.b32.xlu1 %v11579_v47, %s8498_s1  ;;  %7293 = vmatprep.subr.mxu1 %v6561_v60  ;;  %s8518_s1 = smov 11   ;;  %v6833_v60 = vld [vmem:[#allocation4 + $0x6c8] sm:$0xff] }
 0x80a   : > { %v4863_v18 = vpop.permute.xlu0 %4862  ;;  %v6534_v45 = vpop.permute.xlu1 %6533 }
 0x80b   : > { %v4866_v26 = vsel %vm12761_vm1, %v11085_v22, %v4863_v18  ;;  %v6537_v59 = vsel %vm12762_vm2, %v11221_v16, %v6534_v45  ;;  %5692 = vrot.lane.b32.xlu0 %v11629_v34, %s8517_s3  ;;  %vm12475_vm2 = vcmask 580608   ;;  %vm12763_vm1 = vcmask 826368  }
 0x80c   : > { %4872 = vst [vmem:[#allocation4 + $0x150] sm:$0xff] %v4866_v26  ;;  %5743 = vrot.lane.b32.xlu1 %v11309_v48, %s8516_s21  ;;  %7294 = vmatpush1.msra.mxu1 %v6537_v59  ;;  %v6827_v59 = vld [vmem:[#allocation4 + $0x4d8] sm:$0xff] }
 0x80e   : > { %v4831_v25 = vpop.permute.xlu0 %4830  ;;  %v11639_v28 = vpop.permute.xlu1 %4883 }
 0x80f   : > { %v4890_v46 = vsel %vm4889_vm10, %v4882_v56, %v11639_v28  ;;  %4885 = vrot.lane.b32.xlu0 %v11309_v48, %s8502_s9 }
 0x810   : > { %4896 = vst [vmem:[#allocation4 + $0x798] sm:$0xff] %v4890_v46  ;;  %4936 = vrot.lane.b32.xlu1 %v11309_v48, %s8500_s17  ;;  %7224 = vmatprep.subr.mxu0 %v4890_v46  ;;  %s12769_s17 = smov 53  }
 0x811   : > { %7225 = vmatpush1.msra.mxu0 %v4866_v26  ;;  %v6828_v26 = vld [vmem:[#allocation4 + $0x588] sm:$0xff] }
 0x812   : > { %v6452_v22 = vpop.permute.xlu0 %6451  ;;  %v11647_v16 = vpop.permute.xlu1 %6503 }
 0x813   : > { %v6510_v44 = vsel %vm12475_vm2, %v6502_v41, %v11647_v16  ;;  %5639 = vrot.lane.b32.xlu0 %v11649_v30, %s8518_s1  ;;  %vm4838_vm2 = vcmask 498688  }
 0x814   : > { %5690 = vrot.lane.b32.xlu1 %v11649_v30, %s8517_s3  ;;  %7295 = vmatprep.subr.mxu1 %v6510_v44 }
 0x816   : > { %v4812_v48 = vpop.permute.xlu0 %4811  ;;  %v6483_v20 = vpop.permute.xlu1 %6482 }
 0x817   : > { %v4815_v40 = vsel %vm12763_vm1, %v11092_v33, %v4812_v48  ;;  %v6486_v51 = vsel %vm12764_vm5, %v11243_v35, %v6483_v20  ;;  %5620 = vrot.lane.b32.xlu0 %v11657_v2, %s12664_s30  ;;  %v6834_v33 = vld [vmem:[#allocation4 + $0x98] sm:$0xff]  ;;  %vm12765_vm5 = vcmask 15360   ;;  %s12766_s30 = smov 12   ;;  %vm12767_vm1 = vcmask 916480   ;;  %v11691_v48 = vld [vmem:[#allocation3 + $0x30] sm:$0xff]  ;;  %v6816_v20 = vld [vmem:[#allocation4 + $0x450] sm:$0xff] }
 0x818   : > { %4821 = vst [vmem:[#allocation4 + $0x8d8] sm:$0xff] %v4815_v40  ;;  %5671 = vrot.lane.b32.xlu1 %v11657_v2, %s12661_s22  ;;  %7296 = vmatpush1.msra.mxu1 %v6486_v51  ;;  %s12768_s22 = smov 13   ;;  %v6810_v51 = vld [vmem:[#allocation4 + $0x5b8] sm:$0xff] }
 0x81a   : > { %v6401_v38 = vpop.permute.xlu0 %6400  ;;  %v11667_v56 = vpop.permute.xlu1 %4832 }
 0x81b   : > { %v4839_v19 = vsel %vm4838_vm2, %v4831_v25, %v11667_v56  ;;  %4836 = vrot.lane.b32.xlu0 %v11579_v47, %s8504_s27  ;;  %v6822_v25 = vld [vmem:[#allocation4 + $0x58] sm:$0xff] }
 0x81c   : > { %4845 = vst [vmem:[#allocation4 + $0x810] sm:$0xff] %v4839_v19  ;;  %4887 = vrot.lane.b32.xlu1 %v11579_v47, %s8502_s9  ;;  %7226 = vmatprep.subr.mxu0 %v4839_v19  ;;  %s12771_s9 = smov 14  }
 0x81d   : > { %7227 = vmatpush1.msra.mxu0 %v4815_v40  ;;  %v6815_v40 = vld [vmem:[#allocation4 + $0x308] sm:$0xff] }
 0x81e   : > { %v6382_v35 = vpop.permute.xlu0 %6381  ;;  %v11675_v41 = vpop.permute.xlu1 %6453  ;;  %7228 = vmatprep.subr.mxu0 %v6834_v33 }
 0x81f   : > { %v6385_v18 = vsel %vm12765_vm5, %v11289_v62, %v6382_v35  ;;  %v6459_v45 = vsel %vm12478_vm9, %v6452_v22, %v11675_v41  ;;  %5591 = vrot.lane.b32.xlu0 %v11629_v34, %s12766_s30  ;;  %7229 = vmatpush1.msra.mxu0 %v6833_v60  ;;  %v6821_v62 = vld [vmem:[#allocation4 + $0x488] sm:$0xff]  ;;  %vm12476_vm5 = vcmask 736256   ;;  %vm12774_vm9 = vcmask 48128  }
 0x820   : > { %5641 = vrot.lane.b32.xlu1 %v11629_v34, %s8518_s1  ;;  %7230 = vmatprep.subr.mxu0 %v6828_v26  ;;  %v6804_v60 = vld [vmem:[#allocation4 + $0x268] sm:$0xff]  ;;  %v6798_v26 = vld [vmem:[#allocation4 + $0x480] sm:$0xff] }
 0x821   : > { %7297 = vmatprep.subr.mxu1 %v6459_v45  ;;  %7231 = vmatpush1.msra.mxu0 %v6827_v59  ;;  %v6803_v45 = vld [vmem:[#allocation4 + $0x10] sm:$0xff] }
 0x822   : > { %v11685_v46 = vpop.permute.xlu0 %6351  ;;  %v6433_v44 = vpop.permute.xlu1 %6432  ;;  %7232 = vmatprep.subr.mxu0 %v6822_v25 }
 0x823   : > { %v6436_v22 = vsel %vm12767_vm1, %v11263_v29, %v6433_v44  ;;  %5539 = vrot.lane.b32.xlu0 %v11649_v30, %s12768_s22  ;;  %7233 = vmatpush1.msra.mxu0 %v6821_v62  ;;  %v6809_v29 = vld [vmem:[#allocation4 + $0x6f0] sm:$0xff]  ;;  %vm12477_vm1 = vcmask 744448  }
 0x824   : > { %4834 = vrot.lane.b32.xlu1 %v11691_v48, %s8504_s27  ;;  %7234 = vmatprep.subr.mxu0 %v6816_v20  ;;  %v6797_v44 = vld [vmem:[#allocation4 + $0x770] sm:$0xff]  ;;  %s12772_s27 = smov 52  }
 0x825   : > { %7298 = vmatpush1.msra.mxu1 %v6436_v22  ;;  %7235 = vmatpush1.msra.mxu0 %v6815_v40  ;;  %v6792_v22 = vld [vmem:[#allocation4 + $0x580] sm:$0xff]  ;;  %v6791_v20 = vld [vmem:[#allocation4 + $0x570] sm:$0xff] }
 0x826   : > { %v6299_v19 = vpop.permute.xlu0 %6298  ;;  %v11695_v33 = vpop.permute.xlu1 %6402  ;;  %7236 = vmatprep.subr.mxu0 %v6810_v51 }
 0x827   : > { %v6409_v35 = vsel %vm12476_vm5, %v6401_v38, %v11695_v33  ;;  %5520 = vrot.lane.b32.xlu0 %v11657_v2, %s12769_s17  ;;  %7237 = vmatpush1.msra.mxu0 %v6809_v29  ;;  %vm12770_vm5 = vcmask 31744   ;;  %s8520_s17 = smov 16  }
 0x828   : > { %5589 = vrot.lane.b32.xlu1 %v11649_v30, %s12766_s30  ;;  %7238 = vmatprep.subr.mxu0 %v6804_v60  ;;  %v6779_v60 = vld [vmem:[#allocation4 + $0x7f8] sm:$0xff] }
 0x829   : > { %7299 = vmatprep.subr.mxu1 %v6409_v35  ;;  %7239 = vmatpush1.msra.mxu0 %v6803_v45  ;;  %v6780_v35 = vld [vmem:[#allocation4 + $0x758] sm:$0xff] }
 0x82a   : > { %v6280_v59 = vpop.permute.xlu0 %6279  ;;  %v6350_v25 = vpop.permute.xlu1 %6349  ;;  %7300 = vmatpush1.msra.mxu1 %v6385_v18  ;;  %7240 = vmatprep.subr.mxu0 %v6798_v26  ;;  %v6786_v18 = vld [vmem:[#allocation4 + $0x6a8] sm:$0xff] }
 0x82b   : > { %v6283_v38 = vsel %vm12770_vm5, %v11342_v58, %v6280_v59  ;;  %v6358_v62 = vsel %vm12477_vm1, %v6350_v25, %v11685_v46  ;;  %5491 = vrot.lane.b32.xlu0 %v11629_v34, %s12771_s9  ;;  %7241 = vmatpush1.msra.mxu0 %v6797_v44  ;;  %v6785_v58 = vld [vmem:[#allocation4 + $0x6e8] sm:$0xff]  ;;  %vm12773_vm5 = vcmask 23552   ;;  %vm12479_vm1 = vcmask 752640  }
 0x82c   : > { %5570 = vrot.lane.b32.xlu1 %v11657_v2, %s12772_s27  ;;  %7242 = vmatprep.subr.mxu0 %v6792_v22  ;;  %s12780_s27 = smov 37  }
 0x82d   : > { %7301 = vmatprep.subr.mxu1 %v6358_v62  ;;  %7243 = vmatpush1.msra.mxu0 %v6791_v20 }
 0x82e   : > { %v11711_v40 = vpop.permute.xlu0 %6249  ;;  %v6331_v51 = vpop.permute.xlu1 %6330  ;;  %7244 = vmatprep.subr.mxu0 %v6786_v18 }
 0x82f   : > { %v6334_v29 = vsel %vm12773_vm5, %v11317_v61, %v6331_v51  ;;  %5438 = vrot.lane.b32.xlu0 %v11649_v30, %s8519_s18  ;;  %7245 = vmatpush1.msra.mxu0 %v6785_v58  ;;  %vm12482_vm5 = vcmask 760832  }
 0x830   : > { %5541 = vrot.lane.b32.xlu1 %v11629_v34, %s12768_s22  ;;  %7246 = vmatprep.subr.mxu0 %v6780_v35 }
 0x831   : > { %7302 = vmatpush1.msra.mxu1 %v6334_v29  ;;  %7247 = vmatpush1.msra.mxu0 %v6779_v60 }
 0x832   : > { %v6197_v45 = vpop.permute.xlu0 %6196  ;;  %v11719_v26 = vpop.permute.xlu1 %6300 }
 0x833   : > { %v6307_v61 = vsel %vm12479_vm1, %v6299_v19, %v11719_v26  ;;  %5419 = vrot.lane.b32.xlu0 %v11657_v2, %s12677_s28  ;;  %vm12775_vm1 = vcmask 39936   ;;  %s8521_s28 = smov 34  }
 0x834   : > { %5489 = vrot.lane.b32.xlu1 %v11649_v30, %s12771_s9  ;;  %7303 = vmatprep.subr.mxu1 %v6307_v61 }
 0x835   : > { %7304 = vmatpush1.msra.mxu1 %v6283_v38 }
 0x836   : > { %v6178_v59 = vpop.permute.xlu0 %6177  ;;  %v6248_v25 = vpop.permute.xlu1 %6247 }
 0x837   : > { %v6181_v44 = vsel %vm12774_vm9, %v11386_v21, %v6178_v59  ;;  %v6256_v62 = vsel %vm12482_vm5, %v6248_v25, %v11711_v40  ;;  %5389 = vrot.lane.b32.xlu0 %v11629_v34, %s8520_s17  ;;  %vm12480_vm9 = vcmask 769024   ;;  %vm12779_vm5 = vcmask 220160  }
 0x838   : > { %5470 = vrot.lane.b32.xlu1 %v11657_v2, %s12581_s29  ;;  %7305 = vmatprep.subr.mxu1 %v6256_v62  ;;  %s12486_s29 = smov 35  }
 0x83a   : > { %v11735_v19 = vpop.permute.xlu0 %6147  ;;  %v6229_v22 = vpop.permute.xlu1 %6228 }
 0x83b   : > { %v6232_v38 = vsel %vm12775_vm1, %v11364_v27, %v6229_v22  ;;  %5336 = vrot.lane.b32.xlu0 %v11649_v30, %s8521_s28  ;;  %vm12481_vm1 = vcmask 777216  }
 0x83c   : > { %5440 = vrot.lane.b32.xlu1 %v11629_v34, %s8519_s18  ;;  %7306 = vmatpush1.msra.mxu1 %v6232_v38 }
 0x83e   : > { %v6095_v21 = vpop.permute.xlu0 %6094  ;;  %v11743_v20 = vpop.permute.xlu1 %6198 }
 0x83f   : > { %v6205_v18 = vsel %vm12480_vm9, %v6197_v45, %v11743_v20  ;;  %5317 = vrot.lane.b32.xlu0 %v11657_v2, %s12685_s4  ;;  %vm12776_vm9 = vcmask 56320   ;;  %s12777_s4 = smov 36  }
 0x840   : > { %5387 = vrot.lane.b32.xlu1 %v11649_v30, %s8520_s17  ;;  %7307 = vmatprep.subr.mxu1 %v6205_v18 }
 0x841   : > { %7308 = vmatpush1.msra.mxu1 %v6181_v44 }
 0x842   : > { %v6076_v27 = vpop.permute.xlu0 %6075  ;;  %v6146_v51 = vpop.permute.xlu1 %6145 }
 0x843   : > { %v6079_v58 = vsel %vm2090_vm11, %v11430_v42, %v6076_v27  ;;  %v6154_v29 = vsel %vm12481_vm1, %v6146_v51, %v11735_v19  ;;  %5287 = vrot.lane.b32.xlu0 %v11629_v34, %s12486_s29  ;;  %vm12485_vm1 = vcmask 785408  }
 0x844   : > { %5368 = vrot.lane.b32.xlu1 %v11657_v2, %s12682_s11  ;;  %7309 = vmatprep.subr.mxu1 %v6154_v29  ;;  %s12778_s11 = smov 76  }
 0x846   : > { %v11759_v35 = vpop.permute.xlu0 %6045  ;;  %v6127_v60 = vpop.permute.xlu1 %6126 }
 0x847   : > { %v6130_v45 = vsel %vm12776_vm9, %v11408_v12, %v6127_v60  ;;  %5235 = vrot.lane.b32.xlu0 %v11649_v30, %s12777_s4  ;;  %vm12490_vm9 = vcmask 932864  }
 0x848   : > { %5338 = vrot.lane.b32.xlu1 %v11629_v34, %s8521_s28  ;;  %7310 = vmatpush1.msra.mxu1 %v6130_v45 }
 0x84a   : > { %v5994_v42 = vpop.permute.xlu0 %5993  ;;  %v11767_v61 = vpop.permute.xlu1 %6096 }
 0x84b   : > { %v6103_v59 = vsel %vm12485_vm1, %v6095_v21, %v11767_v61  ;;  %5216 = vrot.lane.b32.xlu0 %v11657_v2, %s12778_s11  ;;  %vm12782_vm1 = vcmask 211968   ;;  %s12783_s11 = smov 38  }
 0x84c   : > { %5285 = vrot.lane.b32.xlu1 %v11649_v30, %s12486_s29  ;;  %7311 = vmatprep.subr.mxu1 %v6103_v59  ;;  %s12786_s29 = smov 77  }
 0x84d   : > { %7312 = vmatpush1.msra.mxu1 %v6079_v58 }
 0x84e   : > { %v5975_v12 = vpop.permute.xlu0 %5974  ;;  %v6044_v25 = vpop.permute.xlu1 %6043 }
 0x84f   : > { %v5978_v44 = vsel %vm12779_vm5, %v11474_v3, %v5975_v12  ;;  %v6052_v62 = vsel %vm12490_vm9, %v6044_v25, %v11759_v35  ;;  %5187 = vrot.lane.b32.xlu0 %v11629_v34, %s12780_s27  ;;  %vm12784_vm5 = vcmask 941056   ;;  %vm12806_vm9 = vcmask 621568  }
 0x850   : > { %5266 = vrot.lane.b32.xlu1 %v11657_v2, %s12781_s10  ;;  %7313 = vmatprep.subr.mxu1 %v6052_v62  ;;  %s12785_s10 = smov 78  }
 0x852   : > { %v11783_v22 = vpop.permute.xlu0 %5945  ;;  %v6025_v38 = vpop.permute.xlu1 %6024 }
 0x853   : > { %v6028_v21 = vsel %vm12782_vm1, %v11452_v10, %v6025_v38  ;;  %5135 = vrot.lane.b32.xlu0 %v11649_v30, %s12783_s11  ;;  %v11799_v10 = vld [vmem:[#allocation3 + $0x40] sm:$0xff]  ;;  %vm12787_vm1 = vcmask 236544  }
 0x854   : > { %5237 = vrot.lane.b32.xlu1 %v11629_v34, %s12777_s4  ;;  %7314 = vmatpush1.msra.mxu1 %v6028_v21 }
 0x856   : > { %v5894_v3 = vpop.permute.xlu0 %5893  ;;  %v11791_v18 = vpop.permute.xlu1 %5995 }
 0x857   : > { %v6001_v27 = vsel %vm12784_vm5, %v5994_v42, %v11791_v18  ;;  %5116 = vrot.lane.b32.xlu0 %v11657_v2, %s12785_s10  ;;  %vm12788_vm5 = vcmask 228352   ;;  %s8524_s10 = smov [#allocation12]  }
 0x858   : > { %5185 = vrot.lane.b32.xlu1 %v11649_v30, %s12780_s27  ;;  %7315 = vmatprep.subr.mxu1 %v6001_v27 }
 0x859   : > { %7316 = vmatpush1.msra.mxu1 %v5978_v44 }
 0x85a   : > { %v6756_v51 = vpop.permute.xlu0 %6755  ;;  %v5944_v58 = vpop.permute.xlu1 %5943 }
 0x85b   : > { %v5951_v29 = vsel %vm12488_vm3, %v5944_v58, %v11783_v22  ;;  %6710 = vrot.lane.b32.xlu0 %v11799_v10, %s12708_s23  ;;  %vm12790_vm3 = vcmask 867328  }
 0x85c   : > { %5166 = vrot.lane.b32.xlu1 %v11657_v2, %s12786_s29  ;;  %7317 = vmatprep.subr.mxu1 %v5951_v29 }
 0x85e   : > { %v5875_v60 = vpop.permute.xlu0 %5874  ;;  %v5925_v45 = vpop.permute.xlu1 %5924 }
 0x85f   : > { %v5878_v30 = vsel %vm12787_vm1, %v11148_v57, %v5875_v60  ;;  %v5928_v42 = vsel %vm12788_vm5, %v11496_v43, %v5925_v45  ;;  %5899 = vrot.lane.b32.xlu0 %v11799_v10, %s12749_s19  ;;  %vm12489_vm1 = vcmask 539648   ;;  %vm12789_vm5 = vcmask 244736  }
 0x860   : > { %5137 = vrot.lane.b32.xlu1 %v11629_v34, %s12783_s11  ;;  %7318 = vmatpush1.msra.mxu1 %v5928_v42 }
 0x862   : > { %v5089_v59 = vpop.permute.xlu0 %5088  ;;  %v11815_v12 = vpop.permute.xlu1 %5895 }
 0x863   : > { %v5094_v2 = vsel %vm5092_vm7, %v11538_v15, %v5089_v59  ;;  %v5901_v25 = vsel %vm3720_vm13, %v5894_v3, %v11815_v12  ;;  %6660 = vrot.lane.b32.xlu0 %v11799_v10, %s8497_s2  ;;  %v8523_v15 = vmov 3  }
 0x864   : > { %5100 = vst [vmem:[#allocation4 + $0x1a8] sm:$0xff] %v5094_v2  ;;  %6708 = vrot.lane.b32.xlu1 %v11579_v47, %s12708_s23  ;;  %7248 = vmatprep.subr.mxu0 %v5901_v25  ;;  %s12793_s23 = smov 71  }
 0x865   : > { %7249 = vmatpush2.msra.mxu0 %v5878_v30  ;;  %8224 = vset.pattern.permute.xlu1 %v8523_v15 }
 0x866   : > { %v5844_v57 = vpop.permute.xlu0 %5843  ;;  %v11825_v43 = vpop.permute.xlu1 %6757  ;;  %8225 = vset.pattern.permute.xlu0 %v8523_v15 }
 0x867   : > { %v6764_v34 = vsel %vm12489_vm1, %v6756_v51, %v11825_v43  ;;  %5849 = vrot.lane.b32.xlu0 %v11799_v10, %s12754_s25  ;;  %v8263_v51 = vld [vmem:[#allocation11 + $0x8] sm:$0xff]  ;;  %vm12803_vm1 = vcmask 457728  }
 0x868   : > { %5897 = vrot.lane.b32.xlu1 %v11579_v47, %s12749_s19  ;;  %7349 = vmatprep.subr.mxu1 %v6764_v34 }
 0x86a   : > { %v5825_v44 = vpop.permute.xlu0 %5824  ;;  %v6737_v62 = vpop.permute.xlu1 %6736 }
 0x86b   : > { %v5828_v38 = vsel %vm12789_vm5, %v11185_v1, %v5825_v44  ;;  %v6740_v21 = vsel %vm12790_vm3, %v11518_v55, %v6737_v62  ;;  %6609 = vrot.lane.b32.xlu0 %v11799_v10, %s8499_s6  ;;  %vm12791_vm3 = vcmask 326656   ;;  %vm5800_vm5 = vcmask 973824  }
 0x86c   : > { %6658 = vrot.lane.b32.xlu1 %v11579_v47, %s8497_s2  ;;  %7350 = vmatpush2.msra.mxu1 %v6740_v21  ;;  %s12804_s2 = smov 35  }
 0x86d   : > { %7352 = vmatmul.mubr.f32.vlgmr.msra.gmra.mxu1 %v11528_v23 }
 0x86e   : > { %v5041_v3 = vpop.permute.xlu0 %5040  ;;  %v5091_v27 = vpop.permute.xlu1 %5090  ;;  %7422 = vmatprep.mubr.f32.mxu1 %v8263_v51 }
 0x86f   : > { %v5095_v58 = vsel %vm5092_vm7, %v5089_v59, %v5091_v27  ;;  %5798 = vrot.lane.b32.xlu0 %v11799_v10, %s8515_s0  ;;  %vm12792_vm7 = vmmov %vm12791_vm3 }
 0x870   : > { %5101 = vst [vmem:[#allocation4 + $0x310] sm:$0xff] %v5095_v58  ;;  %5847 = vrot.lane.b32.xlu1 %v11579_v47, %s12754_s25  ;;  %7358 = vmatprep.subr.mxu1 %v5095_v58  ;;  %s12836_s25 = sld [smem:[#allocation33_spill]] }
 0x871   : > { %7359 = vmatpush1.msra.mxu1 %v5094_v2 }
 0x872   : > { %v11847_v1 = vpop.permute.xlu0 %5794  ;;  %v11849_v55 = vpop.permute.xlu1 %5845 }
 0x873   : > { %v5851_v23 = vsel %vm3669_vm15, %v5844_v57, %v11849_v55  ;;  %6558 = vrot.lane.b32.xlu0 %v11799_v10, %s8501_s8 }
 0x874   : > { %6607 = vrot.lane.b32.xlu1 %v11579_v47, %s8499_s6  ;;  %7250 = vmatprep.subr.mxu0 %v5851_v23  ;;  %s12805_s6 = smov 114  }
 0x875   : > { %7251 = vmatpush2.msra.mxu0 %v5828_v38 }
 0x876   : > { %v4988_v29 = vpop.permute.xlu0 %4987  ;;  %v5039_v60 = vpop.permute.xlu1 %5038 }
 0x877   : > { %v4993_v45 = vsel %vm4991_vm6, %v11589_v14, %v4988_v29  ;;  %v5043_v30 = vsel %vm12791_vm3, %v11563_v39, %v5039_v60  ;;  %v5044_v42 = vsel %vm12792_vm7, %v5039_v60, %v5041_v3  ;;  %5747 = vrot.lane.b32.xlu0 %v11799_v10, %s8516_s21  ;;  %vm12794_vm3 = vcmask 261120  }
 0x878   : > { %4999 = vst [vmem:[#allocation4 + $0x348] sm:$0xff] %v4993_v45  ;;  %5049 = vst [vmem:[#allocation4 + $0x1a0] sm:$0xff] %v5043_v30  ;;  %5796 = vrot.lane.b32.xlu1 %v11579_v47, %s8515_s0  ;;  %7360 = vmatprep.subr.mxu1 %v5044_v42  ;;  %vm12795_vm7 = vcmask 252928   ;;  %s12859_s0 = sld [smem:[#allocation25_spill]] }
 0x879   : > { %5050 = vst [vmem:[#allocation4 + $0x378] sm:$0xff] %v5044_v42  ;;  %7361 = vmatpush1.msra.mxu1 %v5043_v30 }
 0x87a   : > { %v5742_v59 = vpop.permute.xlu0 %5741  ;;  %v5793_v2 = vpop.permute.xlu1 %5792 }
 0x87b   : > { %v5801_v14 = vsel %vm5800_vm5, %v5793_v2, %v11847_v1  ;;  %6507 = vrot.lane.b32.xlu0 %v11799_v10, %s12793_s23 }
 0x87c   : > { %6556 = vrot.lane.b32.xlu1 %v11579_v47, %s8501_s8  ;;  %7252 = vmatprep.subr.mxu0 %v5801_v14  ;;  %s12812_s8 = smov 66  }
 0x87e   : > { %v5723_v39 = vpop.permute.xlu0 %5722  ;;  %v5774_v25 = vpop.permute.xlu1 %5773 }
 0x87f   : > { %v5726_v57 = vsel %vm12794_vm3, %v11235_v36, %v5723_v39  ;;  %v5777_v34 = vsel %vm12795_vm7, %v11213_v5, %v5774_v25  ;;  %5696 = vrot.lane.b32.xlu0 %v11579_v47, %s8517_s3  ;;  %vm5749_vm3 = vcmask 982016   ;;  %v11885_v5 = vld [vmem:[#allocation3 + $0x38] sm:$0xff]  ;;  %vm12797_vm7 = vcmask 408576  }
 0x880   : > { %5745 = vrot.lane.b32.xlu1 %v11579_v47, %s8516_s21  ;;  %7253 = vmatpush2.msra.mxu0 %v5777_v34 }
 0x882   : > { %v4939_v15 = vpop.permute.xlu0 %4938  ;;  %v4990_v44 = vpop.permute.xlu1 %4989 }
 0x883   : > { %v4994_v62 = vsel %vm4991_vm6, %v4988_v29, %v4990_v44  ;;  %6457 = vrot.lane.b32.xlu0 %v11799_v10, %s8505_s5  ;;  %vm5698_vm6 = vcmask 80896  }
 0x884   : > { %5000 = vst [vmem:[#allocation4 + $0x698] sm:$0xff] %v4994_v62  ;;  %6505 = vrot.lane.b32.xlu1 %v11579_v47, %s12793_s23  ;;  %7362 = vmatprep.subr.mxu1 %v4994_v62  ;;  %s8351_s23 = sshll.u32 %s8524_s10, 4  ;;  %s8352_s23 = int_to_ptr.vmem [resolvable:$false] %s8351_s23 }
 0x885   : > { %7363 = vmatpush1.msra.mxu1 %v4993_v45 }
 0x886   : > { %v11887_v36 = vpop.permute.xlu0 %5692  ;;  %v11889_v38 = vpop.permute.xlu1 %5743 }
 0x887   : > { %v5750_v21 = vsel %vm5749_vm3, %v5742_v59, %v11889_v38  ;;  %5645 = vrot.lane.b32.xlu0 %v11885_v5, %s8518_s1 }
 0x888   : > { %5694 = vrot.lane.b32.xlu1 %v11691_v48, %s8517_s3  ;;  %7254 = vmatprep.subr.mxu0 %v5750_v21  ;;  %v6835_v21 = vld [vmem:[#allocation4 + $0x70] sm:$0xff]  ;;  %s12860_s3 = sld [smem:[#allocation20_spill]] }
 0x889   : > { %7255 = vmatpush2.msra.mxu0 %v5726_v57 }
 0x88a   : > { %v4886_v3 = vpop.permute.xlu0 %4885  ;;  %v4937_v27 = vpop.permute.xlu1 %4936 }
 0x88b   : > { %v4891_v51 = vsel %vm4889_vm10, %v11639_v28, %v4886_v3  ;;  %v4942_v58 = vsel %vm4940_vm0, %v11613_v37, %v4937_v27  ;;  %v4943_v23 = vsel %vm4940_vm0, %v4937_v27, %v4939_v15  ;;  %6406 = vrot.lane.b32.xlu0 %v11799_v10, %s8506_s7  ;;  %vm12796_vm0 = vcmask 416768   ;;  %v6836_v15 = vld [vmem:[#allocation4 + $0x6b0] sm:$0xff] }
 0x88c   : > { %4897 = vst [vmem:[#allocation4 + $0x818] sm:$0xff] %v4891_v51  ;;  %4948 = vst [vmem:[#allocation4 + $0x2b8] sm:$0xff] %v4942_v58  ;;  %6455 = vrot.lane.b32.xlu1 %v11579_v47, %s8505_s5  ;;  %7364 = vmatprep.subr.mxu1 %v4943_v23  ;;  %v6830_v27 = vld [vmem:[#allocation4 + $0x2f0] sm:$0xff] }
 0x88d   : > { %4949 = vst [vmem:[#allocation4 + $0xb8] sm:$0xff] %v4943_v23  ;;  %7365 = vmatpush1.msra.mxu1 %v4942_v58 }
 0x88e   : > { %v5640_v29 = vpop.permute.xlu0 %5639  ;;  %v5691_v60 = vpop.permute.xlu1 %5690 }
 0x88f   : > { %v5699_v28 = vsel %vm5698_vm6, %v5691_v60, %v11887_v36  ;;  %5595 = vrot.lane.b32.xlu0 %v11885_v5, %s12766_s30  ;;  %v6823_v60 = vld [vmem:[#allocation4 + $0x4a8] sm:$0xff] }
 0x890   : > { %5643 = vrot.lane.b32.xlu1 %v11691_v48, %s8518_s1  ;;  %7256 = vmatprep.subr.mxu0 %v5699_v28  ;;  %v6818_v28 = vld [vmem:[#allocation4 + $0x280] sm:$0xff] }
 0x892   : > { %v5621_v37 = vpop.permute.xlu0 %5620  ;;  %v5672_v45 = vpop.permute.xlu1 %5671 }
 0x893   : > { %v5624_v47 = vsel %vm12796_vm0, %v11279_v63, %v5621_v37  ;;  %v5675_v30 = vsel %vm12797_vm7, %v11255_v52, %v5672_v45  ;;  %6355 = vrot.lane.b32.xlu0 %v11799_v10, %s8507_s14  ;;  %vm5647_vm0 = vcmask 89088   ;;  %v6817_v37 = vld [vmem:[#allocation4 + $0x7c8] sm:$0xff]  ;;  %vm12800_vm7 = vcmask 449536  }
 0x894   : > { %6404 = vrot.lane.b32.xlu1 %v11885_v5, %s8506_s7  ;;  %7257 = vmatpush2.msra.mxu0 %v5675_v30  ;;  %v6812_v30 = vld [vmem:[#allocation4 + $0x900] sm:$0xff] }
 0x896   : > { %v4837_v42 = vpop.permute.xlu0 %4836  ;;  %v4888_v59 = vpop.permute.xlu1 %4887 }
 0x897   : > { %v4892_v2 = vsel %vm4889_vm10, %v4886_v3, %v4888_v59  ;;  %5545 = vrot.lane.b32.xlu0 %v11885_v5, %s12768_s22  ;;  %vm12798_vm10 = vcmask 433152   ;;  %v6806_v59 = vld [vmem:[#allocation4 + $0x540] sm:$0xff] }
 0x898   : > { %4898 = vst [vmem:[#allocation4 + $0x640] sm:$0xff] %v4892_v2  ;;  %5593 = vrot.lane.b32.xlu1 %v11691_v48, %s12766_s30  ;;  %7366 = vmatprep.subr.mxu1 %v4892_v2  ;;  %v6805_v2 = vld [vmem:[#allocation4 + $0x648] sm:$0xff]  ;;  %s12861_s30 = sld [smem:[#allocation23_spill]] }
 0x899   : > { %7367 = vmatpush1.msra.mxu1 %v4891_v51  ;;  %v6829_v51 = vld [vmem:[#allocation4 + $0x600] sm:$0xff] }
 0x89a   : > { %v11925_v52 = vpop.permute.xlu0 %5591  ;;  %v11927_v63 = vpop.permute.xlu1 %5641 }
 0x89b   : > { %v5648_v14 = vsel %vm5647_vm0, %v5640_v29, %v11927_v63  ;;  %6304 = vrot.lane.b32.xlu0 %v11799_v10, %s8508_s16 }
 0x89c   : > { %6353 = vrot.lane.b32.xlu1 %v11885_v5, %s8507_s14  ;;  %7258 = vmatprep.subr.mxu0 %v5648_v14  ;;  %s12813_s14 = sld [smem:[#allocation32_spill]] }
 0x89d   : > { %7259 = vmatpush2.msra.mxu0 %v5624_v47 }
 0x89e   : > { %v5540_v39 = vpop.permute.xlu0 %5539  ;;  %v4835_v25 = vpop.permute.xlu1 %4834  ;;  %p12864_p0 = scmp.ne.s32.totalorder %s12861_s30, 0 }
 0x89f   : > { %v4840_v57 = vsel %vm4838_vm2, %v11667_v56, %v4835_v25  ;;  %v4841_v34 = vsel %vm4838_vm2, %v4835_v25, %v4837_v42  ;;  %5495 = vrot.lane.b32.xlu0 %v11885_v5, %s12771_s9  ;;  %vm12799_vm2 = vcmask 424960   ;;  %v6811_v42 = vld [vmem:[#allocation4 + $0x800] sm:$0xff] }
 0x8a0   : > { %4846 = vst [vmem:[#allocation4 + $0x768] sm:$0xff] %v4840_v57  ;;  %4847 = vst [vmem:[#allocation4 + $0x668] sm:$0xff] %v4841_v34  ;;  %5543 = vrot.lane.b32.xlu1 %v11691_v48, %s12768_s22  ;;  %7368 = vmatprep.subr.mxu1 %v4841_v34  ;;  %s8044_s22 = smul.u32 768, %s12860_s3 }
 0x8a1   : > { %7369 = vmatpush1.msra.mxu1 %v4840_v57  ;;  %v6800_v57 = vld [vmem:[#allocation4 + $0x90] sm:$0xff] }
 0x8a2   : > { %v5521_v44 = vpop.permute.xlu0 %5520  ;;  %v5590_v62 = vpop.permute.xlu1 %5589  ;;  %7370 = vmatprep.subr.mxu1 %v6836_v15  ;;  %v6799_v15 = vld [vmem:[#allocation4 + $0x370] sm:$0xff] }
 0x8a3   : > { %v5524_v56 = vsel %vm12798_vm10, %v11334_v9, %v5521_v44  ;;  %v5597_v3 = vsel %vm3618_vm8, %v5590_v62, %v11925_v52  ;;  %7371 = vmatpush1.msra.mxu1 %v6835_v21  ;;  %6253 = vrot.lane.b32.xlu0 %v11799_v10, %s8509_s26  ;;  %v6824_v9 = vld [vmem:[#allocation4 + $0x618] sm:$0xff]  ;;  %v6794_v44 = vld [vmem:[#allocation4 + $0x8e0] sm:$0xff]  ;;  %v6793_v62 = vld [vmem:[#allocation4 + $0x3a8] sm:$0xff]  ;;  %vm12801_vm10 = vcmask 441344  }
 0x8a4   : > { %5530 = vst [vmem:[#allocation4 + $0x148] sm:$0xff] %v5524_v56  ;;  %6302 = vrot.lane.b32.xlu1 %v11885_v5, %s8508_s16  ;;  %7260 = vmatprep.subr.mxu0 %v5597_v3 }
 0x8a5   : > { %7372 = vmatprep.subr.mxu1 %v6830_v27  ;;  %v6787_v27 = vld [vmem:[#allocation4 + $0x750] sm:$0xff] }
 0x8a6   : > { %v11950_v58 = vpop.permute.xlu0 %5491  ;;  %v5571_v23 = vpop.permute.xlu1 %5570  ;;  %7373 = vmatpush1.msra.mxu1 %v6829_v51  ;;  %v6781_v51 = vld [vmem:[#allocation4 + $0x320] sm:$0xff] }
 0x8a7   : > { %v5574_v29 = vsel %vm12799_vm2, %v11303_v54, %v5571_v23  ;;  %7374 = vmatprep.subr.mxu1 %v6824_v9  ;;  %5444 = vrot.lane.b32.xlu0 %v11885_v5, %s8519_s18  ;;  %vm5446_vm2 = vcmask 121856  }
 0x8a8   : > { %5493 = vrot.lane.b32.xlu1 %v11691_v48, %s12771_s9  ;;  %7375 = vmatpush1.msra.mxu1 %v6823_v60 }
 0x8a9   : > { %7261 = vmatpush2.msra.mxu0 %v5574_v29  ;;  %7376 = vmatprep.subr.mxu1 %v6818_v28  ;;  %v11986_v29 = vld [vmem:[#allocation3 + $0x30] sm:$0xff] }
 0x8aa   : > { %v5439_v45 = vpop.permute.xlu0 %5438  ;;  %v11958_v47 = vpop.permute.xlu1 %5541  ;;  %7377 = vmatpush1.msra.mxu1 %v6817_v37 }
 0x8ab   : > { %v5547_v54 = vsel %vm3567_vm12, %v5540_v39, %v11958_v47  ;;  %7378 = vmatprep.subr.mxu1 %v6812_v30  ;;  %6202 = vrot.lane.b32.xlu0 %v11799_v10, %s8510_s20 }
 0x8ac   : > { %5553 = vst [vmem:[#allocation4 + $0x530] sm:$0xff] %v5547_v54  ;;  %6251 = vrot.lane.b32.xlu1 %v11885_v5, %s8509_s26  ;;  %7379 = vmatpush1.msra.mxu1 %v6811_v42 }
 0x8ad   : > { %7262 = vmatprep.subr.mxu0 %v5547_v54  ;;  %7380 = vmatprep.subr.mxu1 %v6806_v59 }
 0x8ae   : > { %v5420_v14 = vpop.permute.xlu0 %5419  ;;  %v5490_v25 = vpop.permute.xlu1 %5489  ;;  %7263 = vmatpush2.msra.mxu0 %v5524_v56  ;;  %7381 = vmatpush1.msra.mxu1 %v6805_v2  ;;  %v6788_v56 = vld [vmem:[#allocation4 + $0x300] sm:$0xff] }
 0x8af   : > { %v5423_v39 = vsel %vm12800_vm7, %v11378_v50, %v5420_v14  ;;  %v5497_v34 = vsel %vm3516_vm14, %v5490_v25, %v11950_v58  ;;  %7382 = vmatprep.subr.mxu1 %v6800_v57  ;;  %5393 = vrot.lane.b32.xlu0 %v11885_v5, %s8520_s17  ;;  %vm5395_vm7 = vcmask 130048  }
 0x8b0   : > { %5429 = vst [vmem:[#allocation4 + $0x420] sm:$0xff] %v5423_v39  ;;  %5503 = vst [vmem:[#allocation4 + $0x8e8] sm:$0xff] %v5497_v34  ;;  %5442 = vrot.lane.b32.xlu1 %v11691_v48, %s8519_s18  ;;  %7383 = vmatpush1.msra.mxu1 %v6799_v15  ;;  %v6782_v48 = vld [vmem:[#allocation4 + $0x438] sm:$0xff] }
 0x8b1   : > { %7264 = vmatprep.subr.mxu0 %v5497_v34  ;;  %7384 = vmatprep.subr.mxu1 %v6794_v44 }
 0x8b2   : > { %v11974_v21 = vpop.permute.xlu0 %5389  ;;  %v5471_v50 = vpop.permute.xlu1 %5470  ;;  %7385 = vmatpush1.msra.mxu1 %v6793_v62 }
 0x8b3   : > { %v5474_v3 = vsel %vm12801_vm10, %v11356_v49, %v5471_v50  ;;  %7386 = vmatprep.subr.mxu1 %v6788_v56  ;;  %6151 = vrot.lane.b32.xlu0 %v11799_v10, %s8511_s13  ;;  %vm12802_vm10 = vcmask 605184  }
 0x8b4   : > { %5480 = vst [vmem:[#allocation4 + $0x4b8] sm:$0xff] %v5474_v3  ;;  %6200 = vrot.lane.b32.xlu1 %v11885_v5, %s8510_s20  ;;  %7387 = vmatpush1.msra.mxu1 %v6787_v27  ;;  %s12816_s20 = sld [smem:[#allocation31_spill]] }
 0x8b5   : > { %7265 = vmatpush2.msra.mxu0 %v5474_v3  ;;  %7388 = vmatprep.subr.mxu1 %v6782_v48 }
 0x8b6   : > { %v5337_v23 = vpop.permute.xlu0 %5336  ;;  %v11982_v9 = vpop.permute.xlu1 %5440  ;;  %7389 = vmatpush1.msra.mxu1 %v6781_v51 }
 0x8b7   : > { %v5447_v49 = vsel %vm5446_vm2, %v5439_v45, %v11982_v9  ;;  %5342 = vrot.lane.b32.xlu0 %v11885_v5, %s8521_s28 }
 0x8b8   : > { %5453 = vst [vmem:[#allocation4 + $0x5d8] sm:$0xff] %v5447_v49  ;;  %5391 = vrot.lane.b32.xlu1 %v11986_v29, %s8520_s17  ;;  %7266 = vmatprep.subr.mxu0 %v5447_v49 }
 0x8b9   : > { %7267 = vmatpush2.msra.mxu0 %v5423_v39 }
 0x8ba   : > { %v5318_v60 = vpop.permute.xlu0 %5317  ;;  %v5388_v28 = vpop.permute.xlu1 %5387 }
 0x8bb   : > { %v5321_v37 = vsel %vm12802_vm10, %v11422_v0, %v5318_v60  ;;  %v5396_v45 = vsel %vm5395_vm7, %v5388_v28, %v11974_v21  ;;  %6100 = vrot.lane.b32.xlu0 %v11799_v10, %s8512_s24  ;;  %vm12491_vm10 = vcmask 277504  }
 0x8bc   : > { %5327 = vst [vmem:[#allocation4 + $0x5e8] sm:$0xff] %v5321_v37  ;;  %5402 = vst [vmem:[#allocation4 + $0x500] sm:$0xff] %v5396_v45  ;;  %6149 = vrot.lane.b32.xlu1 %v11885_v5, %s8511_s13  ;;  %7268 = vmatprep.subr.mxu0 %v5396_v45 }
 0x8be   : > { %v12000_v30 = vpop.permute.xlu0 %5287  ;;  %v5369_v54 = vpop.permute.xlu1 %5368 }
 0x8bf   : > { %v5372_v42 = vsel %vm12803_vm1, %v11400_v24, %v5369_v54  ;;  %5291 = vrot.lane.b32.xlu0 %v11885_v5, %s12804_s2  ;;  %vm5293_vm1 = vcmask 285696   ;;  %v8265_v54 = vld [vmem:[#allocation11 + $0x18] sm:$0xff] }
 0x8c0   : > { %5378 = vst [vmem:[#allocation4 + $0x2c8] sm:$0xff] %v5372_v42  ;;  %5340 = vrot.lane.b32.xlu1 %v11986_v29, %s8521_s28  ;;  %7269 = vmatpush2.msra.mxu0 %v5372_v42  ;;  %s12862_s28 = sld [smem:[#allocation34_spill]] }
 0x8c2   : > { %v5236_v0 = vpop.permute.xlu0 %5235  ;;  %v12008_v59 = vpop.permute.xlu1 %5338 }
 0x8c3   : > { %v5345_v2 = vsel %vm12491_vm10, %v5337_v23, %v12008_v59  ;;  %6049 = vrot.lane.b32.xlu0 %v11799_v10, %s12805_s6  ;;  %vm12807_vm10 = vcmask 613376  }
 0x8c4   : > { %5351 = vst [vmem:[#allocation4 + $0x130] sm:$0xff] %v5345_v2  ;;  %6098 = vrot.lane.b32.xlu1 %v11885_v5, %s8512_s24  ;;  %7270 = vmatprep.subr.mxu0 %v5345_v2 }
 0x8c5   : > { %7271 = vmatpush2.msra.mxu0 %v5321_v37  ;;  %v12065_v37 = vld [vmem:[#allocation11] sm:$0xff] }
 0x8c6   : > { %v5217_v24 = vpop.permute.xlu0 %5216  ;;  %v5286_v14 = vpop.permute.xlu1 %5285  ;;  %s12214_s29 = scalar_lea.hbm %s12862_s28, %s8044_s22 }
 0x8c7   : > { %v5220_v25 = vsel %vm12806_vm9, %v11466_v13, %v5217_v24  ;;  %v5294_v57 = vsel %vm5293_vm1, %v5286_v14, %v12000_v30  ;;  %5241 = vrot.lane.b32.xlu0 %v11885_v5, %s12777_s4  ;;  %vm12808_vm9 = vcmask 637952  }
 0x8c8   : > { %5226 = vst [vmem:[#allocation4 + $0x880] sm:$0xff] %v5220_v25  ;;  %5300 = vst [vmem:[#allocation4 + $0x468] sm:$0xff] %v5294_v57  ;;  %5289 = vrot.lane.b32.xlu1 %v11986_v29, %s12804_s2  ;;  %7272 = vmatprep.subr.mxu0 %v5294_v57  ;;  %s8353_s2 = scalar_lea.vmem %s8352_s23, 1536 }
 0x8ca   : > { %v12024_v39 = vpop.permute.xlu0 %5187  ;;  %v5267_v34 = vpop.permute.xlu1 %5266 }
 0x8cb   : > { %v5270_v15 = vsel %vm12807_vm10, %v11444_v32, %v5267_v34  ;;  %5999 = vrot.lane.b32.xlu0 %v11799_v10, %s12743_s15  ;;  %vm12809_vm10 = vcmask 302080  }
 0x8cc   : > { %5276 = vst [vmem:[#allocation4 + $0x850] sm:$0xff] %v5270_v15  ;;  %6047 = vrot.lane.b32.xlu1 %v11885_v5, %s12805_s6  ;;  %7273 = vmatpush2.msra.mxu0 %v5270_v15 }
 0x8ce   : > { %v5136_v13 = vpop.permute.xlu0 %5135  ;;  %v12032_v44 = vpop.permute.xlu1 %5237 }
 0x8cf   : > { %v5243_v62 = vsel %vm12492_vm4, %v5236_v0, %v12032_v44  ;;  %5191 = vrot.lane.b32.xlu0 %v11885_v5, %s12780_s27  ;;  %vm12810_vm4 = vcmask 629760  }
 0x8d0   : > { %5249 = vst [vmem:[#allocation4 + $0x5c8] sm:$0xff] %v5243_v62  ;;  %5239 = vrot.lane.b32.xlu1 %v11986_v29, %s12777_s4  ;;  %7274 = vmatprep.subr.mxu0 %v5243_v62  ;;  %s12863_s4 = smov %s12862_s28 }
 0x8d1   : > { %7275 = vmatpush2.msra.mxu0 %v5220_v25 }
 0x8d2   : > { %v5117_v32 = vpop.permute.xlu0 %5116  ;;  %v5186_v50 = vpop.permute.xlu1 %5185 }
 0x8d3   : > { %v5120_v56 = vsel %vm12808_vm9, %v11510_v11, %v5117_v32  ;;  %v5193_v3 = vsel %vm12809_vm10, %v5186_v50, %v12024_v39  ;;  %5949 = vrot.lane.b32.xlu0 %v11799_v10, %s12746_s12  ;;  %vm12811_vm9 = vcmask 310272  }
 0x8d4   : > { %5126 = vst [vmem:[#allocation4 + $0x8c8] sm:$0xff] %v5120_v56  ;;  %5199 = vst [vmem:[#allocation4 + $0x18] sm:$0xff] %v5193_v3  ;;  %5997 = vrot.lane.b32.xlu1 %v11885_v5, %s12743_s15  ;;  %7276 = vmatprep.subr.mxu0 %v5193_v3  ;;  %s12819_s15 = sld [smem:[#allocation30_spill]] }
 0x8d6   : > { %v5167_v27 = vpop.permute.xlu1 %5166  ;;  %v6711_v48 = vpop.permute.xlu0 %6710 }
 0x8d7   : > { %v5170_v51 = vsel %vm12810_vm4, %v11488_v4, %v5167_v27  ;;  %5141 = vrot.lane.b32.xlu0 %v11885_v5, %s12783_s11  ;;  %v7512_v4 = vld [vmem:[%s12813_s14] sm:$0xff]  ;;  %vm12814_vm4 = vcmask 547840  }
 0x8d8   : > { %5176 = vst [vmem:[#allocation4 + $0xc8] sm:$0xff] %v5170_v51  ;;  %5189 = vrot.lane.b32.xlu1 %v11986_v29, %s12780_s27  ;;  %7277 = vmatpush2.msra.mxu0 %v5170_v51  ;;  %vm12815_vm10 = vmmov %vm12814_vm4  ;;  %s7781_s27 = scalar_lea.sflag [#allocation8], %s12859_s0 }
 0x8da   : > { %v12054_v11 = vpop.permute.xlu1 %5137  ;;  %v5900_v23 = vpop.permute.xlu0 %5899 }
 0x8db   : > { %v5143_v49 = vsel %vm12811_vm9, %v5136_v13, %v12054_v11  ;;  %6761 = vrot.lane.b32.xlu0 %v11799_v10, %s12812_s8  ;;  %vm12817_vm9 = vcmask 556032  }
 0x8dc   : > { %5149 = vst [vmem:[#allocation4 + $0x1b8] sm:$0xff] %v5143_v49  ;;  %5947 = vrot.lane.b32.xlu1 %v11885_v5, %s12746_s12  ;;  %7278 = vmatprep.subr.mxu0 %v5143_v49 }
 0x8dd   : > { %7279 = vmatpush2.msra.mxu0 %v5120_v56 }
 0x8de   : > { %v6709_v60 = vpop.permute.xlu1 %6708  ;;  %v6661_v28 = vpop.permute.xlu0 %6660  ;;  %7281 = vmatmul.mubr.f32.vlgmr.msra.gmra.mxu0 %v12065_v37 }
 0x8df   : > { %v6714_v45 = vsel %vm12814_vm4, %v11547_v17, %v6709_v60  ;;  %v6715_v10 = vsel %vm12815_vm10, %v6709_v60, %v6711_v48  ;;  %7515 = vperm.xlu0 %8225, %v7512_v4   ;;  %8016 = vmatprep.mubr.msk.f32.mxu0 %vm2090_vm11, %v8265_v54  ;;  %v7500_v17 = vld [vmem:[%s12816_s20] sm:$0xff]  ;;  %vm12818_vm4 = vmmov %vm12817_vm9 }
 0x8e0   : > { %5139 = vrot.lane.b32.xlu1 %v11986_v29, %s12783_s11  ;;  %7429 = vmatprep.subr.mxu0 %v6715_v10 }
 0x8e1   : > { %7430 = vmatpush1.msra.mxu0 %v6714_v45 }
 0x8e2   : > { %v5898_v42 = vpop.permute.xlu1 %5897  ;;  %v5850_v0 = vpop.permute.xlu0 %5849 }
 0x8e3   : > { %v5902_v2 = vsel %vm3720_vm13, %v11815_v12, %v5898_v42  ;;  %v5903_v24 = vsel %vm3720_vm13, %v5898_v42, %v5900_v23  ;;  %8227 = vset.pattern.permute.xlu0 %v8470_v6  ;;  %vm12820_vm13 = vcmask 564224  }
 0x8e4   : > { %6759 = vrot.lane.b32.xlu1 %v11885_v5, %s12812_s8  ;;  %7390 = vmatprep.subr.mxu1 %v5903_v24  ;;  %v7536_v5 = vld [vmem:[%s12819_s15] sm:$0xff]  ;;  %vm12821_vm10 = vmmov %vm12820_vm13 }
 0x8e5   : > { %7391 = vmatpush2.msra.mxu1 %v5902_v2 }
 0x8e6   : > { %v6659_v29 = vpop.permute.xlu1 %6658  ;;  %v6610_v14 = vpop.permute.xlu0 %6609 }
 0x8e7   : > { %v6663_v25 = vsel %vm12817_vm9, %v11571_v31, %v6659_v29  ;;  %v6664_v12 = vsel %vm12818_vm4, %v6659_v29, %v6661_v28 }
 0x8e8   : > { %7503 = vperm.xlu1 %8224, %v7500_v17   ;;  %7431 = vmatprep.subr.mxu0 %v6664_v12 }
 0x8e9   : > { %7432 = vmatpush1.msra.mxu0 %v6663_v25 }
 0x8ea   : > { %v5848_v57 = vpop.permute.xlu1 %5847  ;;  %v5799_v34 = vpop.permute.xlu0 %5798 }
 0x8eb   : > { %v5852_v15 = vsel %vm3669_vm15, %v11849_v55, %v5848_v57  ;;  %v5853_v13 = vsel %vm3669_vm15, %v5848_v57, %v5850_v0  ;;  %vm12822_vm15 = vcmask 572416  }
 0x8ec   : > { %7392 = vmatprep.subr.mxu1 %v5853_v13  ;;  %7538 = vrot.lane.b32.xlu1 %v7536_v5, %s8516_s21  ;;  %vm12823_vm9 = vmmov %vm12822_vm15  ;;  %s8031_s21 = smul.u32 48, %s12859_s0 }
 0x8ed   : > { %7393 = vmatpush2.msra.mxu1 %v5852_v15  ;;  %8226 = vset.pattern.permute.xlu1 %v8470_v6 }
 0x8ee   : > { %v6608_v31 = vpop.permute.xlu1 %6607  ;;  %v6559_v62 = vpop.permute.xlu0 %6558  ;;  %s349_s1 = scalar_lea.vmem [#allocation12], %s8031_s21 }
 0x8ef   : > { %v6613_v32 = vsel %vm12820_vm13, %v11597_v7, %v6608_v31  ;;  %v6614_v50 = vsel %vm12821_vm10, %v6608_v31, %v6610_v14  ;;  %s7795_s9 = sshll.u32 %s349_s1, 4  ;;  %s12216_s9 = int_to_ptr.vmem [resolvable:$true] %s7795_s9 }
 0x8f0   : > { %7433 = vmatprep.subr.mxu0 %v6614_v50  ;;  %s8347_s11 = scalar_lea.vmem %s12216_s9, 768  ;;  %p8354_p9 = scmp.lt.s32.totalorder %s12216_s9, %s8352_s23 }
 0x8f1   : > { %7434 = vmatpush1.msra.mxu0 %v6613_v32  ;;  %p8348_p2 = scmp.ne.s32.totalorder %s12216_s9, %s8347_s11  ;;  %p8355_p10 = scmp.lt.s32.totalorder %s8353_s2, %s8347_s11 }
 0x8f2   : > { %v5797_v56 = vpop.permute.xlu1 %5796  ;;  %v5748_v3 = vpop.permute.xlu0 %5747 }
 0x8f3   : > { %v5802_v55 = vsel %vm5800_vm5, %v11847_v1, %v5797_v56  ;;  %v5803_v27 = vsel %vm5800_vm5, %v5797_v56, %v5799_v34  ;;  %vm12824_vm5 = vcmask 580608   ;;  %p8349_p4 = pnand %p8348_p2, %p12864_p0  ;;  %p8356_p1 = por %p8355_p10, %p8354_p9 }
 0x8f4   : > { %7394 = vmatprep.subr.mxu1 %v5803_v27  ;;  %vm12825_vm4 = vmmov %vm12824_vm5 }
 0x8f5   : > { %7395 = vmatpush2.msra.mxu1 %v5802_v55  ;;  %p8350_p5 = pneg %p8349_p4 }
 0x8f6   : > { %v6557_v48 = vpop.permute.xlu1 %6556  ;;  %v6508_v6 = vpop.permute.xlu0 %6507 }
 0x8f7   : > { %v6562_v51 = vsel %vm12822_vm15, %v11621_v53, %v6557_v48  ;;  %v6563_v7 = vsel %vm12823_vm9, %v6557_v48, %v6559_v62  ;;  %p8357_p12 = pnand %p8356_p1, %p8350_p5 }
 0x8f8   : > { %7435 = vmatprep.subr.mxu0 %v6563_v7 }
 0x8f9   : > { %7436 = vmatpush1.msra.mxu0 %v6562_v51 }
 0x8fa   : > { %v5746_v23 = vpop.permute.xlu1 %5745  ;;  %v5697_v49 = vpop.permute.xlu0 %5696 }
 0x8fb   : > { %v5751_v4 = vsel %vm5749_vm3, %v11889_v38, %v5746_v23  ;;  %v5752_v1 = vsel %vm5749_vm3, %v5746_v23, %v5748_v3  ;;  %vm12826_vm3 = vcmask 588800  }
 0x8fc   : > { %7396 = vmatprep.subr.mxu1 %v5752_v1  ;;  %vm12827_vm13 = vmmov %vm12826_vm3 }
 0x8fd   : > { %7397 = vmatpush2.msra.mxu1 %v5751_v4 }
 0x8fe   : > { %v6506_v60 = vpop.permute.xlu1 %6505  ;;  %v6458_v28 = vpop.permute.xlu0 %6457 }
 0x8ff   : > { %v6511_v45 = vsel %vm12824_vm5, %v11647_v16, %v6506_v60  ;;  %v6512_v53 = vsel %vm12825_vm4, %v6506_v60, %v6508_v6 }
 0x900   : > { %7437 = vmatprep.subr.mxu0 %v6512_v53 }
 0x901   : > { %7438 = vmatpush1.msra.mxu0 %v6511_v45 }
 0x902   : > { %v5695_v10 = vpop.permute.xlu1 %5694  ;;  %v5646_v54 = vpop.permute.xlu0 %5645 }
 0x903   : > { %v5700_v42 = vsel %vm5698_vm6, %v11887_v36, %v5695_v10  ;;  %v5701_v38 = vsel %vm5698_vm6, %v5695_v10, %v5697_v49  ;;  %vm12828_vm6 = vcmask 736256  }
 0x904   : > { %7398 = vmatprep.subr.mxu1 %v5701_v38  ;;  %vm12829_vm10 = vmmov %vm12828_vm6 }
 0x905   : > { %7399 = vmatpush2.msra.mxu1 %v5700_v42 }
 0x906   : > { %v6456_v0 = vpop.permute.xlu1 %6455  ;;  %v6407_v2 = vpop.permute.xlu0 %6406 }
 0x907   : > { %v6460_v24 = vsel %vm12826_vm3, %v11675_v41, %v6456_v0  ;;  %v6461_v16 = vsel %vm12827_vm13, %v6456_v0, %v6458_v28  ;;  %v7761_v28 = vld [vmem:[%s12836_s25] sm:$0xff]  ;;  %vm12841_vm13 = vcmask 277504  }
 0x908   : > { %7439 = vmatprep.subr.mxu0 %v6461_v16  ;;  %7764 = vperm.xlu1 %8226, %v7761_v28  }
 0x909   : > { %7440 = vmatpush1.msra.mxu0 %v6460_v24 }
 0x90a   : > { %v5644_v17 = vpop.permute.xlu1 %5643  ;;  %v5596_v29 = vpop.permute.xlu0 %5595 }
 0x90b   : > { %v5649_v14 = vsel %vm5647_vm0, %v11927_v63, %v5644_v17  ;;  %v5650_v36 = vsel %vm5647_vm0, %v5644_v17, %v5646_v54  ;;  %vm12830_vm0 = vcmask 744448  }
 0x90c   : > { %7400 = vmatprep.subr.mxu1 %v5650_v36  ;;  %vm12831_vm15 = vmmov %vm12830_vm0 }
 0x90d   : > { %7401 = vmatpush2.msra.mxu1 %v5649_v14 }
 0x90e   : > { %v6405_v25 = vpop.permute.xlu1 %6404  ;;  %v6356_v12 = vpop.permute.xlu0 %6355 }
 0x90f   : > { %v6410_v5 = vsel %vm12828_vm6, %v11695_v33, %v6405_v25  ;;  %v6411_v41 = vsel %vm12829_vm10, %v6405_v25, %v6407_v2  ;;  %vm12842_vm6 = vmmov %vm12841_vm13 }
 0x910   : > { %7441 = vmatprep.subr.mxu0 %v6411_v41 }
 0x911   : > { %7442 = vmatpush1.msra.mxu0 %v6410_v5 }
 0x912   : > { %v5594_v57 = vpop.permute.xlu1 %5593  ;;  %v5546_v34 = vpop.permute.xlu0 %5545 }
 0x913   : > { %v5598_v15 = vsel %vm3618_vm8, %v11925_v52, %v5594_v57  ;;  %v5599_v63 = vsel %vm3618_vm8, %v5594_v57, %v5596_v29  ;;  %vm12832_vm8 = vcmask 752640  }
 0x914   : > { %7402 = vmatprep.subr.mxu1 %v5599_v63  ;;  %vm12833_vm9 = vmmov %vm12832_vm8 }
 0x915   : > { %7403 = vmatpush2.msra.mxu1 %v5598_v15 }
 0x916   : > { %v6354_v13 = vpop.permute.xlu1 %6353  ;;  %v6305_v31 = vpop.permute.xlu0 %6304 }
 0x917   : > { %v6359_v62 = vsel %vm12830_vm0, %v11685_v46, %v6354_v13  ;;  %v6360_v33 = vsel %vm12831_vm15, %v6354_v13, %v6356_v12  ;;  %v12160_v12 = vpop.f32.mrf.mxu0  ;;  %vm12845_vm0 = vcmask 932864  }
 0x918   : > { %7443 = vmatprep.subr.mxu0 %v6360_v33  ;;  %vm12846_vm15 = vmmov %vm12845_vm0 }
 0x919   : > { %7444 = vmatpush1.msra.mxu0 %v6359_v62 }
 0x91a   : > { %v5544_v32 = vpop.permute.xlu1 %5543  ;;  %v5496_v50 = vpop.permute.xlu0 %5495 }
 0x91b   : > { %v5548_v56 = vsel %vm3567_vm12, %v11958_v47, %v5544_v32  ;;  %v5549_v52 = vsel %vm3567_vm12, %v5544_v32, %v5546_v34  ;;  %vm12834_vm12 = vcmask 760832   ;;  %v12165_v34 = vpop.f32.mrf.mxu0 }
 0x91c   : > { %5554 = vst [vmem:[#allocation4 + $0x2c0] sm:$0xff] %v5548_v56  ;;  %5555 = vst [vmem:[#allocation4 + $0x1f0] sm:$0xff] %v5549_v52  ;;  %7404 = vmatprep.subr.mxu1 %v5549_v52 }
 0x91d   : > { %7405 = vmatpush2.msra.mxu1 %v5548_v56  ;;  %vm12835_vm5 = vmmov %vm12834_vm12 }
 0x91e   : > { %v6303_v3 = vpop.permute.xlu1 %6302  ;;  %v6254_v55 = vpop.permute.xlu0 %6253 }
 0x91f   : > { %v6308_v46 = vsel %vm12832_vm8, %v11719_v26, %v6303_v3  ;;  %v6309_v27 = vsel %vm12833_vm9, %v6303_v3, %v6305_v31  ;;  %v12170_v31 = vpop.f32.mrf.mxu0  ;;  %vm12849_vm9 = vcmask 941056  }
 0x920   : > { %7445 = vmatprep.subr.mxu0 %v6309_v27 }
 0x921   : > { %7446 = vmatpush1.msra.mxu0 %v6308_v46 }
 0x922   : > { %v5494_v48 = vpop.permute.xlu1 %5493  ;;  %v5445_v6 = vpop.permute.xlu0 %5444 }
 0x923   : > { %v5498_v47 = vsel %vm3516_vm14, %v11950_v58, %v5494_v48  ;;  %v5499_v51 = vsel %vm3516_vm14, %v5494_v48, %v5496_v50  ;;  %vm12837_vm14 = vcmask 769024   ;;  %v12175_v50 = vpop.f32.mrf.mxu0 }
 0x924   : > { %5504 = vst [vmem:[#allocation4 + $0x440] sm:$0xff] %v5498_v47  ;;  %5505 = vst [vmem:[#allocation4 + $0x6f8] sm:$0xff] %v5499_v51  ;;  %7406 = vmatprep.subr.mxu1 %v5499_v51 }
 0x925   : > { %7407 = vmatpush2.msra.mxu1 %v5498_v47  ;;  %vm12838_vm4 = vmmov %vm12837_vm14 }
 0x926   : > { %v6252_v7 = vpop.permute.xlu1 %6251  ;;  %v6203_v23 = vpop.permute.xlu0 %6202 }
 0x927   : > { %v6257_v26 = vsel %vm12834_vm12, %v11711_v40, %v6252_v7  ;;  %v6258_v49 = vsel %vm12835_vm5, %v6252_v7, %v6254_v55  ;;  %vm12850_vm12 = vmmov %vm12849_vm9  ;;  %v12180_v55 = vpop.f32.mrf.mxu0  ;;  %vm12851_vm5 = vcmask 302080   ;;  %v7140_v7 = vpop.f32.mrf.mxu1 }
 0x928   : > { %7447 = vmatprep.subr.mxu0 %v6258_v49 }
 0x929   : > { %7448 = vmatpush1.msra.mxu0 %v6257_v26  ;;  %v12185_v48 = vpop.f32.mrf.mxu0 }
 0x92a   : > { %v5443_v4 = vpop.permute.xlu1 %5442  ;;  %v5394_v1 = vpop.permute.xlu0 %5393 }
 0x92b   : > { %v5448_v58 = vsel %vm5446_vm2, %v11982_v9, %v5443_v4  ;;  %v5449_v60 = vsel %vm5446_vm2, %v5443_v4, %v5445_v6  ;;  %vm12839_vm2 = vcmask 777216  }
 0x92c   : > { %5454 = vst [vmem:[#allocation4 + $0x4e8] sm:$0xff] %v5448_v58  ;;  %5455 = vst [vmem:[#allocation4 + $0x470] sm:$0xff] %v5449_v60  ;;  %7408 = vmatprep.subr.mxu1 %v5449_v60 }
 0x92d   : > { %7409 = vmatpush2.msra.mxu1 %v5448_v58  ;;  %vm12840_vm3 = vmmov %vm12839_vm2 }
 0x92e   : > { %v6201_v40 = vpop.permute.xlu1 %6200  ;;  %v6152_v45 = vpop.permute.xlu0 %6151 }
 0x92f   : > { %v6206_v53 = vsel %vm12837_vm14, %v11743_v20, %v6201_v40  ;;  %v6207_v10 = vsel %vm12838_vm4, %v6201_v40, %v6203_v23  ;;  %vm12852_vm14 = vmmov %vm12851_vm5  ;;  %vm12853_vm4 = vcmask 949248   ;;  %v7211_v23 = vpop.f32.mrf.mxu0 }
 0x930   : > { %7449 = vmatprep.subr.mxu0 %v6207_v10  ;;  %v7212_v40 = vadd.f32 %v7211_v23, %v7140_v7 }
 0x931   : > { %7450 = vmatpush1.msra.mxu0 %v6206_v53  ;;  %v7213_v58 = vpop.f32.mrf.mxu0 }
 0x932   : > { %v5392_v9 = vpop.permute.xlu1 %5391  ;;  %v5343_v54 = vpop.permute.xlu0 %5342 }
 0x933   : > { %v5397_v42 = vsel %vm5395_vm7, %v11974_v21, %v5392_v9  ;;  %v5398_v38 = vsel %vm5395_vm7, %v5392_v9, %v5394_v1  ;;  %vm12843_vm7 = vcmask 785408   ;;  %v7142_v1 = vpop.f32.mrf.mxu1 }
 0x934   : > { %5403 = vst [vmem:[#allocation4 + $0x2d0] sm:$0xff] %v5397_v42  ;;  %5404 = vst [vmem:[#allocation4 + $0x630] sm:$0xff] %v5398_v38  ;;  %7410 = vmatprep.subr.mxu1 %v5398_v38 }
 0x935   : > { %7411 = vmatpush2.msra.mxu1 %v5397_v42  ;;  %vm12844_vm10 = vmmov %vm12843_vm7 }
 0x936   : > { %v6150_v0 = vpop.permute.xlu1 %6149  ;;  %v6101_v2 = vpop.permute.xlu0 %6100 }
 0x937   : > { %v6155_v20 = vsel %vm12839_vm2, %v11735_v19, %v6150_v0  ;;  %v6156_v24 = vsel %vm12840_vm3, %v6150_v0, %v6152_v45  ;;  %vm12854_vm2 = vmmov %vm12853_vm4  ;;  %vm12855_vm3 = vcmask 310272   ;;  %v7214_v45 = vadd.f32 %v7213_v58, %v7142_v1 }
 0x938   : > { %7451 = vmatprep.subr.mxu0 %v6156_v24 }
 0x939   : > { %7452 = vmatpush1.msra.mxu0 %v6155_v20 }
 0x93a   : > { %v5341_v16 = vpop.permute.xlu1 %5340  ;;  %v5292_v17 = vpop.permute.xlu0 %5291 }
 0x93b   : > { %v5346_v21 = vsel %vm12841_vm13, %v12008_v59, %v5341_v16  ;;  %v5347_v29 = vsel %vm12842_vm6, %v5341_v16, %v5343_v54  ;;  %vm12856_vm13 = vmmov %vm12855_vm3  ;;  %vm12857_vm6 = vcmask 539648  }
 0x93c   : > { %5352 = vst [vmem:[#allocation4 + $0x3c8] sm:$0xff] %v5346_v21  ;;  %5353 = vst [vmem:[#allocation4 + $0x28] sm:$0xff] %v5347_v29  ;;  %7412 = vmatprep.subr.mxu1 %v5347_v29 }
 0x93d   : > { %7413 = vmatpush2.msra.mxu1 %v5346_v21 }
 0x93e   : > { %v6099_v14 = vpop.permute.xlu1 %6098  ;;  %v6050_v36 = vpop.permute.xlu0 %6049 }
 0x93f   : > { %v6104_v19 = vsel %vm12843_vm7, %v11767_v61, %v6099_v14  ;;  %v6105_v25 = vsel %vm12844_vm10, %v6099_v14, %v6101_v2  ;;  %vm12858_vm7 = vmmov %vm12857_vm6 }
 0x940   : > { %7453 = vmatprep.subr.mxu0 %v6105_v25 }
 0x941   : > { %7454 = vmatpush1.msra.mxu0 %v6104_v19 }
 0x942   : > { %v5290_v5 = vpop.permute.xlu1 %5289  ;;  %v5242_v41 = vpop.permute.xlu0 %5241 }
 0x943   : > { %v5295_v59 = vsel %vm5293_vm1, %v12000_v30, %v5290_v5  ;;  %v5296_v57 = vsel %vm5293_vm1, %v5290_v5, %v5292_v17  ;;  %vm12847_vm1 = vcmask 293888  }
 0x944   : > { %5301 = vst [vmem:[#allocation4 + $0x838] sm:$0xff] %v5295_v59  ;;  %5302 = vst [vmem:[#allocation4 + $0x7d8] sm:$0xff] %v5296_v57  ;;  %7414 = vmatprep.subr.mxu1 %v5296_v57 }
 0x945   : > { %7415 = vmatpush2.msra.mxu1 %v5295_v59  ;;  %vm12848_vm8 = vmmov %vm12847_vm1 }
 0x946   : > { %v6048_v61 = vpop.permute.xlu1 %6047  ;;  %v6000_v15 = vpop.permute.xlu0 %5999 }
 0x947   : > { %v6053_v63 = vsel %vm12845_vm0, %v11759_v35, %v6048_v61  ;;  %v6054_v13 = vsel %vm12846_vm15, %v6048_v61, %v6050_v36 }
 0x948   : > { %7455 = vmatprep.subr.mxu0 %v6054_v13 }
 0x949   : > { %7456 = vmatpush1.msra.mxu0 %v6053_v63 }
 0x94a   : > { %v5240_v30 = vpop.permute.xlu1 %5239  ;;  %v5192_v62 = vpop.permute.xlu0 %5191 }
 0x94b   : > { %v5244_v33 = vsel %vm12847_vm1, %v12032_v44, %v5240_v30  ;;  %v5245_v32 = vsel %vm12848_vm8, %v5240_v30, %v5242_v41 }
 0x94c   : > { %5250 = vst [vmem:[#allocation4 + $0x230] sm:$0xff] %v5244_v33  ;;  %5251 = vst [vmem:[#allocation4 + $0xe0] sm:$0xff] %v5245_v32  ;;  %7416 = vmatprep.subr.mxu1 %v5245_v32 }
 0x94d   : > { %7417 = vmatpush2.msra.mxu1 %v5244_v33 }
 0x94e   : > { %v5998_v35 = vpop.permute.xlu1 %5997  ;;  %v5950_v3 = vpop.permute.xlu0 %5949 }
 0x94f   : > { %v6002_v56 = vsel %vm12849_vm9, %v11791_v18, %v5998_v35  ;;  %v6003_v52 = vsel %vm12850_vm12, %v5998_v35, %v6000_v15 }
 0x950   : > { %7457 = vmatprep.subr.mxu0 %v6003_v52 }
 0x951   : > { %7458 = vmatpush1.msra.mxu0 %v6002_v56 }
 0x952   : > { %v5190_v44 = vpop.permute.xlu1 %5189  ;;  %v5142_v6 = vpop.permute.xlu0 %5141 }
 0x953   : > { %v5194_v46 = vsel %vm12851_vm5, %v12024_v39, %v5190_v44  ;;  %v5195_v27 = vsel %vm12852_vm14, %v5190_v44, %v5192_v62 }
 0x954   : > { %5200 = vst [vmem:[#allocation4 + $0x110] sm:$0xff] %v5194_v46  ;;  %5201 = vst [vmem:[#allocation4 + $0x558] sm:$0xff] %v5195_v27  ;;  %7418 = vmatprep.subr.mxu1 %v5195_v27 }
 0x955   : > { %7419 = vmatpush2.msra.mxu1 %v5194_v46 }
 0x956   : > { %v5948_v18 = vpop.permute.xlu1 %5947  ;;  %v6762_v4 = vpop.permute.xlu0 %6761 }
 0x957   : > { %v5952_v47 = vsel %vm12853_vm4, %v11783_v22, %v5948_v18  ;;  %v5953_v51 = vsel %vm12854_vm2, %v5948_v18, %v5950_v3 }
 0x958   : > { %7459 = vmatprep.subr.mxu0 %v5953_v51 }
 0x959   : > { %7460 = vmatpush1.msra.mxu0 %v5952_v47 }
 0x95a   : > { %v5140_v39 = vpop.permute.xlu1 %5139  ;;  %v7516_v10 = vpop.permute.xlu0 %7515 }
 0x95b   : > { %v5144_v26 = vsel %vm12855_vm3, %v12054_v11, %v5140_v39  ;;  %v5145_v49 = vsel %vm12856_vm13, %v5140_v39, %v5142_v6  ;;  %v8266_v11 = vld [vmem:[#allocation11 + $0x10] sm:$0xff] }
 0x95c   : > { %5150 = vst [vmem:[#allocation4 + $0xf8] sm:$0xff] %v5144_v26  ;;  %5151 = vst [vmem:[#allocation4 + $0x638] sm:$0xff] %v5145_v49  ;;  %7420 = vmatprep.subr.mxu1 %v5145_v49 }
 0x95d   : > { %7421 = vmatpush2.msra.mxu1 %v5144_v26 }
 0x95e   : > { %v6760_v22 = vpop.permute.xlu1 %6759  ;;  %7423 = vmatmul.mubr.f32.vlgmr.msra.gmra.mxu1 %v12065_v37 }
 0x95f   : > { %v6765_v60 = vsel %vm12857_vm6, %v11825_v43, %v6760_v22  ;;  %v6766_v28 = vsel %vm12858_vm7, %v6760_v22, %v6762_v4  ;;  %v7353_v43 = vpop.f32.mrf.mxu1 }
 0x960   : > { %7491 = vmatprep.subr.mxu0 %v6766_v28 }
 0x961   : > { %7492 = vmatpush2.msra.mxu0 %v6765_v60  ;;  %v7355_v24 = vpop.f32.mrf.mxu1 }
 0x962   : > { %7494 = vmatmul.mubr.f32.vlgmr.msra.gmra.mxu0 %v8266_v11 }
 0x963   : > { %v7504_v53 = vpop.permute.xlu1 %7503  ;;  %7606 = vmatprep.mubr.f32.mxu0 %v8472_v8 }
 0x964   : > { %v7507_v9 = vmul.f32 %v7504_v53, %v7214_v45  ;;  %v7506_v54 = vmul.f32 %v7504_v53, %v7212_v40 }
 0x966   : > { %v7519_v42 = vadd.f32 %v7516_v10, %v7507_v9  ;;  %v7518_v38 = vadd.f32 %v7516_v10, %v7506_v54 }
 0x967   : > { %v7539_v2 = vpop.permute.xlu1 %7538 }
 0x968   : > { %v7525_v37 = vmax.f32 %v7519_v42, 0.0  ;;  %v7524_v0 = vmax.f32 %v7518_v38, 0.0 }
 0x96a   : > { %7572 = vmatprep.subr.mxu0 %v7525_v37 }
 0x96b   : > { %7573 = vmatpush1.msra.mxu0 %v7524_v0 }
 0x96c   : > { %8017 = vmatmul.mubr.msk.f32.vlgmr.msra.gmra.mxu0 %vm2090_vm11, %v7539_v2 }
 0x96d   : > { %7677 = vmatprep.mubr.f32.mxu0 %v8472_v8 }
 0x983   : > { %v7765_v52 = vpop.permute.xlu1 %7764 }
 0x99e   : > { %v7282_v20 = vpop.f32.mrf.mxu0 }
 0x99f   : > { %v7354_v16 = vadd.f32 %v7353_v43, %v7282_v20 }
 0x9a0   : > { %v7284_v17 = vpop.f32.mrf.mxu0 }
 0x9a1   : > { %v7508_v21 = vmul.f32 %v7504_v53, %v7354_v16  ;;  %v7356_v29 = vadd.f32 %v7355_v24, %v7284_v17 }
 0x9a3   : > { %v7520_v14 = vadd.f32 %v7516_v10, %v7508_v21  ;;  %v7509_v36 = vmul.f32 %v7504_v53, %v7356_v29 }
 0x9a5   : > { %v7521_v19 = vadd.f32 %v7516_v10, %v7509_v36  ;;  %v7526_v25 = vmax.f32 %v7520_v14, 0.0 }
 0x9a7   : > { %v7527_v5 = vmax.f32 %v7521_v19, 0.0 }
 0x9a9   : > { %7643 = vmatprep.subr.mxu0 %v7527_v5 }
 0x9aa   : > { %7644 = vmatpush1.msra.mxu0 %v7526_v25 }
 0x9ab   : > { %8018 = vmatmul.mubr.msk.f32.vlgmr.msra.gmra.mxu0 %vm2090_vm11, %v7539_v2 }
 0x9ac   : > { %7748 = vmatprep.mubr.f32.mxu0 %v8472_v8 }
 0xa1e   : > { %v7424_v41 = vpop.f32.mrf.mxu1 }
 0xa20   : > { %v7426_v61 = vpop.f32.mrf.mxu1 }
 0xa22   : > { %v7495_v59 = vpop.f32.mrf.mxu0 }
 0xa23   : > { %v7496_v57 = vadd.f32 %v7495_v59, %v7424_v41 }
 0xa24   : > { %v7497_v15 = vpop.f32.mrf.mxu0 }
 0xa25   : > { %v7510_v63 = vmul.f32 %v7504_v53, %v7496_v57  ;;  %v7498_v13 = vadd.f32 %v7497_v15, %v7426_v61 }
 0xa27   : > { %v7511_v30 = vmul.f32 %v7504_v53, %v7498_v13  ;;  %v7522_v62 = vadd.f32 %v7516_v10, %v7510_v63 }
 0xa29   : > { %v7523_v33 = vadd.f32 %v7516_v10, %v7511_v30  ;;  %v7528_v35 = vmax.f32 %v7522_v62, 0.0 }
 0xa2b   : > { %v7529_v32 = vmax.f32 %v7523_v33, 0.0 }
 0xa2c   : > { %v7608_v56 = vpop.f32.mrf.mxu0 }
 0xa2d   : > { %v7755_v3 = vadd.f32 %v7608_v56, %v12160_v12  ;;  %7714 = vmatprep.subr.mxu0 %v7529_v32 }
 0xa2e   : > { %v7610_v44 = vpop.f32.mrf.mxu0  ;;  %7715 = vmatpush1.msra.mxu0 %v7528_v35 }
 0xa2f   : > { %v7756_v8 = vadd.f32 %v7610_v44, %v12165_v34  ;;  %v7767_v46 = vadd.f32 %v7765_v52, %v7755_v3  ;;  %8019 = vmatmul.mubr.msk.f32.vlgmr.msra.gmra.mxu0 %vm2090_vm11, %v7539_v2 }
 0xa31   : > { %v7768_v27 = vadd.f32 %v7765_v52, %v7756_v8  ;;  %7773 = vst [vmem:[%s349_s1] sm:$0xff] %v7767_v46 }
 0xa33   : > { %7774 = vst [vmem:[%s349_s1 + $0x8] sm:$0xff] %v7768_v27 }
 0xa6b   : > { %v7679_v18 = vpop.f32.mrf.mxu0 }
 0xa6c   : > { %v7757_v6 = vadd.f32 %v7679_v18, %v12170_v31 }
 0xa6d   : > { %v7681_v47 = vpop.f32.mrf.mxu0 }
 0xa6e   : > { %v7769_v51 = vadd.f32 %v7765_v52, %v7757_v6  ;;  %v7758_v12 = vadd.f32 %v7681_v47, %v12175_v50 }
 0xa70   : > { %7775 = vst [vmem:[%s349_s1 + $0x10] sm:$0xff] %v7769_v51  ;;  %v7770_v7 = vadd.f32 %v7765_v52, %v7758_v12 }
 0xa72   : > { %8020 = vst [vmem:[%s349_s1 + $0x18] sm:$0xff] %v7770_v7 }
 0xaef   : > { %v7750_v34 = vpop.f32.mrf.mxu0 }
 0xaf0   : > { %v7759_v23 = vadd.f32 %v7750_v34, %v12180_v55 }
 0xaf1   : > { %v7752_v39 = vpop.f32.mrf.mxu0 }
 0xaf2   : > { %v7771_v26 = vadd.f32 %v7765_v52, %v7759_v23  ;;  %v7760_v49 = vadd.f32 %v7752_v39, %v12185_v48 }
 0xaf4   : > { %8021 = vst [vmem:[%s349_s1 + $0x20] sm:$0xff] %v7771_v26  ;;  %v7772_v31 = vadd.f32 %v7765_v52, %v7760_v49 }
 0xaf6   : > { %8022 = vst [vmem:[%s349_s1 + $0x28] sm:$0xff] %v7772_v31 }
 0xaf7   : > { %8360 = shalt.err (!%p8357_p12)
}
 0xaf8   : > { %s8361_s6 = scalar_lea.hbm %s12214_s29, 768  ;;  %s8365_s5 = scalar_lea.hbm %s12863_s4, 1536 }
 0xaf9   : > { %p8362_p6 = scmp.ne.s32.totalorder %s12214_s29, %s8361_s6  ;;  %p8366_p13 = scmp.lt.s32.totalorder %s12214_s29, %s12863_s4 }
 0xafa   : > { %p8367_p3 = scmp.lt.s32.totalorder %s8365_s5, %s8361_s6 }
 0xafb   : > { %p8363_p7 = pnand %p8362_p6, %p12864_p0 }
 0xafc   : > { %p8368_p8 = por %p8367_p3, %p8366_p13 }
 0xafd   : > { %p8364_p11 = pneg %p8363_p7 }
 0xaff   : > { %p8369_p2 = pnand %p8368_p8, %p8364_p11 }
 0xb01   : > { %8372 = shalt.err (!%p8369_p2)
}
 0xb02   : > { %s8525_s26 = smov 384   ;;  %s8526_s20 = smov 24  }
 0xb03   : > { %8055 = dma.vmem_to_hbm [thread:$0]  (%p12864_p0), %s12216_s9, 768, %s12214_s29, %s7781_s27, %s8525_s26, %s8525_s26, %s8526_s20  }
 0xb04 PF: > { %s12865_s13 = sld [smem:[#allocation16_spill]] }
 0xb05   : > { %s12866_s24 = sld [smem:[#allocation24_spill]] }
 0xb06   : > { %s12867_s15 = sld [smem:[#allocation19_spill]] }
 0xb0a   : > { %s7810_s12 = sand.u32 1, %s12865_s13  }
 0xb0b   : > { %p12868_p4 = scmp.ne.s32.totalorder %s12866_s24, 0  ;;  %s7811_s19 = scalar_lea.sflag [#allocation8], %s7810_s12 }
 0xb0c   : > { %p12869_p5 = scmp.ge.s32.totalorder %s12867_s15, 2 }
 0xb0e   : > { %p8069_p9 = pnand %p12869_p5, %p12868_p4 }
 0xb10   : > { %p8070_p10 = pneg %p8069_p9 }
 0xb12   : > { %8398 = dma.done.wait (%p8070_p10), %s7811_s19, 768  }
 0xb13   : > { %8400 = vsyncadd (%p8070_p10), %s7811_s19, 4294966528  ;;  %s12870_s30 = sld [smem:[#allocation21_spill]] }
 0xb14   : > { %s12871_s27 = sld [smem:[#allocation17_spill]] }
 0xb15   : > { %s12872_s28 = sld [smem:[#allocation18_spill]] }
 0xb16   : > { %s12873_s29 = sld [smem:[#allocation22_spill]] }
 0xb19   : > { %p22_p1 = scmp.ge.s32.totalorder %s12870_s30, 4  }
 0xb1b   :  { %24 = sbr.rel (!%p22_p1) target bundleno = 16 (0x10), region = 107 }
 0xb20   :  { %7816 = vsyncpa [#allocation7], 1 }
 0xb21   :  { %7818 = vsyncpa [#allocation7 + $0x1], 1 }
 0xb22   :  { %7819 = vsyncpa [#allocation10], 1 }
 0xb23   :  { %7820 = vsyncpa [#allocation8], 1 }
 0xb24   :  { %7822 = vsyncpa [#allocation8 + $0x1], 1 }

</bundles_post_ra>
